<compile_context>
chip_gen: v7x
topology: tpu7x:2x2x1
jax: 0.10.0
libtpu: 0.0.40
codegen_flags: <defaults>
</compile_context>

<pallas_src>
import functools
import math

import jax
import jax.numpy as jnp
from jax import lax
from jax.experimental import pallas as pl
from jax.experimental.pallas import tpu as pltpu


# ----------------------------------------------------------------------------
# Helpers
# ----------------------------------------------------------------------------
def _round_up(v, m):
    return ((v + m - 1) // m) * m


def _pick_tile(dim, desired, align):
    """Largest multiple of `align` that divides `dim` and is <= desired."""
    t = max(align, min(desired, dim) // align * align)
    while dim % t:
        t -= align
    return t


# ----------------------------------------------------------------------------
# Fused (X @ W + b) [+ ReLU] kernel: tiled over (M, N, K), K innermost.
# ----------------------------------------------------------------------------
def _matmul_bias_act_kernel(x_ref, w_ref, b_ref, o_ref, acc_ref, *, apply_relu):
    k = pl.program_id(2)

    @pl.when(k == 0)
    def _():
        acc_ref[...] = jnp.zeros_like(acc_ref)

    acc_ref[...] += jnp.dot(x_ref[...], w_ref[...],
                            preferred_element_type=jnp.float32)

    @pl.when(k == pl.num_programs(2) - 1)
    def _():
        out = acc_ref[...] + b_ref[...]
        if apply_relu:
            out = jnp.maximum(out, 0.0)
        o_ref[...] = out.astype(o_ref.dtype)


def matmul_bias_act(x, w, b, *, relu, tm=512, tn=512, tk=512):
    """y = relu?(x @ w + b).  x:(M,K), w:(K,N), b:(N,) -> (M,N) float32."""
    M, K = x.shape
    K2, N = w.shape
    assert K == K2 and b.shape == (N,)

    # Pad to TPU-friendly (8, 128)-aligned shapes; zero K-padding is exact.
    Mp, Kp, Np = _round_up(M, 8), _round_up(K, 128), _round_up(N, 128)
    tm = _pick_tile(Mp, tm, 8)
    tn = _pick_tile(Np, tn, 128)
    tk = _pick_tile(Kp, tk, 128)

    xp = jnp.pad(x.astype(jnp.float32), ((0, Mp - M), (0, Kp - K)))
    wp = jnp.pad(w.astype(jnp.float32), ((0, Kp - K), (0, Np - N)))
    bp = jnp.pad(b.astype(jnp.float32), (0, Np - N)).reshape(1, Np)

    grid = (Mp // tm, Np // tn, Kp // tk)

    out = pl.pallas_call(
        functools.partial(_matmul_bias_act_kernel, apply_relu=relu),
        out_shape=jax.ShapeDtypeStruct((Mp, Np), jnp.float32),
        grid_spec=pltpu.PrefetchScalarGridSpec(
            num_scalar_prefetch=0,
            grid=grid,
            in_specs=[
                pl.BlockSpec((tm, tk), lambda i, j, k: (i, k)),
                pl.BlockSpec((tk, tn), lambda i, j, k: (k, j)),
                pl.BlockSpec((1, tn), lambda i, j, k: (0, j)),
            ],
            out_specs=pl.BlockSpec((tm, tn), lambda i, j, k: (i, j)),
            scratch_shapes=[pltpu.VMEM((tm, tn), jnp.float32)],
        ),
        compiler_params=pltpu.CompilerParams(
            dimension_semantics=("parallel", "parallel", "arbitrary")),
    )(xp, wp, bp)

    return out[:M, :N]


# ----------------------------------------------------------------------------
# Fused MLP head kernel:
#   h   = relu(x @ Wfc + bfc)          (K reduction, acc in VMEM)
#   out = h @ Wheads + bheads          (epilogue; Wheads = [mu_w | lv_w])
# Single pallas_call; h never touches HBM.
# ----------------------------------------------------------------------------
def _mlp_head_kernel(x_ref, wfc_ref, bfc_ref, wh_ref, bh_ref, o_ref, acc_ref):
    k = pl.program_id(0)

    @pl.when(k == 0)
    def _():
        acc_ref[...] = jnp.zeros_like(acc_ref)

    acc_ref[...] += jnp.dot(x_ref[...], wfc_ref[...],
                            preferred_element_type=jnp.float32)

    @pl.when(k == pl.num_programs(0) - 1)
    def _():
        h = jnp.maximum(acc_ref[...] + bfc_ref[...], 0.0)
        o_ref[...] = (jnp.dot(h, wh_ref[...], preferred_element_type=jnp.float32)
                      + bh_ref[...]).astype(o_ref.dtype)


def mlp_head(x, wfc, bfc, wh, bh, *, tk=512):
    """out = relu(x @ wfc + bfc) @ wh + bh.
    x:(M,K), wfc:(K,L), bfc:(L,), wh:(L,N), bh:(N,) -> (M,N) float32."""
    M, K = x.shape
    K2, L = wfc.shape
    L2, N = wh.shape
    assert K == K2 and L == L2 and bfc.shape == (L,) and bh.shape == (N,)

    Mp = _round_up(M, 8)
    Kp = _round_up(K, 128)
    Lp = _round_up(L, 128)
    Np = _round_up(N, 128)
    tk = _pick_tile(Kp, tk, 128)

    xp = jnp.pad(x.astype(jnp.float32), ((0, Mp - M), (0, Kp - K)))
    wfcp = jnp.pad(wfc.astype(jnp.float32), ((0, Kp - K), (0, Lp - L)))
    bfcp = jnp.pad(bfc.astype(jnp.float32), (0, Lp - L)).reshape(1, Lp)
    whp = jnp.pad(wh.astype(jnp.float32), ((0, Lp - L), (0, Np - N)))
    bhp = jnp.pad(bh.astype(jnp.float32), (0, Np - N)).reshape(1, Np)

    out = pl.pallas_call(
        _mlp_head_kernel,
        out_shape=jax.ShapeDtypeStruct((Mp, Np), jnp.float32),
        grid_spec=pltpu.PrefetchScalarGridSpec(
            num_scalar_prefetch=0,
            grid=(Kp // tk,),
            in_specs=[
                pl.BlockSpec((Mp, tk), lambda k: (0, k)),
                pl.BlockSpec((tk, Lp), lambda k: (k, 0)),
                pl.BlockSpec((1, Lp), lambda k: (0, 0)),
                pl.BlockSpec((Lp, Np), lambda k: (0, 0)),
                pl.BlockSpec((1, Np), lambda k: (0, 0)),
            ],
            out_specs=pl.BlockSpec((Mp, Np), lambda k: (0, 0)),
            scratch_shapes=[pltpu.VMEM((Mp, Lp), jnp.float32)],
        ),
        compiler_params=pltpu.CompilerParams(
            dimension_semantics=("arbitrary",)),
    )(xp, wfcp, bfcp, whp, bhp)

    return out[:M, :N]


# ----------------------------------------------------------------------------
# Conv2d(kernel=3, stride=2, padding=1) + ReLU via im2col + fused matmul kernel.
# ----------------------------------------------------------------------------
def conv3x3_s2_p1_relu(x_nhwc, w_oihw, b):
    """x:(B,H,W,Cin) NHWC, w:(Cout,Cin,3,3) (PyTorch OIHW), b:(Cout,)."""
    B, H, W, Cin = x_nhwc.shape
    Cout = w_oihw.shape[0]
    Ho, Wo = (H + 1) // 2, (W + 1) // 2

    xp = jnp.pad(x_nhwc, ((0, 0), (1, 1), (1, 1), (0, 0)))
    # im2col with strided slices (layout glue); K ordering is (kh, kw, cin).
    cols = []
    for kh in range(3):
        for kw in range(3):
            cols.append(xp[:, kh:kh + 2 * Ho - 1:2, kw:kw + 2 * Wo - 1:2, :])
    patches = jnp.stack(cols, axis=3).reshape(B * Ho * Wo, 9 * Cin)

    # Match (kh, kw, cin) ordering: OIHW -> (kh, kw, cin, cout) -> (9*Cin, Cout)
    w_mat = jnp.transpose(w_oihw, (2, 3, 1, 0)).reshape(9 * Cin, Cout)

    y = matmul_bias_act(patches, w_mat, b, relu=True)
    return y.reshape(B, Ho, Wo, Cout)


# ----------------------------------------------------------------------------
# Encoder1 forward (Pallas path).
# ----------------------------------------------------------------------------
def encoder1_forward(x_nchw, params):
    B = x_nchw.shape[0]
    h = jnp.transpose(x_nchw, (0, 2, 3, 1))  # NHWC: channels on the lane axis
    for w, b in params["convs"]:
        h = conv3x3_s2_p1_relu(h, w, b)
    # PyTorch Flatten (x.view(B, -1)) on a contiguous NCHW tensor:
    # zero-cost metadata reshape (+ tiny layout transpose) -- no copy kernel.
    h = jnp.transpose(h, (0, 3, 1, 2)).reshape(B, -1)  # (B, 2048)

    # Pack the two heads side-by-side along N and fuse fc+ReLU+heads in one call.
    L = params["fc_b"].shape[0]
    w_heads = jnp.concatenate([params["mu_w"].T, params["lv_w"].T], axis=1)  # (L, 2L)
    b_heads = jnp.concatenate([params["mu_b"], params["lv_b"]])              # (2L,)
    out = mlp_head(h, params["fc_w"].T, params["fc_b"], w_heads, b_heads)
    mu, logvar = out[:, :L], out[:, L:]
    return mu, logvar


# ----------------------------------------------------------------------------
# Pure-JAX reference (mirrors the PyTorch module exactly) for verification.
# ----------------------------------------------------------------------------
def encoder1_reference(x, params):
    h = x
    for w, b in params["convs"]:
        h = lax.conv_general_dilated(
            h, w, window_strides=(2, 2), padding=((1, 1), (1, 1)),
            dimension_numbers=("NCHW", "OIHW", "NCHW"),
            precision=lax.Precision.HIGHEST)
        h = jnp.maximum(h + b[None, :, None, None], 0.0)
    h = h.reshape(h.shape[0], -1)
    h = jnp.maximum(
        jnp.dot(h, params["fc_w"].T, precision=lax.Precision.HIGHEST)
        + params["fc_b"], 0.0)
    mu = jnp.dot(h, params["mu_w"].T, precision=lax.Precision.HIGHEST) + params["mu_b"]
    lv = jnp.dot(h, params["lv_w"].T, precision=lax.Precision.HIGHEST) + params["lv_b"]
    return mu, lv


def init_params(key, latent_dim):
    conv_specs = [(3, 64), (64, 128), (128, 256), (256, 512), (512, 512)]
    params = {"convs": []}
    for cin, cout in conv_specs:
        key, k1, k2 = jax.random.split(key, 3)
        fan_in = cin * 9
        w = jax.random.normal(k1, (cout, cin, 3, 3), jnp.float32) * math.sqrt(2.0 / fan_in)
        b = jax.random.normal(k2, (cout,), jnp.float32) * 0.01
        params["convs"].append((w, b))
    key, k1, k2, k3, k4, k5, k6 = jax.random.split(key, 7)
    params["fc_w"] = jax.random.normal(k1, (latent_dim, 2048), jnp.float32) * math.sqrt(2.0 / 2048)
    params["fc_b"] = jax.random.normal(k2, (latent_dim,), jnp.float32) * 0.01
    params["mu_w"] = jax.random.normal(k3, (latent_dim, latent_dim), jnp.float32) * math.sqrt(1.0 / latent_dim)
    params["mu_b"] = jax.random.normal(k4, (latent_dim,), jnp.float32) * 0.01
    params["lv_w"] = jax.random.normal(k5, (latent_dim, latent_dim), jnp.float32) * math.sqrt(1.0 / latent_dim)
    params["lv_b"] = jax.random.normal(k6, (latent_dim,), jnp.float32) * 0.01
    return params


if __name__ == "__main__":
    latent_dim = 128
    key = jax.random.PRNGKey(0)
    key, xkey = jax.random.split(key)
    # Spatial size 64x64 is implied by the module: 5 stride-2 convs -> 2x2x512 = 2048
    # features feeding nn.Linear(2048, latent_dim). Batch kept small (2).
    x = jax.random.normal(xkey, (2, 3, 64, 64), dtype=jnp.float32)
    params = init_params(key, latent_dim)

    fwd = jax.jit(encoder1_forward)
    mu, logvar = fwd(x, params)
    (mu, logvar) = jax.block_until_ready((mu, logvar))

    mu_ref, lv_ref = encoder1_reference(x, params)
    assert mu.shape == (2, latent_dim) and logvar.shape == (2, latent_dim)
    assert jnp.allclose(mu, mu_ref, rtol=2e-2, atol=2e-2), (
        f"mu mismatch, max abs err {jnp.max(jnp.abs(mu - mu_ref))}")
    assert jnp.allclose(logvar, lv_ref, rtol=2e-2, atol=2e-2), (
        f"logvar mismatch, max abs err {jnp.max(jnp.abs(logvar - lv_ref))}")

    print("KERNEL_OK")
</pallas_src>

<mosaic_0001>
module attributes {stable_mosaic.version = 11 : i64} {
  func.func @_matmul_bias_act_kernel(%arg0: i32, %arg1: i32, %arg2: i32, %arg3: memref<512x128xf32, #tpu.memory_space<vmem>>, %arg4: memref<128x128xf32, #tpu.memory_space<vmem>>, %arg5: memref<1x128xf32, #tpu.memory_space<vmem>>, %arg6: memref<512x128xf32, #tpu.memory_space<vmem>>, %arg7: memref<512x128xf32, #tpu.memory_space<vmem>>) attributes {dimension_semantics = [#tpu.dimension_semantics<parallel>, #tpu.dimension_semantics<parallel>, #tpu.dimension_semantics<arbitrary>], iteration_bounds = array<i64: 4, 1, 1>, scalar_prefetch = 0 : i64, scratch_operands = 1 : i64, tpu.core_type = #tpu.core_type<tc>, window_params = [{transform_indices = @transform_0, window_bounds = array<i64: 512, 128>}, {transform_indices = @transform_1, window_bounds = array<i64: 128, 128>}, {transform_indices = @transform_2, window_bounds = array<i64: 1, 128>}, {transform_indices = @transform_3, window_bounds = array<i64: 512, 128>}]} {
    %c0_i32 = arith.constant 0 : i32
    %0 = arith.cmpi eq, %arg2, %c0_i32 : i32
    %1 = arith.extui %0 : i1 to i32
    %c0_i32_0 = arith.constant 0 : i32
    %2 = arith.cmpi ne, %1, %c0_i32_0 : i32
    scf.if %2 {
      %cst_10 = arith.constant 0.000000e+00 : f32
      %12 = vector.broadcast %cst_10 : f32 to vector<512x128xf32>
      %c0_11 = arith.constant 0 : index
      %c0_12 = arith.constant 0 : index
      %13 = vector.load %arg7[%c0_11, %c0_12] : memref<512x128xf32, #tpu.memory_space<vmem>>, vector<512x128xf32>
      tpu.vector_store %arg7[%c0_11, %c0_12], %12 {strides = array<i32>} : memref<512x128xf32, #tpu.memory_space<vmem>>, vector<512x128xf32>,
    } else {
    }
    %c0 = arith.constant 0 : index
    %c0_1 = arith.constant 0 : index
    %3 = vector.load %arg7[%c0, %c0_1] : memref<512x128xf32, #tpu.memory_space<vmem>>, vector<512x128xf32>
    %c0_2 = arith.constant 0 : index
    %c0_3 = arith.constant 0 : index
    %4 = vector.load %arg3[%c0_2, %c0_3] : memref<512x128xf32, #tpu.memory_space<vmem>>, vector<512x128xf32>
    %c0_4 = arith.constant 0 : index
    %c0_5 = arith.constant 0 : index
    %5 = vector.load %arg4[%c0_4, %c0_5] : memref<128x128xf32, #tpu.memory_space<vmem>>, vector<128x128xf32>
    %cst = arith.constant dense<0.000000e+00> : vector<512x128xf32>
    %6 = tpu.matmul %4, %5, %cst {dimension_numbers = #tpu.dot_dimension_numbers<[1], [0], [0], [1], [0, 0, 1, 1], [], []>} : vector<512x128xf32>, vector<128x128xf32>, vector<512x128xf32> -> vector<512x128xf32>
    %7 = arith.addf %3, %6 : vector<512x128xf32>
    %c0_6 = arith.constant 0 : index
    %c0_7 = arith.constant 0 : index
    %8 = vector.load %arg7[%c0_6, %c0_7] : memref<512x128xf32, #tpu.memory_space<vmem>>, vector<512x128xf32>
    tpu.vector_store %arg7[%c0_6, %c0_7], %7 {strides = array<i32>} : memref<512x128xf32, #tpu.memory_space<vmem>>, vector<512x128xf32>,
    %c0_i32_8 = arith.constant 0 : i32
    %9 = arith.cmpi eq, %arg2, %c0_i32_8 : i32
    %10 = arith.extui %9 : i1 to i32
    %c0_i32_9 = arith.constant 0 : i32
    %11 = arith.cmpi ne, %10, %c0_i32_9 : i32
    scf.if %11 {
      %c0_10 = arith.constant 0 : index
      %c0_11 = arith.constant 0 : index
      %12 = vector.load %arg7[%c0_10, %c0_11] : memref<512x128xf32, #tpu.memory_space<vmem>>, vector<512x128xf32>
      %c0_12 = arith.constant 0 : index
      %c0_13 = arith.constant 0 : index
      %13 = vector.load %arg5[%c0_12, %c0_13] : memref<1x128xf32, #tpu.memory_space<vmem>>, vector<1x128xf32>
      %14 = vector.broadcast %13 : vector<1x128xf32> to vector<512x128xf32>
      %15 = arith.addf %12, %14 : vector<512x128xf32>
      %cst_14 = arith.constant 0.000000e+00 : f32
      %16 = vector.broadcast %cst_14 : f32 to vector<512x128xf32>
      %17 = arith.maximumf %15, %16 : vector<512x128xf32>
      %c0_15 = arith.constant 0 : index
      %c0_16 = arith.constant 0 : index
      %18 = vector.load %arg6[%c0_15, %c0_16] : memref<512x128xf32, #tpu.memory_space<vmem>>, vector<512x128xf32>
      tpu.vector_store %arg6[%c0_15, %c0_16], %17 {strides = array<i32>} : memref<512x128xf32, #tpu.memory_space<vmem>>, vector<512x128xf32>,
    } else {
    }
    return
  }
  func.func @transform_0(%arg0: i32, %arg1: i32, %arg2: i32) -> (i32, i32) {
    %c0_i32 = arith.constant 0 : i32
    return %arg0, %arg2 : i32, i32
  }
  func.func @transform_1(%arg0: i32, %arg1: i32, %arg2: i32) -> (i32, i32) {
    %c0_i32 = arith.constant 0 : i32
    return %arg2, %arg1 : i32, i32
  }
  func.func @transform_2(%arg0: i32, %arg1: i32, %arg2: i32) -> (i32, i32) {
    %c0_i32 = arith.constant 0 : i32
    %c0_i32_0 = arith.constant 0 : i32
    return %c0_i32, %arg1 : i32, i32
  }
  func.func @transform_3(%arg0: i32, %arg1: i32, %arg2: i32) -> (i32, i32) {
    %c0_i32 = arith.constant 0 : i32
    return %arg0, %arg1 : i32, i32
  }
}

module attributes {stable_mosaic.version = 11 : i64} {
  func.func @_matmul_bias_act_kernel(%arg0: i32, %arg1: i32, %arg2: i32, %arg3: memref<512x128xf32, #tpu.memory_space<vmem>>, %arg4: memref<128x128xf32, #tpu.memory_space<vmem>>, %arg5: memref<1x128xf32, #tpu.memory_space<vmem>>, %arg6: memref<512x128xf32, #tpu.memory_space<vmem>>, %arg7: memref<512x128xf32, #tpu.memory_space<vmem>>) attributes {dimension_semantics = [#tpu.dimension_semantics<parallel>, #tpu.dimension_semantics<parallel>, #tpu.dimension_semantics<arbitrary>], iteration_bounds = array<i64: 1, 1, 5>, scalar_prefetch = 0 : i64, scratch_operands = 1 : i64, tpu.core_type = #tpu.core_type<tc>, window_params = [{transform_indices = @transform_0, window_bounds = array<i64: 512, 128>}, {transform_indices = @transform_1, window_bounds = array<i64: 128, 128>}, {transform_indices = @transform_2, window_bounds = array<i64: 1, 128>}, {transform_indices = @transform_3, window_bounds = array<i64: 512, 128>}]} {
    %c0_i32 = arith.constant 0 : i32
    %0 = arith.cmpi eq, %arg2, %c0_i32 : i32
    %1 = arith.extui %0 : i1 to i32
    %c0_i32_0 = arith.constant 0 : i32
    %2 = arith.cmpi ne, %1, %c0_i32_0 : i32
    scf.if %2 {
      %cst_9 = arith.constant 0.000000e+00 : f32
      %12 = vector.broadcast %cst_9 : f32 to vector<512x128xf32>
      %c0_10 = arith.constant 0 : index
      %c0_11 = arith.constant 0 : index
      %13 = vector.load %arg7[%c0_10, %c0_11] : memref<512x128xf32, #tpu.memory_space<vmem>>, vector<512x128xf32>
      tpu.vector_store %arg7[%c0_10, %c0_11], %12 {strides = array<i32>} : memref<512x128xf32, #tpu.memory_space<vmem>>, vector<512x128xf32>,
    } else {
    }
    %c0 = arith.constant 0 : index
    %c0_1 = arith.constant 0 : index
    %3 = vector.load %arg7[%c0, %c0_1] : memref<512x128xf32, #tpu.memory_space<vmem>>, vector<512x128xf32>
    %c0_2 = arith.constant 0 : index
    %c0_3 = arith.constant 0 : index
    %4 = vector.load %arg3[%c0_2, %c0_3] : memref<512x128xf32, #tpu.memory_space<vmem>>, vector<512x128xf32>
    %c0_4 = arith.constant 0 : index
    %c0_5 = arith.constant 0 : index
    %5 = vector.load %arg4[%c0_4, %c0_5] : memref<128x128xf32, #tpu.memory_space<vmem>>, vector<128x128xf32>
    %cst = arith.constant dense<0.000000e+00> : vector<512x128xf32>
    %6 = tpu.matmul %4, %5, %cst {dimension_numbers = #tpu.dot_dimension_numbers<[1], [0], [0], [1], [0, 0, 1, 1], [], []>} : vector<512x128xf32>, vector<128x128xf32>, vector<512x128xf32> -> vector<512x128xf32>
    %7 = arith.addf %3, %6 : vector<512x128xf32>
    %c0_6 = arith.constant 0 : index
    %c0_7 = arith.constant 0 : index
    %8 = vector.load %arg7[%c0_6, %c0_7] : memref<512x128xf32, #tpu.memory_space<vmem>>, vector<512x128xf32>
    tpu.vector_store %arg7[%c0_6, %c0_7], %7 {strides = array<i32>} : memref<512x128xf32, #tpu.memory_space<vmem>>, vector<512x128xf32>,
    %c4_i32 = arith.constant 4 : i32
    %9 = arith.cmpi eq, %arg2, %c4_i32 : i32
    %10 = arith.extui %9 : i1 to i32
    %c0_i32_8 = arith.constant 0 : i32
    %11 = arith.cmpi ne, %10, %c0_i32_8 : i32
    scf.if %11 {
      %c0_9 = arith.constant 0 : index
      %c0_10 = arith.constant 0 : index
      %12 = vector.load %arg7[%c0_9, %c0_10] : memref<512x128xf32, #tpu.memory_space<vmem>>, vector<512x128xf32>
      %c0_11 = arith.constant 0 : index
      %c0_12 = arith.constant 0 : index
      %13 = vector.load %arg5[%c0_11, %c0_12] : memref<1x128xf32, #tpu.memory_space<vmem>>, vector<1x128xf32>
      %14 = vector.broadcast %13 : vector<1x128xf32> to vector<512x128xf32>
      %15 = arith.addf %12, %14 : vector<512x128xf32>
      %cst_13 = arith.constant 0.000000e+00 : f32
      %16 = vector.broadcast %cst_13 : f32 to vector<512x128xf32>
      %17 = arith.maximumf %15, %16 : vector<512x128xf32>
      %c0_14 = arith.constant 0 : index
      %c0_15 = arith.constant 0 : index
      %18 = vector.load %arg6[%c0_14, %c0_15] : memref<512x128xf32, #tpu.memory_space<vmem>>, vector<512x128xf32>
      tpu.vector_store %arg6[%c0_14, %c0_15], %17 {strides = array<i32>} : memref<512x128xf32, #tpu.memory_space<vmem>>, vector<512x128xf32>,
    } else {
    }
    return
  }
  func.func @transform_0(%arg0: i32, %arg1: i32, %arg2: i32) -> (i32, i32) {
    %c0_i32 = arith.constant 0 : i32
    return %arg0, %arg2 : i32, i32
  }
  func.func @transform_1(%arg0: i32, %arg1: i32, %arg2: i32) -> (i32, i32) {
    %c0_i32 = arith.constant 0 : i32
    return %arg2, %arg1 : i32, i32
  }
  func.func @transform_2(%arg0: i32, %arg1: i32, %arg2: i32) -> (i32, i32) {
    %c0_i32 = arith.constant 0 : i32
    %c0_i32_0 = arith.constant 0 : i32
    return %c0_i32, %arg1 : i32, i32
  }
  func.func @transform_3(%arg0: i32, %arg1: i32, %arg2: i32) -> (i32, i32) {
    %c0_i32 = arith.constant 0 : i32
    return %arg0, %arg1 : i32, i32
  }
}

module attributes {stable_mosaic.version = 11 : i64} {
  func.func @_matmul_bias_act_kernel(%arg0: i32, %arg1: i32, %arg2: i32, %arg3: memref<128x384xf32, #tpu.memory_space<vmem>>, %arg4: memref<384x256xf32, #tpu.memory_space<vmem>>, %arg5: memref<1x256xf32, #tpu.memory_space<vmem>>, %arg6: memref<128x256xf32, #tpu.memory_space<vmem>>, %arg7: memref<128x256xf32, #tpu.memory_space<vmem>>) attributes {dimension_semantics = [#tpu.dimension_semantics<parallel>, #tpu.dimension_semantics<parallel>, #tpu.dimension_semantics<arbitrary>], iteration_bounds = array<i64: 1, 1, 3>, scalar_prefetch = 0 : i64, scratch_operands = 1 : i64, tpu.core_type = #tpu.core_type<tc>, window_params = [{transform_indices = @transform_0, window_bounds = array<i64: 128, 384>}, {transform_indices = @transform_1, window_bounds = array<i64: 384, 256>}, {transform_indices = @transform_2, window_bounds = array<i64: 1, 256>}, {transform_indices = @transform_3, window_bounds = array<i64: 128, 256>}]} {
    %c0_i32 = arith.constant 0 : i32
    %0 = arith.cmpi eq, %arg2, %c0_i32 : i32
    %1 = arith.extui %0 : i1 to i32
    %c0_i32_0 = arith.constant 0 : i32
    %2 = arith.cmpi ne, %1, %c0_i32_0 : i32
    scf.if %2 {
      %cst_9 = arith.constant 0.000000e+00 : f32
      %12 = vector.broadcast %cst_9 : f32 to vector<128x256xf32>
      %c0_10 = arith.constant 0 : index
      %c0_11 = arith.constant 0 : index
      %13 = vector.load %arg7[%c0_10, %c0_11] : memref<128x256xf32, #tpu.memory_space<vmem>>, vector<128x256xf32>
      tpu.vector_store %arg7[%c0_10, %c0_11], %12 {strides = array<i32>} : memref<128x256xf32, #tpu.memory_space<vmem>>, vector<128x256xf32>,
    } else {
    }
    %c0 = arith.constant 0 : index
    %c0_1 = arith.constant 0 : index
    %3 = vector.load %arg7[%c0, %c0_1] : memref<128x256xf32, #tpu.memory_space<vmem>>, vector<128x256xf32>
    %c0_2 = arith.constant 0 : index
    %c0_3 = arith.constant 0 : index
    %4 = vector.load %arg3[%c0_2, %c0_3] : memref<128x384xf32, #tpu.memory_space<vmem>>, vector<128x384xf32>
    %c0_4 = arith.constant 0 : index
    %c0_5 = arith.constant 0 : index
    %5 = vector.load %arg4[%c0_4, %c0_5] : memref<384x256xf32, #tpu.memory_space<vmem>>, vector<384x256xf32>
    %cst = arith.constant dense<0.000000e+00> : vector<128x256xf32>
    %6 = tpu.matmul %4, %5, %cst {dimension_numbers = #tpu.dot_dimension_numbers<[1], [0], [0], [1], [0, 0, 1, 1], [], []>} : vector<128x384xf32>, vector<384x256xf32>, vector<128x256xf32> -> vector<128x256xf32>
    %7 = arith.addf %3, %6 : vector<128x256xf32>
    %c0_6 = arith.constant 0 : index
    %c0_7 = arith.constant 0 : index
    %8 = vector.load %arg7[%c0_6, %c0_7] : memref<128x256xf32, #tpu.memory_space<vmem>>, vector<128x256xf32>
    tpu.vector_store %arg7[%c0_6, %c0_7], %7 {strides = array<i32>} : memref<128x256xf32, #tpu.memory_space<vmem>>, vector<128x256xf32>,
    %c2_i32 = arith.constant 2 : i32
    %9 = arith.cmpi eq, %arg2, %c2_i32 : i32
    %10 = arith.extui %9 : i1 to i32
    %c0_i32_8 = arith.constant 0 : i32
    %11 = arith.cmpi ne, %10, %c0_i32_8 : i32
    scf.if %11 {
      %c0_9 = arith.constant 0 : index
      %c0_10 = arith.constant 0 : index
      %12 = vector.load %arg7[%c0_9, %c0_10] : memref<128x256xf32, #tpu.memory_space<vmem>>, vector<128x256xf32>
      %c0_11 = arith.constant 0 : index
      %c0_12 = arith.constant 0 : index
      %13 = vector.load %arg5[%c0_11, %c0_12] : memref<1x256xf32, #tpu.memory_space<vmem>>, vector<1x256xf32>
      %14 = vector.broadcast %13 : vector<1x256xf32> to vector<128x256xf32>
      %15 = arith.addf %12, %14 : vector<128x256xf32>
      %cst_13 = arith.constant 0.000000e+00 : f32
      %16 = vector.broadcast %cst_13 : f32 to vector<128x256xf32>
      %17 = arith.maximumf %15, %16 : vector<128x256xf32>
      %c0_14 = arith.constant 0 : index
      %c0_15 = arith.constant 0 : index
      %18 = vector.load %arg6[%c0_14, %c0_15] : memref<128x256xf32, #tpu.memory_space<vmem>>, vector<128x256xf32>
      tpu.vector_store %arg6[%c0_14, %c0_15], %17 {strides = array<i32>} : memref<128x256xf32, #tpu.memory_space<vmem>>, vector<128x256xf32>,
    } else {
    }
    return
  }
  func.func @transform_0(%arg0: i32, %arg1: i32, %arg2: i32) -> (i32, i32) {
    %c0_i32 = arith.constant 0 : i32
    return %arg0, %arg2 : i32, i32
  }
  func.func @transform_1(%arg0: i32, %arg1: i32, %arg2: i32) -> (i32, i32) {
    %c0_i32 = arith.constant 0 : i32
    return %arg2, %arg1 : i32, i32
  }
  func.func @transform_2(%arg0: i32, %arg1: i32, %arg2: i32) -> (i32, i32) {
    %c0_i32 = arith.constant 0 : i32
    %c0_i32_0 = arith.constant 0 : i32
    return %c0_i32, %arg1 : i32, i32
  }
  func.func @transform_3(%arg0: i32, %arg1: i32, %arg2: i32) -> (i32, i32) {
    %c0_i32 = arith.constant 0 : i32
    return %arg0, %arg1 : i32, i32
  }
}

module attributes {stable_mosaic.version = 11 : i64} {
  func.func @_matmul_bias_act_kernel(%arg0: i32, %arg1: i32, %arg2: i32, %arg3: memref<32x384xf32, #tpu.memory_space<vmem>>, %arg4: memref<384x512xf32, #tpu.memory_space<vmem>>, %arg5: memref<1x512xf32, #tpu.memory_space<vmem>>, %arg6: memref<32x512xf32, #tpu.memory_space<vmem>>, %arg7: memref<32x512xf32, #tpu.memory_space<vmem>>) attributes {dimension_semantics = [#tpu.dimension_semantics<parallel>, #tpu.dimension_semantics<parallel>, #tpu.dimension_semantics<arbitrary>], iteration_bounds = array<i64: 1, 1, 6>, scalar_prefetch = 0 : i64, scratch_operands = 1 : i64, tpu.core_type = #tpu.core_type<tc>, window_params = [{transform_indices = @transform_0, window_bounds = array<i64: 32, 384>}, {transform_indices = @transform_1, window_bounds = array<i64: 384, 512>}, {transform_indices = @transform_2, window_bounds = array<i64: 1, 512>}, {transform_indices = @transform_3, window_bounds = array<i64: 32, 512>}]} {
    %c0_i32 = arith.constant 0 : i32
    %0 = arith.cmpi eq, %arg2, %c0_i32 : i32
    %1 = arith.extui %0 : i1 to i32
    %c0_i32_0 = arith.constant 0 : i32
    %2 = arith.cmpi ne, %1, %c0_i32_0 : i32
    scf.if %2 {
      %cst_9 = arith.constant 0.000000e+00 : f32
      %12 = vector.broadcast %cst_9 : f32 to vector<32x512xf32>
      %c0_10 = arith.constant 0 : index
      %c0_11 = arith.constant 0 : index
      %13 = vector.load %arg7[%c0_10, %c0_11] : memref<32x512xf32, #tpu.memory_space<vmem>>, vector<32x512xf32>
      tpu.vector_store %arg7[%c0_10, %c0_11], %12 {strides = array<i32>} : memref<32x512xf32, #tpu.memory_space<vmem>>, vector<32x512xf32>,
    } else {
    }
    %c0 = arith.constant 0 : index
    %c0_1 = arith.constant 0 : index
    %3 = vector.load %arg7[%c0, %c0_1] : memref<32x512xf32, #tpu.memory_space<vmem>>, vector<32x512xf32>
    %c0_2 = arith.constant 0 : index
    %c0_3 = arith.constant 0 : index
    %4 = vector.load %arg3[%c0_2, %c0_3] : memref<32x384xf32, #tpu.memory_space<vmem>>, vector<32x384xf32>
    %c0_4 = arith.constant 0 : index
    %c0_5 = arith.constant 0 : index
    %5 = vector.load %arg4[%c0_4, %c0_5] : memref<384x512xf32, #tpu.memory_space<vmem>>, vector<384x512xf32>
    %cst = arith.constant dense<0.000000e+00> : vector<32x512xf32>
    %6 = tpu.matmul %4, %5, %cst {dimension_numbers = #tpu.dot_dimension_numbers<[1], [0], [0], [1], [0, 0, 1, 1], [], []>} : vector<32x384xf32>, vector<384x512xf32>, vector<32x512xf32> -> vector<32x512xf32>
    %7 = arith.addf %3, %6 : vector<32x512xf32>
    %c0_6 = arith.constant 0 : index
    %c0_7 = arith.constant 0 : index
    %8 = vector.load %arg7[%c0_6, %c0_7] : memref<32x512xf32, #tpu.memory_space<vmem>>, vector<32x512xf32>
    tpu.vector_store %arg7[%c0_6, %c0_7], %7 {strides = array<i32>} : memref<32x512xf32, #tpu.memory_space<vmem>>, vector<32x512xf32>,
    %c5_i32 = arith.constant 5 : i32
    %9 = arith.cmpi eq, %arg2, %c5_i32 : i32
    %10 = arith.extui %9 : i1 to i32
    %c0_i32_8 = arith.constant 0 : i32
    %11 = arith.cmpi ne, %10, %c0_i32_8 : i32
    scf.if %11 {
      %c0_9 = arith.constant 0 : index
      %c0_10 = arith.constant 0 : index
      %12 = vector.load %arg7[%c0_9, %c0_10] : memref<32x512xf32, #tpu.memory_space<vmem>>, vector<32x512xf32>
      %c0_11 = arith.constant 0 : index
      %c0_12 = arith.constant 0 : index
      %13 = vector.load %arg5[%c0_11, %c0_12] : memref<1x512xf32, #tpu.memory_space<vmem>>, vector<1x512xf32>
      %14 = vector.broadcast %13 : vector<1x512xf32> to vector<32x512xf32>
      %15 = arith.addf %12, %14 : vector<32x512xf32>
      %cst_13 = arith.constant 0.000000e+00 : f32
      %16 = vector.broadcast %cst_13 : f32 to vector<32x512xf32>
      %17 = arith.maximumf %15, %16 : vector<32x512xf32>
      %c0_14 = arith.constant 0 : index
      %c0_15 = arith.constant 0 : index
      %18 = vector.load %arg6[%c0_14, %c0_15] : memref<32x512xf32, #tpu.memory_space<vmem>>, vector<32x512xf32>
      tpu.vector_store %arg6[%c0_14, %c0_15], %17 {strides = array<i32>} : memref<32x512xf32, #tpu.memory_space<vmem>>, vector<32x512xf32>,
    } else {
    }
    return
  }
  func.func @transform_0(%arg0: i32, %arg1: i32, %arg2: i32) -> (i32, i32) {
    %c0_i32 = arith.constant 0 : i32
    return %arg0, %arg2 : i32, i32
  }
  func.func @transform_1(%arg0: i32, %arg1: i32, %arg2: i32) -> (i32, i32) {
    %c0_i32 = arith.constant 0 : i32
    return %arg2, %arg1 : i32, i32
  }
  func.func @transform_2(%arg0: i32, %arg1: i32, %arg2: i32) -> (i32, i32) {
    %c0_i32 = arith.constant 0 : i32
    %c0_i32_0 = arith.constant 0 : i32
    return %c0_i32, %arg1 : i32, i32
  }
  func.func @transform_3(%arg0: i32, %arg1: i32, %arg2: i32) -> (i32, i32) {
    %c0_i32 = arith.constant 0 : i32
    return %arg0, %arg1 : i32, i32
  }
}

module attributes {stable_mosaic.version = 11 : i64} {
  func.func @_matmul_bias_act_kernel(%arg0: i32, %arg1: i32, %arg2: i32, %arg3: memref<8x512xf32, #tpu.memory_space<vmem>>, %arg4: memref<512x512xf32, #tpu.memory_space<vmem>>, %arg5: memref<1x512xf32, #tpu.memory_space<vmem>>, %arg6: memref<8x512xf32, #tpu.memory_space<vmem>>, %arg7: memref<8x512xf32, #tpu.memory_space<vmem>>) attributes {dimension_semantics = [#tpu.dimension_semantics<parallel>, #tpu.dimension_semantics<parallel>, #tpu.dimension_semantics<arbitrary>], iteration_bounds = array<i64: 1, 1, 9>, scalar_prefetch = 0 : i64, scratch_operands = 1 : i64, tpu.core_type = #tpu.core_type<tc>, window_params = [{transform_indices = @transform_0, window_bounds = array<i64: 8, 512>}, {transform_indices = @transform_1, window_bounds = array<i64: 512, 512>}, {transform_indices = @transform_2, window_bounds = array<i64: 1, 512>}, {transform_indices = @transform_3, window_bounds = array<i64: 8, 512>}]} {
    %c0_i32 = arith.constant 0 : i32
    %0 = arith.cmpi eq, %arg2, %c0_i32 : i32
    %1 = arith.extui %0 : i1 to i32
    %c0_i32_0 = arith.constant 0 : i32
    %2 = arith.cmpi ne, %1, %c0_i32_0 : i32
    scf.if %2 {
      %cst_9 = arith.constant 0.000000e+00 : f32
      %12 = vector.broadcast %cst_9 : f32 to vector<8x512xf32>
      %c0_10 = arith.constant 0 : index
      %c0_11 = arith.constant 0 : index
      %13 = vector.load %arg7[%c0_10, %c0_11] : memref<8x512xf32, #tpu.memory_space<vmem>>, vector<8x512xf32>
      tpu.vector_store %arg7[%c0_10, %c0_11], %12 {strides = array<i32>} : memref<8x512xf32, #tpu.memory_space<vmem>>, vector<8x512xf32>,
    } else {
    }
    %c0 = arith.constant 0 : index
    %c0_1 = arith.constant 0 : index
    %3 = vector.load %arg7[%c0, %c0_1] : memref<8x512xf32, #tpu.memory_space<vmem>>, vector<8x512xf32>
    %c0_2 = arith.constant 0 : index
    %c0_3 = arith.constant 0 : index
    %4 = vector.load %arg3[%c0_2, %c0_3] : memref<8x512xf32, #tpu.memory_space<vmem>>, vector<8x512xf32>
    %c0_4 = arith.constant 0 : index
    %c0_5 = arith.constant 0 : index
    %5 = vector.load %arg4[%c0_4, %c0_5] : memref<512x512xf32, #tpu.memory_space<vmem>>, vector<512x512xf32>
    %cst = arith.constant dense<0.000000e+00> : vector<8x512xf32>
    %6 = tpu.matmul %4, %5, %cst {dimension_numbers = #tpu.dot_dimension_numbers<[1], [0], [0], [1], [0, 0, 1, 1], [], []>} : vector<8x512xf32>, vector<512x512xf32>, vector<8x512xf32> -> vector<8x512xf32>
    %7 = arith.addf %3, %6 : vector<8x512xf32>
    %c0_6 = arith.constant 0 : index
    %c0_7 = arith.constant 0 : index
    %8 = vector.load %arg7[%c0_6, %c0_7] : memref<8x512xf32, #tpu.memory_space<vmem>>, vector<8x512xf32>
    tpu.vector_store %arg7[%c0_6, %c0_7], %7 {strides = array<i32>} : memref<8x512xf32, #tpu.memory_space<vmem>>, vector<8x512xf32>,
    %c8_i32 = arith.constant 8 : i32
    %9 = arith.cmpi eq, %arg2, %c8_i32 : i32
    %10 = arith.extui %9 : i1 to i32
    %c0_i32_8 = arith.constant 0 : i32
    %11 = arith.cmpi ne, %10, %c0_i32_8 : i32
    scf.if %11 {
      %c0_9 = arith.constant 0 : index
      %c0_10 = arith.constant 0 : index
      %12 = vector.load %arg7[%c0_9, %c0_10] : memref<8x512xf32, #tpu.memory_space<vmem>>, vector<8x512xf32>
      %c0_11 = arith.constant 0 : index
      %c0_12 = arith.constant 0 : index
      %13 = vector.load %arg5[%c0_11, %c0_12] : memref<1x512xf32, #tpu.memory_space<vmem>>, vector<1x512xf32>
      %14 = vector.broadcast %13 : vector<1x512xf32> to vector<8x512xf32>
      %15 = arith.addf %12, %14 : vector<8x512xf32>
      %cst_13 = arith.constant 0.000000e+00 : f32
      %16 = vector.broadcast %cst_13 : f32 to vector<8x512xf32>
      %17 = arith.maximumf %15, %16 : vector<8x512xf32>
      %c0_14 = arith.constant 0 : index
      %c0_15 = arith.constant 0 : index
      %18 = vector.load %arg6[%c0_14, %c0_15] : memref<8x512xf32, #tpu.memory_space<vmem>>, vector<8x512xf32>
      tpu.vector_store %arg6[%c0_14, %c0_15], %17 {strides = array<i32>} : memref<8x512xf32, #tpu.memory_space<vmem>>, vector<8x512xf32>,
    } else {
    }
    return
  }
  func.func @transform_0(%arg0: i32, %arg1: i32, %arg2: i32) -> (i32, i32) {
    %c0_i32 = arith.constant 0 : i32
    return %arg0, %arg2 : i32, i32
  }
  func.func @transform_1(%arg0: i32, %arg1: i32, %arg2: i32) -> (i32, i32) {
    %c0_i32 = arith.constant 0 : i32
    return %arg2, %arg1 : i32, i32
  }
  func.func @transform_2(%arg0: i32, %arg1: i32, %arg2: i32) -> (i32, i32) {
    %c0_i32 = arith.constant 0 : i32
    %c0_i32_0 = arith.constant 0 : i32
    return %c0_i32, %arg1 : i32, i32
  }
  func.func @transform_3(%arg0: i32, %arg1: i32, %arg2: i32) -> (i32, i32) {
    %c0_i32 = arith.constant 0 : i32
    return %arg0, %arg1 : i32, i32
  }
}

module attributes {stable_mosaic.version = 11 : i64} {
  func.func @_mlp_head_kernel(%arg0: i32, %arg1: memref<8x512xf32, #tpu.memory_space<vmem>>, %arg2: memref<512x128xf32, #tpu.memory_space<vmem>>, %arg3: memref<1x128xf32, #tpu.memory_space<vmem>>, %arg4: memref<128x256xf32, #tpu.memory_space<vmem>>, %arg5: memref<1x256xf32, #tpu.memory_space<vmem>>, %arg6: memref<8x256xf32, #tpu.memory_space<vmem>>, %arg7: memref<8x128xf32, #tpu.memory_space<vmem>>) attributes {dimension_semantics = [#tpu.dimension_semantics<arbitrary>], iteration_bounds = array<i64: 4>, scalar_prefetch = 0 : i64, scratch_operands = 1 : i64, tpu.core_type = #tpu.core_type<tc>, window_params = [{transform_indices = @transform_0, window_bounds = array<i64: 8, 512>}, {transform_indices = @transform_1, window_bounds = array<i64: 512, 128>}, {pipeline_mode = #tpu.pipeline_mode<synchronous>, transform_indices = @transform_2, window_bounds = array<i64: 1, 128>}, {pipeline_mode = #tpu.pipeline_mode<synchronous>, transform_indices = @transform_3, window_bounds = array<i64: 128, 256>}, {pipeline_mode = #tpu.pipeline_mode<synchronous>, transform_indices = @transform_4, window_bounds = array<i64: 1, 256>}, {pipeline_mode = #tpu.pipeline_mode<synchronous>, transform_indices = @transform_5, window_bounds = array<i64: 8, 256>}]} {
    %c0_i32 = arith.constant 0 : i32
    %0 = arith.cmpi eq, %arg0, %c0_i32 : i32
    %1 = arith.extui %0 : i1 to i32
    %c0_i32_0 = arith.constant 0 : i32
    %2 = arith.cmpi ne, %1, %c0_i32_0 : i32
    scf.if %2 {
      %cst_9 = arith.constant 0.000000e+00 : f32
      %12 = vector.broadcast %cst_9 : f32 to vector<8x128xf32>
      %c0_10 = arith.constant 0 : index
      %c0_11 = arith.constant 0 : index
      %13 = vector.load %arg7[%c0_10, %c0_11] : memref<8x128xf32, #tpu.memory_space<vmem>>, vector<8x128xf32>
      tpu.vector_store %arg7[%c0_10, %c0_11], %12 {strides = array<i32>} : memref<8x128xf32, #tpu.memory_space<vmem>>, vector<8x128xf32>,
    } else {
    }
    %c0 = arith.constant 0 : index
    %c0_1 = arith.constant 0 : index
    %3 = vector.load %arg7[%c0, %c0_1] : memref<8x128xf32, #tpu.memory_space<vmem>>, vector<8x128xf32>
    %c0_2 = arith.constant 0 : index
    %c0_3 = arith.constant 0 : index
    %4 = vector.load %arg1[%c0_2, %c0_3] : memref<8x512xf32, #tpu.memory_space<vmem>>, vector<8x512xf32>
    %c0_4 = arith.constant 0 : index
    %c0_5 = arith.constant 0 : index
    %5 = vector.load %arg2[%c0_4, %c0_5] : memref<512x128xf32, #tpu.memory_space<vmem>>, vector<512x128xf32>
    %cst = arith.constant dense<0.000000e+00> : vector<8x128xf32>
    %6 = tpu.matmul %4, %5, %cst {dimension_numbers = #tpu.dot_dimension_numbers<[1], [0], [0], [1], [0, 0, 1, 1], [], []>} : vector<8x512xf32>, vector<512x128xf32>, vector<8x128xf32> -> vector<8x128xf32>
    %7 = arith.addf %3, %6 : vector<8x128xf32>
    %c0_6 = arith.constant 0 : index
    %c0_7 = arith.constant 0 : index
    %8 = vector.load %arg7[%c0_6, %c0_7] : memref<8x128xf32, #tpu.memory_space<vmem>>, vector<8x128xf32>
    tpu.vector_store %arg7[%c0_6, %c0_7], %7 {strides = array<i32>} : memref<8x128xf32, #tpu.memory_space<vmem>>, vector<8x128xf32>,
    %c3_i32 = arith.constant 3 : i32
    %9 = arith.cmpi eq, %arg0, %c3_i32 : i32
    %10 = arith.extui %9 : i1 to i32
    %c0_i32_8 = arith.constant 0 : i32
    %11 = arith.cmpi ne, %10, %c0_i32_8 : i32
    scf.if %11 {
      %c0_9 = arith.constant 0 : index
      %c0_10 = arith.constant 0 : index
      %12 = vector.load %arg7[%c0_9, %c0_10] : memref<8x128xf32, #tpu.memory_space<vmem>>, vector<8x128xf32>
      %c0_11 = arith.constant 0 : index
      %c0_12 = arith.constant 0 : index
      %13 = vector.load %arg3[%c0_11, %c0_12] : memref<1x128xf32, #tpu.memory_space<vmem>>, vector<1x128xf32>
      %14 = vector.broadcast %13 : vector<1x128xf32> to vector<8x128xf32>
      %15 = arith.addf %12, %14 : vector<8x128xf32>
      %cst_13 = arith.constant 0.000000e+00 : f32
      %16 = vector.broadcast %cst_13 : f32 to vector<8x128xf32>
      %17 = arith.maximumf %15, %16 : vector<8x128xf32>
      %c0_14 = arith.constant 0 : index
      %c0_15 = arith.constant 0 : index
      %18 = vector.load %arg4[%c0_14, %c0_15] : memref<128x256xf32, #tpu.memory_space<vmem>>, vector<128x256xf32>
      %cst_16 = arith.constant dense<0.000000e+00> : vector<8x256xf32>
      %19 = tpu.matmul %17, %18, %cst_16 {dimension_numbers = #tpu.dot_dimension_numbers<[1], [0], [0], [1], [0, 0, 1, 1], [], []>} : vector<8x128xf32>, vector<128x256xf32>, vector<8x256xf32> -> vector<8x256xf32>
      %c0_17 = arith.constant 0 : index
      %c0_18 = arith.constant 0 : index
      %20 = vector.load %arg5[%c0_17, %c0_18] : memref<1x256xf32, #tpu.memory_space<vmem>>, vector<1x256xf32>
      %21 = vector.broadcast %20 : vector<1x256xf32> to vector<8x256xf32>
      %22 = arith.addf %19, %21 : vector<8x256xf32>
      %c0_19 = arith.constant 0 : index
      %c0_20 = arith.constant 0 : index
      %23 = vector.load %arg6[%c0_19, %c0_20] : memref<8x256xf32, #tpu.memory_space<vmem>>, vector<8x256xf32>
      tpu.vector_store %arg6[%c0_19, %c0_20], %22 {strides = array<i32>} : memref<8x256xf32, #tpu.memory_space<vmem>>, vector<8x256xf32>,
    } else {
    }
    return
  }
  func.func @transform_0(%arg0: i32) -> (i32, i32) {
    %c0_i32 = arith.constant 0 : i32
    %c0_i32_0 = arith.constant 0 : i32
    return %c0_i32, %arg0 : i32, i32
  }
  func.func @transform_1(%arg0: i32) -> (i32, i32) {
    %c0_i32 = arith.constant 0 : i32
    %c0_i32_0 = arith.constant 0 : i32
    return %arg0, %c0_i32 : i32, i32
  }
  func.func @transform_2(%arg0: i32) -> (i32, i32) {
    %c0_i32 = arith.constant 0 : i32
    %c0_i32_0 = arith.constant 0 : i32
    %c0_i32_1 = arith.constant 0 : i32
    return %c0_i32, %c0_i32_0 : i32, i32
  }
  func.func @transform_3(%arg0: i32) -> (i32, i32) {
    %c0_i32 = arith.constant 0 : i32
    %c0_i32_0 = arith.constant 0 : i32
    %c0_i32_1 = arith.constant 0 : i32
    return %c0_i32, %c0_i32_0 : i32, i32
  }
  func.func @transform_4(%arg0: i32) -> (i32, i32) {
    %c0_i32 = arith.constant 0 : i32
    %c0_i32_0 = arith.constant 0 : i32
    %c0_i32_1 = arith.constant 0 : i32
    return %c0_i32, %c0_i32_0 : i32, i32
  }
  func.func @transform_5(%arg0: i32) -> (i32, i32) {
    %c0_i32 = arith.constant 0 : i32
    %c0_i32_0 = arith.constant 0 : i32
    %c0_i32_1 = arith.constant 0 : i32
    return %c0_i32, %c0_i32_0 : i32, i32
  }
}

</mosaic_0001>

<bundles_post_ra>
// kernel: encoder1_forward.6
= control target key start
LH: loop header
LB: loop body
LE: loop exit
PB: predicated region body
PF: predicated region fallthrough
CT: control target
= control target key end

     0   :  { %s1699_s12 = smov 0   ;;  %s1701_s13 = smov 0   ;;  %s1988_s0 = inlined_call_operand.vmem [shape: f32[2048,128], index: 0, kind: input, shape index: {}]   ;;  %s1989_s1 = inlined_call_operand.vmem [shape: f32[128,128], index: 1, kind: input, shape index: {}]   ;;  %s1990_s2 = inlined_call_operand.vmem [shape: f32[1,128], index: 2, kind: input, shape index: {}]   ;;  %s1991_s3 = inlined_call_operand.vmem [shape: f32[2048,128], index: 3, kind: output, shape index: {}]  }
   0x1   :  { %s1703_s14 = smov 0  }
   0x2 LB: > { %s32_s15 = sadd.s32 1, %s1673_s13  ;;  %p1367_p0 = scmp.ge.s32.totalorder %s1677_s14, 1  ;;  %s1677_s14 = sphi %s1703_s14, %s13_s14   ;;  %s1673_s13 = sphi %s1701_s13, %s1993_s13   ;;  %s1669_s12 = sphi %s1699_s12, %s1992_s12  }
   0x3   : > { %p34_p1 = scmp.ge.s32.totalorder %s32_s15, 4  ;;  %p188_p2 = scmp.lt.s32.totalorder %s1677_s14, 5 }
   0x5   : > { %s1995_s15 = smov (%p34_p1, %s32_s15), 0  ;;  %p189_p3 = pnand %p1367_p0, %p188_p2 }
   0x6   : > { %v455_v0 = vld [vmem:[%s1989_s1] sm:$0xff] (!%p189_p3)  ;;  %v456_v1 = vld [vmem:[%s1989_s1 + $0x8] sm:$0xff] (!%p189_p3)  ;;  %v457_v2 = vld [vmem:[%s1989_s1 + $0x10] sm:$0xff] (!%p189_p3)  ;;  %s1368_s22 = sshll.u32 (!%p189_p3), %s1669_s12, 6 }
   0x7   : > { %192 = sbr.rel (%p189_p3) target bundleno = 320 (0x140), region = 32  ;;  %v1583_v3 = vpack.c.bf16 (!%p189_p3), %v456_v1, %v455_v0  ;;  %v458_v4 = vld [vmem:[%s1989_s1 + $0x18] sm:$0xff] (!%p189_p3)  ;;  %p230_p4 = scmp.lt.s32.totalorder (!%p189_p3), %s1368_s22, 255  ;;  %v459_v6 = vld [vmem:[%s1989_s1 + $0x20] sm:$0xff] (!%p189_p3)  ;;  %v460_v7 = vld [vmem:[%s1989_s1 + $0x28] sm:$0xff] (!%p189_p3) }
   0x8   : > { %v1587_v5 = vpack.c.bf16 (!%p189_p3), %v458_v4, %v457_v2  ;;  %v1591_v8 = vpack.c.bf16 (!%p189_p3), %v460_v7, %v459_v6  ;;  %v461_v9 = vld [vmem:[%s1989_s1 + $0x30] sm:$0xff] (!%p189_p3)  ;;  %v462_v10 = vld [vmem:[%s1989_s1 + $0x38] sm:$0xff] (!%p189_p3)  ;;  %v463_v14 = vld [vmem:[%s1989_s1 + $0x40] sm:$0xff] (!%p189_p3) }
   0x9   : > { %1584 = vmatprep.subr.bf16.mxu0 (!%p189_p3), %v1583_v3  ;;  %1615 = vmatprep.subr.bf16.mxu1 (!%p189_p3), %v1583_v3  ;;  %v1595_v13 = vpack.c.bf16 (!%p189_p3), %v462_v10, %v461_v9  ;;  %v464_v15 = vld [vmem:[%s1989_s1 + $0x48] sm:$0xff] (!%p189_p3)  ;;  %v465_v17 = vld [vmem:[%s1989_s1 + $0x50] sm:$0xff] (!%p189_p3)  ;;  %v466_v18 = vld [vmem:[%s1989_s1 + $0x58] sm:$0xff] (!%p189_p3) }
   0xa   : > { %1586 = vmatpush3.bf16.msra.mxu0 (!%p189_p3), %v1583_v3  ;;  %1623 = vmatpush3.bf16.msra.mxu1 (!%p189_p3), %v1583_v3  ;;  %v1599_v16 = vpack.c.bf16 (!%p189_p3), %v464_v15, %v463_v14  ;;  %v1603_v19 = vpack.c.bf16 (!%p189_p3), %v466_v18, %v465_v17  ;;  %v467_v20 = vld [vmem:[%s1989_s1 + $0x60] sm:$0xff] (!%p189_p3)  ;;  %v468_v21 = vld [vmem:[%s1989_s1 + $0x68] sm:$0xff] (!%p189_p3)  ;;  %v469_v23 = vld [vmem:[%s1989_s1 + $0x70] sm:$0xff] (!%p189_p3) }
   0xb   : > { %1588 = vmatprep.subr.bf16.mxu0 (!%p189_p3), %v1587_v5  ;;  %1616 = vmatprep.subr.bf16.mxu1 (!%p189_p3), %v1587_v5  ;;  %v1607_v22 = vpack.c.bf16 (!%p189_p3), %v468_v21, %v467_v20  ;;  %v470_v24 = vld [vmem:[%s1989_s1 + $0x78] sm:$0xff] (!%p189_p3) }
   0xc   : > { %v1611_v25 = vpack.c.bf16 (!%p189_p3), %v470_v24, %v469_v23  ;;  %v1842_v24 = vld [vmem:[%s1990_s2] ss:$0 sm:$0xff] (!%p189_p3) }
   0xe   : > { %s1997_s22 = smov (!%p230_p4, %s1368_s22), 255  ;;  %1590 = vmatpush3.bf16.msra.mxu0 %v1587_v5  ;;  %1624 = vmatpush3.bf16.msra.mxu1 %v1587_v5 }
   0xf   : > { %s1369_s29 = sshll.u32 %s1997_s22, 3  ;;  %1592 = vmatprep.subr.bf16.mxu0 %v1591_v8  ;;  %1617 = vmatprep.subr.bf16.mxu1 %v1591_v8 }
  0x10   : > { %s1749_s9 = scalar_lea.vmem %s1988_s0, %s1369_s29  ;;  %s1851_s8 = scalar_lea.vmem %s1991_s3, %s1369_s29 }
  0x11   : > { %v391_v11 = vld [vmem:[%s1749_s9] sm:$0xff]  ;;  %v392_v26 = vld [vmem:[%s1749_s9 + $0x8] sm:$0xff]  ;;  %v393_v28 = vld [vmem:[%s1749_s9 + $0x10] sm:$0xff] }
  0x12   : > { %v423_v12 = vld [vmem:[%s1749_s9 + $0x100] sm:$0xff]  ;;  %1487 = vmatprep.mubr.f32.mxu0 %v391_v11  ;;  %1594 = vmatpush3.bf16.msra.mxu0 %v1591_v8  ;;  %v424_v27 = vld [vmem:[%s1749_s9 + $0x108] sm:$0xff]  ;;  %v425_v29 = vld [vmem:[%s1749_s9 + $0x110] sm:$0xff] }
  0x13   : > { %1535 = vmatprep.mubr.f32.mxu1 %v423_v12  ;;  %1625 = vmatpush3.bf16.msra.mxu1 %v1591_v8  ;;  %v394_v30 = vld [vmem:[%s1749_s9 + $0x18] sm:$0xff]  ;;  %v395_v32 = vld [vmem:[%s1749_s9 + $0x20] sm:$0xff]  ;;  %v396_v34 = vld [vmem:[%s1749_s9 + $0x28] sm:$0xff] }
  0x14   : > { %1596 = vmatprep.subr.bf16.mxu0 %v1595_v13  ;;  %1618 = vmatprep.subr.bf16.mxu1 %v1595_v13  ;;  %v426_v31 = vld [vmem:[%s1749_s9 + $0x118] sm:$0xff]  ;;  %v427_v33 = vld [vmem:[%s1749_s9 + $0x120] sm:$0xff]  ;;  %v428_v35 = vld [vmem:[%s1749_s9 + $0x128] sm:$0xff] }
  0x15   : > { %v397_v36 = vld [vmem:[%s1749_s9 + $0x30] sm:$0xff]  ;;  %v398_v38 = vld [vmem:[%s1749_s9 + $0x38] sm:$0xff]  ;;  %v399_v40 = vld [vmem:[%s1749_s9 + $0x40] sm:$0xff] }
  0x16   : > { %1598 = vmatpush3.bf16.msra.mxu0 %v1595_v13  ;;  %v429_v37 = vld [vmem:[%s1749_s9 + $0x130] sm:$0xff]  ;;  %v430_v39 = vld [vmem:[%s1749_s9 + $0x138] sm:$0xff]  ;;  %v431_v41 = vld [vmem:[%s1749_s9 + $0x140] sm:$0xff] }
  0x17   : > { %1626 = vmatpush3.bf16.msra.mxu1 %v1595_v13  ;;  %1600 = vmatprep.subr.bf16.mxu0 %v1599_v16  ;;  %v400_v42 = vld [vmem:[%s1749_s9 + $0x48] sm:$0xff]  ;;  %v401_v44 = vld [vmem:[%s1749_s9 + $0x50] sm:$0xff]  ;;  %v402_v46 = vld [vmem:[%s1749_s9 + $0x58] sm:$0xff] }
  0x18   : > { %1619 = vmatprep.subr.bf16.mxu1 %v1599_v16  ;;  %v432_v43 = vld [vmem:[%s1749_s9 + $0x148] sm:$0xff]  ;;  %v433_v45 = vld [vmem:[%s1749_s9 + $0x150] sm:$0xff]  ;;  %v434_v47 = vld [vmem:[%s1749_s9 + $0x158] sm:$0xff] }
  0x19   : > { %v403_v48 = vld [vmem:[%s1749_s9 + $0x60] sm:$0xff]  ;;  %v404_v50 = vld [vmem:[%s1749_s9 + $0x68] sm:$0xff]  ;;  %v405_v52 = vld [vmem:[%s1749_s9 + $0x70] sm:$0xff] }
  0x1a   : > { %1602 = vmatpush3.bf16.msra.mxu0 %v1599_v16  ;;  %v435_v49 = vld [vmem:[%s1749_s9 + $0x160] sm:$0xff]  ;;  %v436_v51 = vld [vmem:[%s1749_s9 + $0x168] sm:$0xff]  ;;  %v437_v53 = vld [vmem:[%s1749_s9 + $0x170] sm:$0xff] }
  0x1b   : > { %1627 = vmatpush3.bf16.msra.mxu1 %v1599_v16  ;;  %1604 = vmatprep.subr.bf16.mxu0 %v1603_v19  ;;  %v406_v54 = vld [vmem:[%s1749_s9 + $0x78] sm:$0xff]  ;;  %v407_v56 = vld [vmem:[%s1749_s9 + $0x80] sm:$0xff]  ;;  %v408_v58 = vld [vmem:[%s1749_s9 + $0x88] sm:$0xff] }
  0x1c   : > { %1620 = vmatprep.subr.bf16.mxu1 %v1603_v19  ;;  %v438_v55 = vld [vmem:[%s1749_s9 + $0x178] sm:$0xff]  ;;  %v439_v57 = vld [vmem:[%s1749_s9 + $0x180] sm:$0xff]  ;;  %v440_v59 = vld [vmem:[%s1749_s9 + $0x188] sm:$0xff] }
  0x1d   : > { %v409_v60 = vld [vmem:[%s1749_s9 + $0x90] sm:$0xff]  ;;  %v410_v62 = vld [vmem:[%s1749_s9 + $0x98] sm:$0xff]  ;;  %v411_v0 = vld [vmem:[%s1749_s9 + $0xa0] sm:$0xff] }
  0x1e   : > { %1606 = vmatpush3.bf16.msra.mxu0 %v1603_v19  ;;  %v441_v61 = vld [vmem:[%s1749_s9 + $0x190] sm:$0xff]  ;;  %v442_v63 = vld [vmem:[%s1749_s9 + $0x198] sm:$0xff]  ;;  %v443_v1 = vld [vmem:[%s1749_s9 + $0x1a0] sm:$0xff] }
  0x1f   : > { %1628 = vmatpush3.bf16.msra.mxu1 %v1603_v19  ;;  %1608 = vmatprep.subr.bf16.mxu0 %v1607_v22  ;;  %v412_v2 = vld [vmem:[%s1749_s9 + $0xa8] sm:$0xff]  ;;  %v413_v4 = vld [vmem:[%s1749_s9 + $0xb0] sm:$0xff]  ;;  %v414_v6 = vld [vmem:[%s1749_s9 + $0xb8] sm:$0xff] }
  0x20   : > { %1621 = vmatprep.subr.bf16.mxu1 %v1607_v22  ;;  %v444_v3 = vld [vmem:[%s1749_s9 + $0x1a8] sm:$0xff]  ;;  %v445_v5 = vld [vmem:[%s1749_s9 + $0x1b0] sm:$0xff]  ;;  %v446_v7 = vld [vmem:[%s1749_s9 + $0x1b8] sm:$0xff] }
  0x21   : > { %v415_v8 = vld [vmem:[%s1749_s9 + $0xc0] sm:$0xff]  ;;  %v416_v10 = vld [vmem:[%s1749_s9 + $0xc8] sm:$0xff]  ;;  %v417_v12 = vld [vmem:[%s1749_s9 + $0xd0] sm:$0xff] }
  0x22   : > { %1610 = vmatpush3.bf16.msra.mxu0 %v1607_v22  ;;  %v447_v9 = vld [vmem:[%s1749_s9 + $0x1c0] sm:$0xff]  ;;  %v448_v11 = vld [vmem:[%s1749_s9 + $0x1c8] sm:$0xff]  ;;  %v449_v13 = vld [vmem:[%s1749_s9 + $0x1d0] sm:$0xff] }
  0x23   : > { %1629 = vmatpush3.bf16.msra.mxu1 %v1607_v22  ;;  %1612 = vmatprep.subr.bf16.mxu0 %v1611_v25  ;;  %v418_v14 = vld [vmem:[%s1749_s9 + $0xd8] sm:$0xff]  ;;  %v419_v16 = vld [vmem:[%s1749_s9 + $0xe0] sm:$0xff]  ;;  %v420_v18 = vld [vmem:[%s1749_s9 + $0xe8] sm:$0xff] }
  0x24   : > { %1622 = vmatprep.subr.bf16.mxu1 %v1611_v25  ;;  %v450_v15 = vld [vmem:[%s1749_s9 + $0x1d8] sm:$0xff]  ;;  %v451_v17 = vld [vmem:[%s1749_s9 + $0x1e0] sm:$0xff]  ;;  %v452_v19 = vld [vmem:[%s1749_s9 + $0x1e8] sm:$0xff] }
  0x25   : > { %v421_v20 = vld [vmem:[%s1749_s9 + $0xf0] sm:$0xff]  ;;  %v422_v22 = vld [vmem:[%s1749_s9 + $0xf8] sm:$0xff] }
  0x26   : > { %1614 = vmatpush3.bf16.msra.mxu0 %v1611_v25  ;;  %v453_v21 = vld [vmem:[%s1749_s9 + $0x1f0] sm:$0xff]  ;;  %v454_v23 = vld [vmem:[%s1749_s9 + $0x1f8] sm:$0xff] }
  0x27   : > { %1630 = vmatpush3.bf16.msra.mxu1 %v1611_v25 }
  0x29   : > { %1488 = vmatmul.mubr.f32.vlgmr.msra.gmra.mrb[0].mxu0 %v392_v26 }
  0x2a   : > { %1536 = vmatmul.mubr.f32.vlgmr.msra.gmra.mrb[0].mxu1 %v424_v27  ;;  %1490 = vmatprep.mubr.f32.mxu0 %v393_v28 }
  0x2b   : > { %1538 = vmatprep.mubr.f32.mxu1 %v425_v29 }
  0x2d   : > { %1491 = vmatmul.mubr.f32.gmra.mrb[2].mxu0 %v394_v30 }
  0x2e   : > { %1539 = vmatmul.mubr.f32.gmra.mrb[2].mxu1 %v426_v31  ;;  %1493 = vmatprep.mubr.f32.mxu0 %v395_v32 }
  0x2f   : > { %1541 = vmatprep.mubr.f32.mxu1 %v427_v33 }
  0x31   : > { %1494 = vmatmul.mubr.f32.gmra.mrb[4].mxu0 %v396_v34 }
  0x32   : > { %1542 = vmatmul.mubr.f32.gmra.mrb[4].mxu1 %v428_v35  ;;  %1496 = vmatprep.mubr.f32.mxu0 %v397_v36 }
  0x33   : > { %1544 = vmatprep.mubr.f32.mxu1 %v429_v37 }
  0x35   : > { %1497 = vmatmul.mubr.f32.gmra.mrb[6].mxu0 %v398_v38 }
  0x36   : > { %1545 = vmatmul.mubr.f32.gmra.mrb[6].mxu1 %v430_v39  ;;  %1499 = vmatprep.mubr.f32.mxu0 %v399_v40 }
  0x37   : > { %1547 = vmatprep.mubr.f32.mxu1 %v431_v41 }
  0x39   : > { %1500 = vmatmul.mubr.f32.gmra.mrb[8].mxu0 %v400_v42 }
  0x3a   : > { %1548 = vmatmul.mubr.f32.gmra.mrb[8].mxu1 %v432_v43  ;;  %1502 = vmatprep.mubr.f32.mxu0 %v401_v44 }
  0x3b   : > { %1550 = vmatprep.mubr.f32.mxu1 %v433_v45 }
  0x3d   : > { %1503 = vmatmul.mubr.f32.gmra.mrb[10].mxu0 %v402_v46 }
  0x3e   : > { %1551 = vmatmul.mubr.f32.gmra.mrb[10].mxu1 %v434_v47  ;;  %1505 = vmatprep.mubr.f32.mxu0 %v403_v48 }
  0x3f   : > { %1553 = vmatprep.mubr.f32.mxu1 %v435_v49 }
  0x41   : > { %1506 = vmatmul.mubr.f32.gmra.mrb[12].mxu0 %v404_v50 }
  0x42   : > { %1554 = vmatmul.mubr.f32.gmra.mrb[12].mxu1 %v436_v51  ;;  %1508 = vmatprep.mubr.f32.mxu0 %v405_v52 }
  0x43   : > { %1556 = vmatprep.mubr.f32.mxu1 %v437_v53 }
  0x45   : > { %1509 = vmatmul.mubr.f32.gmra.mrb[14].mxu0 %v406_v54 }
  0x46   : > { %1557 = vmatmul.mubr.f32.gmra.mrb[14].mxu1 %v438_v55  ;;  %1511 = vmatprep.mubr.f32.mxu0 %v407_v56 }
  0x47   : > { %1559 = vmatprep.mubr.f32.mxu1 %v439_v57 }
  0x49   : > { %1512 = vmatmul.mubr.f32.gmra.mrb[16].mxu0 %v408_v58 }
  0x4a   : > { %1560 = vmatmul.mubr.f32.gmra.mrb[16].mxu1 %v440_v59  ;;  %1514 = vmatprep.mubr.f32.mxu0 %v409_v60 }
  0x4b   : > { %1562 = vmatprep.mubr.f32.mxu1 %v441_v61 }
  0x4d   : > { %1515 = vmatmul.mubr.f32.gmra.mrb[18].mxu0 %v410_v62 }
  0x4e   : > { %1563 = vmatmul.mubr.f32.gmra.mrb[18].mxu1 %v442_v63  ;;  %1517 = vmatprep.mubr.f32.mxu0 %v411_v0 }
  0x4f   : > { %1565 = vmatprep.mubr.f32.mxu1 %v443_v1 }
  0x51   : > { %1518 = vmatmul.mubr.f32.gmra.mrb[20].mxu0 %v412_v2 }
  0x52   : > { %1566 = vmatmul.mubr.f32.gmra.mrb[20].mxu1 %v444_v3  ;;  %1520 = vmatprep.mubr.f32.mxu0 %v413_v4 }
  0x53   : > { %1568 = vmatprep.mubr.f32.mxu1 %v445_v5 }
  0x55   : > { %1521 = vmatmul.mubr.f32.gmra.mrb[22].mxu0 %v414_v6 }
  0x56   : > { %1569 = vmatmul.mubr.f32.gmra.mrb[22].mxu1 %v446_v7  ;;  %1523 = vmatprep.mubr.f32.mxu0 %v415_v8 }
  0x57   : > { %1571 = vmatprep.mubr.f32.mxu1 %v447_v9 }
  0x59   : > { %1524 = vmatmul.mubr.f32.gmra.mrb[24].mxu0 %v416_v10 }
  0x5a   : > { %1572 = vmatmul.mubr.f32.gmra.mrb[24].mxu1 %v448_v11  ;;  %1526 = vmatprep.mubr.f32.mxu0 %v417_v12 }
  0x5b   : > { %1574 = vmatprep.mubr.f32.mxu1 %v449_v13 }
  0x5d   : > { %1527 = vmatmul.mubr.f32.gmra.mrb[26].mxu0 %v418_v14 }
  0x5e   : > { %1575 = vmatmul.mubr.f32.gmra.mrb[26].mxu1 %v450_v15  ;;  %1529 = vmatprep.mubr.f32.mxu0 %v419_v16 }
  0x5f   : > { %1577 = vmatprep.mubr.f32.mxu1 %v451_v17 }
  0x61   : > { %1530 = vmatmul.mubr.f32.gmra.mrb[28].mxu0 %v420_v18 }
  0x62   : > { %1578 = vmatmul.mubr.f32.gmra.mrb[28].mxu1 %v452_v19  ;;  %1532 = vmatprep.mubr.f32.mxu0 %v421_v20 }
  0x63   : > { %1580 = vmatprep.mubr.f32.mxu1 %v453_v21 }
  0x65   : > { %1533 = vmatmul.mubr.f32.gmra.mrb[30].mxu0 %v422_v22 }
  0x66   : > { %1581 = vmatmul.mubr.f32.gmra.mrb[30].mxu1 %v454_v23 }
  0xfc   : > { %v1489_v25 = vpop.f32.mrb[0].mxu0 }
  0xfd   : > { %v1537_v26 = vpop.f32.mrb[0].mxu1  ;;  %v1059_v27 = vadd.f32 %v1489_v25, %v1842_v24  ;;  %v537_v29 = vpop.f32.mrb[1].mxu0 }
  0xfe   : > { %v1091_v28 = vadd.f32 %v1537_v26, %v1842_v24  ;;  %v697_v30 = vpop.f32.mrb[1].mxu1  ;;  %v1058_v31 = vadd.f32 %v1842_v24, %v537_v29 }
  0xff   : > { %v1090_v32 = vadd.f32 %v1842_v24, %v697_v30  ;;  %v1123_v33 = vmax.f32 %v1059_v27, 0.0 }
 0x100   : > { %v1155_v34 = vmax.f32 %v1091_v28, 0.0  ;;  %v1122_v35 = vmax.f32 %v1058_v31, 0.0  ;;  %v1492_v37 = vpop.f32.mrb[2].mxu0 }
 0x101   : > { %v1154_v36 = vmax.f32 %v1090_v32, 0.0  ;;  %v1540_v38 = vpop.f32.mrb[2].mxu1  ;;  %1187 = vst [vmem:[%s1851_s8 + $0x8] sm:$0xff] %v1123_v33  ;;  %v1061_v39 = vadd.f32 %v1492_v37, %v1842_v24  ;;  %v547_v41 = vpop.f32.mrb[3].mxu0 }
 0x102   : > { %1219 = vst [vmem:[%s1851_s8 + $0x108] sm:$0xff] %v1155_v34  ;;  %v1093_v40 = vadd.f32 %v1540_v38, %v1842_v24  ;;  %v707_v42 = vpop.f32.mrb[3].mxu1  ;;  %1186 = vst [vmem:[%s1851_s8] sm:$0xff] %v1122_v35  ;;  %v1060_v43 = vadd.f32 %v1842_v24, %v547_v41 }
 0x103   : > { %1218 = vst [vmem:[%s1851_s8 + $0x100] sm:$0xff] %v1154_v36  ;;  %v1092_v44 = vadd.f32 %v1842_v24, %v707_v42  ;;  %v1125_v45 = vmax.f32 %v1061_v39, 0.0 }
 0x104   : > { %v1157_v46 = vmax.f32 %v1093_v40, 0.0  ;;  %v1124_v47 = vmax.f32 %v1060_v43, 0.0  ;;  %v1495_v49 = vpop.f32.mrb[4].mxu0 }
 0x105   : > { %v1156_v48 = vmax.f32 %v1092_v44, 0.0  ;;  %v1543_v50 = vpop.f32.mrb[4].mxu1  ;;  %1189 = vst [vmem:[%s1851_s8 + $0x18] sm:$0xff] %v1125_v45  ;;  %v1063_v51 = vadd.f32 %v1495_v49, %v1842_v24  ;;  %v557_v53 = vpop.f32.mrb[5].mxu0 }
 0x106   : > { %1221 = vst [vmem:[%s1851_s8 + $0x118] sm:$0xff] %v1157_v46  ;;  %v1095_v52 = vadd.f32 %v1543_v50, %v1842_v24  ;;  %v717_v54 = vpop.f32.mrb[5].mxu1  ;;  %1188 = vst [vmem:[%s1851_s8 + $0x10] sm:$0xff] %v1124_v47  ;;  %v1062_v55 = vadd.f32 %v1842_v24, %v557_v53 }
 0x107   : > { %1220 = vst [vmem:[%s1851_s8 + $0x110] sm:$0xff] %v1156_v48  ;;  %v1094_v56 = vadd.f32 %v1842_v24, %v717_v54  ;;  %v1127_v57 = vmax.f32 %v1063_v51, 0.0 }
 0x108   : > { %v1159_v58 = vmax.f32 %v1095_v52, 0.0  ;;  %v1126_v59 = vmax.f32 %v1062_v55, 0.0  ;;  %v1498_v61 = vpop.f32.mrb[6].mxu0 }
 0x109   : > { %v1158_v60 = vmax.f32 %v1094_v56, 0.0  ;;  %v1546_v62 = vpop.f32.mrb[6].mxu1  ;;  %1191 = vst [vmem:[%s1851_s8 + $0x28] sm:$0xff] %v1127_v57  ;;  %v1065_v63 = vadd.f32 %v1498_v61, %v1842_v24  ;;  %v567_v1 = vpop.f32.mrb[7].mxu0 }
 0x10a   : > { %1223 = vst [vmem:[%s1851_s8 + $0x128] sm:$0xff] %v1159_v58  ;;  %v1097_v0 = vadd.f32 %v1546_v62, %v1842_v24  ;;  %v727_v2 = vpop.f32.mrb[7].mxu1  ;;  %1190 = vst [vmem:[%s1851_s8 + $0x20] sm:$0xff] %v1126_v59  ;;  %v1064_v3 = vadd.f32 %v1842_v24, %v567_v1 }
 0x10b   : > { %1222 = vst [vmem:[%s1851_s8 + $0x120] sm:$0xff] %v1158_v60  ;;  %v1096_v4 = vadd.f32 %v1842_v24, %v727_v2  ;;  %v1129_v5 = vmax.f32 %v1065_v63, 0.0 }
 0x10c   : > { %v1161_v6 = vmax.f32 %v1097_v0, 0.0  ;;  %v1128_v7 = vmax.f32 %v1064_v3, 0.0  ;;  %v1501_v9 = vpop.f32.mrb[8].mxu0 }
 0x10d   : > { %v1160_v8 = vmax.f32 %v1096_v4, 0.0  ;;  %v1549_v10 = vpop.f32.mrb[8].mxu1  ;;  %1193 = vst [vmem:[%s1851_s8 + $0x38] sm:$0xff] %v1129_v5  ;;  %v1067_v11 = vadd.f32 %v1501_v9, %v1842_v24  ;;  %v577_v13 = vpop.f32.mrb[9].mxu0 }
 0x10e   : > { %1225 = vst [vmem:[%s1851_s8 + $0x138] sm:$0xff] %v1161_v6  ;;  %v1099_v12 = vadd.f32 %v1549_v10, %v1842_v24  ;;  %v737_v14 = vpop.f32.mrb[9].mxu1  ;;  %1192 = vst [vmem:[%s1851_s8 + $0x30] sm:$0xff] %v1128_v7  ;;  %v1066_v15 = vadd.f32 %v1842_v24, %v577_v13 }
 0x10f   : > { %1224 = vst [vmem:[%s1851_s8 + $0x130] sm:$0xff] %v1160_v8  ;;  %v1098_v16 = vadd.f32 %v1842_v24, %v737_v14  ;;  %v1131_v17 = vmax.f32 %v1067_v11, 0.0 }
 0x110   : > { %v1163_v18 = vmax.f32 %v1099_v12, 0.0  ;;  %v1130_v19 = vmax.f32 %v1066_v15, 0.0  ;;  %v1504_v21 = vpop.f32.mrb[10].mxu0 }
 0x111   : > { %v1162_v20 = vmax.f32 %v1098_v16, 0.0  ;;  %v1552_v22 = vpop.f32.mrb[10].mxu1  ;;  %1195 = vst [vmem:[%s1851_s8 + $0x48] sm:$0xff] %v1131_v17  ;;  %v1069_v23 = vadd.f32 %v1504_v21, %v1842_v24  ;;  %v587_v26 = vpop.f32.mrb[11].mxu0 }
 0x112   : > { %1227 = vst [vmem:[%s1851_s8 + $0x148] sm:$0xff] %v1163_v18  ;;  %v1101_v25 = vadd.f32 %v1552_v22, %v1842_v24  ;;  %v747_v27 = vpop.f32.mrb[11].mxu1  ;;  %1194 = vst [vmem:[%s1851_s8 + $0x40] sm:$0xff] %v1130_v19  ;;  %v1068_v28 = vadd.f32 %v1842_v24, %v587_v26 }
 0x113   : > { %1226 = vst [vmem:[%s1851_s8 + $0x140] sm:$0xff] %v1162_v20  ;;  %v1100_v29 = vadd.f32 %v1842_v24, %v747_v27  ;;  %v1133_v30 = vmax.f32 %v1069_v23, 0.0 }
 0x114   : > { %v1165_v31 = vmax.f32 %v1101_v25, 0.0  ;;  %v1132_v32 = vmax.f32 %v1068_v28, 0.0  ;;  %v1507_v34 = vpop.f32.mrb[12].mxu0 }
 0x115   : > { %v1164_v33 = vmax.f32 %v1100_v29, 0.0  ;;  %v1555_v35 = vpop.f32.mrb[12].mxu1  ;;  %1197 = vst [vmem:[%s1851_s8 + $0x58] sm:$0xff] %v1133_v30  ;;  %v1071_v36 = vadd.f32 %v1507_v34, %v1842_v24  ;;  %v597_v38 = vpop.f32.mrb[13].mxu0 }
 0x116   : > { %1229 = vst [vmem:[%s1851_s8 + $0x158] sm:$0xff] %v1165_v31  ;;  %v1103_v37 = vadd.f32 %v1555_v35, %v1842_v24  ;;  %v757_v39 = vpop.f32.mrb[13].mxu1  ;;  %1196 = vst [vmem:[%s1851_s8 + $0x50] sm:$0xff] %v1132_v32  ;;  %v1070_v40 = vadd.f32 %v1842_v24, %v597_v38 }
 0x117   : > { %1228 = vst [vmem:[%s1851_s8 + $0x150] sm:$0xff] %v1164_v33  ;;  %v1102_v41 = vadd.f32 %v1842_v24, %v757_v39  ;;  %v1135_v42 = vmax.f32 %v1071_v36, 0.0 }
 0x118   : > { %v1167_v43 = vmax.f32 %v1103_v37, 0.0  ;;  %v1134_v44 = vmax.f32 %v1070_v40, 0.0  ;;  %v1510_v46 = vpop.f32.mrb[14].mxu0 }
 0x119   : > { %v1166_v45 = vmax.f32 %v1102_v41, 0.0  ;;  %v1558_v47 = vpop.f32.mrb[14].mxu1  ;;  %1199 = vst [vmem:[%s1851_s8 + $0x68] sm:$0xff] %v1135_v42  ;;  %v1073_v48 = vadd.f32 %v1510_v46, %v1842_v24  ;;  %v607_v50 = vpop.f32.mrb[15].mxu0 }
 0x11a   : > { %1231 = vst [vmem:[%s1851_s8 + $0x168] sm:$0xff] %v1167_v43  ;;  %v1105_v49 = vadd.f32 %v1558_v47, %v1842_v24  ;;  %v767_v51 = vpop.f32.mrb[15].mxu1  ;;  %1198 = vst [vmem:[%s1851_s8 + $0x60] sm:$0xff] %v1134_v44  ;;  %v1072_v52 = vadd.f32 %v1842_v24, %v607_v50 }
 0x11b   : > { %1230 = vst [vmem:[%s1851_s8 + $0x160] sm:$0xff] %v1166_v45  ;;  %v1104_v53 = vadd.f32 %v1842_v24, %v767_v51  ;;  %v1137_v54 = vmax.f32 %v1073_v48, 0.0 }
 0x11c   : > { %v1169_v55 = vmax.f32 %v1105_v49, 0.0  ;;  %v1136_v56 = vmax.f32 %v1072_v52, 0.0  ;;  %v1513_v58 = vpop.f32.mrb[16].mxu0 }
 0x11d   : > { %v1168_v57 = vmax.f32 %v1104_v53, 0.0  ;;  %v1561_v59 = vpop.f32.mrb[16].mxu1  ;;  %1201 = vst [vmem:[%s1851_s8 + $0x78] sm:$0xff] %v1137_v54  ;;  %v1075_v60 = vadd.f32 %v1513_v58, %v1842_v24  ;;  %v617_v62 = vpop.f32.mrb[17].mxu0 }
 0x11e   : > { %1233 = vst [vmem:[%s1851_s8 + $0x178] sm:$0xff] %v1169_v55  ;;  %v1107_v61 = vadd.f32 %v1561_v59, %v1842_v24  ;;  %v777_v63 = vpop.f32.mrb[17].mxu1  ;;  %1200 = vst [vmem:[%s1851_s8 + $0x70] sm:$0xff] %v1136_v56  ;;  %v1074_v0 = vadd.f32 %v1842_v24, %v617_v62 }
 0x11f   : > { %1232 = vst [vmem:[%s1851_s8 + $0x170] sm:$0xff] %v1168_v57  ;;  %v1106_v1 = vadd.f32 %v1842_v24, %v777_v63  ;;  %v1139_v2 = vmax.f32 %v1075_v60, 0.0 }
 0x120   : > { %v1171_v3 = vmax.f32 %v1107_v61, 0.0  ;;  %v1138_v4 = vmax.f32 %v1074_v0, 0.0  ;;  %v1516_v6 = vpop.f32.mrb[18].mxu0 }
 0x121   : > { %v1170_v5 = vmax.f32 %v1106_v1, 0.0  ;;  %v1564_v7 = vpop.f32.mrb[18].mxu1  ;;  %1203 = vst [vmem:[%s1851_s8 + $0x88] sm:$0xff] %v1139_v2  ;;  %v1077_v8 = vadd.f32 %v1516_v6, %v1842_v24  ;;  %v627_v10 = vpop.f32.mrb[19].mxu0 }
 0x122   : > { %1235 = vst [vmem:[%s1851_s8 + $0x188] sm:$0xff] %v1171_v3  ;;  %v1109_v9 = vadd.f32 %v1564_v7, %v1842_v24  ;;  %v787_v11 = vpop.f32.mrb[19].mxu1  ;;  %1202 = vst [vmem:[%s1851_s8 + $0x80] sm:$0xff] %v1138_v4  ;;  %v1076_v12 = vadd.f32 %v1842_v24, %v627_v10 }
 0x123   : > { %1234 = vst [vmem:[%s1851_s8 + $0x180] sm:$0xff] %v1170_v5  ;;  %v1108_v13 = vadd.f32 %v1842_v24, %v787_v11  ;;  %v1141_v14 = vmax.f32 %v1077_v8, 0.0 }
 0x124   : > { %v1173_v15 = vmax.f32 %v1109_v9, 0.0  ;;  %v1140_v16 = vmax.f32 %v1076_v12, 0.0  ;;  %v1519_v18 = vpop.f32.mrb[20].mxu0 }
 0x125   : > { %v1172_v17 = vmax.f32 %v1108_v13, 0.0  ;;  %v1567_v19 = vpop.f32.mrb[20].mxu1  ;;  %1205 = vst [vmem:[%s1851_s8 + $0x98] sm:$0xff] %v1141_v14  ;;  %v1079_v20 = vadd.f32 %v1519_v18, %v1842_v24  ;;  %v637_v22 = vpop.f32.mrb[21].mxu0 }
 0x126   : > { %1237 = vst [vmem:[%s1851_s8 + $0x198] sm:$0xff] %v1173_v15  ;;  %v1111_v21 = vadd.f32 %v1567_v19, %v1842_v24  ;;  %v797_v23 = vpop.f32.mrb[21].mxu1  ;;  %1204 = vst [vmem:[%s1851_s8 + $0x90] sm:$0xff] %v1140_v16  ;;  %v1078_v25 = vadd.f32 %v1842_v24, %v637_v22 }
 0x127   : > { %1236 = vst [vmem:[%s1851_s8 + $0x190] sm:$0xff] %v1172_v17  ;;  %v1110_v26 = vadd.f32 %v1842_v24, %v797_v23  ;;  %v1143_v27 = vmax.f32 %v1079_v20, 0.0 }
 0x128   : > { %v1175_v28 = vmax.f32 %v1111_v21, 0.0  ;;  %v1142_v29 = vmax.f32 %v1078_v25, 0.0  ;;  %v1522_v31 = vpop.f32.mrb[22].mxu0 }
 0x129   : > { %v1174_v30 = vmax.f32 %v1110_v26, 0.0  ;;  %v1570_v32 = vpop.f32.mrb[22].mxu1  ;;  %1207 = vst [vmem:[%s1851_s8 + $0xa8] sm:$0xff] %v1143_v27  ;;  %v1081_v33 = vadd.f32 %v1522_v31, %v1842_v24  ;;  %v647_v35 = vpop.f32.mrb[23].mxu0 }
 0x12a   : > { %1239 = vst [vmem:[%s1851_s8 + $0x1a8] sm:$0xff] %v1175_v28  ;;  %v1113_v34 = vadd.f32 %v1570_v32, %v1842_v24  ;;  %v807_v36 = vpop.f32.mrb[23].mxu1  ;;  %1206 = vst [vmem:[%s1851_s8 + $0xa0] sm:$0xff] %v1142_v29  ;;  %v1080_v37 = vadd.f32 %v1842_v24, %v647_v35 }
 0x12b   : > { %1238 = vst [vmem:[%s1851_s8 + $0x1a0] sm:$0xff] %v1174_v30  ;;  %v1112_v38 = vadd.f32 %v1842_v24, %v807_v36  ;;  %v1145_v39 = vmax.f32 %v1081_v33, 0.0 }
 0x12c   : > { %v1177_v40 = vmax.f32 %v1113_v34, 0.0  ;;  %v1144_v41 = vmax.f32 %v1080_v37, 0.0  ;;  %v1525_v43 = vpop.f32.mrb[24].mxu0 }
 0x12d   : > { %v1176_v42 = vmax.f32 %v1112_v38, 0.0  ;;  %v1573_v44 = vpop.f32.mrb[24].mxu1  ;;  %1209 = vst [vmem:[%s1851_s8 + $0xb8] sm:$0xff] %v1145_v39  ;;  %v1083_v45 = vadd.f32 %v1525_v43, %v1842_v24  ;;  %v657_v47 = vpop.f32.mrb[25].mxu0 }
 0x12e   : > { %1241 = vst [vmem:[%s1851_s8 + $0x1b8] sm:$0xff] %v1177_v40  ;;  %v1115_v46 = vadd.f32 %v1573_v44, %v1842_v24  ;;  %v817_v48 = vpop.f32.mrb[25].mxu1  ;;  %1208 = vst [vmem:[%s1851_s8 + $0xb0] sm:$0xff] %v1144_v41  ;;  %v1082_v49 = vadd.f32 %v1842_v24, %v657_v47 }
 0x12f   : > { %1240 = vst [vmem:[%s1851_s8 + $0x1b0] sm:$0xff] %v1176_v42  ;;  %v1114_v50 = vadd.f32 %v1842_v24, %v817_v48  ;;  %v1147_v51 = vmax.f32 %v1083_v45, 0.0 }
 0x130   : > { %v1179_v52 = vmax.f32 %v1115_v46, 0.0  ;;  %v1146_v53 = vmax.f32 %v1082_v49, 0.0  ;;  %v1528_v55 = vpop.f32.mrb[26].mxu0 }
 0x131   : > { %v1178_v54 = vmax.f32 %v1114_v50, 0.0  ;;  %v1576_v56 = vpop.f32.mrb[26].mxu1  ;;  %1211 = vst [vmem:[%s1851_s8 + $0xc8] sm:$0xff] %v1147_v51  ;;  %v1085_v57 = vadd.f32 %v1528_v55, %v1842_v24  ;;  %v667_v59 = vpop.f32.mrb[27].mxu0 }
 0x132   : > { %1243 = vst [vmem:[%s1851_s8 + $0x1c8] sm:$0xff] %v1179_v52  ;;  %v1117_v58 = vadd.f32 %v1576_v56, %v1842_v24  ;;  %v827_v60 = vpop.f32.mrb[27].mxu1  ;;  %1210 = vst [vmem:[%s1851_s8 + $0xc0] sm:$0xff] %v1146_v53  ;;  %v1084_v61 = vadd.f32 %v1842_v24, %v667_v59 }
 0x133   : > { %1242 = vst [vmem:[%s1851_s8 + $0x1c0] sm:$0xff] %v1178_v54  ;;  %v1116_v62 = vadd.f32 %v1842_v24, %v827_v60  ;;  %v1149_v63 = vmax.f32 %v1085_v57, 0.0 }
 0x134   : > { %v1181_v0 = vmax.f32 %v1117_v58, 0.0  ;;  %v1148_v1 = vmax.f32 %v1084_v61, 0.0  ;;  %v1531_v3 = vpop.f32.mrb[28].mxu0 }
 0x135   : > { %v1180_v2 = vmax.f32 %v1116_v62, 0.0  ;;  %v1579_v4 = vpop.f32.mrb[28].mxu1  ;;  %1213 = vst [vmem:[%s1851_s8 + $0xd8] sm:$0xff] %v1149_v63  ;;  %v1087_v5 = vadd.f32 %v1531_v3, %v1842_v24  ;;  %v677_v7 = vpop.f32.mrb[29].mxu0 }
 0x136   : > { %1245 = vst [vmem:[%s1851_s8 + $0x1d8] sm:$0xff] %v1181_v0  ;;  %v1119_v6 = vadd.f32 %v1579_v4, %v1842_v24  ;;  %v837_v8 = vpop.f32.mrb[29].mxu1  ;;  %1212 = vst [vmem:[%s1851_s8 + $0xd0] sm:$0xff] %v1148_v1  ;;  %v1086_v9 = vadd.f32 %v1842_v24, %v677_v7 }
 0x137   : > { %1244 = vst [vmem:[%s1851_s8 + $0x1d0] sm:$0xff] %v1180_v2  ;;  %v1118_v10 = vadd.f32 %v1842_v24, %v837_v8  ;;  %v1151_v11 = vmax.f32 %v1087_v5, 0.0 }
 0x138   : > { %v1183_v12 = vmax.f32 %v1119_v6, 0.0  ;;  %v1150_v13 = vmax.f32 %v1086_v9, 0.0  ;;  %v1534_v15 = vpop.f32.mrb[30].mxu0 }
 0x139   : > { %v1182_v14 = vmax.f32 %v1118_v10, 0.0  ;;  %v1582_v16 = vpop.f32.mrb[30].mxu1  ;;  %1215 = vst [vmem:[%s1851_s8 + $0xe8] sm:$0xff] %v1151_v11  ;;  %v1089_v17 = vadd.f32 %v1534_v15, %v1842_v24  ;;  %v687_v19 = vpop.f32.mrb[31].mxu0 }
 0x13a   : > { %1247 = vst [vmem:[%s1851_s8 + $0x1e8] sm:$0xff] %v1183_v12  ;;  %v1121_v18 = vadd.f32 %v1582_v16, %v1842_v24  ;;  %v847_v20 = vpop.f32.mrb[31].mxu1  ;;  %1214 = vst [vmem:[%s1851_s8 + $0xe0] sm:$0xff] %v1150_v13  ;;  %v1088_v21 = vadd.f32 %v1842_v24, %v687_v19 }
 0x13b   : > { %1246 = vst [vmem:[%s1851_s8 + $0x1e0] sm:$0xff] %v1182_v14  ;;  %v1120_v22 = vadd.f32 %v1842_v24, %v847_v20  ;;  %v1153_v23 = vmax.f32 %v1089_v17, 0.0 }
 0x13c   : > { %v1185_v25 = vmax.f32 %v1121_v18, 0.0  ;;  %v1152_v26 = vmax.f32 %v1088_v21, 0.0 }
 0x13d   : > { %v1184_v27 = vmax.f32 %v1120_v22, 0.0  ;;  %1217 = vst [vmem:[%s1851_s8 + $0xf8] sm:$0xff] %v1153_v23 }
 0x13e   : > { %1249 = vst [vmem:[%s1851_s8 + $0x1f8] sm:$0xff] %v1185_v25  ;;  %1216 = vst [vmem:[%s1851_s8 + $0xf0] sm:$0xff] %v1152_v26 }
 0x13f   : > { %1248 = vst [vmem:[%s1851_s8 + $0x1f0] sm:$0xff] %v1184_v27 }
 0x140 PF: > { %s13_s14 = sadd.s32 1, %s1677_s14   ;;  %s1992_s12 = smov %s1673_s13 }
 0x141   : > { %p10_p5 = scmp.ge.s32.totalorder %s13_s14, 6   ;;  %s1993_s13 = smov %s1995_s15 }
 0x143   :  { %12 = sbr.rel (!%p10_p5) target bundleno = 2 (0x2), region = 76 }

// kernel: encoder1_forward.7
= control target key start
LH: loop header
LB: loop body
LE: loop exit
PB: predicated region body
PF: predicated region fallthrough
CT: control target
= control target key end

     0   :  { %s2015_s12 = smov 0   ;;  %s2017_s13 = smov 0   ;;  %s2623_s0 = inlined_call_operand.vmem [shape: f32[512,640], index: 0, kind: input, shape index: {}]   ;;  %s2624_s1 = inlined_call_operand.vmem [shape: f32[640,128], index: 1, kind: input, shape index: {}]   ;;  %s2625_s2 = inlined_call_operand.vmem [shape: f32[1,128], index: 2, kind: input, shape index: {}]   ;;  %s2626_s3 = inlined_call_operand.vmem [shape: f32[512,128], index: 3, kind: output, shape index: {}]  }
   0x1   :  { %s2019_s14 = smov 0   ;;  %s2021_s15 = smov 0  }
   0x2   :  { %s2023_s16 = smov 0  }
   0x3 LB: > { %s25_s17 = sadd.s32 1, %s1988_s15  ;;  %p48_p1 = scmp.ne.s32.totalorder %s1980_s13, %s1976_s12  ;;  %s1992_s16 = sphi %s2023_s16, %s13_s16   ;;  %s1988_s15 = sphi %s2021_s15, %s2630_s15   ;;  %s1984_s14 = sphi %s2019_s14, %s2629_s14   ;;  %s1980_s13 = sphi %s2017_s13, %s2628_s13   ;;  %s1976_s12 = sphi %s2015_s12, %s2627_s12  }
   0x4   : > { %p26_p0 = scmp.ge.s32.totalorder %s25_s17, 5  ;;  %p49_p2 = scmp.eq.s32.totalorder %s1992_s16, 0 }
   0x5   : > { %s41_s19 = sadd.s32 1, %s1980_s13  ;;  %p1643_p5 = scmp.ge.s32.totalorder %s1992_s16, 5 }
   0x6   : > { %s2632_s17 = smov (%p26_p0, %s25_s17), 0  ;;  %p50_p3 = por %p49_p2, %p48_p1 }
   0x7   : > { %s37_s18 = ssub.s32 %s1988_s15, %s2632_s17  ;;  %162 = sbr.rel (%p1643_p5) target bundleno = 50 (0x32), region = 20 }
   0x8   : > { %p39_p4 = scmp.eq.s32.totalorder %s37_s18, 0 }
   0xa   : > { %s2050_s20 = scalar_select %p39_p4, %s1980_s13, %s41_s19  }
   0xe   : > { %165 = sbr.rel (!%p50_p3) target bundleno = 50 (0x32), region = 24  ;;  %s167_s21 = sand.u32 (%p50_p3), 1, %s1980_s13  }
   0xf   : > { %s1645_s22 = sshll.u32 (%p50_p3), %s1988_s15, 3  ;;  %s1644_s23 = sshll.u32 (%p50_p3), %s167_s21, 9 }
  0x10   : > { %s2058_s26 = scalar_lea.vmem (%p50_p3), %s2623_s0, %s1645_s22  ;;  %s2063_s27 = scalar_lea.vmem (%p50_p3), [#allocation3], %s1644_s23 }
  0x11   : > { %v328_v0 = vld [vmem:[%s2058_s26] sm:$0xff] (%p50_p3)  ;;  %v330_v1 = vld [vmem:[%s2058_s26 + $0x28] sm:$0xff] (%p50_p3)  ;;  %v332_v2 = vld [vmem:[%s2058_s26 + $0x50] sm:$0xff] (%p50_p3) }
  0x12   : > { %329 = vst [vmem:[%s2063_s27] sm:$0xff] (%p50_p3), %v328_v0  ;;  %331 = vst [vmem:[%s2063_s27 + $0x8] sm:$0xff] (%p50_p3), %v330_v1  ;;  %v334_v3 = vld [vmem:[%s2058_s26 + $0x78] sm:$0xff] (%p50_p3)  ;;  %v336_v4 = vld [vmem:[%s2058_s26 + $0xa0] sm:$0xff] (%p50_p3) }
  0x13   : > { %333 = vst [vmem:[%s2063_s27 + $0x10] sm:$0xff] (%p50_p3), %v332_v2  ;;  %v338_v5 = vld [vmem:[%s2058_s26 + $0xc8] sm:$0xff] (%p50_p3)  ;;  %335 = vst [vmem:[%s2063_s27 + $0x18] sm:$0xff] (%p50_p3), %v334_v3  ;;  %v340_v6 = vld [vmem:[%s2058_s26 + $0xf0] sm:$0xff] (%p50_p3) }
  0x14   : > { %337 = vst [vmem:[%s2063_s27 + $0x20] sm:$0xff] (%p50_p3), %v336_v4  ;;  %339 = vst [vmem:[%s2063_s27 + $0x28] sm:$0xff] (%p50_p3), %v338_v5  ;;  %v342_v7 = vld [vmem:[%s2058_s26 + $0x118] sm:$0xff] (%p50_p3)  ;;  %v344_v8 = vld [vmem:[%s2058_s26 + $0x140] sm:$0xff] (%p50_p3) }
  0x15   : > { %341 = vst [vmem:[%s2063_s27 + $0x30] sm:$0xff] %v340_v6  ;;  %343 = vst [vmem:[%s2063_s27 + $0x38] sm:$0xff] %v342_v7  ;;  %v346_v9 = vld [vmem:[%s2058_s26 + $0x168] sm:$0xff]  ;;  %v348_v10 = vld [vmem:[%s2058_s26 + $0x190] sm:$0xff] }
  0x16   : > { %345 = vst [vmem:[%s2063_s27 + $0x40] sm:$0xff] %v344_v8  ;;  %v350_v11 = vld [vmem:[%s2058_s26 + $0x1b8] sm:$0xff]  ;;  %347 = vst [vmem:[%s2063_s27 + $0x48] sm:$0xff] %v346_v9  ;;  %v352_v12 = vld [vmem:[%s2058_s26 + $0x1e0] sm:$0xff] }
  0x17   : > { %349 = vst [vmem:[%s2063_s27 + $0x50] sm:$0xff] %v348_v10  ;;  %351 = vst [vmem:[%s2063_s27 + $0x58] sm:$0xff] %v350_v11  ;;  %v354_v13 = vld [vmem:[%s2058_s26 + $0x208] sm:$0xff]  ;;  %v356_v14 = vld [vmem:[%s2058_s26 + $0x230] sm:$0xff] }
  0x18   : > { %353 = vst [vmem:[%s2063_s27 + $0x60] sm:$0xff] %v352_v12  ;;  %355 = vst [vmem:[%s2063_s27 + $0x68] sm:$0xff] %v354_v13  ;;  %v358_v15 = vld [vmem:[%s2058_s26 + $0x258] sm:$0xff]  ;;  %v360_v16 = vld [vmem:[%s2058_s26 + $0x280] sm:$0xff] }
  0x19   : > { %357 = vst [vmem:[%s2063_s27 + $0x70] sm:$0xff] %v356_v14  ;;  %v362_v17 = vld [vmem:[%s2058_s26 + $0x2a8] sm:$0xff]  ;;  %359 = vst [vmem:[%s2063_s27 + $0x78] sm:$0xff] %v358_v15  ;;  %v364_v18 = vld [vmem:[%s2058_s26 + $0x2d0] sm:$0xff] }
  0x1a   : > { %361 = vst [vmem:[%s2063_s27 + $0x80] sm:$0xff] %v360_v16  ;;  %363 = vst [vmem:[%s2063_s27 + $0x88] sm:$0xff] %v362_v17  ;;  %v366_v19 = vld [vmem:[%s2058_s26 + $0x2f8] sm:$0xff]  ;;  %v368_v20 = vld [vmem:[%s2058_s26 + $0x320] sm:$0xff] }
  0x1b   : > { %365 = vst [vmem:[%s2063_s27 + $0x90] sm:$0xff] %v364_v18  ;;  %367 = vst [vmem:[%s2063_s27 + $0x98] sm:$0xff] %v366_v19  ;;  %v370_v21 = vld [vmem:[%s2058_s26 + $0x348] sm:$0xff]  ;;  %v372_v22 = vld [vmem:[%s2058_s26 + $0x370] sm:$0xff] }
  0x1c   : > { %369 = vst [vmem:[%s2063_s27 + $0xa0] sm:$0xff] %v368_v20  ;;  %v374_v23 = vld [vmem:[%s2058_s26 + $0x398] sm:$0xff]  ;;  %371 = vst [vmem:[%s2063_s27 + $0xa8] sm:$0xff] %v370_v21  ;;  %v376_v24 = vld [vmem:[%s2058_s26 + $0x3c0] sm:$0xff] }
  0x1d   : > { %373 = vst [vmem:[%s2063_s27 + $0xb0] sm:$0xff] %v372_v22  ;;  %375 = vst [vmem:[%s2063_s27 + $0xb8] sm:$0xff] %v374_v23  ;;  %v378_v25 = vld [vmem:[%s2058_s26 + $0x3e8] sm:$0xff]  ;;  %v380_v26 = vld [vmem:[%s2058_s26 + $0x410] sm:$0xff] }
  0x1e   : > { %377 = vst [vmem:[%s2063_s27 + $0xc0] sm:$0xff] %v376_v24  ;;  %379 = vst [vmem:[%s2063_s27 + $0xc8] sm:$0xff] %v378_v25  ;;  %v382_v27 = vld [vmem:[%s2058_s26 + $0x438] sm:$0xff]  ;;  %v384_v28 = vld [vmem:[%s2058_s26 + $0x460] sm:$0xff] }
  0x1f   : > { %381 = vst [vmem:[%s2063_s27 + $0xd0] sm:$0xff] %v380_v26  ;;  %v386_v29 = vld [vmem:[%s2058_s26 + $0x488] sm:$0xff]  ;;  %383 = vst [vmem:[%s2063_s27 + $0xd8] sm:$0xff] %v382_v27  ;;  %v388_v30 = vld [vmem:[%s2058_s26 + $0x4b0] sm:$0xff] }
  0x20   : > { %385 = vst [vmem:[%s2063_s27 + $0xe0] sm:$0xff] %v384_v28  ;;  %387 = vst [vmem:[%s2063_s27 + $0xe8] sm:$0xff] %v386_v29  ;;  %v390_v31 = vld [vmem:[%s2058_s26 + $0x4d8] sm:$0xff]  ;;  %v392_v32 = vld [vmem:[%s2058_s26 + $0x500] sm:$0xff] }
  0x21   : > { %389 = vst [vmem:[%s2063_s27 + $0xf0] sm:$0xff] %v388_v30  ;;  %391 = vst [vmem:[%s2063_s27 + $0xf8] sm:$0xff] %v390_v31  ;;  %v394_v33 = vld [vmem:[%s2058_s26 + $0x528] sm:$0xff]  ;;  %v396_v34 = vld [vmem:[%s2058_s26 + $0x550] sm:$0xff] }
  0x22   : > { %393 = vst [vmem:[%s2063_s27 + $0x100] sm:$0xff] %v392_v32  ;;  %v398_v35 = vld [vmem:[%s2058_s26 + $0x578] sm:$0xff]  ;;  %395 = vst [vmem:[%s2063_s27 + $0x108] sm:$0xff] %v394_v33  ;;  %v400_v36 = vld [vmem:[%s2058_s26 + $0x5a0] sm:$0xff] }
  0x23   : > { %397 = vst [vmem:[%s2063_s27 + $0x110] sm:$0xff] %v396_v34  ;;  %399 = vst [vmem:[%s2063_s27 + $0x118] sm:$0xff] %v398_v35  ;;  %v402_v37 = vld [vmem:[%s2058_s26 + $0x5c8] sm:$0xff]  ;;  %v404_v38 = vld [vmem:[%s2058_s26 + $0x5f0] sm:$0xff] }
  0x24   : > { %401 = vst [vmem:[%s2063_s27 + $0x120] sm:$0xff] %v400_v36  ;;  %403 = vst [vmem:[%s2063_s27 + $0x128] sm:$0xff] %v402_v37  ;;  %v406_v39 = vld [vmem:[%s2058_s26 + $0x618] sm:$0xff]  ;;  %v408_v40 = vld [vmem:[%s2058_s26 + $0x640] sm:$0xff] }
  0x25   : > { %405 = vst [vmem:[%s2063_s27 + $0x130] sm:$0xff] %v404_v38  ;;  %v410_v41 = vld [vmem:[%s2058_s26 + $0x668] sm:$0xff]  ;;  %407 = vst [vmem:[%s2063_s27 + $0x138] sm:$0xff] %v406_v39  ;;  %v412_v42 = vld [vmem:[%s2058_s26 + $0x690] sm:$0xff] }
  0x26   : > { %409 = vst [vmem:[%s2063_s27 + $0x140] sm:$0xff] %v408_v40  ;;  %411 = vst [vmem:[%s2063_s27 + $0x148] sm:$0xff] %v410_v41  ;;  %v414_v43 = vld [vmem:[%s2058_s26 + $0x6b8] sm:$0xff]  ;;  %v416_v44 = vld [vmem:[%s2058_s26 + $0x6e0] sm:$0xff] }
  0x27   : > { %413 = vst [vmem:[%s2063_s27 + $0x150] sm:$0xff] %v412_v42  ;;  %415 = vst [vmem:[%s2063_s27 + $0x158] sm:$0xff] %v414_v43  ;;  %v418_v45 = vld [vmem:[%s2058_s26 + $0x708] sm:$0xff]  ;;  %v420_v46 = vld [vmem:[%s2058_s26 + $0x730] sm:$0xff] }
  0x28   : > { %417 = vst [vmem:[%s2063_s27 + $0x160] sm:$0xff] %v416_v44  ;;  %v422_v47 = vld [vmem:[%s2058_s26 + $0x758] sm:$0xff]  ;;  %419 = vst [vmem:[%s2063_s27 + $0x168] sm:$0xff] %v418_v45  ;;  %v424_v48 = vld [vmem:[%s2058_s26 + $0x780] sm:$0xff] }
  0x29   : > { %421 = vst [vmem:[%s2063_s27 + $0x170] sm:$0xff] %v420_v46  ;;  %423 = vst [vmem:[%s2063_s27 + $0x178] sm:$0xff] %v422_v47  ;;  %v426_v49 = vld [vmem:[%s2058_s26 + $0x7a8] sm:$0xff]  ;;  %v428_v50 = vld [vmem:[%s2058_s26 + $0x7d0] sm:$0xff] }
  0x2a   : > { %425 = vst [vmem:[%s2063_s27 + $0x180] sm:$0xff] %v424_v48  ;;  %427 = vst [vmem:[%s2063_s27 + $0x188] sm:$0xff] %v426_v49  ;;  %v430_v51 = vld [vmem:[%s2058_s26 + $0x7f8] sm:$0xff]  ;;  %v432_v52 = vld [vmem:[%s2058_s26 + $0x820] sm:$0xff] }
  0x2b   : > { %429 = vst [vmem:[%s2063_s27 + $0x190] sm:$0xff] %v428_v50  ;;  %v434_v53 = vld [vmem:[%s2058_s26 + $0x848] sm:$0xff]  ;;  %431 = vst [vmem:[%s2063_s27 + $0x198] sm:$0xff] %v430_v51  ;;  %v436_v54 = vld [vmem:[%s2058_s26 + $0x870] sm:$0xff] }
  0x2c   : > { %433 = vst [vmem:[%s2063_s27 + $0x1a0] sm:$0xff] %v432_v52  ;;  %435 = vst [vmem:[%s2063_s27 + $0x1a8] sm:$0xff] %v434_v53  ;;  %v438_v55 = vld [vmem:[%s2058_s26 + $0x898] sm:$0xff]  ;;  %v440_v56 = vld [vmem:[%s2058_s26 + $0x8c0] sm:$0xff] }
  0x2d   : > { %437 = vst [vmem:[%s2063_s27 + $0x1b0] sm:$0xff] %v436_v54  ;;  %439 = vst [vmem:[%s2063_s27 + $0x1b8] sm:$0xff] %v438_v55  ;;  %v442_v57 = vld [vmem:[%s2058_s26 + $0x8e8] sm:$0xff]  ;;  %v444_v58 = vld [vmem:[%s2058_s26 + $0x910] sm:$0xff] }
  0x2e   : > { %441 = vst [vmem:[%s2063_s27 + $0x1c0] sm:$0xff] %v440_v56  ;;  %v446_v59 = vld [vmem:[%s2058_s26 + $0x938] sm:$0xff]  ;;  %443 = vst [vmem:[%s2063_s27 + $0x1c8] sm:$0xff] %v442_v57  ;;  %v448_v60 = vld [vmem:[%s2058_s26 + $0x960] sm:$0xff] }
  0x2f   : > { %445 = vst [vmem:[%s2063_s27 + $0x1d0] sm:$0xff] %v444_v58  ;;  %447 = vst [vmem:[%s2063_s27 + $0x1d8] sm:$0xff] %v446_v59  ;;  %v450_v61 = vld [vmem:[%s2058_s26 + $0x988] sm:$0xff]  ;;  %v452_v62 = vld [vmem:[%s2058_s26 + $0x9b0] sm:$0xff] }
  0x30   : > { %449 = vst [vmem:[%s2063_s27 + $0x1e0] sm:$0xff] %v448_v60  ;;  %451 = vst [vmem:[%s2063_s27 + $0x1e8] sm:$0xff] %v450_v61  ;;  %v454_v63 = vld [vmem:[%s2058_s26 + $0x9d8] sm:$0xff] }
  0x31   : > { %453 = vst [vmem:[%s2063_s27 + $0x1f0] sm:$0xff] %v452_v62  ;;  %455 = vst [vmem:[%s2063_s27 + $0x1f8] sm:$0xff] %v454_v63 }
  0x32 PF: > { %p1646_p6 = scmp.ge.s32.totalorder %s1992_s16, 1  ;;  %p472_p7 = scmp.lt.s32.totalorder %s1992_s16, 6 }
  0x34   : > { %p473_p8 = pnand %p1646_p6, %p472_p7 }
  0x35   : > { %s479_s28 = sand.u32 (!%p473_p8), 1, %s1976_s12   ;;  %s1648_s29 = sshll.u32 (!%p473_p8), %s1984_s14, 4 }
  0x36   : > { %476 = sbr.rel (%p473_p8) target bundleno = 433 (0x1b1), region = 66  ;;  %s1647_s30 = sshll.u32 (!%p473_p8), %s479_s28, 9 }
  0x37   : > { %p518_p9 = scmp.lt.s32.totalorder (!%p473_p8), %s1648_s29, 79  ;;  %s2199_s8 = scalar_lea.vmem (!%p473_p8), [#allocation3], %s1647_s30 }
  0x38   : > { %p1650_p10 = scmp.ne.s32.totalorder (!%p473_p8), %s1984_s14, 0 }
  0x3d   : > { %s2634_s29 = smov (!%p518_p9, %s1648_s29), 79  ;;  %541 = sbr.rel (%p1650_p10) target bundleno = 95 (0x5f), region = 74 }
  0x3e   : > { %s1649_s4 = sshll.u32 %s2634_s29, 3  ;;  %v1994_v0 = vmov (!%p1650_p10), 0.0  }
  0x3f   : > { %s2197_s7 = scalar_lea.vmem %s2624_s1, %s1649_s4  ;;  %542 = vst [vmem:[#allocation2] sm:$0xff] (!%p1650_p10), %v1994_v0  ;;  %543 = vst [vmem:[#allocation2 + $0x8] sm:$0xff] (!%p1650_p10), %v1994_v0 }
  0x40   : > { %544 = vst [vmem:[#allocation2 + $0x10] sm:$0xff] (!%p1650_p10), %v1994_v0  ;;  %545 = vst [vmem:[#allocation2 + $0x18] sm:$0xff] (!%p1650_p10), %v1994_v0 }
  0x41   : > { %546 = vst [vmem:[#allocation2 + $0x20] sm:$0xff] (!%p1650_p10), %v1994_v0  ;;  %547 = vst [vmem:[#allocation2 + $0x28] sm:$0xff] (!%p1650_p10), %v1994_v0 }
  0x42   : > { %548 = vst [vmem:[#allocation2 + $0x30] sm:$0xff] (!%p1650_p10), %v1994_v0  ;;  %549 = vst [vmem:[#allocation2 + $0x38] sm:$0xff] (!%p1650_p10), %v1994_v0 }
  0x43   : > { %550 = vst [vmem:[#allocation2 + $0x40] sm:$0xff] (!%p1650_p10), %v1994_v0  ;;  %551 = vst [vmem:[#allocation2 + $0x48] sm:$0xff] (!%p1650_p10), %v1994_v0 }
  0x44   : > { %552 = vst [vmem:[#allocation2 + $0x50] sm:$0xff] %v1994_v0  ;;  %553 = vst [vmem:[#allocation2 + $0x58] sm:$0xff] %v1994_v0 }
  0x45   : > { %554 = vst [vmem:[#allocation2 + $0x60] sm:$0xff] %v1994_v0  ;;  %555 = vst [vmem:[#allocation2 + $0x68] sm:$0xff] %v1994_v0 }
  0x46   : > { %556 = vst [vmem:[#allocation2 + $0x70] sm:$0xff] %v1994_v0  ;;  %557 = vst [vmem:[#allocation2 + $0x78] sm:$0xff] %v1994_v0 }
  0x47   : > { %558 = vst [vmem:[#allocation2 + $0x80] sm:$0xff] %v1994_v0  ;;  %559 = vst [vmem:[#allocation2 + $0x88] sm:$0xff] %v1994_v0 }
  0x48   : > { %560 = vst [vmem:[#allocation2 + $0x90] sm:$0xff] %v1994_v0  ;;  %561 = vst [vmem:[#allocation2 + $0x98] sm:$0xff] %v1994_v0 }
  0x49   : > { %562 = vst [vmem:[#allocation2 + $0xa0] sm:$0xff] %v1994_v0  ;;  %563 = vst [vmem:[#allocation2 + $0xa8] sm:$0xff] %v1994_v0 }
  0x4a   : > { %564 = vst [vmem:[#allocation2 + $0xb0] sm:$0xff] %v1994_v0  ;;  %565 = vst [vmem:[#allocation2 + $0xb8] sm:$0xff] %v1994_v0 }
  0x4b   : > { %566 = vst [vmem:[#allocation2 + $0xc0] sm:$0xff] %v1994_v0  ;;  %567 = vst [vmem:[#allocation2 + $0xc8] sm:$0xff] %v1994_v0 }
  0x4c   : > { %568 = vst [vmem:[#allocation2 + $0xd0] sm:$0xff] %v1994_v0  ;;  %569 = vst [vmem:[#allocation2 + $0xd8] sm:$0xff] %v1994_v0 }
  0x4d   : > { %570 = vst [vmem:[#allocation2 + $0xe0] sm:$0xff] %v1994_v0  ;;  %571 = vst [vmem:[#allocation2 + $0xe8] sm:$0xff] %v1994_v0 }
  0x4e   : > { %572 = vst [vmem:[#allocation2 + $0xf0] sm:$0xff] %v1994_v0  ;;  %573 = vst [vmem:[#allocation2 + $0xf8] sm:$0xff] %v1994_v0 }
  0x4f   : > { %574 = vst [vmem:[#allocation2 + $0x100] sm:$0xff] %v1994_v0  ;;  %575 = vst [vmem:[#allocation2 + $0x108] sm:$0xff] %v1994_v0 }
  0x50   : > { %576 = vst [vmem:[#allocation2 + $0x110] sm:$0xff] %v1994_v0  ;;  %577 = vst [vmem:[#allocation2 + $0x118] sm:$0xff] %v1994_v0 }
  0x51   : > { %578 = vst [vmem:[#allocation2 + $0x120] sm:$0xff] %v1994_v0  ;;  %579 = vst [vmem:[#allocation2 + $0x128] sm:$0xff] %v1994_v0 }
  0x52   : > { %580 = vst [vmem:[#allocation2 + $0x130] sm:$0xff] %v1994_v0  ;;  %581 = vst [vmem:[#allocation2 + $0x138] sm:$0xff] %v1994_v0 }
  0x53   : > { %582 = vst [vmem:[#allocation2 + $0x140] sm:$0xff] %v1994_v0  ;;  %583 = vst [vmem:[#allocation2 + $0x148] sm:$0xff] %v1994_v0 }
  0x54   : > { %584 = vst [vmem:[#allocation2 + $0x150] sm:$0xff] %v1994_v0  ;;  %585 = vst [vmem:[#allocation2 + $0x158] sm:$0xff] %v1994_v0 }
  0x55   : > { %586 = vst [vmem:[#allocation2 + $0x160] sm:$0xff] %v1994_v0  ;;  %587 = vst [vmem:[#allocation2 + $0x168] sm:$0xff] %v1994_v0 }
  0x56   : > { %588 = vst [vmem:[#allocation2 + $0x170] sm:$0xff] %v1994_v0  ;;  %589 = vst [vmem:[#allocation2 + $0x178] sm:$0xff] %v1994_v0 }
  0x57   : > { %590 = vst [vmem:[#allocation2 + $0x180] sm:$0xff] %v1994_v0  ;;  %591 = vst [vmem:[#allocation2 + $0x188] sm:$0xff] %v1994_v0 }
  0x58   : > { %592 = vst [vmem:[#allocation2 + $0x190] sm:$0xff] %v1994_v0  ;;  %593 = vst [vmem:[#allocation2 + $0x198] sm:$0xff] %v1994_v0 }
  0x59   : > { %594 = vst [vmem:[#allocation2 + $0x1a0] sm:$0xff] %v1994_v0  ;;  %595 = vst [vmem:[#allocation2 + $0x1a8] sm:$0xff] %v1994_v0 }
  0x5a   : > { %596 = vst [vmem:[#allocation2 + $0x1b0] sm:$0xff] %v1994_v0  ;;  %597 = vst [vmem:[#allocation2 + $0x1b8] sm:$0xff] %v1994_v0 }
  0x5b   : > { %598 = vst [vmem:[#allocation2 + $0x1c0] sm:$0xff] %v1994_v0  ;;  %599 = vst [vmem:[#allocation2 + $0x1c8] sm:$0xff] %v1994_v0 }
  0x5c   : > { %600 = vst [vmem:[#allocation2 + $0x1d0] sm:$0xff] %v1994_v0  ;;  %601 = vst [vmem:[#allocation2 + $0x1d8] sm:$0xff] %v1994_v0 }
  0x5d   : > { %602 = vst [vmem:[#allocation2 + $0x1e0] sm:$0xff] %v1994_v0  ;;  %603 = vst [vmem:[#allocation2 + $0x1e8] sm:$0xff] %v1994_v0 }
  0x5e   : > { %604 = vst [vmem:[#allocation2 + $0x1f0] sm:$0xff] %v1994_v0  ;;  %605 = vst [vmem:[#allocation2 + $0x1f8] sm:$0xff] %v1994_v0 }
  0x5f PF: > { %v734_v1 = vld [vmem:[%s2197_s7] sm:$0xff]  ;;  %v735_v2 = vld [vmem:[%s2197_s7 + $0x8] sm:$0xff]  ;;  %v736_v3 = vld [vmem:[%s2197_s7 + $0x10] sm:$0xff]  ;;  %p1651_p11 = scmp.ne.s32.totalorder %s1984_s14, 4 }
  0x60   : > { %v1865_v4 = vpack.c.bf16 %v735_v2, %v734_v1  ;;  %v737_v5 = vld [vmem:[%s2197_s7 + $0x18] sm:$0xff]  ;;  %v738_v7 = vld [vmem:[%s2197_s7 + $0x20] sm:$0xff]  ;;  %v739_v8 = vld [vmem:[%s2197_s7 + $0x28] sm:$0xff] }
  0x61   : > { %v1869_v6 = vpack.c.bf16 %v737_v5, %v736_v3  ;;  %v1873_v9 = vpack.c.bf16 %v739_v8, %v738_v7  ;;  %v670_v10 = vld [vmem:[%s2199_s8] sm:$0xff]  ;;  %v740_v12 = vld [vmem:[%s2197_s7 + $0x30] sm:$0xff]  ;;  %v741_v13 = vld [vmem:[%s2197_s7 + $0x38] sm:$0xff] }
  0x62   : > { %1866 = vmatprep.subr.bf16.mxu0 %v1865_v4  ;;  %1897 = vmatprep.subr.bf16.mxu1 %v1865_v4  ;;  %v702_v11 = vld [vmem:[%s2199_s8 + $0x100] sm:$0xff]  ;;  %v1877_v14 = vpack.c.bf16 %v741_v13, %v740_v12  ;;  %v743_v16 = vld [vmem:[%s2197_s7 + $0x48] sm:$0xff]  ;;  %v744_v18 = vld [vmem:[%s2197_s7 + $0x50] sm:$0xff] }
  0x63   : > { %1868 = vmatpush3.bf16.msra.mxu0 %v1865_v4  ;;  %1905 = vmatpush3.bf16.msra.mxu1 %v1865_v4  ;;  %v742_v15 = vld [vmem:[%s2197_s7 + $0x40] sm:$0xff]  ;;  %v745_v19 = vld [vmem:[%s2197_s7 + $0x58] sm:$0xff]  ;;  %v747_v22 = vld [vmem:[%s2197_s7 + $0x68] sm:$0xff] }
  0x64   : > { %1870 = vmatprep.subr.bf16.mxu0 %v1869_v6  ;;  %1898 = vmatprep.subr.bf16.mxu1 %v1869_v6  ;;  %v1881_v17 = vpack.c.bf16 %v743_v16, %v742_v15  ;;  %v1885_v20 = vpack.c.bf16 %v745_v19, %v744_v18  ;;  %v746_v21 = vld [vmem:[%s2197_s7 + $0x60] sm:$0xff]  ;;  %v748_v24 = vld [vmem:[%s2197_s7 + $0x70] sm:$0xff]  ;;  %v749_v25 = vld [vmem:[%s2197_s7 + $0x78] sm:$0xff] }
  0x65   : > { %1769 = vmatprep.mubr.f32.mxu0 %v670_v10  ;;  %1817 = vmatprep.mubr.f32.mxu1 %v702_v11  ;;  %v1889_v23 = vpack.c.bf16 %v747_v22, %v746_v21  ;;  %v1893_v26 = vpack.c.bf16 %v749_v25, %v748_v24  ;;  %v671_v27 = vld [vmem:[%s2199_s8 + $0x8] sm:$0xff]  ;;  %v672_v29 = vld [vmem:[%s2199_s8 + $0x10] sm:$0xff]  ;;  %v673_v31 = vld [vmem:[%s2199_s8 + $0x18] sm:$0xff] }
  0x66   : > { %v703_v28 = vld [vmem:[%s2199_s8 + $0x108] sm:$0xff]  ;;  %v704_v30 = vld [vmem:[%s2199_s8 + $0x110] sm:$0xff]  ;;  %v705_v32 = vld [vmem:[%s2199_s8 + $0x118] sm:$0xff] }
  0x67   : > { %1872 = vmatpush3.bf16.msra.mxu0 %v1869_v6  ;;  %1906 = vmatpush3.bf16.msra.mxu1 %v1869_v6  ;;  %v674_v33 = vld [vmem:[%s2199_s8 + $0x20] sm:$0xff]  ;;  %v675_v35 = vld [vmem:[%s2199_s8 + $0x28] sm:$0xff]  ;;  %v676_v37 = vld [vmem:[%s2199_s8 + $0x30] sm:$0xff] }
  0x68   : > { %1874 = vmatprep.subr.bf16.mxu0 %v1873_v9  ;;  %1899 = vmatprep.subr.bf16.mxu1 %v1873_v9  ;;  %v706_v34 = vld [vmem:[%s2199_s8 + $0x120] sm:$0xff]  ;;  %v707_v36 = vld [vmem:[%s2199_s8 + $0x128] sm:$0xff]  ;;  %v708_v38 = vld [vmem:[%s2199_s8 + $0x130] sm:$0xff] }
  0x69   : > { %v677_v39 = vld [vmem:[%s2199_s8 + $0x38] sm:$0xff]  ;;  %v678_v41 = vld [vmem:[%s2199_s8 + $0x40] sm:$0xff]  ;;  %v679_v43 = vld [vmem:[%s2199_s8 + $0x48] sm:$0xff] }
  0x6a   : > { %v709_v40 = vld [vmem:[%s2199_s8 + $0x138] sm:$0xff]  ;;  %v710_v42 = vld [vmem:[%s2199_s8 + $0x140] sm:$0xff]  ;;  %v711_v44 = vld [vmem:[%s2199_s8 + $0x148] sm:$0xff] }
  0x6b   : > { %1876 = vmatpush3.bf16.msra.mxu0 %v1873_v9  ;;  %1907 = vmatpush3.bf16.msra.mxu1 %v1873_v9  ;;  %v680_v45 = vld [vmem:[%s2199_s8 + $0x50] sm:$0xff]  ;;  %v681_v47 = vld [vmem:[%s2199_s8 + $0x58] sm:$0xff]  ;;  %v682_v49 = vld [vmem:[%s2199_s8 + $0x60] sm:$0xff] }
  0x6c   : > { %1878 = vmatprep.subr.bf16.mxu0 %v1877_v14  ;;  %1900 = vmatprep.subr.bf16.mxu1 %v1877_v14  ;;  %v712_v46 = vld [vmem:[%s2199_s8 + $0x150] sm:$0xff]  ;;  %v713_v48 = vld [vmem:[%s2199_s8 + $0x158] sm:$0xff]  ;;  %v714_v50 = vld [vmem:[%s2199_s8 + $0x160] sm:$0xff] }
  0x6d   : > { %v683_v51 = vld [vmem:[%s2199_s8 + $0x68] sm:$0xff]  ;;  %v684_v53 = vld [vmem:[%s2199_s8 + $0x70] sm:$0xff]  ;;  %v685_v55 = vld [vmem:[%s2199_s8 + $0x78] sm:$0xff] }
  0x6e   : > { %v715_v52 = vld [vmem:[%s2199_s8 + $0x168] sm:$0xff]  ;;  %v716_v54 = vld [vmem:[%s2199_s8 + $0x170] sm:$0xff]  ;;  %v717_v56 = vld [vmem:[%s2199_s8 + $0x178] sm:$0xff] }
  0x6f   : > { %1880 = vmatpush3.bf16.msra.mxu0 %v1877_v14  ;;  %1908 = vmatpush3.bf16.msra.mxu1 %v1877_v14  ;;  %v686_v57 = vld [vmem:[%s2199_s8 + $0x80] sm:$0xff]  ;;  %v687_v59 = vld [vmem:[%s2199_s8 + $0x88] sm:$0xff]  ;;  %v688_v61 = vld [vmem:[%s2199_s8 + $0x90] sm:$0xff] }
  0x70   : > { %1882 = vmatprep.subr.bf16.mxu0 %v1881_v17  ;;  %1901 = vmatprep.subr.bf16.mxu1 %v1881_v17  ;;  %v718_v58 = vld [vmem:[%s2199_s8 + $0x180] sm:$0xff]  ;;  %v719_v60 = vld [vmem:[%s2199_s8 + $0x188] sm:$0xff]  ;;  %v720_v62 = vld [vmem:[%s2199_s8 + $0x190] sm:$0xff] }
  0x71   : > { %v689_v63 = vld [vmem:[%s2199_s8 + $0x98] sm:$0xff]  ;;  %v690_v1 = vld [vmem:[%s2199_s8 + $0xa0] sm:$0xff]  ;;  %v691_v3 = vld [vmem:[%s2199_s8 + $0xa8] sm:$0xff] }
  0x72   : > { %v721_v0 = vld [vmem:[%s2199_s8 + $0x198] sm:$0xff]  ;;  %v722_v2 = vld [vmem:[%s2199_s8 + $0x1a0] sm:$0xff]  ;;  %v723_v4 = vld [vmem:[%s2199_s8 + $0x1a8] sm:$0xff] }
  0x73   : > { %1884 = vmatpush3.bf16.msra.mxu0 %v1881_v17  ;;  %1909 = vmatpush3.bf16.msra.mxu1 %v1881_v17  ;;  %v692_v5 = vld [vmem:[%s2199_s8 + $0xb0] sm:$0xff]  ;;  %v693_v7 = vld [vmem:[%s2199_s8 + $0xb8] sm:$0xff]  ;;  %v694_v9 = vld [vmem:[%s2199_s8 + $0xc0] sm:$0xff] }
  0x74   : > { %1886 = vmatprep.subr.bf16.mxu0 %v1885_v20  ;;  %1902 = vmatprep.subr.bf16.mxu1 %v1885_v20  ;;  %v724_v6 = vld [vmem:[%s2199_s8 + $0x1b0] sm:$0xff]  ;;  %v725_v8 = vld [vmem:[%s2199_s8 + $0x1b8] sm:$0xff]  ;;  %v726_v10 = vld [vmem:[%s2199_s8 + $0x1c0] sm:$0xff] }
  0x75   : > { %v695_v11 = vld [vmem:[%s2199_s8 + $0xc8] sm:$0xff]  ;;  %v696_v13 = vld [vmem:[%s2199_s8 + $0xd0] sm:$0xff]  ;;  %v697_v15 = vld [vmem:[%s2199_s8 + $0xd8] sm:$0xff] }
  0x76   : > { %v727_v12 = vld [vmem:[%s2199_s8 + $0x1c8] sm:$0xff]  ;;  %v728_v14 = vld [vmem:[%s2199_s8 + $0x1d0] sm:$0xff]  ;;  %v729_v16 = vld [vmem:[%s2199_s8 + $0x1d8] sm:$0xff] }
  0x77   : > { %1888 = vmatpush3.bf16.msra.mxu0 %v1885_v20  ;;  %1910 = vmatpush3.bf16.msra.mxu1 %v1885_v20  ;;  %v698_v17 = vld [vmem:[%s2199_s8 + $0xe0] sm:$0xff]  ;;  %v699_v19 = vld [vmem:[%s2199_s8 + $0xe8] sm:$0xff]  ;;  %v700_v21 = vld [vmem:[%s2199_s8 + $0xf0] sm:$0xff] }
  0x78   : > { %1890 = vmatprep.subr.bf16.mxu0 %v1889_v23  ;;  %1903 = vmatprep.subr.bf16.mxu1 %v1889_v23  ;;  %v730_v18 = vld [vmem:[%s2199_s8 + $0x1e0] sm:$0xff]  ;;  %v731_v20 = vld [vmem:[%s2199_s8 + $0x1e8] sm:$0xff]  ;;  %v732_v22 = vld [vmem:[%s2199_s8 + $0x1f0] sm:$0xff] }
  0x79   : > { %v733_v24 = vld [vmem:[%s2199_s8 + $0x1f8] sm:$0xff]  ;;  %v607_v25 = vld [vmem:[#allocation2 + $0x8] sm:$0xff] }
  0x7b   : > { %1892 = vmatpush3.bf16.msra.mxu0 %v1889_v23  ;;  %1911 = vmatpush3.bf16.msra.mxu1 %v1889_v23  ;;  %v701_v23 = vld [vmem:[%s2199_s8 + $0xf8] sm:$0xff] }
  0x7c   : > { %1894 = vmatprep.subr.bf16.mxu0 %v1893_v26  ;;  %1904 = vmatprep.subr.bf16.mxu1 %v1893_v26 }
  0x7f   : > { %1896 = vmatpush3.bf16.msra.mxu0 %v1893_v26  ;;  %1912 = vmatpush3.bf16.msra.mxu1 %v1893_v26  ;;  %v639_v26 = vld [vmem:[#allocation2 + $0x108] sm:$0xff] }
  0x82   : > { %1770 = vmatmul.mubr.f32.vlgmr.msra.gmra.mrb[0].mxu0 %v671_v27  ;;  %1818 = vmatmul.mubr.f32.vlgmr.msra.gmra.mrb[0].mxu1 %v703_v28  ;;  %v606_v27 = vld [vmem:[#allocation2] sm:$0xff] }
  0x83   : > { %1772 = vmatprep.mubr.f32.mxu0 %v672_v29  ;;  %1820 = vmatprep.mubr.f32.mxu1 %v704_v30  ;;  %v638_v28 = vld [vmem:[#allocation2 + $0x100] sm:$0xff] }
  0x86   : > { %1773 = vmatmul.mubr.f32.gmra.mrb[2].mxu0 %v673_v31  ;;  %1821 = vmatmul.mubr.f32.gmra.mrb[2].mxu1 %v705_v32 }
  0x87   : > { %1775 = vmatprep.mubr.f32.mxu0 %v674_v33  ;;  %1823 = vmatprep.mubr.f32.mxu1 %v706_v34 }
  0x8a   : > { %1776 = vmatmul.mubr.f32.gmra.mrb[4].mxu0 %v675_v35  ;;  %1824 = vmatmul.mubr.f32.gmra.mrb[4].mxu1 %v707_v36 }
  0x8b   : > { %1778 = vmatprep.mubr.f32.mxu0 %v676_v37  ;;  %1826 = vmatprep.mubr.f32.mxu1 %v708_v38  ;;  %v609_v37 = vld [vmem:[#allocation2 + $0x18] sm:$0xff] }
  0x8c   : > { %v641_v38 = vld [vmem:[#allocation2 + $0x118] sm:$0xff] }
  0x8e   : > { %1779 = vmatmul.mubr.f32.gmra.mrb[6].mxu0 %v677_v39  ;;  %1827 = vmatmul.mubr.f32.gmra.mrb[6].mxu1 %v709_v40  ;;  %v608_v39 = vld [vmem:[#allocation2 + $0x10] sm:$0xff] }
  0x8f   : > { %1781 = vmatprep.mubr.f32.mxu0 %v678_v41  ;;  %1829 = vmatprep.mubr.f32.mxu1 %v710_v42  ;;  %v640_v40 = vld [vmem:[#allocation2 + $0x110] sm:$0xff] }
  0x92   : > { %1782 = vmatmul.mubr.f32.gmra.mrb[8].mxu0 %v679_v43  ;;  %1830 = vmatmul.mubr.f32.gmra.mrb[8].mxu1 %v711_v44 }
  0x93   : > { %1784 = vmatprep.mubr.f32.mxu0 %v680_v45  ;;  %1832 = vmatprep.mubr.f32.mxu1 %v712_v46 }
  0x96   : > { %1785 = vmatmul.mubr.f32.gmra.mrb[10].mxu0 %v681_v47  ;;  %1833 = vmatmul.mubr.f32.gmra.mrb[10].mxu1 %v713_v48 }
  0x97   : > { %1787 = vmatprep.mubr.f32.mxu0 %v682_v49  ;;  %1835 = vmatprep.mubr.f32.mxu1 %v714_v50  ;;  %v611_v49 = vld [vmem:[#allocation2 + $0x28] sm:$0xff] }
  0x98   : > { %v643_v50 = vld [vmem:[#allocation2 + $0x128] sm:$0xff] }
  0x9a   : > { %1788 = vmatmul.mubr.f32.gmra.mrb[12].mxu0 %v683_v51  ;;  %1836 = vmatmul.mubr.f32.gmra.mrb[12].mxu1 %v715_v52  ;;  %v610_v51 = vld [vmem:[#allocation2 + $0x20] sm:$0xff] }
  0x9b   : > { %1790 = vmatprep.mubr.f32.mxu0 %v684_v53  ;;  %1838 = vmatprep.mubr.f32.mxu1 %v716_v54  ;;  %v642_v52 = vld [vmem:[#allocation2 + $0x120] sm:$0xff] }
  0x9e   : > { %1791 = vmatmul.mubr.f32.gmra.mrb[14].mxu0 %v685_v55  ;;  %1839 = vmatmul.mubr.f32.gmra.mrb[14].mxu1 %v717_v56 }
  0x9f   : > { %1793 = vmatprep.mubr.f32.mxu0 %v686_v57  ;;  %1841 = vmatprep.mubr.f32.mxu1 %v718_v58 }
  0xa2   : > { %1794 = vmatmul.mubr.f32.gmra.mrb[16].mxu0 %v687_v59  ;;  %1842 = vmatmul.mubr.f32.gmra.mrb[16].mxu1 %v719_v60 }
  0xa3   : > { %1796 = vmatprep.mubr.f32.mxu0 %v688_v61  ;;  %1844 = vmatprep.mubr.f32.mxu1 %v720_v62  ;;  %v613_v61 = vld [vmem:[#allocation2 + $0x38] sm:$0xff] }
  0xa4   : > { %v645_v62 = vld [vmem:[#allocation2 + $0x138] sm:$0xff] }
  0xa6   : > { %1797 = vmatmul.mubr.f32.gmra.mrb[18].mxu0 %v689_v63  ;;  %1845 = vmatmul.mubr.f32.gmra.mrb[18].mxu1 %v721_v0  ;;  %v612_v63 = vld [vmem:[#allocation2 + $0x30] sm:$0xff] }
  0xa7   : > { %1799 = vmatprep.mubr.f32.mxu0 %v690_v1  ;;  %1847 = vmatprep.mubr.f32.mxu1 %v722_v2  ;;  %v644_v0 = vld [vmem:[#allocation2 + $0x130] sm:$0xff] }
  0xaa   : > { %1800 = vmatmul.mubr.f32.gmra.mrb[20].mxu0 %v691_v3  ;;  %1848 = vmatmul.mubr.f32.gmra.mrb[20].mxu1 %v723_v4 }
  0xab   : > { %1802 = vmatprep.mubr.f32.mxu0 %v692_v5  ;;  %1850 = vmatprep.mubr.f32.mxu1 %v724_v6 }
  0xae   : > { %1803 = vmatmul.mubr.f32.gmra.mrb[22].mxu0 %v693_v7  ;;  %1851 = vmatmul.mubr.f32.gmra.mrb[22].mxu1 %v725_v8 }
  0xaf   : > { %1805 = vmatprep.mubr.f32.mxu0 %v694_v9  ;;  %1853 = vmatprep.mubr.f32.mxu1 %v726_v10  ;;  %v615_v9 = vld [vmem:[#allocation2 + $0x48] sm:$0xff] }
  0xb0   : > { %v647_v10 = vld [vmem:[#allocation2 + $0x148] sm:$0xff] }
  0xb2   : > { %1806 = vmatmul.mubr.f32.gmra.mrb[24].mxu0 %v695_v11  ;;  %1854 = vmatmul.mubr.f32.gmra.mrb[24].mxu1 %v727_v12  ;;  %v614_v11 = vld [vmem:[#allocation2 + $0x40] sm:$0xff] }
  0xb3   : > { %1808 = vmatprep.mubr.f32.mxu0 %v696_v13  ;;  %1856 = vmatprep.mubr.f32.mxu1 %v728_v14  ;;  %v646_v12 = vld [vmem:[#allocation2 + $0x140] sm:$0xff] }
  0xb6   : > { %1809 = vmatmul.mubr.f32.gmra.mrb[26].mxu0 %v697_v15  ;;  %1857 = vmatmul.mubr.f32.gmra.mrb[26].mxu1 %v729_v16 }
  0xb7   : > { %1811 = vmatprep.mubr.f32.mxu0 %v698_v17  ;;  %1859 = vmatprep.mubr.f32.mxu1 %v730_v18 }
  0xba   : > { %1812 = vmatmul.mubr.f32.gmra.mrb[28].mxu0 %v699_v19  ;;  %1860 = vmatmul.mubr.f32.gmra.mrb[28].mxu1 %v731_v20 }
  0xbb   : > { %1814 = vmatprep.mubr.f32.mxu0 %v700_v21  ;;  %1862 = vmatprep.mubr.f32.mxu1 %v732_v22  ;;  %v617_v21 = vld [vmem:[#allocation2 + $0x58] sm:$0xff] }
  0xbc   : > { %v649_v22 = vld [vmem:[#allocation2 + $0x158] sm:$0xff] }
  0xbe   : > { %1815 = vmatmul.mubr.f32.gmra.mrb[30].mxu0 %v701_v23  ;;  %1863 = vmatmul.mubr.f32.gmra.mrb[30].mxu1 %v733_v24  ;;  %v616_v23 = vld [vmem:[#allocation2 + $0x50] sm:$0xff] }
  0xbf   : > { %v648_v24 = vld [vmem:[#allocation2 + $0x150] sm:$0xff] }
 0x155   : > { %v1771_v29 = vpop.f32.mrb[0].mxu0  ;;  %v1819_v30 = vpop.f32.mrb[0].mxu1 }
 0x156   : > { %v1136_v31 = vadd.f32 %v1771_v29, %v607_v25  ;;  %v1168_v32 = vadd.f32 %v1819_v30, %v639_v26  ;;  %v816_v33 = vpop.f32.mrb[1].mxu0  ;;  %v976_v34 = vpop.f32.mrb[1].mxu1 }
 0x157   : > { %v1135_v35 = vadd.f32 %v816_v33, %v606_v27  ;;  %v1167_v36 = vadd.f32 %v976_v34, %v638_v28  ;;  %v619_v33 = vld [vmem:[#allocation2 + $0x68] sm:$0xff] }
 0x158   : > { %1200 = vst [vmem:[#allocation2 + $0x8] sm:$0xff] %v1136_v31  ;;  %1232 = vst [vmem:[#allocation2 + $0x108] sm:$0xff] %v1168_v32  ;;  %v651_v34 = vld [vmem:[#allocation2 + $0x168] sm:$0xff] }
 0x159   : > { %1199 = vst [vmem:[#allocation2] sm:$0xff] %v1135_v35  ;;  %1231 = vst [vmem:[#allocation2 + $0x100] sm:$0xff] %v1167_v36  ;;  %v1774_v41 = vpop.f32.mrb[2].mxu0  ;;  %v1822_v42 = vpop.f32.mrb[2].mxu1  ;;  %v618_v35 = vld [vmem:[#allocation2 + $0x60] sm:$0xff] }
 0x15a   : > { %v1138_v43 = vadd.f32 %v1774_v41, %v609_v37  ;;  %v1170_v44 = vadd.f32 %v1822_v42, %v641_v38  ;;  %v826_v45 = vpop.f32.mrb[3].mxu0  ;;  %v986_v46 = vpop.f32.mrb[3].mxu1  ;;  %v650_v36 = vld [vmem:[#allocation2 + $0x160] sm:$0xff] }
 0x15b   : > { %v1137_v47 = vadd.f32 %v826_v45, %v608_v39  ;;  %v1169_v48 = vadd.f32 %v986_v46, %v640_v40  ;;  %v621_v45 = vld [vmem:[#allocation2 + $0x78] sm:$0xff] }
 0x15c   : > { %1202 = vst [vmem:[#allocation2 + $0x18] sm:$0xff] %v1138_v43  ;;  %1234 = vst [vmem:[#allocation2 + $0x118] sm:$0xff] %v1170_v44  ;;  %v653_v46 = vld [vmem:[#allocation2 + $0x178] sm:$0xff] }
 0x15d   : > { %1201 = vst [vmem:[#allocation2 + $0x10] sm:$0xff] %v1137_v47  ;;  %1233 = vst [vmem:[#allocation2 + $0x110] sm:$0xff] %v1169_v48  ;;  %v1777_v53 = vpop.f32.mrb[4].mxu0  ;;  %v1825_v54 = vpop.f32.mrb[4].mxu1  ;;  %v620_v47 = vld [vmem:[#allocation2 + $0x70] sm:$0xff] }
 0x15e   : > { %v1140_v55 = vadd.f32 %v1777_v53, %v611_v49  ;;  %v1172_v56 = vadd.f32 %v1825_v54, %v643_v50  ;;  %v836_v57 = vpop.f32.mrb[5].mxu0  ;;  %v996_v58 = vpop.f32.mrb[5].mxu1  ;;  %v652_v48 = vld [vmem:[#allocation2 + $0x170] sm:$0xff] }
 0x15f   : > { %v1139_v59 = vadd.f32 %v836_v57, %v610_v51  ;;  %v1171_v60 = vadd.f32 %v996_v58, %v642_v52  ;;  %v623_v57 = vld [vmem:[#allocation2 + $0x88] sm:$0xff] }
 0x160   : > { %1204 = vst [vmem:[#allocation2 + $0x28] sm:$0xff] %v1140_v55  ;;  %1236 = vst [vmem:[#allocation2 + $0x128] sm:$0xff] %v1172_v56  ;;  %v655_v58 = vld [vmem:[#allocation2 + $0x188] sm:$0xff] }
 0x161   : > { %1203 = vst [vmem:[#allocation2 + $0x20] sm:$0xff] %v1139_v59  ;;  %1235 = vst [vmem:[#allocation2 + $0x120] sm:$0xff] %v1171_v60  ;;  %v1780_v1 = vpop.f32.mrb[6].mxu0  ;;  %v1828_v2 = vpop.f32.mrb[6].mxu1  ;;  %v622_v59 = vld [vmem:[#allocation2 + $0x80] sm:$0xff] }
 0x162   : > { %v1142_v3 = vadd.f32 %v1780_v1, %v613_v61  ;;  %v1174_v4 = vadd.f32 %v1828_v2, %v645_v62  ;;  %v846_v5 = vpop.f32.mrb[7].mxu0  ;;  %v1006_v6 = vpop.f32.mrb[7].mxu1  ;;  %v654_v60 = vld [vmem:[#allocation2 + $0x180] sm:$0xff] }
 0x163   : > { %v1141_v7 = vadd.f32 %v846_v5, %v612_v63  ;;  %v1173_v8 = vadd.f32 %v1006_v6, %v644_v0  ;;  %v625_v5 = vld [vmem:[#allocation2 + $0x98] sm:$0xff] }
 0x164   : > { %1206 = vst [vmem:[#allocation2 + $0x38] sm:$0xff] %v1142_v3  ;;  %1238 = vst [vmem:[#allocation2 + $0x138] sm:$0xff] %v1174_v4  ;;  %v657_v6 = vld [vmem:[#allocation2 + $0x198] sm:$0xff] }
 0x165   : > { %1205 = vst [vmem:[#allocation2 + $0x30] sm:$0xff] %v1141_v7  ;;  %1237 = vst [vmem:[#allocation2 + $0x130] sm:$0xff] %v1173_v8  ;;  %v1783_v13 = vpop.f32.mrb[8].mxu0  ;;  %v1831_v14 = vpop.f32.mrb[8].mxu1  ;;  %v624_v7 = vld [vmem:[#allocation2 + $0x90] sm:$0xff] }
 0x166   : > { %v1144_v15 = vadd.f32 %v1783_v13, %v615_v9  ;;  %v1176_v16 = vadd.f32 %v1831_v14, %v647_v10  ;;  %v856_v17 = vpop.f32.mrb[9].mxu0  ;;  %v1016_v18 = vpop.f32.mrb[9].mxu1  ;;  %v656_v8 = vld [vmem:[#allocation2 + $0x190] sm:$0xff] }
 0x167   : > { %v1143_v19 = vadd.f32 %v856_v17, %v614_v11  ;;  %v1175_v20 = vadd.f32 %v1016_v18, %v646_v12  ;;  %v627_v17 = vld [vmem:[#allocation2 + $0xa8] sm:$0xff] }
 0x168   : > { %1208 = vst [vmem:[#allocation2 + $0x48] sm:$0xff] %v1144_v15  ;;  %1240 = vst [vmem:[#allocation2 + $0x148] sm:$0xff] %v1176_v16  ;;  %v659_v18 = vld [vmem:[#allocation2 + $0x1a8] sm:$0xff] }
 0x169   : > { %1207 = vst [vmem:[#allocation2 + $0x40] sm:$0xff] %v1143_v19  ;;  %1239 = vst [vmem:[#allocation2 + $0x140] sm:$0xff] %v1175_v20  ;;  %v1786_v25 = vpop.f32.mrb[10].mxu0  ;;  %v1834_v26 = vpop.f32.mrb[10].mxu1  ;;  %v626_v19 = vld [vmem:[#allocation2 + $0xa0] sm:$0xff] }
 0x16a   : > { %v1146_v27 = vadd.f32 %v1786_v25, %v617_v21  ;;  %v1178_v28 = vadd.f32 %v1834_v26, %v649_v22  ;;  %v866_v29 = vpop.f32.mrb[11].mxu0  ;;  %v1026_v30 = vpop.f32.mrb[11].mxu1  ;;  %v658_v20 = vld [vmem:[#allocation2 + $0x1a0] sm:$0xff] }
 0x16b   : > { %v1145_v31 = vadd.f32 %v866_v29, %v616_v23  ;;  %v1177_v32 = vadd.f32 %v1026_v30, %v648_v24  ;;  %v629_v29 = vld [vmem:[#allocation2 + $0xb8] sm:$0xff] }
 0x16c   : > { %1210 = vst [vmem:[#allocation2 + $0x58] sm:$0xff] %v1146_v27  ;;  %1242 = vst [vmem:[#allocation2 + $0x158] sm:$0xff] %v1178_v28  ;;  %v661_v30 = vld [vmem:[#allocation2 + $0x1b8] sm:$0xff] }
 0x16d   : > { %1209 = vst [vmem:[#allocation2 + $0x50] sm:$0xff] %v1145_v31  ;;  %1241 = vst [vmem:[#allocation2 + $0x150] sm:$0xff] %v1177_v32  ;;  %v1789_v37 = vpop.f32.mrb[12].mxu0  ;;  %v1837_v38 = vpop.f32.mrb[12].mxu1  ;;  %v628_v31 = vld [vmem:[#allocation2 + $0xb0] sm:$0xff] }
 0x16e   : > { %v1148_v39 = vadd.f32 %v1789_v37, %v619_v33  ;;  %v1180_v40 = vadd.f32 %v1837_v38, %v651_v34  ;;  %v876_v41 = vpop.f32.mrb[13].mxu0  ;;  %v1036_v42 = vpop.f32.mrb[13].mxu1  ;;  %v660_v32 = vld [vmem:[#allocation2 + $0x1b0] sm:$0xff] }
 0x16f   : > { %v1147_v43 = vadd.f32 %v876_v41, %v618_v35  ;;  %v1179_v44 = vadd.f32 %v1036_v42, %v650_v36  ;;  %v631_v41 = vld [vmem:[#allocation2 + $0xc8] sm:$0xff] }
 0x170   : > { %1212 = vst [vmem:[#allocation2 + $0x68] sm:$0xff] %v1148_v39  ;;  %1244 = vst [vmem:[#allocation2 + $0x168] sm:$0xff] %v1180_v40  ;;  %v663_v42 = vld [vmem:[#allocation2 + $0x1c8] sm:$0xff] }
 0x171   : > { %1211 = vst [vmem:[#allocation2 + $0x60] sm:$0xff] %v1147_v43  ;;  %1243 = vst [vmem:[#allocation2 + $0x160] sm:$0xff] %v1179_v44  ;;  %v1792_v49 = vpop.f32.mrb[14].mxu0  ;;  %v1840_v50 = vpop.f32.mrb[14].mxu1  ;;  %v630_v43 = vld [vmem:[#allocation2 + $0xc0] sm:$0xff] }
 0x172   : > { %v1150_v51 = vadd.f32 %v1792_v49, %v621_v45  ;;  %v1182_v52 = vadd.f32 %v1840_v50, %v653_v46  ;;  %v886_v53 = vpop.f32.mrb[15].mxu0  ;;  %v1046_v54 = vpop.f32.mrb[15].mxu1  ;;  %v662_v44 = vld [vmem:[#allocation2 + $0x1c0] sm:$0xff] }
 0x173   : > { %v1149_v55 = vadd.f32 %v886_v53, %v620_v47  ;;  %v1181_v56 = vadd.f32 %v1046_v54, %v652_v48  ;;  %v633_v53 = vld [vmem:[#allocation2 + $0xd8] sm:$0xff] }
 0x174   : > { %1214 = vst [vmem:[#allocation2 + $0x78] sm:$0xff] %v1150_v51  ;;  %1246 = vst [vmem:[#allocation2 + $0x178] sm:$0xff] %v1182_v52  ;;  %v665_v54 = vld [vmem:[#allocation2 + $0x1d8] sm:$0xff] }
 0x175   : > { %1213 = vst [vmem:[#allocation2 + $0x70] sm:$0xff] %v1149_v55  ;;  %1245 = vst [vmem:[#allocation2 + $0x170] sm:$0xff] %v1181_v56  ;;  %v1795_v61 = vpop.f32.mrb[16].mxu0  ;;  %v1843_v62 = vpop.f32.mrb[16].mxu1  ;;  %v632_v55 = vld [vmem:[#allocation2 + $0xd0] sm:$0xff] }
 0x176   : > { %v1152_v63 = vadd.f32 %v1795_v61, %v623_v57  ;;  %v1184_v0 = vadd.f32 %v1843_v62, %v655_v58  ;;  %v896_v1 = vpop.f32.mrb[17].mxu0  ;;  %v1056_v2 = vpop.f32.mrb[17].mxu1  ;;  %v664_v56 = vld [vmem:[#allocation2 + $0x1d0] sm:$0xff] }
 0x177   : > { %v1151_v3 = vadd.f32 %v896_v1, %v622_v59  ;;  %v1183_v4 = vadd.f32 %v1056_v2, %v654_v60  ;;  %v635_v1 = vld [vmem:[#allocation2 + $0xe8] sm:$0xff] }
 0x178   : > { %1216 = vst [vmem:[#allocation2 + $0x88] sm:$0xff] %v1152_v63  ;;  %1248 = vst [vmem:[#allocation2 + $0x188] sm:$0xff] %v1184_v0  ;;  %v667_v2 = vld [vmem:[#allocation2 + $0x1e8] sm:$0xff] }
 0x179   : > { %1215 = vst [vmem:[#allocation2 + $0x80] sm:$0xff] %v1151_v3  ;;  %1247 = vst [vmem:[#allocation2 + $0x180] sm:$0xff] %v1183_v4  ;;  %v1798_v9 = vpop.f32.mrb[18].mxu0  ;;  %v1846_v10 = vpop.f32.mrb[18].mxu1  ;;  %v634_v3 = vld [vmem:[#allocation2 + $0xe0] sm:$0xff] }
 0x17a   : > { %v1154_v11 = vadd.f32 %v1798_v9, %v625_v5  ;;  %v1186_v12 = vadd.f32 %v1846_v10, %v657_v6  ;;  %v906_v13 = vpop.f32.mrb[19].mxu0  ;;  %v1066_v14 = vpop.f32.mrb[19].mxu1  ;;  %v666_v4 = vld [vmem:[#allocation2 + $0x1e0] sm:$0xff] }
 0x17b   : > { %v1153_v15 = vadd.f32 %v906_v13, %v624_v7  ;;  %v1185_v16 = vadd.f32 %v1066_v14, %v656_v8  ;;  %v637_v13 = vld [vmem:[#allocation2 + $0xf8] sm:$0xff] }
 0x17c   : > { %1218 = vst [vmem:[#allocation2 + $0x98] sm:$0xff] %v1154_v11  ;;  %1250 = vst [vmem:[#allocation2 + $0x198] sm:$0xff] %v1186_v12  ;;  %v669_v14 = vld [vmem:[#allocation2 + $0x1f8] sm:$0xff] }
 0x17d   : > { %1217 = vst [vmem:[#allocation2 + $0x90] sm:$0xff] %v1153_v15  ;;  %1249 = vst [vmem:[#allocation2 + $0x190] sm:$0xff] %v1185_v16  ;;  %v1801_v21 = vpop.f32.mrb[20].mxu0  ;;  %v1849_v22 = vpop.f32.mrb[20].mxu1  ;;  %v636_v15 = vld [vmem:[#allocation2 + $0xf0] sm:$0xff] }
 0x17e   : > { %v1156_v23 = vadd.f32 %v1801_v21, %v627_v17  ;;  %v1188_v24 = vadd.f32 %v1849_v22, %v659_v18  ;;  %v916_v25 = vpop.f32.mrb[21].mxu0  ;;  %v1076_v26 = vpop.f32.mrb[21].mxu1  ;;  %v668_v16 = vld [vmem:[#allocation2 + $0x1f0] sm:$0xff] }
 0x17f   : > { %v1155_v27 = vadd.f32 %v916_v25, %v626_v19  ;;  %v1187_v28 = vadd.f32 %v1076_v26, %v658_v20  ;;  %v1267_v25 = vld [vmem:[#allocation2] sm:$0xff] (!%p1651_p11) }
 0x180   : > { %1220 = vst [vmem:[#allocation2 + $0xa8] sm:$0xff] %v1156_v23  ;;  %1252 = vst [vmem:[#allocation2 + $0x1a8] sm:$0xff] %v1188_v24  ;;  %v2350_v26 = vld [vmem:[%s2625_s2] ss:$0 sm:$0xff] (!%p1651_p11) }
 0x181   : > { %1219 = vst [vmem:[#allocation2 + $0xa0] sm:$0xff] %v1155_v27  ;;  %1251 = vst [vmem:[#allocation2 + $0x1a0] sm:$0xff] %v1187_v28  ;;  %v1804_v33 = vpop.f32.mrb[22].mxu0  ;;  %v1852_v34 = vpop.f32.mrb[22].mxu1  ;;  %v1268_v27 = vld [vmem:[#allocation2 + $0x8] sm:$0xff] (!%p1651_p11)  ;;  %v1338_v28 = vadd.f32 (!%p1651_p11), %v2350_v26, %v1267_v25 }
 0x182   : > { %v1158_v35 = vadd.f32 %v1804_v33, %v629_v29  ;;  %v1190_v36 = vadd.f32 %v1852_v34, %v661_v30  ;;  %v926_v37 = vpop.f32.mrb[23].mxu0  ;;  %v1086_v38 = vpop.f32.mrb[23].mxu1  ;;  %v1339_v29 = vadd.f32 (!%p1651_p11), %v2350_v26, %v1268_v27  ;;  %v1269_v30 = vld [vmem:[#allocation2 + $0x10] sm:$0xff] (!%p1651_p11) }
 0x183   : > { %v1157_v39 = vadd.f32 %v926_v37, %v628_v31  ;;  %v1189_v40 = vadd.f32 %v1086_v38, %v660_v32  ;;  %v1270_v31 = vld [vmem:[#allocation2 + $0x18] sm:$0xff] (!%p1651_p11)  ;;  %v1271_v32 = vld [vmem:[#allocation2 + $0x20] sm:$0xff] (!%p1651_p11)  ;;  %v1340_v33 = vadd.f32 (!%p1651_p11), %v2350_v26, %v1269_v30  ;;  %v1273_v37 = vld [vmem:[#allocation2 + $0x30] sm:$0xff] (!%p1651_p11) }
 0x184   : > { %1222 = vst [vmem:[#allocation2 + $0xb8] sm:$0xff] %v1158_v35  ;;  %1254 = vst [vmem:[#allocation2 + $0x1b8] sm:$0xff] %v1190_v36  ;;  %v1341_v34 = vadd.f32 (!%p1651_p11), %v2350_v26, %v1270_v31  ;;  %v1342_v35 = vadd.f32 (!%p1651_p11), %v2350_v26, %v1271_v32  ;;  %v1272_v36 = vld [vmem:[#allocation2 + $0x28] sm:$0xff] (!%p1651_p11)  ;;  %v1274_v38 = vld [vmem:[#allocation2 + $0x38] sm:$0xff] (!%p1651_p11) }
 0x185   : > { %1221 = vst [vmem:[#allocation2 + $0xb0] sm:$0xff] %v1157_v39  ;;  %1253 = vst [vmem:[#allocation2 + $0x1b0] sm:$0xff] %v1189_v40  ;;  %v1807_v45 = vpop.f32.mrb[24].mxu0  ;;  %v1855_v46 = vpop.f32.mrb[24].mxu1  ;;  %v1402_v39 = vmax.f32 (!%p1651_p11), %v1338_v28, 0.0  ;;  %v1403_v40 = vmax.f32 (!%p1651_p11), %v1339_v29, 0.0 }
 0x186   : > { %v1160_v47 = vadd.f32 %v1807_v45, %v631_v41  ;;  %v1192_v48 = vadd.f32 %v1855_v46, %v663_v42  ;;  %v936_v49 = vpop.f32.mrb[25].mxu0  ;;  %v1096_v50 = vpop.f32.mrb[25].mxu1  ;;  %v1343_v41 = vadd.f32 (!%p1651_p11), %v2350_v26, %v1272_v36  ;;  %v1344_v42 = vadd.f32 (!%p1651_p11), %v2350_v26, %v1273_v37  ;;  %v1277_v45 = vld [vmem:[#allocation2 + $0x50] sm:$0xff] (!%p1651_p11) }
 0x187   : > { %v1159_v51 = vadd.f32 %v936_v49, %v630_v43  ;;  %v1191_v52 = vadd.f32 %v1096_v50, %v662_v44  ;;  %v1275_v43 = vld [vmem:[#allocation2 + $0x40] sm:$0xff] (!%p1651_p11)  ;;  %v1276_v44 = vld [vmem:[#allocation2 + $0x48] sm:$0xff] (!%p1651_p11)  ;;  %v1404_v46 = vmax.f32 (!%p1651_p11), %v1340_v33, 0.0  ;;  %v1345_v49 = vadd.f32 (!%p1651_p11), %v2350_v26, %v1274_v38  ;;  %v1278_v50 = vld [vmem:[#allocation2 + $0x58] sm:$0xff] (!%p1651_p11)  ;;  %1466 = vst [vmem:[%s2626_s3] sm:$0xff] (!%p1651_p11), %v1402_v39 }
 0x188   : > { %1224 = vst [vmem:[#allocation2 + $0xc8] sm:$0xff] %v1160_v47  ;;  %1256 = vst [vmem:[#allocation2 + $0x1c8] sm:$0xff] %v1192_v48  ;;  %v1405_v47 = vmax.f32 (!%p1651_p11), %v1341_v34, 0.0  ;;  %v1406_v48 = vmax.f32 (!%p1651_p11), %v1342_v35, 0.0 }
 0x189   : > { %1223 = vst [vmem:[#allocation2 + $0xc0] sm:$0xff] %v1159_v51  ;;  %1255 = vst [vmem:[#allocation2 + $0x1c0] sm:$0xff] %v1191_v52  ;;  %v1810_v57 = vpop.f32.mrb[26].mxu0  ;;  %v1858_v58 = vpop.f32.mrb[26].mxu1  ;;  %v1279_v51 = vld [vmem:[#allocation2 + $0x60] sm:$0xff] (!%p1651_p11)  ;;  %v1280_v52 = vld [vmem:[#allocation2 + $0x68] sm:$0xff] (!%p1651_p11) }
 0x18a   : > { %v1162_v59 = vadd.f32 %v1810_v57, %v633_v53  ;;  %v1194_v60 = vadd.f32 %v1858_v58, %v665_v54  ;;  %v946_v61 = vpop.f32.mrb[27].mxu0  ;;  %v1106_v62 = vpop.f32.mrb[27].mxu1  ;;  %1467 = vst [vmem:[%s2626_s3 + $0x8] sm:$0xff] (!%p1651_p11), %v1403_v40  ;;  %v1407_v53 = vmax.f32 (!%p1651_p11), %v1343_v41, 0.0  ;;  %v1408_v54 = vmax.f32 (!%p1651_p11), %v1344_v42, 0.0  ;;  %v1281_v57 = vld [vmem:[#allocation2 + $0x70] sm:$0xff] (!%p1651_p11) }
 0x18b   : > { %v1161_v63 = vadd.f32 %v946_v61, %v632_v55  ;;  %v1193_v0 = vadd.f32 %v1106_v62, %v664_v56  ;;  %v1346_v55 = vadd.f32 (!%p1651_p11), %v2350_v26, %v1275_v43  ;;  %v1347_v56 = vadd.f32 (!%p1651_p11), %v2350_v26, %v1276_v44  ;;  %v1282_v58 = vld [vmem:[#allocation2 + $0x78] sm:$0xff] (!%p1651_p11)  ;;  %1468 = vst [vmem:[%s2626_s3 + $0x10] sm:$0xff] (!%p1651_p11), %v1404_v46 }
 0x18c   : > { %1226 = vst [vmem:[#allocation2 + $0xd8] sm:$0xff] %v1162_v59  ;;  %1258 = vst [vmem:[#allocation2 + $0x1d8] sm:$0xff] %v1194_v60  ;;  %v1409_v59 = vmax.f32 (!%p1651_p11), %v1345_v49, 0.0  ;;  %v1348_v60 = vadd.f32 (!%p1651_p11), %v2350_v26, %v1277_v45  ;;  %v1349_v61 = vadd.f32 (!%p1651_p11), %v2350_v26, %v1278_v50  ;;  %v1350_v62 = vadd.f32 (!%p1651_p11), %v2350_v26, %v1279_v51  ;;  %v1300_v49 = vld [vmem:[#allocation2 + $0x108] sm:$0xff] (!%p1651_p11) }
 0x18d   : > { %1225 = vst [vmem:[#allocation2 + $0xd0] sm:$0xff] %v1161_v63  ;;  %1257 = vst [vmem:[#allocation2 + $0x1d0] sm:$0xff] %v1193_v0  ;;  %v1813_v5 = vpop.f32.mrb[28].mxu0  ;;  %v1861_v6 = vpop.f32.mrb[28].mxu1  ;;  %v1283_v63 = vld [vmem:[#allocation2 + $0x80] sm:$0xff] (!%p1651_p11)  ;;  %v1284_v0 = vld [vmem:[#allocation2 + $0x88] sm:$0xff] (!%p1651_p11) }
 0x18e   : > { %v1164_v7 = vadd.f32 %v1813_v5, %v635_v1  ;;  %v1196_v8 = vadd.f32 %v1861_v6, %v667_v2  ;;  %v956_v9 = vpop.f32.mrb[29].mxu0  ;;  %v1116_v10 = vpop.f32.mrb[29].mxu1  ;;  %1469 = vst [vmem:[%s2626_s3 + $0x18] sm:$0xff] (!%p1651_p11), %v1405_v47  ;;  %1470 = vst [vmem:[%s2626_s3 + $0x20] sm:$0xff] (!%p1651_p11), %v1406_v48  ;;  %v1410_v1 = vmax.f32 (!%p1651_p11), %v1346_v55, 0.0  ;;  %v1411_v2 = vmax.f32 (!%p1651_p11), %v1347_v56, 0.0 }
 0x18f   : > { %v1163_v11 = vadd.f32 %v956_v9, %v634_v3  ;;  %v1195_v12 = vadd.f32 %v1116_v10, %v666_v4  ;;  %1266 = sbr.rel (%p1651_p11) target bundleno = 433 (0x1b1), region = 78  ;;  %1471 = vst [vmem:[%s2626_s3 + $0x28] sm:$0xff] (!%p1651_p11), %v1407_v53  ;;  %1472 = vst [vmem:[%s2626_s3 + $0x30] sm:$0xff] (!%p1651_p11), %v1408_v54  ;;  %v1351_v3 = vadd.f32 (!%p1651_p11), %v2350_v26, %v1280_v52  ;;  %v1285_v5 = vld [vmem:[#allocation2 + $0x90] sm:$0xff] (!%p1651_p11)  ;;  %v1286_v6 = vld [vmem:[#allocation2 + $0x98] sm:$0xff] (!%p1651_p11)  ;;  %v1413_v9 = vmax.f32 (!%p1651_p11), %v1349_v61, 0.0 }
 0x190   : > { %1228 = vst [vmem:[#allocation2 + $0xe8] sm:$0xff] %v1164_v7  ;;  %1260 = vst [vmem:[#allocation2 + $0x1e8] sm:$0xff] %v1196_v8  ;;  %v1352_v4 = vadd.f32 (!%p1651_p11), %v2350_v26, %v1281_v57  ;;  %v1287_v7 = vld [vmem:[#allocation2 + $0xa0] sm:$0xff] (!%p1651_p11)  ;;  %v1412_v8 = vmax.f32 (!%p1651_p11), %v1348_v60, 0.0  ;;  %v1414_v10 = vmax.f32 (!%p1651_p11), %v1350_v62, 0.0  ;;  %v1301_v54 = vld [vmem:[#allocation2 + $0x110] sm:$0xff] (!%p1651_p11) }
 0x191   : > { %1227 = vst [vmem:[#allocation2 + $0xe0] sm:$0xff] %v1163_v11  ;;  %1259 = vst [vmem:[#allocation2 + $0x1e0] sm:$0xff] %v1195_v12  ;;  %v1816_v17 = vpop.f32.mrb[30].mxu0  ;;  %v1864_v18 = vpop.f32.mrb[30].mxu1  ;;  %v1353_v11 = vadd.f32 (!%p1651_p11), %v2350_v26, %v1282_v58  ;;  %v1288_v12 = vld [vmem:[#allocation2 + $0xa8] sm:$0xff] (!%p1651_p11)  ;;  %v1299_v48 = vld [vmem:[#allocation2 + $0x100] sm:$0xff] (!%p1651_p11) }
 0x192   : > { %v1166_v19 = vadd.f32 %v1816_v17, %v637_v13  ;;  %v1198_v20 = vadd.f32 %v1864_v18, %v669_v14  ;;  %v966_v21 = vpop.f32.mrb[31].mxu0  ;;  %v1126_v22 = vpop.f32.mrb[31].mxu1  ;;  %1473 = vst [vmem:[%s2626_s3 + $0x38] sm:$0xff] (!%p1651_p11), %v1409_v59  ;;  %v1289_v13 = vld [vmem:[#allocation2 + $0xb0] sm:$0xff] (!%p1651_p11)  ;;  %1474 = vst [vmem:[%s2626_s3 + $0x40] sm:$0xff] (!%p1651_p11), %v1410_v1  ;;  %v1415_v14 = vmax.f32 (!%p1651_p11), %v1351_v3, 0.0  ;;  %v1355_v17 = vadd.f32 (!%p1651_p11), %v2350_v26, %v1284_v0 }
 0x193   : > { %v1165_v23 = vadd.f32 %v966_v21, %v636_v15  ;;  %v1197_v24 = vadd.f32 %v1126_v22, %v668_v16  ;;  %1475 = vst [vmem:[%s2626_s3 + $0x48] sm:$0xff] (!%p1651_p11), %v1411_v2  ;;  %v1416_v15 = vmax.f32 (!%p1651_p11), %v1352_v4, 0.0  ;;  %v1354_v16 = vadd.f32 (!%p1651_p11), %v2350_v26, %v1283_v63  ;;  %v1290_v18 = vld [vmem:[#allocation2 + $0xb8] sm:$0xff] (!%p1651_p11)  ;;  %1476 = vst [vmem:[%s2626_s3 + $0x50] sm:$0xff] (!%p1651_p11), %v1412_v8  ;;  %v1303_v56 = vld [vmem:[#allocation2 + $0x120] sm:$0xff] (!%p1651_p11) }
 0x194   : > { %1230 = vst [vmem:[#allocation2 + $0xf8] sm:$0xff] %v1166_v19  ;;  %1262 = vst [vmem:[#allocation2 + $0x1f8] sm:$0xff] %v1198_v20  ;;  %v1417_v19 = vmax.f32 (!%p1651_p11), %v1353_v11, 0.0  ;;  %v1356_v20 = vadd.f32 (!%p1651_p11), %v2350_v26, %v1285_v5  ;;  %v1357_v21 = vadd.f32 (!%p1651_p11), %v2350_v26, %v1286_v6  ;;  %v1358_v22 = vadd.f32 (!%p1651_p11), %v2350_v26, %v1287_v7  ;;  %v1293_v30 = vld [vmem:[#allocation2 + $0xd0] sm:$0xff] (!%p1651_p11)  ;;  %v1294_v31 = vld [vmem:[#allocation2 + $0xd8] sm:$0xff] (!%p1651_p11) }
 0x195   : > { %1229 = vst [vmem:[#allocation2 + $0xf0] sm:$0xff] %v1165_v23  ;;  %1261 = vst [vmem:[#allocation2 + $0x1f0] sm:$0xff] %v1197_v24  ;;  %v1291_v23 = vld [vmem:[#allocation2 + $0xc0] sm:$0xff] (!%p1651_p11)  ;;  %v1292_v24 = vld [vmem:[#allocation2 + $0xc8] sm:$0xff] (!%p1651_p11)  ;;  %v1418_v25 = vmax.f32 (!%p1651_p11), %v1354_v16, 0.0  ;;  %v1419_v27 = vmax.f32 (!%p1651_p11), %v1355_v17, 0.0  ;;  %v1359_v28 = vadd.f32 (!%p1651_p11), %v2350_v26, %v1288_v12  ;;  %v1360_v29 = vadd.f32 (!%p1651_p11), %v2350_v26, %v1289_v13 }
 0x196   : > { %1477 = vst [vmem:[%s2626_s3 + $0x58] sm:$0xff] %v1413_v9  ;;  %1478 = vst [vmem:[%s2626_s3 + $0x60] sm:$0xff] %v1414_v10  ;;  %v1420_v33 = vmax.f32 %v1356_v20, 0.0  ;;  %v1421_v34 = vmax.f32 %v1357_v21, 0.0  ;;  %v1422_v35 = vmax.f32 %v1358_v22, 0.0  ;;  %v1361_v36 = vadd.f32 %v2350_v26, %v1290_v18  ;;  %v1302_v55 = vld [vmem:[#allocation2 + $0x118] sm:$0xff] }
 0x197   : > { %1479 = vst [vmem:[%s2626_s3 + $0x68] sm:$0xff] %v1415_v14  ;;  %1480 = vst [vmem:[%s2626_s3 + $0x70] sm:$0xff] %v1416_v15  ;;  %v1296_v37 = vld [vmem:[#allocation2 + $0xe8] sm:$0xff]  ;;  %v1423_v39 = vmax.f32 %v1359_v28, 0.0  ;;  %v1424_v40 = vmax.f32 %v1360_v29, 0.0  ;;  %v1362_v41 = vadd.f32 %v2350_v26, %v1291_v23  ;;  %v1363_v42 = vadd.f32 %v2350_v26, %v1292_v24  ;;  %v1305_v62 = vld [vmem:[#allocation2 + $0x130] sm:$0xff] }
 0x198   : > { %v1295_v32 = vld [vmem:[#allocation2 + $0xe0] sm:$0xff]  ;;  %1481 = vst [vmem:[%s2626_s3 + $0x78] sm:$0xff] %v1417_v19  ;;  %1482 = vst [vmem:[%s2626_s3 + $0x80] sm:$0xff] %v1418_v25  ;;  %v1425_v44 = vmax.f32 %v1361_v36, 0.0  ;;  %v1364_v45 = vadd.f32 %v2350_v26, %v1293_v30  ;;  %v1365_v46 = vadd.f32 %v2350_v26, %v1294_v31  ;;  %v1367_v52 = vadd.f32 %v2350_v26, %v1296_v37  ;;  %v1304_v61 = vld [vmem:[#allocation2 + $0x128] sm:$0xff] }
 0x199   : > { %1483 = vst [vmem:[%s2626_s3 + $0x88] sm:$0xff] %v1419_v27  ;;  %1484 = vst [vmem:[%s2626_s3 + $0x90] sm:$0xff] %v1420_v33  ;;  %v1366_v47 = vadd.f32 %v2350_v26, %v1295_v32  ;;  %v1426_v50 = vmax.f32 %v1362_v41, 0.0  ;;  %v1427_v51 = vmax.f32 %v1363_v42, 0.0  ;;  %v1370_v1 = vadd.f32 %v2350_v26, %v1299_v48  ;;  %v1306_v3 = vld [vmem:[#allocation2 + $0x138] sm:$0xff]  ;;  %v1307_v8 = vld [vmem:[#allocation2 + $0x140] sm:$0xff] }
 0x19a   : > { %1485 = vst [vmem:[%s2626_s3 + $0x98] sm:$0xff] %v1421_v34  ;;  %1486 = vst [vmem:[%s2626_s3 + $0xa0] sm:$0xff] %v1422_v35  ;;  %v1428_v57 = vmax.f32 %v1364_v45, 0.0  ;;  %v1429_v58 = vmax.f32 %v1365_v46, 0.0  ;;  %v1431_v63 = vmax.f32 %v1367_v52, 0.0  ;;  %v1371_v2 = vadd.f32 %v2350_v26, %v1300_v49  ;;  %v1308_v9 = vld [vmem:[#allocation2 + $0x148] sm:$0xff] }
 0x19b   : > { %v1298_v43 = vld [vmem:[#allocation2 + $0xf8] sm:$0xff]  ;;  %1487 = vst [vmem:[%s2626_s3 + $0xa8] sm:$0xff] %v1423_v39  ;;  %1488 = vst [vmem:[%s2626_s3 + $0xb0] sm:$0xff] %v1424_v40  ;;  %v1430_v59 = vmax.f32 %v1366_v47, 0.0  ;;  %v1372_v5 = vadd.f32 %v2350_v26, %v1301_v54  ;;  %v1373_v6 = vadd.f32 %v2350_v26, %v1302_v55  ;;  %v1374_v7 = vadd.f32 %v2350_v26, %v1303_v56  ;;  %v1309_v14 = vld [vmem:[#allocation2 + $0x150] sm:$0xff] }
 0x19c   : > { %v1297_v38 = vld [vmem:[#allocation2 + $0xf0] sm:$0xff]  ;;  %1489 = vst [vmem:[%s2626_s3 + $0xb8] sm:$0xff] %v1425_v44  ;;  %v1369_v60 = vadd.f32 %v2350_v26, %v1298_v43  ;;  %1490 = vst [vmem:[%s2626_s3 + $0xc0] sm:$0xff] %v1426_v50  ;;  %v1434_v10 = vmax.f32 %v1370_v1, 0.0  ;;  %v1435_v11 = vmax.f32 %v1371_v2, 0.0  ;;  %v1375_v12 = vadd.f32 %v2350_v26, %v1304_v61  ;;  %v1310_v15 = vld [vmem:[#allocation2 + $0x158] sm:$0xff] }
 0x19d   : > { %v1368_v53 = vadd.f32 %v2350_v26, %v1297_v38  ;;  %1491 = vst [vmem:[%s2626_s3 + $0xc8] sm:$0xff] %v1427_v51  ;;  %1492 = vst [vmem:[%s2626_s3 + $0xd0] sm:$0xff] %v1428_v57  ;;  %v1376_v13 = vadd.f32 %v2350_v26, %v1305_v62  ;;  %v1311_v16 = vld [vmem:[#allocation2 + $0x160] sm:$0xff]  ;;  %v1436_v17 = vmax.f32 %v1372_v5, 0.0  ;;  %v1437_v18 = vmax.f32 %v1373_v6, 0.0  ;;  %v1312_v21 = vld [vmem:[#allocation2 + $0x168] sm:$0xff] }
 0x19e   : > { %1493 = vst [vmem:[%s2626_s3 + $0xd8] sm:$0xff] %v1429_v58  ;;  %1494 = vst [vmem:[%s2626_s3 + $0xe0] sm:$0xff] %v1430_v59  ;;  %v1433_v4 = vmax.f32 %v1369_v60, 0.0  ;;  %v1438_v19 = vmax.f32 %v1374_v7, 0.0  ;;  %v1377_v20 = vadd.f32 %v2350_v26, %v1306_v3  ;;  %v1313_v22 = vld [vmem:[#allocation2 + $0x170] sm:$0xff]  ;;  %v1439_v23 = vmax.f32 %v1375_v12, 0.0 }
 0x19f   : > { %v1432_v0 = vmax.f32 %v1368_v53, 0.0  ;;  %1495 = vst [vmem:[%s2626_s3 + $0xe8] sm:$0xff] %v1431_v63  ;;  %1498 = vst [vmem:[%s2626_s3 + $0x100] sm:$0xff] %v1434_v10  ;;  %v1440_v24 = vmax.f32 %v1376_v13, 0.0  ;;  %v1378_v25 = vadd.f32 %v2350_v26, %v1307_v8  ;;  %v1379_v27 = vadd.f32 %v2350_v26, %v1308_v9  ;;  %v1314_v28 = vld [vmem:[#allocation2 + $0x178] sm:$0xff]  ;;  %v1315_v33 = vld [vmem:[#allocation2 + $0x180] sm:$0xff] }
 0x1a0   : > { %1497 = vst [vmem:[%s2626_s3 + $0xf8] sm:$0xff] %v1433_v4  ;;  %1499 = vst [vmem:[%s2626_s3 + $0x108] sm:$0xff] %v1435_v11  ;;  %v1441_v29 = vmax.f32 %v1377_v20, 0.0  ;;  %v1380_v30 = vadd.f32 %v2350_v26, %v1309_v14  ;;  %v1381_v31 = vadd.f32 %v2350_v26, %v1310_v15  ;;  %v1382_v32 = vadd.f32 %v2350_v26, %v1311_v16  ;;  %v1316_v34 = vld [vmem:[#allocation2 + $0x188] sm:$0xff]  ;;  %v1317_v39 = vld [vmem:[#allocation2 + $0x190] sm:$0xff] }
 0x1a1   : > { %1496 = vst [vmem:[%s2626_s3 + $0xf0] sm:$0xff] %v1432_v0  ;;  %1500 = vst [vmem:[%s2626_s3 + $0x110] sm:$0xff] %v1436_v17  ;;  %v1442_v35 = vmax.f32 %v1378_v25, 0.0  ;;  %v1443_v36 = vmax.f32 %v1379_v27, 0.0  ;;  %v1383_v37 = vadd.f32 %v2350_v26, %v1312_v21  ;;  %v1384_v38 = vadd.f32 %v2350_v26, %v1313_v22  ;;  %v1318_v40 = vld [vmem:[#allocation2 + $0x198] sm:$0xff]  ;;  %v1319_v41 = vld [vmem:[#allocation2 + $0x1a0] sm:$0xff] }
 0x1a2   : > { %1501 = vst [vmem:[%s2626_s3 + $0x118] sm:$0xff] %v1437_v18  ;;  %1502 = vst [vmem:[%s2626_s3 + $0x120] sm:$0xff] %v1438_v19  ;;  %v1444_v42 = vmax.f32 %v1380_v30, 0.0  ;;  %v1445_v43 = vmax.f32 %v1381_v31, 0.0  ;;  %v1446_v44 = vmax.f32 %v1382_v32, 0.0  ;;  %v1385_v45 = vadd.f32 %v2350_v26, %v1314_v28  ;;  %v1320_v46 = vld [vmem:[#allocation2 + $0x1a8] sm:$0xff] }
 0x1a3   : > { %1503 = vst [vmem:[%s2626_s3 + $0x128] sm:$0xff] %v1439_v23  ;;  %1504 = vst [vmem:[%s2626_s3 + $0x130] sm:$0xff] %v1440_v24  ;;  %v1321_v47 = vld [vmem:[#allocation2 + $0x1b0] sm:$0xff]  ;;  %v1447_v48 = vmax.f32 %v1383_v37, 0.0  ;;  %v1448_v49 = vmax.f32 %v1384_v38, 0.0  ;;  %v1386_v50 = vadd.f32 %v2350_v26, %v1315_v33  ;;  %v1387_v51 = vadd.f32 %v2350_v26, %v1316_v34  ;;  %v1322_v52 = vld [vmem:[#allocation2 + $0x1b8] sm:$0xff] }
 0x1a4   : > { %1505 = vst [vmem:[%s2626_s3 + $0x138] sm:$0xff] %v1441_v29  ;;  %1506 = vst [vmem:[%s2626_s3 + $0x140] sm:$0xff] %v1442_v35  ;;  %v1449_v53 = vmax.f32 %v1385_v45, 0.0  ;;  %v1388_v54 = vadd.f32 %v2350_v26, %v1317_v39  ;;  %v1389_v55 = vadd.f32 %v2350_v26, %v1318_v40  ;;  %v1390_v56 = vadd.f32 %v2350_v26, %v1319_v41  ;;  %v1323_v57 = vld [vmem:[#allocation2 + $0x1c0] sm:$0xff]  ;;  %v1324_v58 = vld [vmem:[#allocation2 + $0x1c8] sm:$0xff] }
 0x1a5   : > { %1507 = vst [vmem:[%s2626_s3 + $0x148] sm:$0xff] %v1443_v36  ;;  %1508 = vst [vmem:[%s2626_s3 + $0x150] sm:$0xff] %v1444_v42  ;;  %v1450_v59 = vmax.f32 %v1386_v50, 0.0  ;;  %v1451_v60 = vmax.f32 %v1387_v51, 0.0  ;;  %v1391_v61 = vadd.f32 %v2350_v26, %v1320_v46  ;;  %v1392_v62 = vadd.f32 %v2350_v26, %v1321_v47  ;;  %v1325_v63 = vld [vmem:[#allocation2 + $0x1d0] sm:$0xff]  ;;  %v1326_v0 = vld [vmem:[#allocation2 + $0x1d8] sm:$0xff] }
 0x1a6   : > { %1509 = vst [vmem:[%s2626_s3 + $0x158] sm:$0xff] %v1445_v43  ;;  %1510 = vst [vmem:[%s2626_s3 + $0x160] sm:$0xff] %v1446_v44  ;;  %v1327_v1 = vld [vmem:[#allocation2 + $0x1e0] sm:$0xff]  ;;  %v1452_v2 = vmax.f32 %v1388_v54, 0.0  ;;  %v1453_v3 = vmax.f32 %v1389_v55, 0.0  ;;  %v1454_v4 = vmax.f32 %v1390_v56, 0.0  ;;  %v1393_v5 = vadd.f32 %v2350_v26, %v1322_v52 }
 0x1a7   : > { %1511 = vst [vmem:[%s2626_s3 + $0x168] sm:$0xff] %v1447_v48  ;;  %1512 = vst [vmem:[%s2626_s3 + $0x170] sm:$0xff] %v1448_v49  ;;  %v1328_v6 = vld [vmem:[#allocation2 + $0x1e8] sm:$0xff]  ;;  %v1329_v7 = vld [vmem:[#allocation2 + $0x1f0] sm:$0xff]  ;;  %v1455_v8 = vmax.f32 %v1391_v61, 0.0  ;;  %v1456_v9 = vmax.f32 %v1392_v62, 0.0  ;;  %v1394_v10 = vadd.f32 %v2350_v26, %v1323_v57  ;;  %v1395_v11 = vadd.f32 %v2350_v26, %v1324_v58 }
 0x1a8   : > { %1513 = vst [vmem:[%s2626_s3 + $0x178] sm:$0xff] %v1449_v53  ;;  %1514 = vst [vmem:[%s2626_s3 + $0x180] sm:$0xff] %v1450_v59  ;;  %v1330_v12 = vld [vmem:[#allocation2 + $0x1f8] sm:$0xff]  ;;  %v1457_v13 = vmax.f32 %v1393_v5, 0.0  ;;  %v1396_v14 = vadd.f32 %v2350_v26, %v1325_v63  ;;  %v1397_v15 = vadd.f32 %v2350_v26, %v1326_v0  ;;  %v1398_v16 = vadd.f32 %v2350_v26, %v1327_v1 }
 0x1a9   : > { %1515 = vst [vmem:[%s2626_s3 + $0x188] sm:$0xff] %v1451_v60  ;;  %1516 = vst [vmem:[%s2626_s3 + $0x190] sm:$0xff] %v1452_v2  ;;  %v1458_v17 = vmax.f32 %v1394_v10, 0.0  ;;  %v1459_v18 = vmax.f32 %v1395_v11, 0.0  ;;  %v1399_v19 = vadd.f32 %v2350_v26, %v1328_v6  ;;  %v1400_v20 = vadd.f32 %v2350_v26, %v1329_v7 }
 0x1aa   : > { %1517 = vst [vmem:[%s2626_s3 + $0x198] sm:$0xff] %v1453_v3  ;;  %1518 = vst [vmem:[%s2626_s3 + $0x1a0] sm:$0xff] %v1454_v4  ;;  %v1460_v21 = vmax.f32 %v1396_v14, 0.0  ;;  %v1461_v22 = vmax.f32 %v1397_v15, 0.0  ;;  %v1462_v23 = vmax.f32 %v1398_v16, 0.0  ;;  %v1401_v24 = vadd.f32 %v2350_v26, %v1330_v12 }
 0x1ab   : > { %1519 = vst [vmem:[%s2626_s3 + $0x1a8] sm:$0xff] %v1455_v8  ;;  %1520 = vst [vmem:[%s2626_s3 + $0x1b0] sm:$0xff] %v1456_v9  ;;  %v1463_v25 = vmax.f32 %v1399_v19, 0.0  ;;  %v1464_v27 = vmax.f32 %v1400_v20, 0.0 }
 0x1ac   : > { %1521 = vst [vmem:[%s2626_s3 + $0x1b8] sm:$0xff] %v1457_v13  ;;  %1522 = vst [vmem:[%s2626_s3 + $0x1c0] sm:$0xff] %v1458_v17  ;;  %v1465_v26 = vmax.f32 %v1401_v24, 0.0 }
 0x1ad   : > { %1523 = vst [vmem:[%s2626_s3 + $0x1c8] sm:$0xff] %v1459_v18  ;;  %1524 = vst [vmem:[%s2626_s3 + $0x1d0] sm:$0xff] %v1460_v21 }
 0x1ae   : > { %1525 = vst [vmem:[%s2626_s3 + $0x1d8] sm:$0xff] %v1461_v22  ;;  %1526 = vst [vmem:[%s2626_s3 + $0x1e0] sm:$0xff] %v1462_v23 }
 0x1af   : > { %1527 = vst [vmem:[%s2626_s3 + $0x1e8] sm:$0xff] %v1463_v25  ;;  %1528 = vst [vmem:[%s2626_s3 + $0x1f0] sm:$0xff] %v1464_v27 }
 0x1b0   : > { %1529 = vst [vmem:[%s2626_s3 + $0x1f8] sm:$0xff] %v1465_v26 }
 0x1b1 PF: > { %s13_s16 = sadd.s32 1, %s1992_s16   ;;  %s2627_s12 = smov %s1980_s13 }
 0x1b2   : > { %p10_p12 = scmp.ge.s32.totalorder %s13_s16, 7   ;;  %s2628_s13 = smov %s2050_s20 }
 0x1b3   : > { %s2629_s14 = smov %s1988_s15  ;;  %s2630_s15 = smov %s2632_s17 }
 0x1b4   :  { %12 = sbr.rel (!%p10_p12) target bundleno = 3 (0x3), region = 119 }

// kernel: encoder1_forward.8
= control target key start
LH: loop header
LB: loop body
LE: loop exit
PB: predicated region body
PF: predicated region fallthrough
CT: control target
= control target key end

     0   :  { %s1500_s12 = smov 0   ;;  %s1502_s13 = smov 0   ;;  %s2008_s0 = inlined_call_operand.vmem [shape: f32[128,1152], index: 0, kind: input, shape index: {}]   ;;  %s2009_s1 = inlined_call_operand.vmem [shape: f32[1152,256], index: 1, kind: input, shape index: {}]   ;;  %s2010_s2 = inlined_call_operand.vmem [shape: f32[1,256], index: 2, kind: input, shape index: {}]   ;;  %s2011_s3 = inlined_call_operand.vmem [shape: f32[128,256], index: 3, kind: output, shape index: {}]  }
   0x1   :  { %s1504_s14 = smov 0   ;;  %s1506_s15 = smov 0  }
   0x2   :  { %s1508_s16 = smov 0  }
   0x3 LB: > { %s25_s17 = sadd.s32 1, %s1472_s15  ;;  %p48_p1 = scmp.ne.s32.totalorder %s1464_s13, %s1460_s12  ;;  %s1476_s16 = sphi %s1508_s16, %s13_s16   ;;  %s1472_s15 = sphi %s1506_s15, %s2015_s15   ;;  %s1468_s14 = sphi %s1504_s14, %s2014_s14   ;;  %s1464_s13 = sphi %s1502_s13, %s2013_s13   ;;  %s1460_s12 = sphi %s1500_s12, %s2012_s12  }
   0x4   : > { %p26_p0 = scmp.ge.s32.totalorder %s25_s17, 3  ;;  %p49_p2 = scmp.eq.s32.totalorder %s1476_s16, 0 }
   0x5   : > { %s41_s19 = sadd.s32 1, %s1464_s13  ;;  %p1253_p5 = scmp.ge.s32.totalorder %s1476_s16, 3 }
   0x6   : > { %s2017_s17 = smov (%p26_p0, %s25_s17), 0  ;;  %p50_p3 = por %p49_p2, %p48_p1 }
   0x7   : > { %s37_s18 = ssub.s32 %s1472_s15, %s2017_s17  ;;  %164 = sbr.rel (%p1253_p5) target bundleno = 43 (0x2b), region = 20 }
   0x8   : > { %p39_p4 = scmp.eq.s32.totalorder %s37_s18, 0 }
   0xa   : > { %s1535_s20 = scalar_select %p39_p4, %s1464_s13, %s41_s19  }
   0xe   : > { %167 = sbr.rel (!%p50_p3) target bundleno = 43 (0x2b), region = 24  ;;  %s169_s21 = sand.u32 (%p50_p3), 1, %s1464_s13  }
   0xf   : > { %s1264_s22 = smul.u32 (%p50_p3), 24, %s1472_s15 }
  0x10   : > { %s1394_s23 = smul.u32 (%p50_p3), 384, %s169_s21 }
  0x11   : > { %s1543_s26 = scalar_lea.vmem (%p50_p3), %s2008_s0, %s1264_s22 }
  0x12   : > { %v190_v0 = vld [vmem:[%s1543_s26] sm:$0xff] (%p50_p3)  ;;  %v192_v1 = vld [vmem:[%s1543_s26 + $0x8] sm:$0xff] (%p50_p3)  ;;  %v194_v2 = vld [vmem:[%s1543_s26 + $0x10] sm:$0xff] (%p50_p3)  ;;  %s1548_s27 = scalar_lea.vmem (%p50_p3), [#allocation3], %s1394_s23 }
  0x13   : > { %191 = vst [vmem:[%s1548_s27] sm:$0xff] (%p50_p3), %v190_v0  ;;  %193 = vst [vmem:[%s1548_s27 + $0x8] sm:$0xff] (%p50_p3), %v192_v1  ;;  %v196_v3 = vld [vmem:[%s1543_s26 + $0x48] sm:$0xff] (%p50_p3)  ;;  %v198_v4 = vld [vmem:[%s1543_s26 + $0x50] sm:$0xff] (%p50_p3) }
  0x14   : > { %195 = vst [vmem:[%s1548_s27 + $0x10] sm:$0xff] (%p50_p3), %v194_v2  ;;  %v200_v5 = vld [vmem:[%s1543_s26 + $0x58] sm:$0xff] (%p50_p3)  ;;  %197 = vst [vmem:[%s1548_s27 + $0x18] sm:$0xff] (%p50_p3), %v196_v3  ;;  %v202_v6 = vld [vmem:[%s1543_s26 + $0x90] sm:$0xff] (%p50_p3) }
  0x15   : > { %199 = vst [vmem:[%s1548_s27 + $0x20] sm:$0xff] %v198_v4  ;;  %201 = vst [vmem:[%s1548_s27 + $0x28] sm:$0xff] %v200_v5  ;;  %v204_v7 = vld [vmem:[%s1543_s26 + $0x98] sm:$0xff]  ;;  %v206_v8 = vld [vmem:[%s1543_s26 + $0xa0] sm:$0xff] }
  0x16   : > { %203 = vst [vmem:[%s1548_s27 + $0x30] sm:$0xff] %v202_v6  ;;  %205 = vst [vmem:[%s1548_s27 + $0x38] sm:$0xff] %v204_v7  ;;  %v208_v9 = vld [vmem:[%s1543_s26 + $0xd8] sm:$0xff]  ;;  %v210_v10 = vld [vmem:[%s1543_s26 + $0xe0] sm:$0xff] }
  0x17   : > { %207 = vst [vmem:[%s1548_s27 + $0x40] sm:$0xff] %v206_v8  ;;  %v212_v11 = vld [vmem:[%s1543_s26 + $0xe8] sm:$0xff]  ;;  %209 = vst [vmem:[%s1548_s27 + $0x48] sm:$0xff] %v208_v9  ;;  %v214_v12 = vld [vmem:[%s1543_s26 + $0x120] sm:$0xff] }
  0x18   : > { %211 = vst [vmem:[%s1548_s27 + $0x50] sm:$0xff] %v210_v10  ;;  %213 = vst [vmem:[%s1548_s27 + $0x58] sm:$0xff] %v212_v11  ;;  %v216_v13 = vld [vmem:[%s1543_s26 + $0x128] sm:$0xff]  ;;  %v218_v14 = vld [vmem:[%s1543_s26 + $0x130] sm:$0xff] }
  0x19   : > { %215 = vst [vmem:[%s1548_s27 + $0x60] sm:$0xff] %v214_v12  ;;  %217 = vst [vmem:[%s1548_s27 + $0x68] sm:$0xff] %v216_v13  ;;  %v220_v15 = vld [vmem:[%s1543_s26 + $0x168] sm:$0xff]  ;;  %v222_v16 = vld [vmem:[%s1543_s26 + $0x170] sm:$0xff] }
  0x1a   : > { %219 = vst [vmem:[%s1548_s27 + $0x70] sm:$0xff] %v218_v14  ;;  %v224_v17 = vld [vmem:[%s1543_s26 + $0x178] sm:$0xff]  ;;  %221 = vst [vmem:[%s1548_s27 + $0x78] sm:$0xff] %v220_v15  ;;  %v226_v18 = vld [vmem:[%s1543_s26 + $0x1b0] sm:$0xff] }
  0x1b   : > { %223 = vst [vmem:[%s1548_s27 + $0x80] sm:$0xff] %v222_v16  ;;  %225 = vst [vmem:[%s1548_s27 + $0x88] sm:$0xff] %v224_v17  ;;  %v228_v19 = vld [vmem:[%s1543_s26 + $0x1b8] sm:$0xff]  ;;  %v230_v20 = vld [vmem:[%s1543_s26 + $0x1c0] sm:$0xff] }
  0x1c   : > { %227 = vst [vmem:[%s1548_s27 + $0x90] sm:$0xff] %v226_v18  ;;  %229 = vst [vmem:[%s1548_s27 + $0x98] sm:$0xff] %v228_v19  ;;  %v232_v21 = vld [vmem:[%s1543_s26 + $0x1f8] sm:$0xff]  ;;  %v234_v22 = vld [vmem:[%s1543_s26 + $0x200] sm:$0xff] }
  0x1d   : > { %231 = vst [vmem:[%s1548_s27 + $0xa0] sm:$0xff] %v230_v20  ;;  %v236_v23 = vld [vmem:[%s1543_s26 + $0x208] sm:$0xff]  ;;  %233 = vst [vmem:[%s1548_s27 + $0xa8] sm:$0xff] %v232_v21  ;;  %v238_v24 = vld [vmem:[%s1543_s26 + $0x240] sm:$0xff] }
  0x1e   : > { %235 = vst [vmem:[%s1548_s27 + $0xb0] sm:$0xff] %v234_v22  ;;  %237 = vst [vmem:[%s1548_s27 + $0xb8] sm:$0xff] %v236_v23  ;;  %v240_v25 = vld [vmem:[%s1543_s26 + $0x248] sm:$0xff]  ;;  %v242_v26 = vld [vmem:[%s1543_s26 + $0x250] sm:$0xff] }
  0x1f   : > { %239 = vst [vmem:[%s1548_s27 + $0xc0] sm:$0xff] %v238_v24  ;;  %241 = vst [vmem:[%s1548_s27 + $0xc8] sm:$0xff] %v240_v25  ;;  %v244_v27 = vld [vmem:[%s1543_s26 + $0x288] sm:$0xff]  ;;  %v246_v28 = vld [vmem:[%s1543_s26 + $0x290] sm:$0xff] }
  0x20   : > { %243 = vst [vmem:[%s1548_s27 + $0xd0] sm:$0xff] %v242_v26  ;;  %v248_v29 = vld [vmem:[%s1543_s26 + $0x298] sm:$0xff]  ;;  %245 = vst [vmem:[%s1548_s27 + $0xd8] sm:$0xff] %v244_v27  ;;  %v250_v30 = vld [vmem:[%s1543_s26 + $0x2d0] sm:$0xff] }
  0x21   : > { %247 = vst [vmem:[%s1548_s27 + $0xe0] sm:$0xff] %v246_v28  ;;  %249 = vst [vmem:[%s1548_s27 + $0xe8] sm:$0xff] %v248_v29  ;;  %v252_v31 = vld [vmem:[%s1543_s26 + $0x2d8] sm:$0xff]  ;;  %v254_v32 = vld [vmem:[%s1543_s26 + $0x2e0] sm:$0xff] }
  0x22   : > { %251 = vst [vmem:[%s1548_s27 + $0xf0] sm:$0xff] %v250_v30  ;;  %253 = vst [vmem:[%s1548_s27 + $0xf8] sm:$0xff] %v252_v31  ;;  %v256_v33 = vld [vmem:[%s1543_s26 + $0x318] sm:$0xff]  ;;  %v258_v34 = vld [vmem:[%s1543_s26 + $0x320] sm:$0xff] }
  0x23   : > { %255 = vst [vmem:[%s1548_s27 + $0x100] sm:$0xff] %v254_v32  ;;  %v260_v35 = vld [vmem:[%s1543_s26 + $0x328] sm:$0xff]  ;;  %257 = vst [vmem:[%s1548_s27 + $0x108] sm:$0xff] %v256_v33  ;;  %v262_v36 = vld [vmem:[%s1543_s26 + $0x360] sm:$0xff] }
  0x24   : > { %259 = vst [vmem:[%s1548_s27 + $0x110] sm:$0xff] %v258_v34  ;;  %261 = vst [vmem:[%s1548_s27 + $0x118] sm:$0xff] %v260_v35  ;;  %v264_v37 = vld [vmem:[%s1543_s26 + $0x368] sm:$0xff]  ;;  %v266_v38 = vld [vmem:[%s1543_s26 + $0x370] sm:$0xff] }
  0x25   : > { %263 = vst [vmem:[%s1548_s27 + $0x120] sm:$0xff] %v262_v36  ;;  %265 = vst [vmem:[%s1548_s27 + $0x128] sm:$0xff] %v264_v37  ;;  %v268_v39 = vld [vmem:[%s1543_s26 + $0x3a8] sm:$0xff]  ;;  %v270_v40 = vld [vmem:[%s1543_s26 + $0x3b0] sm:$0xff] }
  0x26   : > { %267 = vst [vmem:[%s1548_s27 + $0x130] sm:$0xff] %v266_v38  ;;  %v272_v41 = vld [vmem:[%s1543_s26 + $0x3b8] sm:$0xff]  ;;  %269 = vst [vmem:[%s1548_s27 + $0x138] sm:$0xff] %v268_v39  ;;  %v274_v42 = vld [vmem:[%s1543_s26 + $0x3f0] sm:$0xff] }
  0x27   : > { %271 = vst [vmem:[%s1548_s27 + $0x140] sm:$0xff] %v270_v40  ;;  %273 = vst [vmem:[%s1548_s27 + $0x148] sm:$0xff] %v272_v41  ;;  %v276_v43 = vld [vmem:[%s1543_s26 + $0x3f8] sm:$0xff]  ;;  %v278_v44 = vld [vmem:[%s1543_s26 + $0x400] sm:$0xff] }
  0x28   : > { %275 = vst [vmem:[%s1548_s27 + $0x150] sm:$0xff] %v274_v42  ;;  %277 = vst [vmem:[%s1548_s27 + $0x158] sm:$0xff] %v276_v43  ;;  %v280_v45 = vld [vmem:[%s1543_s26 + $0x438] sm:$0xff]  ;;  %v282_v46 = vld [vmem:[%s1543_s26 + $0x440] sm:$0xff] }
  0x29   : > { %279 = vst [vmem:[%s1548_s27 + $0x160] sm:$0xff] %v278_v44  ;;  %v284_v47 = vld [vmem:[%s1543_s26 + $0x448] sm:$0xff]  ;;  %281 = vst [vmem:[%s1548_s27 + $0x168] sm:$0xff] %v280_v45 }
  0x2a   : > { %283 = vst [vmem:[%s1548_s27 + $0x170] sm:$0xff] %v282_v46  ;;  %285 = vst [vmem:[%s1548_s27 + $0x178] sm:$0xff] %v284_v47 }
  0x2b PF: > { %p1255_p6 = scmp.ge.s32.totalorder %s1476_s16, 1  ;;  %p305_p7 = scmp.lt.s32.totalorder %s1476_s16, 4 }
  0x2d   : > { %p306_p8 = pnand %p1255_p6, %p305_p7 }
  0x2e   : > { %s312_s28 = sand.u32 (!%p306_p8), 1, %s1460_s12   ;;  %s356_s29 = smul.u32 (!%p306_p8), 48, %s1468_s14 }
  0x2f   : > { %309 = sbr.rel (%p306_p8) target bundleno = 429 (0x1ad), region = 51  ;;  %p1258_p10 = scmp.ne.s32.totalorder (!%p306_p8), %s1468_s14, 0 }
  0x30   : > { %s1395_s30 = smul.u32 (!%p306_p8), 384, %s312_s28  ;;  %p358_p9 = scmp.lt.s32.totalorder (!%p306_p8), %s356_s29, 143 }
  0x32   : > { %s1652_s8 = scalar_lea.vmem (!%p306_p8), [#allocation3], %s1395_s30 }
  0x36   : > { %s2019_s29 = smov (!%p358_p9, %s356_s29), 143  ;;  %388 = sbr.rel (%p1258_p10) target bundleno = 72 (0x48), region = 59 }
  0x37   : > { %s1265_s4 = sshll.u32 %s2019_s29, 4  ;;  %v1478_v48 = vmov (!%p1258_p10), 0.0  }
  0x38   : > { %s1650_s7 = scalar_lea.vmem %s2009_s1, %s1265_s4  ;;  %389 = vst [vmem:[#allocation2] sm:$0xff] (!%p1258_p10), %v1478_v48  ;;  %390 = vst [vmem:[#allocation2 + $0x8] sm:$0xff] (!%p1258_p10), %v1478_v48 }
  0x39   : > { %391 = vst [vmem:[#allocation2 + $0x10] sm:$0xff] (!%p1258_p10), %v1478_v48  ;;  %392 = vst [vmem:[#allocation2 + $0x18] sm:$0xff] (!%p1258_p10), %v1478_v48 }
  0x3a   : > { %393 = vst [vmem:[#allocation2 + $0x20] sm:$0xff] (!%p1258_p10), %v1478_v48  ;;  %394 = vst [vmem:[#allocation2 + $0x28] sm:$0xff] (!%p1258_p10), %v1478_v48 }
  0x3b   : > { %395 = vst [vmem:[#allocation2 + $0x30] sm:$0xff] (!%p1258_p10), %v1478_v48  ;;  %396 = vst [vmem:[#allocation2 + $0x38] sm:$0xff] (!%p1258_p10), %v1478_v48 }
  0x3c   : > { %397 = vst [vmem:[#allocation2 + $0x40] sm:$0xff] (!%p1258_p10), %v1478_v48  ;;  %398 = vst [vmem:[#allocation2 + $0x48] sm:$0xff] (!%p1258_p10), %v1478_v48 }
  0x3d   : > { %399 = vst [vmem:[#allocation2 + $0x50] sm:$0xff] %v1478_v48  ;;  %400 = vst [vmem:[#allocation2 + $0x58] sm:$0xff] %v1478_v48 }
  0x3e   : > { %401 = vst [vmem:[#allocation2 + $0x60] sm:$0xff] %v1478_v48  ;;  %402 = vst [vmem:[#allocation2 + $0x68] sm:$0xff] %v1478_v48 }
  0x3f   : > { %403 = vst [vmem:[#allocation2 + $0x70] sm:$0xff] %v1478_v48  ;;  %404 = vst [vmem:[#allocation2 + $0x78] sm:$0xff] %v1478_v48 }
  0x40   : > { %405 = vst [vmem:[#allocation2 + $0x80] sm:$0xff] %v1478_v48  ;;  %406 = vst [vmem:[#allocation2 + $0x88] sm:$0xff] %v1478_v48 }
  0x41   : > { %407 = vst [vmem:[#allocation2 + $0x90] sm:$0xff] %v1478_v48  ;;  %408 = vst [vmem:[#allocation2 + $0x98] sm:$0xff] %v1478_v48 }
  0x42   : > { %409 = vst [vmem:[#allocation2 + $0xa0] sm:$0xff] %v1478_v48  ;;  %410 = vst [vmem:[#allocation2 + $0xa8] sm:$0xff] %v1478_v48 }
  0x43   : > { %411 = vst [vmem:[#allocation2 + $0xb0] sm:$0xff] %v1478_v48  ;;  %412 = vst [vmem:[#allocation2 + $0xb8] sm:$0xff] %v1478_v48 }
  0x44   : > { %413 = vst [vmem:[#allocation2 + $0xc0] sm:$0xff] %v1478_v48  ;;  %414 = vst [vmem:[#allocation2 + $0xc8] sm:$0xff] %v1478_v48 }
  0x45   : > { %415 = vst [vmem:[#allocation2 + $0xd0] sm:$0xff] %v1478_v48  ;;  %416 = vst [vmem:[#allocation2 + $0xd8] sm:$0xff] %v1478_v48 }
  0x46   : > { %417 = vst [vmem:[#allocation2 + $0xe0] sm:$0xff] %v1478_v48  ;;  %418 = vst [vmem:[#allocation2 + $0xe8] sm:$0xff] %v1478_v48 }
  0x47   : > { %419 = vst [vmem:[#allocation2 + $0xf0] sm:$0xff] %v1478_v48  ;;  %420 = vst [vmem:[#allocation2 + $0xf8] sm:$0xff] %v1478_v48 }
  0x48 PF: > { %v502_v49 = vld [vmem:[%s1650_s7 + $0x8] sm:$0xff]  ;;  %v504_v50 = vld [vmem:[%s1650_s7 + $0x18] sm:$0xff]  ;;  %v501_v51 = vld [vmem:[%s1650_s7] sm:$0xff]  ;;  %v1479_v56 = vmov 0.0   ;;  %p1259_p11 = scmp.ne.s32.totalorder %s1468_s14, 2 }
  0x49   : > { %v1266_v52 = vpack.c.bf16 %v504_v50, %v502_v49  ;;  %v503_v53 = vld [vmem:[%s1650_s7 + $0x10] sm:$0xff]  ;;  %v506_v54 = vld [vmem:[%s1650_s7 + $0x28] sm:$0xff]  ;;  %v508_v55 = vld [vmem:[%s1650_s7 + $0x38] sm:$0xff]  ;;  %822 = vmatprep.mubr.f32.mxu0 %v1479_v56 }
  0x4a   : > { %v1268_v57 = vpack.c.bf16 %v503_v53, %v501_v51  ;;  %v1270_v58 = vpack.c.bf16 %v508_v55, %v506_v54  ;;  %v505_v59 = vld [vmem:[%s1650_s7 + $0x20] sm:$0xff]  ;;  %v507_v60 = vld [vmem:[%s1650_s7 + $0x30] sm:$0xff]  ;;  %v510_v61 = vld [vmem:[%s1650_s7 + $0x48] sm:$0xff] }
  0x4b   : > { %1267 = vmatprep.subr.bf16.mxu1 %v1266_v52  ;;  %v512_v62 = vld [vmem:[%s1650_s7 + $0x58] sm:$0xff]  ;;  %v1272_v63 = vpack.c.bf16 %v507_v60, %v505_v59  ;;  %v509_v1 = vld [vmem:[%s1650_s7 + $0x40] sm:$0xff]  ;;  %v511_v2 = vld [vmem:[%s1650_s7 + $0x50] sm:$0xff] }
  0x4c   : > { %1269 = vmatpush1.bf16.msra.mxu1 %v1268_v57  ;;  %v1274_v0 = vpack.c.bf16 %v512_v62, %v510_v61  ;;  %v514_v3 = vld [vmem:[%s1650_s7 + $0x68] sm:$0xff]  ;;  %v516_v4 = vld [vmem:[%s1650_s7 + $0x78] sm:$0xff]  ;;  %v1276_v5 = vpack.c.bf16 %v511_v2, %v509_v1  ;;  %v513_v7 = vld [vmem:[%s1650_s7 + $0x60] sm:$0xff] }
  0x4d   : > { %1271 = vmatprep.subr.bf16.mxu1 %v1270_v58  ;;  %v1278_v6 = vpack.c.bf16 %v516_v4, %v514_v3  ;;  %v515_v8 = vld [vmem:[%s1650_s7 + $0x70] sm:$0xff]  ;;  %v518_v9 = vld [vmem:[%s1650_s7 + $0x88] sm:$0xff]  ;;  %v520_v10 = vld [vmem:[%s1650_s7 + $0x98] sm:$0xff] }
  0x4e   : > { %v566_v11 = vld [vmem:[%s1650_s7 + $0x208] sm:$0xff]  ;;  %v568_v12 = vld [vmem:[%s1650_s7 + $0x218] sm:$0xff]  ;;  %v1280_v13 = vpack.c.bf16 %v515_v8, %v513_v7  ;;  %v517_v14 = vld [vmem:[%s1650_s7 + $0x80] sm:$0xff]  ;;  %v1282_v18 = vpack.c.bf16 %v520_v10, %v518_v9 }
  0x4f   : > { %v1330_v15 = vpack.c.bf16 %v568_v12, %v566_v11  ;;  %v565_v16 = vld [vmem:[%s1650_s7 + $0x200] sm:$0xff]  ;;  %v567_v17 = vld [vmem:[%s1650_s7 + $0x210] sm:$0xff]  ;;  %v570_v21 = vld [vmem:[%s1650_s7 + $0x228] sm:$0xff] }
  0x50   : > { %1273 = vmatpush1.bf16.msra.mxu1 %v1272_v63  ;;  %v519_v19 = vld [vmem:[%s1650_s7 + $0x90] sm:$0xff]  ;;  %v1332_v20 = vpack.c.bf16 %v567_v17, %v565_v16  ;;  %v572_v22 = vld [vmem:[%s1650_s7 + $0x238] sm:$0xff]  ;;  %v522_v23 = vld [vmem:[%s1650_s7 + $0xa8] sm:$0xff] }
  0x51   : > { %1275 = vmatprep.subr.bf16.mxu1 %v1274_v0  ;;  %v524_v24 = vld [vmem:[%s1650_s7 + $0xb8] sm:$0xff]  ;;  %1331 = vmatprep.subr.bf16.mxu0 %v1330_v15  ;;  %v1334_v25 = vpack.c.bf16 %v572_v22, %v570_v21  ;;  %v569_v26 = vld [vmem:[%s1650_s7 + $0x220] sm:$0xff]  ;;  %v571_v27 = vld [vmem:[%s1650_s7 + $0x230] sm:$0xff]  ;;  %v1284_v28 = vpack.c.bf16 %v519_v19, %v517_v14 }
  0x52   : > { %1333 = vmatpush1.bf16.msra.mxu0 %v1332_v20  ;;  %v521_v29 = vld [vmem:[%s1650_s7 + $0xa0] sm:$0xff]  ;;  %v1336_v30 = vpack.c.bf16 %v571_v27, %v569_v26  ;;  %v574_v31 = vld [vmem:[%s1650_s7 + $0x248] sm:$0xff]  ;;  %v576_v32 = vld [vmem:[%s1650_s7 + $0x258] sm:$0xff]  ;;  %v1286_v33 = vpack.c.bf16 %v524_v24, %v522_v23 }
  0x53   : > { %1335 = vmatprep.subr.bf16.mxu0 %v1334_v25  ;;  %v523_v34 = vld [vmem:[%s1650_s7 + $0xb0] sm:$0xff]  ;;  %v1338_v35 = vpack.c.bf16 %v576_v32, %v574_v31  ;;  %v573_v36 = vld [vmem:[%s1650_s7 + $0x240] sm:$0xff]  ;;  %v526_v38 = vld [vmem:[%s1650_s7 + $0xc8] sm:$0xff] }
  0x54   : > { %1277 = vmatpush1.bf16.msra.mxu1 %v1276_v5  ;;  %v575_v37 = vld [vmem:[%s1650_s7 + $0x250] sm:$0xff]  ;;  %v528_v39 = vld [vmem:[%s1650_s7 + $0xd8] sm:$0xff]  ;;  %v578_v40 = vld [vmem:[%s1650_s7 + $0x268] sm:$0xff]  ;;  %v1288_v43 = vpack.c.bf16 %v523_v34, %v521_v29 }
  0x55   : > { %1279 = vmatprep.subr.bf16.mxu1 %v1278_v6  ;;  %v1340_v41 = vpack.c.bf16 %v575_v37, %v573_v36  ;;  %v580_v42 = vld [vmem:[%s1650_s7 + $0x278] sm:$0xff]  ;;  %v525_v44 = vld [vmem:[%s1650_s7 + $0xc0] sm:$0xff]  ;;  %v579_v47 = vld [vmem:[%s1650_s7 + $0x270] sm:$0xff]  ;;  %v1290_v48 = vpack.c.bf16 %v528_v39, %v526_v38 }
  0x56   : > { %1337 = vmatpush1.bf16.msra.mxu0 %v1336_v30  ;;  %v1342_v45 = vpack.c.bf16 %v580_v42, %v578_v40  ;;  %v577_v46 = vld [vmem:[%s1650_s7 + $0x260] sm:$0xff]  ;;  %v527_v49 = vld [vmem:[%s1650_s7 + $0xd0] sm:$0xff]  ;;  %v582_v50 = vld [vmem:[%s1650_s7 + $0x288] sm:$0xff] }
  0x57   : > { %1339 = vmatprep.subr.bf16.mxu0 %v1338_v35  ;;  %v584_v51 = vld [vmem:[%s1650_s7 + $0x298] sm:$0xff]  ;;  %v530_v52 = vld [vmem:[%s1650_s7 + $0xe8] sm:$0xff]  ;;  %v1344_v54 = vpack.c.bf16 %v579_v47, %v577_v46  ;;  %v1292_v55 = vpack.c.bf16 %v527_v49, %v525_v44  ;;  %v529_v57 = vld [vmem:[%s1650_s7 + $0xe0] sm:$0xff] }
  0x58   : > { %1281 = vmatpush1.bf16.msra.mxu1 %v1280_v13  ;;  %v532_v53 = vld [vmem:[%s1650_s7 + $0xf8] sm:$0xff]  ;;  %v1346_v58 = vpack.c.bf16 %v584_v51, %v582_v50  ;;  %v581_v59 = vld [vmem:[%s1650_s7 + $0x280] sm:$0xff]  ;;  %v583_v60 = vld [vmem:[%s1650_s7 + $0x290] sm:$0xff] }
  0x59   : > { %1283 = vmatprep.subr.bf16.mxu1 %v1282_v18  ;;  %v1294_v61 = vpack.c.bf16 %v532_v53, %v530_v52  ;;  %v531_v62 = vld [vmem:[%s1650_s7 + $0xf0] sm:$0xff]  ;;  %v586_v63 = vld [vmem:[%s1650_s7 + $0x2a8] sm:$0xff]  ;;  %v588_v0 = vld [vmem:[%s1650_s7 + $0x2b8] sm:$0xff]  ;;  %v1348_v3 = vpack.c.bf16 %v583_v60, %v581_v59 }
  0x5a   : > { %1341 = vmatpush1.bf16.msra.mxu0 %v1340_v41  ;;  %v534_v1 = vld [vmem:[%s1650_s7 + $0x108] sm:$0xff]  ;;  %v536_v2 = vld [vmem:[%s1650_s7 + $0x118] sm:$0xff]  ;;  %v1296_v4 = vpack.c.bf16 %v531_v62, %v529_v57  ;;  %v533_v5 = vld [vmem:[%s1650_s7 + $0x100] sm:$0xff]  ;;  %v1350_v6 = vpack.c.bf16 %v588_v0, %v586_v63 }
  0x5b   : > { %1343 = vmatprep.subr.bf16.mxu0 %v1342_v45  ;;  %v585_v7 = vld [vmem:[%s1650_s7 + $0x2a0] sm:$0xff]  ;;  %v587_v8 = vld [vmem:[%s1650_s7 + $0x2b0] sm:$0xff]  ;;  %v1298_v9 = vpack.c.bf16 %v536_v2, %v534_v1  ;;  %v590_v11 = vld [vmem:[%s1650_s7 + $0x2c8] sm:$0xff] }
  0x5c   : > { %1285 = vmatpush1.bf16.msra.mxu1 %v1284_v28  ;;  %v535_v10 = vld [vmem:[%s1650_s7 + $0x110] sm:$0xff]  ;;  %v592_v12 = vld [vmem:[%s1650_s7 + $0x2d8] sm:$0xff]  ;;  %v538_v13 = vld [vmem:[%s1650_s7 + $0x128] sm:$0xff]  ;;  %v1352_v16 = vpack.c.bf16 %v587_v8, %v585_v7 }
  0x5d   : > { %1287 = vmatprep.subr.bf16.mxu1 %v1286_v33  ;;  %v540_v14 = vld [vmem:[%s1650_s7 + $0x138] sm:$0xff]  ;;  %v537_v15 = vld [vmem:[%s1650_s7 + $0x120] sm:$0xff]  ;;  %v1300_v17 = vpack.c.bf16 %v535_v10, %v533_v5  ;;  %v1354_v18 = vpack.c.bf16 %v592_v12, %v590_v11  ;;  %v591_v20 = vld [vmem:[%s1650_s7 + $0x2d0] sm:$0xff] }
  0x5e   : > { %1345 = vmatpush1.bf16.msra.mxu0 %v1344_v54  ;;  %v589_v19 = vld [vmem:[%s1650_s7 + $0x2c0] sm:$0xff]  ;;  %v454_v21 = vld [vmem:[%s1652_s8 + $0x8] sm:$0xff]  ;;  %v1302_v22 = vpack.c.bf16 %v540_v14, %v538_v13  ;;  %v539_v23 = vld [vmem:[%s1650_s7 + $0x130] sm:$0xff] }
  0x5f   : > { %1347 = vmatprep.subr.bf16.mxu0 %v1346_v58  ;;  %v594_v24 = vld [vmem:[%s1650_s7 + $0x2e8] sm:$0xff]  ;;  %v596_v25 = vld [vmem:[%s1650_s7 + $0x2f8] sm:$0xff]  ;;  %661 = vmatprep.mubr.f32.mxu1 %v454_v21  ;;  %v1356_v28 = vpack.c.bf16 %v591_v20, %v589_v19  ;;  %v1304_v29 = vpack.c.bf16 %v539_v23, %v537_v15  ;;  %v593_v31 = vld [vmem:[%s1650_s7 + $0x2e0] sm:$0xff] }
  0x60   : > { %1289 = vmatpush1.bf16.msra.mxu1 %v1288_v43  ;;  %v542_v26 = vld [vmem:[%s1650_s7 + $0x148] sm:$0xff]  ;;  %v544_v27 = vld [vmem:[%s1650_s7 + $0x158] sm:$0xff]  ;;  %v1358_v30 = vpack.c.bf16 %v596_v25, %v594_v24  ;;  %v595_v32 = vld [vmem:[%s1650_s7 + $0x2f0] sm:$0xff] }
  0x61   : > { %1291 = vmatprep.subr.bf16.mxu1 %v1290_v48  ;;  %v1306_v33 = vpack.c.bf16 %v544_v27, %v542_v26  ;;  %v541_v34 = vld [vmem:[%s1650_s7 + $0x140] sm:$0xff]  ;;  %v543_v35 = vld [vmem:[%s1650_s7 + $0x150] sm:$0xff]  ;;  %v546_v36 = vld [vmem:[%s1650_s7 + $0x168] sm:$0xff]  ;;  %v1360_v38 = vpack.c.bf16 %v595_v32, %v593_v31 }
  0x62   : > { %1349 = vmatpush1.bf16.msra.mxu0 %v1348_v3  ;;  %v548_v37 = vld [vmem:[%s1650_s7 + $0x178] sm:$0xff]  ;;  %v1308_v39 = vpack.c.bf16 %v543_v35, %v541_v34  ;;  %v545_v41 = vld [vmem:[%s1650_s7 + $0x160] sm:$0xff]  ;;  %v547_v42 = vld [vmem:[%s1650_s7 + $0x170] sm:$0xff] }
  0x63   : > { %1351 = vmatprep.subr.bf16.mxu0 %v1350_v6  ;;  %v1310_v40 = vpack.c.bf16 %v548_v37, %v546_v36  ;;  %v550_v43 = vld [vmem:[%s1650_s7 + $0x188] sm:$0xff]  ;;  %v552_v44 = vld [vmem:[%s1650_s7 + $0x198] sm:$0xff]  ;;  %v455_v45 = vld [vmem:[%s1652_s8 + $0x10] sm:$0xff]  ;;  %v1312_v46 = vpack.c.bf16 %v547_v42, %v545_v41 }
  0x64   : > { %1293 = vmatpush1.bf16.msra.mxu1 %v1292_v55  ;;  %v1314_v47 = vpack.c.bf16 %v552_v44, %v550_v43  ;;  %v549_v48 = vld [vmem:[%s1650_s7 + $0x180] sm:$0xff]  ;;  %v551_v49 = vld [vmem:[%s1650_s7 + $0x190] sm:$0xff]  ;;  %v554_v50 = vld [vmem:[%s1650_s7 + $0x1a8] sm:$0xff] }
  0x65   : > { %1295 = vmatprep.subr.bf16.mxu1 %v1294_v61  ;;  %v556_v51 = vld [vmem:[%s1650_s7 + $0x1b8] sm:$0xff]  ;;  %v458_v52 = vld [vmem:[%s1652_s8 + $0x28] sm:$0xff]  ;;  %v1316_v53 = vpack.c.bf16 %v551_v49, %v549_v48  ;;  %v553_v55 = vld [vmem:[%s1650_s7 + $0x1a0] sm:$0xff] }
  0x66   : > { %1353 = vmatpush1.bf16.msra.mxu0 %v1352_v16  ;;  %v1318_v54 = vpack.c.bf16 %v556_v51, %v554_v50  ;;  %v555_v57 = vld [vmem:[%s1650_s7 + $0x1b0] sm:$0xff]  ;;  %v558_v58 = vld [vmem:[%s1650_s7 + $0x1c8] sm:$0xff]  ;;  %v560_v59 = vld [vmem:[%s1650_s7 + $0x1d8] sm:$0xff] }
  0x67   : > { %1355 = vmatprep.subr.bf16.mxu0 %v1354_v18  ;;  %v461_v60 = vld [vmem:[%s1652_s8 + $0x40] sm:$0xff]  ;;  %v1320_v61 = vpack.c.bf16 %v555_v57, %v553_v55  ;;  %v1322_v62 = vpack.c.bf16 %v560_v59, %v558_v58  ;;  %v559_v0 = vld [vmem:[%s1650_s7 + $0x1d0] sm:$0xff]  ;;  %v562_v1 = vld [vmem:[%s1650_s7 + $0x1e8] sm:$0xff] }
  0x68   : > { %1297 = vmatpush1.bf16.msra.mxu1 %v1296_v4  ;;  %v557_v63 = vld [vmem:[%s1650_s7 + $0x1c0] sm:$0xff]  ;;  %v564_v2 = vld [vmem:[%s1650_s7 + $0x1f8] sm:$0xff]  ;;  %v563_v7 = vld [vmem:[%s1650_s7 + $0x1f0] sm:$0xff] }
  0x69   : > { %1299 = vmatprep.subr.bf16.mxu1 %v1298_v9  ;;  %v464_v3 = vld [vmem:[%s1652_s8 + $0x58] sm:$0xff]  ;;  %v1324_v4 = vpack.c.bf16 %v559_v0, %v557_v63  ;;  %v1326_v5 = vpack.c.bf16 %v564_v2, %v562_v1  ;;  %v561_v6 = vld [vmem:[%s1650_s7 + $0x1e0] sm:$0xff]  ;;  %v467_v8 = vld [vmem:[%s1652_s8 + $0x70] sm:$0xff] }
  0x6a   : > { %1357 = vmatpush1.bf16.msra.mxu0 %v1356_v28  ;;  %v1328_v9 = vpack.c.bf16 %v563_v7, %v561_v6  ;;  %v470_v10 = vld [vmem:[%s1652_s8 + $0x88] sm:$0xff]  ;;  %v453_v11 = vld [vmem:[%s1652_s8] sm:$0xff]  ;;  %v456_v14 = vld [vmem:[%s1652_s8 + $0x18] sm:$0xff] }
  0x6b   : > { %1359 = vmatprep.subr.bf16.mxu0 %v1358_v30  ;;  %v457_v12 = vld [vmem:[%s1652_s8 + $0x20] sm:$0xff]  ;;  %v460_v15 = vld [vmem:[%s1652_s8 + $0x38] sm:$0xff]  ;;  %v463_v18 = vld [vmem:[%s1652_s8 + $0x50] sm:$0xff] }
  0x6c   : > { %1301 = vmatpush1.bf16.msra.mxu1 %v1300_v17  ;;  %v473_v13 = vld [vmem:[%s1652_s8 + $0xa0] sm:$0xff]  ;;  %v476_v16 = vld [vmem:[%s1652_s8 + $0xb8] sm:$0xff]  ;;  %v459_v17 = vld [vmem:[%s1652_s8 + $0x30] sm:$0xff] }
  0x6d   : > { %1303 = vmatprep.subr.bf16.mxu1 %v1302_v22  ;;  %v479_v19 = vld [vmem:[%s1652_s8 + $0xd0] sm:$0xff]  ;;  %v462_v20 = vld [vmem:[%s1652_s8 + $0x48] sm:$0xff]  ;;  %v465_v23 = vld [vmem:[%s1652_s8 + $0x60] sm:$0xff] }
  0x6e   : > { %1361 = vmatpush1.bf16.msra.mxu0 %v1360_v38  ;;  %v466_v21 = vld [vmem:[%s1652_s8 + $0x68] sm:$0xff]  ;;  %v469_v24 = vld [vmem:[%s1652_s8 + $0x80] sm:$0xff]  ;;  %v468_v26 = vld [vmem:[%s1652_s8 + $0x78] sm:$0xff] }
  0x6f   : > { %v482_v22 = vld [vmem:[%s1652_s8 + $0xe8] sm:$0xff]  ;;  %v485_v25 = vld [vmem:[%s1652_s8 + $0x100] sm:$0xff]  ;;  %v472_v27 = vld [vmem:[%s1652_s8 + $0x98] sm:$0xff] }
  0x70   : > { %1305 = vmatpush1.bf16.msra.mxu1 %v1304_v29  ;;  %v488_v28 = vld [vmem:[%s1652_s8 + $0x118] sm:$0xff]  ;;  %v471_v29 = vld [vmem:[%s1652_s8 + $0x90] sm:$0xff]  ;;  %v474_v32 = vld [vmem:[%s1652_s8 + $0xa8] sm:$0xff] }
  0x71   : > { %1307 = vmatprep.subr.bf16.mxu1 %v1306_v33  ;;  %823 = vmatmul.mubr.f32.vlgmr.msra.gmra.mrb[0].mxu0 %v455_v45  ;;  %v475_v30 = vld [vmem:[%s1652_s8 + $0xb0] sm:$0xff]  ;;  %v478_v33 = vld [vmem:[%s1652_s8 + $0xc8] sm:$0xff]  ;;  %v477_v35 = vld [vmem:[%s1652_s8 + $0xc0] sm:$0xff] }
  0x72   : > { %828 = vmatprep.mubr.f32.mxu0 %v1479_v56  ;;  %v491_v31 = vld [vmem:[%s1652_s8 + $0x130] sm:$0xff]  ;;  %v494_v34 = vld [vmem:[%s1652_s8 + $0x148] sm:$0xff]  ;;  %v481_v36 = vld [vmem:[%s1652_s8 + $0xe0] sm:$0xff] }
  0x73   : > { %v497_v37 = vld [vmem:[%s1652_s8 + $0x160] sm:$0xff]  ;;  %v480_v38 = vld [vmem:[%s1652_s8 + $0xd8] sm:$0xff]  ;;  %v483_v41 = vld [vmem:[%s1652_s8 + $0xf0] sm:$0xff] }
  0x74   : > { %1309 = vmatpush1.bf16.msra.mxu1 %v1308_v39  ;;  %v484_v39 = vld [vmem:[%s1652_s8 + $0xf8] sm:$0xff]  ;;  %v487_v42 = vld [vmem:[%s1652_s8 + $0x110] sm:$0xff]  ;;  %v486_v43 = vld [vmem:[%s1652_s8 + $0x108] sm:$0xff] }
  0x75   : > { %1311 = vmatprep.subr.bf16.mxu1 %v1310_v40  ;;  %829 = vmatmul.mubr.f32.gmra.mrb[2].mxu0 %v458_v52  ;;  %v500_v40 = vld [vmem:[%s1652_s8 + $0x178] sm:$0xff]  ;;  %v490_v44 = vld [vmem:[%s1652_s8 + $0x128] sm:$0xff]  ;;  %v489_v45 = vld [vmem:[%s1652_s8 + $0x120] sm:$0xff] }
  0x76   : > { %834 = vmatprep.mubr.f32.mxu0 %v1479_v56  ;;  %v495_v48 = vld [vmem:[%s1652_s8 + $0x150] sm:$0xff]  ;;  %v498_v50 = vld [vmem:[%s1652_s8 + $0x168] sm:$0xff]  ;;  %v421_v63 = vld [vmem:[#allocation2] sm:$0xff] }
  0x77   : > { %v499_v49 = vld [vmem:[%s1652_s8 + $0x170] sm:$0xff] }
  0x78   : > { %1313 = vmatpush1.bf16.msra.mxu1 %v1312_v46  ;;  %v493_v46 = vld [vmem:[%s1652_s8 + $0x140] sm:$0xff] }
  0x79   : > { %1315 = vmatprep.subr.bf16.mxu1 %v1314_v47  ;;  %835 = vmatmul.mubr.f32.gmra.mrb[4].mxu0 %v461_v60  ;;  %v496_v47 = vld [vmem:[%s1652_s8 + $0x158] sm:$0xff] }
  0x7a   : > { %840 = vmatprep.mubr.f32.mxu0 %v1479_v56 }
  0x7c   : > { %1317 = vmatpush1.bf16.msra.mxu1 %v1316_v53 }
  0x7d   : > { %1319 = vmatprep.subr.bf16.mxu1 %v1318_v54  ;;  %841 = vmatmul.mubr.f32.gmra.mrb[6].mxu0 %v464_v3  ;;  %v422_v3 = vld [vmem:[#allocation2 + $0x8] sm:$0xff] }
  0x7e   : > { %846 = vmatprep.mubr.f32.mxu0 %v1479_v56 }
  0x80   : > { %1321 = vmatpush1.bf16.msra.mxu1 %v1320_v61 }
  0x81   : > { %1323 = vmatprep.subr.bf16.mxu1 %v1322_v62  ;;  %847 = vmatmul.mubr.f32.gmra.mrb[8].mxu0 %v467_v8 }
  0x82   : > { %852 = vmatprep.mubr.f32.mxu0 %v1479_v56 }
  0x84   : > { %1325 = vmatpush1.bf16.msra.mxu1 %v1324_v4 }
  0x85   : > { %1327 = vmatprep.subr.bf16.mxu1 %v1326_v5  ;;  %853 = vmatmul.mubr.f32.gmra.mrb[10].mxu0 %v470_v10 }
  0x86   : > { %858 = vmatprep.mubr.f32.mxu0 %v1479_v56 }
  0x88   : > { %1329 = vmatpush1.bf16.msra.mxu1 %v1328_v9  ;;  %v423_v9 = vld [vmem:[#allocation2 + $0x10] sm:$0xff] }
  0x89   : > { %859 = vmatmul.mubr.f32.gmra.mrb[12].mxu0 %v473_v13  ;;  %v424_v13 = vld [vmem:[#allocation2 + $0x18] sm:$0xff] }
  0x8a   : > { %864 = vmatprep.mubr.f32.mxu0 %v1479_v56 }
  0x8b   : > { %662 = vmatmul.mubr.f32.vlgmr.msra.gmra.mrb[0].mxu1 %v453_v11 }
  0x8c   : > { %667 = vmatprep.mubr.f32.mxu1 %v457_v12 }
  0x8d   : > { %865 = vmatmul.mubr.f32.gmra.mrb[14].mxu0 %v476_v16 }
  0x8e   : > { %870 = vmatprep.mubr.f32.mxu0 %v1479_v56 }
  0x8f   : > { %668 = vmatmul.mubr.f32.gmra.mrb[2].mxu1 %v456_v14 }
  0x90   : > { %673 = vmatprep.mubr.f32.mxu1 %v460_v15 }
  0x91   : > { %871 = vmatmul.mubr.f32.gmra.mrb[16].mxu0 %v479_v19  ;;  %v425_v19 = vld [vmem:[#allocation2 + $0x20] sm:$0xff] }
  0x92   : > { %876 = vmatprep.mubr.f32.mxu0 %v1479_v56 }
  0x93   : > { %674 = vmatmul.mubr.f32.gmra.mrb[4].mxu1 %v459_v17 }
  0x94   : > { %679 = vmatprep.mubr.f32.mxu1 %v463_v18 }
  0x95   : > { %877 = vmatmul.mubr.f32.gmra.mrb[18].mxu0 %v482_v22 }
  0x96   : > { %882 = vmatprep.mubr.f32.mxu0 %v1479_v56 }
  0x97   : > { %680 = vmatmul.mubr.f32.gmra.mrb[6].mxu1 %v462_v20 }
  0x98   : > { %685 = vmatprep.mubr.f32.mxu1 %v466_v21 }
  0x99   : > { %883 = vmatmul.mubr.f32.gmra.mrb[20].mxu0 %v485_v25 }
  0x9a   : > { %888 = vmatprep.mubr.f32.mxu0 %v1479_v56 }
  0x9b   : > { %686 = vmatmul.mubr.f32.gmra.mrb[8].mxu1 %v465_v23  ;;  %v426_v23 = vld [vmem:[#allocation2 + $0x28] sm:$0xff] }
  0x9c   : > { %691 = vmatprep.mubr.f32.mxu1 %v469_v24 }
  0x9d   : > { %889 = vmatmul.mubr.f32.gmra.mrb[22].mxu0 %v488_v28 }
  0x9e   : > { %894 = vmatprep.mubr.f32.mxu0 %v1479_v56 }
  0x9f   : > { %692 = vmatmul.mubr.f32.gmra.mrb[10].mxu1 %v468_v26 }
  0xa0   : > { %697 = vmatprep.mubr.f32.mxu1 %v472_v27 }
  0xa1   : > { %895 = vmatmul.mubr.f32.gmra.mrb[24].mxu0 %v491_v31 }
  0xa2   : > { %900 = vmatprep.mubr.f32.mxu0 %v1479_v56 }
  0xa3   : > { %698 = vmatmul.mubr.f32.gmra.mrb[12].mxu1 %v471_v29  ;;  %v427_v29 = vld [vmem:[#allocation2 + $0x30] sm:$0xff] }
  0xa4   : > { %703 = vmatprep.mubr.f32.mxu1 %v475_v30 }
  0xa5   : > { %901 = vmatmul.mubr.f32.gmra.mrb[26].mxu0 %v494_v34 }
  0xa6   : > { %906 = vmatprep.mubr.f32.mxu0 %v1479_v56 }
  0xa7   : > { %704 = vmatmul.mubr.f32.gmra.mrb[14].mxu1 %v474_v32 }
  0xa8   : > { %709 = vmatprep.mubr.f32.mxu1 %v478_v33  ;;  %v428_v33 = vld [vmem:[#allocation2 + $0x38] sm:$0xff] }
  0xa9   : > { %907 = vmatmul.mubr.f32.gmra.mrb[28].mxu0 %v497_v37 }
  0xaa   : > { %912 = vmatprep.mubr.f32.mxu0 %v1479_v56  ;;  %v492_v56 = vld [vmem:[%s1652_s8 + $0x138] sm:$0xff] }
  0xab   : > { %710 = vmatmul.mubr.f32.gmra.mrb[16].mxu1 %v477_v35 }
  0xac   : > { %715 = vmatprep.mubr.f32.mxu1 %v481_v36 }
  0xad   : > { %913 = vmatmul.mubr.f32.gmra.mrb[30].mxu0 %v500_v40 }
  0xaf   : > { %716 = vmatmul.mubr.f32.gmra.mrb[18].mxu1 %v480_v38 }
  0xb0   : > { %721 = vmatprep.mubr.f32.mxu1 %v484_v39  ;;  %v429_v39 = vld [vmem:[#allocation2 + $0x40] sm:$0xff] }
  0xb3   : > { %722 = vmatmul.mubr.f32.gmra.mrb[20].mxu1 %v483_v41 }
  0xb4   : > { %727 = vmatprep.mubr.f32.mxu1 %v487_v42 }
  0xb7   : > { %728 = vmatmul.mubr.f32.gmra.mrb[22].mxu1 %v486_v43  ;;  %v430_v43 = vld [vmem:[#allocation2 + $0x48] sm:$0xff] }
  0xb8   : > { %733 = vmatprep.mubr.f32.mxu1 %v490_v44 }
  0xbb   : > { %734 = vmatmul.mubr.f32.gmra.mrb[24].mxu1 %v489_v45 }
  0xbc   : > { %739 = vmatprep.mubr.f32.mxu1 %v493_v46 }
  0xbf   : > { %740 = vmatmul.mubr.f32.gmra.mrb[26].mxu1 %v492_v56 }
  0xc0   : > { %745 = vmatprep.mubr.f32.mxu1 %v496_v47 }
  0xc3   : > { %746 = vmatmul.mubr.f32.gmra.mrb[28].mxu1 %v495_v48  ;;  %v431_v48 = vld [vmem:[#allocation2 + $0x50] sm:$0xff] }
  0xc4   : > { %751 = vmatprep.mubr.f32.mxu1 %v499_v49 }
  0xc7   : > { %752 = vmatmul.mubr.f32.gmra.mrb[30].mxu1 %v498_v50 }
 0x144   : > { %v824_v51 = vpop.f32.mrb[0].mxu0 }
 0x145   : > { %v826_v52 = vpop.f32.mrb[1].mxu0 }
 0x148   : > { %v830_v53 = vpop.f32.mrb[2].mxu0 }
 0x149   : > { %v832_v54 = vpop.f32.mrb[3].mxu0 }
 0x14c   : > { %v836_v55 = vpop.f32.mrb[4].mxu0 }
 0x14d   : > { %v838_v57 = vpop.f32.mrb[5].mxu0 }
 0x150   : > { %v842_v58 = vpop.f32.mrb[6].mxu0 }
 0x151   : > { %v844_v59 = vpop.f32.mrb[7].mxu0 }
 0x154   : > { %v848_v60 = vpop.f32.mrb[8].mxu0 }
 0x155   : > { %v850_v61 = vpop.f32.mrb[9].mxu0 }
 0x158   : > { %v1815_v62 = vpop.f32.mrb[10].mxu0 }
 0x159   : > { %v1817_v1 = vpop.f32.mrb[11].mxu0 }
 0x15c   : > { %v1819_v7 = vpop.f32.mrb[12].mxu0 }
 0x15d   : > { %v1821_v11 = vpop.f32.mrb[13].mxu0 }
 0x15e   : > { %v663_v0 = vpop.f32.mrb[0].mxu1 }
 0x15f   : > { %v825_v2 = vadd.f32 %v824_v51, %v663_v0  ;;  %v665_v4 = vpop.f32.mrb[1].mxu1  ;;  %v434_v0 = vld [vmem:[#allocation2 + $0x68] sm:$0xff] }
 0x160   : > { %v827_v5 = vadd.f32 %v826_v52, %v665_v4  ;;  %v1823_v17 = vpop.f32.mrb[14].mxu0  ;;  %v432_v52 = vld [vmem:[#allocation2 + $0x58] sm:$0xff] }
 0x161   : > { %v919_v6 = vadd.f32 %v825_v2, %v421_v63  ;;  %v1825_v21 = vpop.f32.mrb[15].mxu0 }
 0x162   : > { %v920_v8 = vadd.f32 %v827_v5, %v422_v3  ;;  %v669_v10 = vpop.f32.mrb[2].mxu1 }
 0x163   : > { %951 = vst [vmem:[#allocation2] sm:$0xff] %v919_v6  ;;  %v831_v12 = vadd.f32 %v830_v53, %v669_v10  ;;  %v671_v14 = vpop.f32.mrb[3].mxu1  ;;  %v436_v10 = vld [vmem:[#allocation2 + $0x78] sm:$0xff] }
 0x164   : > { %952 = vst [vmem:[#allocation2 + $0x8] sm:$0xff] %v920_v8  ;;  %v833_v15 = vadd.f32 %v832_v54, %v671_v14  ;;  %v1827_v27 = vpop.f32.mrb[16].mxu0 }
 0x165   : > { %v921_v16 = vadd.f32 %v831_v12, %v423_v9  ;;  %v1829_v31 = vpop.f32.mrb[17].mxu0 }
 0x166   : > { %v922_v18 = vadd.f32 %v833_v15, %v424_v13  ;;  %v675_v20 = vpop.f32.mrb[4].mxu1 }
 0x167   : > { %953 = vst [vmem:[#allocation2 + $0x10] sm:$0xff] %v921_v16  ;;  %v837_v22 = vadd.f32 %v836_v55, %v675_v20  ;;  %v677_v24 = vpop.f32.mrb[5].mxu1  ;;  %v437_v16 = vld [vmem:[#allocation2 + $0x80] sm:$0xff]  ;;  %v438_v20 = vld [vmem:[#allocation2 + $0x88] sm:$0xff] }
 0x168   : > { %954 = vst [vmem:[#allocation2 + $0x18] sm:$0xff] %v922_v18  ;;  %v839_v25 = vadd.f32 %v838_v57, %v677_v24  ;;  %v1831_v37 = vpop.f32.mrb[18].mxu0 }
 0x169   : > { %v923_v26 = vadd.f32 %v837_v22, %v425_v19  ;;  %v1833_v41 = vpop.f32.mrb[19].mxu0 }
 0x16a   : > { %v924_v28 = vadd.f32 %v839_v25, %v426_v23  ;;  %v681_v30 = vpop.f32.mrb[6].mxu1 }
 0x16b   : > { %955 = vst [vmem:[#allocation2 + $0x20] sm:$0xff] %v923_v26  ;;  %v843_v32 = vadd.f32 %v842_v58, %v681_v30  ;;  %v683_v34 = vpop.f32.mrb[7].mxu1  ;;  %v439_v26 = vld [vmem:[#allocation2 + $0x90] sm:$0xff]  ;;  %v440_v30 = vld [vmem:[#allocation2 + $0x98] sm:$0xff] }
 0x16c   : > { %956 = vst [vmem:[#allocation2 + $0x28] sm:$0xff] %v924_v28  ;;  %v845_v35 = vadd.f32 %v844_v59, %v683_v34  ;;  %v1835_v56 = vpop.f32.mrb[20].mxu0  ;;  %v433_v59 = vld [vmem:[#allocation2 + $0x60] sm:$0xff] }
 0x16d   : > { %v925_v36 = vadd.f32 %v843_v32, %v427_v29  ;;  %v1837_v50 = vpop.f32.mrb[21].mxu0 }
 0x16e   : > { %v926_v38 = vadd.f32 %v845_v35, %v428_v33  ;;  %v687_v40 = vpop.f32.mrb[8].mxu1 }
 0x16f   : > { %957 = vst [vmem:[#allocation2 + $0x30] sm:$0xff] %v925_v36  ;;  %v849_v42 = vadd.f32 %v848_v60, %v687_v40  ;;  %v689_v44 = vpop.f32.mrb[9].mxu1  ;;  %v441_v36 = vld [vmem:[#allocation2 + $0xa0] sm:$0xff]  ;;  %v442_v40 = vld [vmem:[#allocation2 + $0xa8] sm:$0xff] }
 0x170   : > { %958 = vst [vmem:[#allocation2 + $0x38] sm:$0xff] %v926_v38  ;;  %v851_v45 = vadd.f32 %v850_v61, %v689_v44  ;;  %v1841_v57 = vpop.f32.mrb[22].mxu0 }
 0x171   : > { %v927_v46 = vadd.f32 %v849_v42, %v429_v39  ;;  %v1843_v61 = vpop.f32.mrb[23].mxu0 }
 0x172   : > { %v928_v47 = vadd.f32 %v851_v45, %v430_v43  ;;  %v693_v49 = vpop.f32.mrb[10].mxu1  ;;  %v443_v45 = vld [vmem:[#allocation2 + $0xb0] sm:$0xff] }
 0x173   : > { %959 = vst [vmem:[#allocation2 + $0x40] sm:$0xff] %v927_v46  ;;  %v855_v51 = vadd.f32 %v1815_v62, %v693_v49  ;;  %v695_v53 = vpop.f32.mrb[11].mxu1 }
 0x174   : > { %960 = vst [vmem:[#allocation2 + $0x48] sm:$0xff] %v928_v47  ;;  %v857_v54 = vadd.f32 %v1817_v1, %v695_v53  ;;  %v896_v4 = vpop.f32.mrb[24].mxu0  ;;  %v435_v1 = vld [vmem:[#allocation2 + $0x70] sm:$0xff]  ;;  %v444_v47 = vld [vmem:[#allocation2 + $0xb8] sm:$0xff] }
 0x175   : > { %v929_v55 = vadd.f32 %v855_v51, %v431_v48  ;;  %v898_v8 = vpop.f32.mrb[25].mxu0 }
 0x176   : > { %v930_v58 = vadd.f32 %v857_v54, %v432_v52  ;;  %v699_v60 = vpop.f32.mrb[12].mxu1 }
 0x177   : > { %961 = vst [vmem:[#allocation2 + $0x50] sm:$0xff] %v929_v55  ;;  %v861_v63 = vadd.f32 %v1819_v7, %v699_v60  ;;  %v701_v2 = vpop.f32.mrb[13].mxu1  ;;  %v446_v55 = vld [vmem:[#allocation2 + $0xc8] sm:$0xff] }
 0x178   : > { %962 = vst [vmem:[#allocation2 + $0x58] sm:$0xff] %v930_v58  ;;  %v863_v62 = vadd.f32 %v1821_v11, %v701_v2  ;;  %v902_v14 = vpop.f32.mrb[26].mxu0  ;;  %v448_v2 = vld [vmem:[#allocation2 + $0xd8] sm:$0xff] }
 0x179   : > { %v931_v3 = vadd.f32 %v861_v63, %v433_v59  ;;  %v904_v11 = vpop.f32.mrb[27].mxu0  ;;  %v447_v63 = vld [vmem:[#allocation2 + $0xd0] sm:$0xff] }
 0x17a   : > { %v932_v5 = vadd.f32 %v863_v62, %v434_v0  ;;  %v705_v6 = vpop.f32.mrb[14].mxu1 }
 0x17b   : > { %963 = vst [vmem:[#allocation2 + $0x60] sm:$0xff] %v931_v3  ;;  %v867_v9 = vadd.f32 %v1823_v17, %v705_v6  ;;  %v707_v12 = vpop.f32.mrb[15].mxu1 }
 0x17c   : > { %964 = vst [vmem:[#allocation2 + $0x68] sm:$0xff] %v932_v5  ;;  %v869_v13 = vadd.f32 %v1825_v21, %v707_v12  ;;  %v908_v24 = vpop.f32.mrb[28].mxu0 }
 0x17d   : > { %v933_v7 = vadd.f32 %v867_v9, %v435_v1  ;;  %v910_v21 = vpop.f32.mrb[29].mxu0  ;;  %v449_v1 = vld [vmem:[#allocation2 + $0xe0] sm:$0xff]  ;;  %v450_v9 = vld [vmem:[#allocation2 + $0xe8] sm:$0xff] }
 0x17e   : > { %v934_v15 = vadd.f32 %v869_v13, %v436_v10  ;;  %v711_v18 = vpop.f32.mrb[16].mxu1 }
 0x17f   : > { %965 = vst [vmem:[#allocation2 + $0x70] sm:$0xff] %v933_v7  ;;  %v873_v19 = vadd.f32 %v1827_v27, %v711_v18  ;;  %v713_v22 = vpop.f32.mrb[17].mxu1  ;;  %v451_v7 = vld [vmem:[#allocation2 + $0xf0] sm:$0xff] }
 0x180   : > { %966 = vst [vmem:[#allocation2 + $0x78] sm:$0xff] %v934_v15  ;;  %v875_v23 = vadd.f32 %v1829_v31, %v713_v22  ;;  %v914_v34 = vpop.f32.mrb[30].mxu0  ;;  %v1021_v22 = vlaneseq (!%p1259_p11) }
 0x181   : > { %v935_v17 = vadd.f32 %v873_v19, %v437_v16  ;;  %v916_v31 = vpop.f32.mrb[31].mxu0  ;;  %v452_v16 = vld [vmem:[#allocation2 + $0xf8] sm:$0xff] }
 0x182   : > { %v936_v25 = vadd.f32 %v875_v23, %v438_v20  ;;  %v717_v28 = vpop.f32.mrb[18].mxu1  ;;  %v1022_v23 = vshrl.u32 (!%p1259_p11), %v1021_v22, 7 }
 0x183   : > { %967 = vst [vmem:[#allocation2 + $0x80] sm:$0xff] %v935_v17  ;;  %v879_v29 = vadd.f32 %v1831_v37, %v717_v28  ;;  %v719_v32 = vpop.f32.mrb[19].mxu1  ;;  %v1019_v17 = vld [vmem:[%s2010_s2] sm:$0x3] (!%p1259_p11) }
 0x184   : > { %968 = vst [vmem:[#allocation2 + $0x88] sm:$0xff] %v936_v25  ;;  %v881_v33 = vadd.f32 %v1833_v41, %v719_v32  ;;  %v1023_v25 = vsub.s32 (!%p1259_p11), 0, %v1022_v23  ;;  %v1027_v28 = vsub.s32 (!%p1259_p11), 1, %v1022_v23 }
 0x185   : > { %v937_v27 = vadd.f32 %v879_v29, %v439_v26  ;;  %v988_v26 = vld [vmem:[#allocation2 + $0x8] sm:$0xff] (!%p1259_p11)  ;;  %v990_v29 = vld [vmem:[#allocation2 + $0x18] sm:$0xff] (!%p1259_p11) }
 0x186   : > { %v938_v35 = vadd.f32 %v881_v33, %v440_v30  ;;  %v723_v38 = vpop.f32.mrb[20].mxu1  ;;  %v991_v30 = vld [vmem:[#allocation2 + $0x20] sm:$0xff] (!%p1259_p11)  ;;  %v1861_v32 = vrot.slane (!%p1259_p11), %v1019_v17, %v1023_v25  ;;  %v1863_v33 = vrot.slane (!%p1259_p11), %v1019_v17, %v1027_v28 }
 0x187   : > { %969 = vst [vmem:[#allocation2 + $0x90] sm:$0xff] %v937_v27  ;;  %v885_v39 = vadd.f32 %v1835_v56, %v723_v38  ;;  %v725_v42 = vpop.f32.mrb[21].mxu1  ;;  %v445_v56 = vld [vmem:[#allocation2 + $0xc0] sm:$0xff]  ;;  %v992_v27 = vld [vmem:[#allocation2 + $0x28] sm:$0xff] (!%p1259_p11) }
 0x188   : > { %970 = vst [vmem:[#allocation2 + $0x98] sm:$0xff] %v938_v35  ;;  %v887_v43 = vadd.f32 %v1837_v50, %v725_v42  ;;  %v994_v35 = vld [vmem:[#allocation2 + $0x38] sm:$0xff] (!%p1259_p11)  ;;  %v1032_v38 = vadd.f32 (!%p1259_p11), %v1863_v33, %v988_v26  ;;  %v996_v42 = vld [vmem:[#allocation2 + $0x48] sm:$0xff] (!%p1259_p11) }
 0x189   : > { %v939_v37 = vadd.f32 %v885_v39, %v441_v36  ;;  %v1034_v39 = vadd.f32 (!%p1259_p11), %v1863_v33, %v990_v29 }
 0x18a   : > { %v940_v44 = vadd.f32 %v887_v43, %v442_v40  ;;  %v729_v46 = vpop.f32.mrb[22].mxu1  ;;  %v995_v40 = vld [vmem:[#allocation2 + $0x40] sm:$0xff] (!%p1259_p11)  ;;  %v997_v43 = vld [vmem:[#allocation2 + $0x50] sm:$0xff] (!%p1259_p11) }
 0x18b   : > { %971 = vst [vmem:[#allocation2 + $0xa0] sm:$0xff] %v939_v37  ;;  %v891_v41 = vadd.f32 %v1841_v57, %v729_v46  ;;  %v731_v48 = vpop.f32.mrb[23].mxu1  ;;  %v1035_v37 = vadd.f32 (!%p1259_p11), %v1861_v32, %v991_v30  ;;  %v1038_v46 = vadd.f32 (!%p1259_p11), %v1863_v33, %v994_v35 }
 0x18c   : > { %972 = vst [vmem:[#allocation2 + $0xa8] sm:$0xff] %v940_v44  ;;  %v893_v49 = vadd.f32 %v1843_v61, %v731_v48  ;;  %v1036_v44 = vadd.f32 (!%p1259_p11), %v1863_v33, %v992_v27  ;;  %v1000_v48 = vld [vmem:[#allocation2 + $0x68] sm:$0xff] (!%p1259_p11) }
 0x18d   : > { %v941_v51 = vadd.f32 %v891_v41, %v443_v45  ;;  %v998_v41 = vld [vmem:[#allocation2 + $0x58] sm:$0xff] (!%p1259_p11) }
 0x18e   : > { %v942_v52 = vadd.f32 %v893_v49, %v444_v47  ;;  %v735_v53 = vpop.f32.mrb[24].mxu1  ;;  %v999_v47 = vld [vmem:[#allocation2 + $0x60] sm:$0xff] (!%p1259_p11) }
 0x18f   : > { %973 = vst [vmem:[#allocation2 + $0xb0] sm:$0xff] %v941_v51  ;;  %v897_v54 = vadd.f32 %v896_v4, %v735_v53  ;;  %v737_v50 = vpop.f32.mrb[25].mxu1  ;;  %v1064_v51 = vmax.f32 (!%p1259_p11), %v1032_v38, 0.0  ;;  %v1001_v53 = vld [vmem:[#allocation2 + $0x70] sm:$0xff] (!%p1259_p11) }
 0x190   : > { %974 = vst [vmem:[#allocation2 + $0xb8] sm:$0xff] %v942_v52  ;;  %v899_v58 = vadd.f32 %v898_v8, %v737_v50  ;;  %v1068_v50 = vmax.f32 (!%p1259_p11), %v1036_v44, 0.0 }
 0x191   : > { %v943_v59 = vadd.f32 %v897_v54, %v445_v56  ;;  %v1066_v56 = vmax.f32 (!%p1259_p11), %v1034_v39, 0.0  ;;  %v1002_v54 = vld [vmem:[#allocation2 + $0x78] sm:$0xff] (!%p1259_p11)  ;;  %1096 = vst [vmem:[%s2011_s3 + $0x8] sm:$0xff] (!%p1259_p11), %v1064_v51 }
 0x192   : > { %v944_v60 = vadd.f32 %v899_v58, %v446_v55  ;;  %v741_v0 = vpop.f32.mrb[26].mxu1  ;;  %v1067_v55 = vmax.f32 (!%p1259_p11), %v1035_v37, 0.0  ;;  %1100 = vst [vmem:[%s2011_s3 + $0x28] sm:$0xff] (!%p1259_p11), %v1068_v50 }
 0x193   : > { %975 = vst [vmem:[#allocation2 + $0xc0] sm:$0xff] %v943_v59  ;;  %v903_v57 = vadd.f32 %v902_v14, %v741_v0  ;;  %v743_v62 = vpop.f32.mrb[27].mxu1  ;;  %v1070_v59 = vmax.f32 (!%p1259_p11), %v1038_v46, 0.0  ;;  %1098 = vst [vmem:[%s2011_s3 + $0x18] sm:$0xff] (!%p1259_p11), %v1066_v56  ;;  %v1041_v0 = vadd.f32 (!%p1259_p11), %v1861_v32, %v997_v43 }
 0x194   : > { %976 = vst [vmem:[#allocation2 + $0xc8] sm:$0xff] %v944_v60  ;;  %v905_v61 = vadd.f32 %v904_v11, %v743_v62  ;;  %v1039_v60 = vadd.f32 (!%p1259_p11), %v1861_v32, %v995_v40  ;;  %v1004_v62 = vld [vmem:[#allocation2 + $0x88] sm:$0xff] (!%p1259_p11)  ;;  %1099 = vst [vmem:[%s2011_s3 + $0x20] sm:$0xff] (!%p1259_p11), %v1067_v55 }
 0x195   : > { %v945_v3 = vadd.f32 %v903_v57, %v447_v63  ;;  %v1040_v63 = vadd.f32 (!%p1259_p11), %v1863_v33, %v996_v42  ;;  %v1042_v57 = vadd.f32 (!%p1259_p11), %v1863_v33, %v998_v41  ;;  %1102 = vst [vmem:[%s2011_s3 + $0x38] sm:$0xff] (!%p1259_p11), %v1070_v59  ;;  %v1048_v22 = vadd.f32 (!%p1259_p11), %v1863_v33, %v1004_v62 }
 0x196   : > { %v946_v5 = vadd.f32 %v905_v61, %v448_v2  ;;  %v747_v6 = vpop.f32.mrb[28].mxu1  ;;  %v1003_v2 = vld [vmem:[#allocation2 + $0x80] sm:$0xff] (!%p1259_p11)  ;;  %v1005_v61 = vld [vmem:[#allocation2 + $0x90] sm:$0xff] (!%p1259_p11) }
 0x197   : > { %977 = vst [vmem:[#allocation2 + $0xd0] sm:$0xff] %v945_v3  ;;  %v909_v4 = vadd.f32 %v908_v24, %v747_v6  ;;  %v749_v10 = vpop.f32.mrb[29].mxu1  ;;  %v987_v24 = vld [vmem:[#allocation2] sm:$0xff] (!%p1259_p11)  ;;  %v1043_v3 = vadd.f32 (!%p1259_p11), %v1861_v32, %v999_v47  ;;  %v1046_v6 = vadd.f32 (!%p1259_p11), %v1863_v33, %v1002_v54  ;;  %v1049_v23 = vadd.f32 (!%p1259_p11), %v1861_v32, %v1005_v61 }
 0x198   : > { %978 = vst [vmem:[#allocation2 + $0xd8] sm:$0xff] %v946_v5  ;;  %v911_v8 = vadd.f32 %v910_v21, %v749_v10  ;;  %v989_v21 = vld [vmem:[#allocation2 + $0x10] sm:$0xff] (!%p1259_p11)  ;;  %v1031_v36 = vadd.f32 (!%p1259_p11), %v1861_v32, %v987_v24  ;;  %v1044_v5 = vadd.f32 (!%p1259_p11), %v1863_v33, %v1000_v48  ;;  %v1008_v10 = vld [vmem:[#allocation2 + $0xa8] sm:$0xff] (!%p1259_p11)  ;;  %v1080_v38 = vmax.f32 (!%p1259_p11), %v1048_v22, 0.0 }
 0x199   : > { %v947_v12 = vadd.f32 %v909_v4, %v449_v1  ;;  %v1045_v1 = vadd.f32 (!%p1259_p11), %v1861_v32, %v1001_v53  ;;  %v1006_v4 = vld [vmem:[#allocation2 + $0x98] sm:$0xff] (!%p1259_p11) }
 0x19a   : > { %v948_v13 = vadd.f32 %v911_v8, %v450_v9  ;;  %v753_v15 = vpop.f32.mrb[30].mxu1  ;;  %986 = sbr.rel (%p1259_p11) target bundleno = 429 (0x1ad), region = 63  ;;  %v1063_v49 = vmax.f32 (!%p1259_p11), %v1031_v36, 0.0  ;;  %v1007_v9 = vld [vmem:[#allocation2 + $0xa0] sm:$0xff] (!%p1259_p11)  ;;  %v1071_v8 = vmax.f32 (!%p1259_p11), %v1039_v60, 0.0  ;;  %v1050_v17 = vadd.f32 (!%p1259_p11), %v1863_v33, %v1006_v4  ;;  %1112 = vst [vmem:[%s2011_s3 + $0x88] sm:$0xff] (!%p1259_p11), %v1080_v38 }
 0x19b   : > { %979 = vst [vmem:[#allocation2 + $0xe0] sm:$0xff] %v947_v12  ;;  %v915_v14 = vadd.f32 %v914_v34, %v753_v15  ;;  %v755_v18 = vpop.f32.mrb[31].mxu1  ;;  %v993_v34 = vld [vmem:[#allocation2 + $0x30] sm:$0xff] (!%p1259_p11)  ;;  %v1072_v12 = vmax.f32 (!%p1259_p11), %v1040_v63, 0.0  ;;  %v1011_v24 = vld [vmem:[#allocation2 + $0xc0] sm:$0xff] (!%p1259_p11)  ;;  %v1012_v25 = vld [vmem:[#allocation2 + $0xc8] sm:$0xff] (!%p1259_p11)  ;;  %v1051_v28 = vadd.f32 (!%p1259_p11), %v1861_v32, %v1007_v9 }
 0x19c   : > { %980 = vst [vmem:[#allocation2 + $0xe8] sm:$0xff] %v948_v13  ;;  %v917_v11 = vadd.f32 %v916_v31, %v755_v18  ;;  %v1033_v31 = vadd.f32 (!%p1259_p11), %v1861_v32, %v989_v21  ;;  %v1037_v45 = vadd.f32 (!%p1259_p11), %v1861_v32, %v993_v34  ;;  %1095 = vst [vmem:[%s2011_s3] sm:$0xff] (!%p1259_p11), %v1063_v49  ;;  %v1073_v13 = vmax.f32 (!%p1259_p11), %v1041_v0, 0.0  ;;  %v1009_v15 = vld [vmem:[#allocation2 + $0xb0] sm:$0xff] (!%p1259_p11) }
 0x19d   : > { %v949_v19 = vadd.f32 %v915_v14, %v451_v7  ;;  %v1074_v7 = vmax.f32 (!%p1259_p11), %v1042_v57, 0.0  ;;  %v1010_v14 = vld [vmem:[#allocation2 + $0xb8] sm:$0xff] (!%p1259_p11)  ;;  %v1076_v18 = vmax.f32 (!%p1259_p11), %v1044_v5, 0.0  ;;  %1103 = vst [vmem:[%s2011_s3 + $0x40] sm:$0xff] (!%p1259_p11), %v1071_v8  ;;  %1104 = vst [vmem:[%s2011_s3 + $0x48] sm:$0xff] (!%p1259_p11), %v1072_v12  ;;  %v1052_v21 = vadd.f32 (!%p1259_p11), %v1863_v33, %v1008_v10 }
 0x19e   : > { %v950_v20 = vadd.f32 %v917_v11, %v452_v16  ;;  %v1065_v52 = vmax.f32 (!%p1259_p11), %v1033_v31, 0.0  ;;  %v1069_v58 = vmax.f32 (!%p1259_p11), %v1037_v45, 0.0  ;;  %v1075_v16 = vmax.f32 (!%p1259_p11), %v1043_v3, 0.0  ;;  %1105 = vst [vmem:[%s2011_s3 + $0x50] sm:$0xff] (!%p1259_p11), %v1073_v13  ;;  %v1013_v26 = vld [vmem:[#allocation2 + $0xd0] sm:$0xff] (!%p1259_p11) }
 0x19f   : > { %981 = vst [vmem:[#allocation2 + $0xf0] sm:$0xff] %v949_v19  ;;  %v1077_v11 = vmax.f32 (!%p1259_p11), %v1045_v1, 0.0  ;;  %v1078_v19 = vmax.f32 (!%p1259_p11), %v1046_v6, 0.0  ;;  %1106 = vst [vmem:[%s2011_s3 + $0x58] sm:$0xff] (!%p1259_p11), %v1074_v7  ;;  %v1053_v29 = vadd.f32 (!%p1259_p11), %v1861_v32, %v1009_v15  ;;  %v1054_v30 = vadd.f32 (!%p1259_p11), %v1863_v33, %v1010_v14  ;;  %v1014_v27 = vld [vmem:[#allocation2 + $0xd8] sm:$0xff] (!%p1259_p11) }
 0x1a0   : > { %982 = vst [vmem:[#allocation2 + $0xf8] sm:$0xff] %v950_v20  ;;  %1097 = vst [vmem:[%s2011_s3 + $0x10] sm:$0xff] (!%p1259_p11), %v1065_v52  ;;  %v1047_v20 = vadd.f32 (!%p1259_p11), %v1861_v32, %v1003_v2  ;;  %v1081_v31 = vmax.f32 (!%p1259_p11), %v1049_v23, 0.0  ;;  %v1082_v39 = vmax.f32 (!%p1259_p11), %v1050_v17, 0.0  ;;  %v1083_v43 = vmax.f32 (!%p1259_p11), %v1051_v28, 0.0 }
 0x1a1   : > { %1101 = vst [vmem:[%s2011_s3 + $0x30] sm:$0xff] %v1069_v58  ;;  %1107 = vst [vmem:[%s2011_s3 + $0x60] sm:$0xff] %v1075_v16  ;;  %v1084_v37 = vmax.f32 %v1052_v21, 0.0  ;;  %v1085_v44 = vmax.f32 %v1053_v29, 0.0  ;;  %v1086_v45 = vmax.f32 %v1054_v30, 0.0  ;;  %v1055_v46 = vadd.f32 %v1861_v32, %v1011_v24 }
 0x1a2   : > { %1108 = vst [vmem:[%s2011_s3 + $0x68] sm:$0xff] %v1076_v18  ;;  %1109 = vst [vmem:[%s2011_s3 + $0x70] sm:$0xff] %v1077_v11  ;;  %v1015_v34 = vld [vmem:[#allocation2 + $0xe0] sm:$0xff]  ;;  %v1079_v36 = vmax.f32 %v1047_v20, 0.0  ;;  %v1056_v41 = vadd.f32 %v1863_v33, %v1012_v25  ;;  %v1057_v47 = vadd.f32 %v1861_v32, %v1013_v26  ;;  %v1058_v48 = vadd.f32 %v1863_v33, %v1014_v27 }
 0x1a3   : > { %1110 = vst [vmem:[%s2011_s3 + $0x78] sm:$0xff] %v1078_v19  ;;  %v1016_v35 = vld [vmem:[#allocation2 + $0xe8] sm:$0xff]  ;;  %1113 = vst [vmem:[%s2011_s3 + $0x90] sm:$0xff] %v1081_v31  ;;  %v1059_v49 = vadd.f32 %v1861_v32, %v1015_v34  ;;  %v1087_v53 = vmax.f32 %v1055_v46, 0.0 }
 0x1a4   : > { %1111 = vst [vmem:[%s2011_s3 + $0x80] sm:$0xff] %v1079_v36  ;;  %1114 = vst [vmem:[%s2011_s3 + $0x98] sm:$0xff] %v1082_v39  ;;  %v1060_v51 = vadd.f32 %v1863_v33, %v1016_v35  ;;  %v1088_v54 = vmax.f32 %v1056_v41, 0.0  ;;  %v1089_v55 = vmax.f32 %v1057_v47, 0.0  ;;  %v1090_v50 = vmax.f32 %v1058_v48, 0.0 }
 0x1a5   : > { %1115 = vst [vmem:[%s2011_s3 + $0xa0] sm:$0xff] %v1083_v43  ;;  %1116 = vst [vmem:[%s2011_s3 + $0xa8] sm:$0xff] %v1084_v37  ;;  %v1091_v58 = vmax.f32 %v1059_v49, 0.0 }
 0x1a6   : > { %v1017_v40 = vld [vmem:[#allocation2 + $0xf0] sm:$0xff]  ;;  %1117 = vst [vmem:[%s2011_s3 + $0xb0] sm:$0xff] %v1085_v44  ;;  %1118 = vst [vmem:[%s2011_s3 + $0xb8] sm:$0xff] %v1086_v45  ;;  %v1092_v59 = vmax.f32 %v1060_v51, 0.0 }
 0x1a7   : > { %v1018_v42 = vld [vmem:[#allocation2 + $0xf8] sm:$0xff]  ;;  %v1061_v52 = vadd.f32 %v1861_v32, %v1017_v40  ;;  %1119 = vst [vmem:[%s2011_s3 + $0xc0] sm:$0xff] %v1087_v53  ;;  %1120 = vst [vmem:[%s2011_s3 + $0xc8] sm:$0xff] %v1088_v54 }
 0x1a8   : > { %v1062_v56 = vadd.f32 %v1863_v33, %v1018_v42  ;;  %1121 = vst [vmem:[%s2011_s3 + $0xd0] sm:$0xff] %v1089_v55  ;;  %1122 = vst [vmem:[%s2011_s3 + $0xd8] sm:$0xff] %v1090_v50 }
 0x1a9   : > { %v1093_v60 = vmax.f32 %v1061_v52, 0.0  ;;  %1123 = vst [vmem:[%s2011_s3 + $0xe0] sm:$0xff] %v1091_v58  ;;  %1124 = vst [vmem:[%s2011_s3 + $0xe8] sm:$0xff] %v1092_v59 }
 0x1aa   : > { %v1094_v63 = vmax.f32 %v1062_v56, 0.0 }
 0x1ab   : > { %1125 = vst [vmem:[%s2011_s3 + $0xf0] sm:$0xff] %v1093_v60 }
 0x1ac   : > { %1126 = vst [vmem:[%s2011_s3 + $0xf8] sm:$0xff] %v1094_v63 }
 0x1ad PF: > { %s13_s16 = sadd.s32 1, %s1476_s16   ;;  %s2012_s12 = smov %s1464_s13 }
 0x1ae   : > { %p10_p12 = scmp.ge.s32.totalorder %s13_s16, 5   ;;  %s2013_s13 = smov %s1535_s20 }
 0x1af   : > { %s2014_s14 = smov %s1472_s15  ;;  %s2015_s15 = smov %s2017_s17 }
 0x1b0   :  { %12 = sbr.rel (!%p10_p12) target bundleno = 3 (0x3), region = 104 }

// kernel: encoder1_forward.9
= control target key start
LH: loop header
LB: loop body
LE: loop exit
PB: predicated region body
PF: predicated region fallthrough
CT: control target
= control target key end

     0   :  { %s1484_s12 = smov 0   ;;  %s1486_s13 = smov 0   ;;  %s1810_s0 = inlined_call_operand.vmem [shape: f32[32,2304], index: 0, kind: input, shape index: {}]   ;;  %s1811_s1 = inlined_call_operand.vmem [shape: f32[2304,512], index: 1, kind: input, shape index: {}]   ;;  %s1812_s2 = inlined_call_operand.vmem [shape: f32[1,512], index: 2, kind: input, shape index: {}]   ;;  %s1813_s3 = inlined_call_operand.vmem [shape: f32[32,512], index: 3, kind: output, shape index: {}]  }
   0x1   :  { %s1488_s14 = smov 0   ;;  %s1490_s15 = smov 0  }
   0x2   :  { %s1492_s16 = smov 0  }
   0x3 LB: > { %s25_s17 = sadd.s32 1, %s1456_s15  ;;  %p48_p1 = scmp.ne.s32.totalorder %s1448_s13, %s1444_s12  ;;  %s1460_s16 = sphi %s1492_s16, %s13_s16   ;;  %s1456_s15 = sphi %s1490_s15, %s1817_s15   ;;  %s1452_s14 = sphi %s1488_s14, %s1816_s14   ;;  %s1448_s13 = sphi %s1486_s13, %s1815_s13   ;;  %s1444_s12 = sphi %s1484_s12, %s1814_s12  }
   0x4   : > { %p26_p0 = scmp.ge.s32.totalorder %s25_s17, 6  ;;  %p49_p2 = scmp.eq.s32.totalorder %s1460_s16, 0 }
   0x5   : > { %s41_s19 = sadd.s32 1, %s1448_s13  ;;  %p1157_p5 = scmp.ge.s32.totalorder %s1460_s16, 6 }
   0x6   : > { %s1819_s17 = smov (%p26_p0, %s25_s17), 0  ;;  %p50_p3 = por %p49_p2, %p48_p1 }
   0x7   : > { %s37_s18 = ssub.s32 %s1456_s15, %s1819_s17  ;;  %164 = sbr.rel (%p1157_p5) target bundleno = 25 (0x19), region = 20 }
   0x8   : > { %p39_p4 = scmp.eq.s32.totalorder %s37_s18, 0 }
   0xa   : > { %s1519_s20 = scalar_select %p39_p4, %s1448_s13, %s41_s19  }
   0xe   : > { %167 = sbr.rel (!%p50_p3) target bundleno = 25 (0x19), region = 24  ;;  %s169_s21 = sand.u32 (%p50_p3), 1, %s1448_s13  }
   0xf   : > { %s1168_s22 = smul.u32 (%p50_p3), 24, %s1456_s15 }
  0x10   : > { %s1378_s23 = smul.u32 (%p50_p3), 96, %s169_s21 }
  0x11   : > { %s177_s26 = scalar_lea.vmem (%p50_p3), %s1810_s0, %s1168_s22 }
  0x12   : > { %v190_v0 = vld [vmem:[%s177_s26] sm:$0xff] (%p50_p3)  ;;  %v192_v1 = vld [vmem:[%s177_s26 + $0x8] sm:$0xff] (%p50_p3)  ;;  %v194_v2 = vld [vmem:[%s177_s26 + $0x10] sm:$0xff] (%p50_p3)  ;;  %s171_s27 = scalar_lea.vmem (%p50_p3), [#allocation3], %s1378_s23 }
  0x13   : > { %191 = vst [vmem:[%s171_s27] sm:$0xff] (%p50_p3), %v190_v0  ;;  %193 = vst [vmem:[%s171_s27 + $0x8] sm:$0xff] (%p50_p3), %v192_v1  ;;  %v196_v3 = vld [vmem:[%s177_s26 + $0x90] sm:$0xff] (%p50_p3)  ;;  %v198_v4 = vld [vmem:[%s177_s26 + $0x98] sm:$0xff] (%p50_p3) }
  0x14   : > { %195 = vst [vmem:[%s171_s27 + $0x10] sm:$0xff] (%p50_p3), %v194_v2  ;;  %v200_v5 = vld [vmem:[%s177_s26 + $0xa0] sm:$0xff] (%p50_p3)  ;;  %197 = vst [vmem:[%s171_s27 + $0x18] sm:$0xff] (%p50_p3), %v196_v3  ;;  %v204_v7 = vld [vmem:[%s177_s26 + $0x128] sm:$0xff] (%p50_p3) }
  0x15   : > { %199 = vst [vmem:[%s171_s27 + $0x20] sm:$0xff] %v198_v4  ;;  %201 = vst [vmem:[%s171_s27 + $0x28] sm:$0xff] %v200_v5  ;;  %v202_v6 = vld [vmem:[%s177_s26 + $0x120] sm:$0xff]  ;;  %v206_v8 = vld [vmem:[%s177_s26 + $0x130] sm:$0xff] }
  0x16   : > { %203 = vst [vmem:[%s171_s27 + $0x30] sm:$0xff] %v202_v6  ;;  %205 = vst [vmem:[%s171_s27 + $0x38] sm:$0xff] %v204_v7  ;;  %v208_v9 = vld [vmem:[%s177_s26 + $0x1b0] sm:$0xff]  ;;  %v210_v10 = vld [vmem:[%s177_s26 + $0x1b8] sm:$0xff] }
  0x17   : > { %207 = vst [vmem:[%s171_s27 + $0x40] sm:$0xff] %v206_v8  ;;  %v212_v11 = vld [vmem:[%s177_s26 + $0x1c0] sm:$0xff]  ;;  %209 = vst [vmem:[%s171_s27 + $0x48] sm:$0xff] %v208_v9 }
  0x18   : > { %211 = vst [vmem:[%s171_s27 + $0x50] sm:$0xff] %v210_v10  ;;  %213 = vst [vmem:[%s171_s27 + $0x58] sm:$0xff] %v212_v11 }
  0x19 PF: > { %p1159_p6 = scmp.ge.s32.totalorder %s1460_s16, 1  ;;  %p233_p7 = scmp.lt.s32.totalorder %s1460_s16, 7 }
  0x1b   : > { %p234_p8 = pnand %p1159_p6, %p233_p7 }
  0x1c   : > { %s240_s28 = sand.u32 (!%p234_p8), 1, %s1444_s12   ;;  %s284_s29 = smul.u32 (!%p234_p8), 48, %s1452_s14 }
  0x1d   : > { %237 = sbr.rel (%p234_p8) target bundleno = 387 (0x183), region = 51  ;;  %p1162_p10 = scmp.ne.s32.totalorder (!%p234_p8), %s1452_s14, 0 }
  0x1e   : > { %s1379_s30 = smul.u32 (!%p234_p8), 96, %s240_s28  ;;  %p286_p9 = scmp.lt.s32.totalorder (!%p234_p8), %s284_s29, 287 }
  0x20   : > { %s1536_s8 = scalar_lea.vmem (!%p234_p8), [#allocation3], %s1379_s30 }
  0x24   : > { %s1821_s29 = smov (!%p286_p9, %s284_s29), 287  ;;  %316 = sbr.rel (%p1162_p10) target bundleno = 46 (0x2e), region = 59 }
  0x25   : > { %s1169_s4 = sshll.u32 %s1821_s29, 5  ;;  %v1462_v12 = vmov (!%p1162_p10), 0.0  }
  0x26   : > { %s1534_s7 = scalar_lea.vmem %s1811_s1, %s1169_s4  ;;  %317 = vst [vmem:[#allocation2] sm:$0xff] (!%p1162_p10), %v1462_v12  ;;  %318 = vst [vmem:[#allocation2 + $0x8] sm:$0xff] (!%p1162_p10), %v1462_v12 }
  0x27   : > { %319 = vst [vmem:[#allocation2 + $0x10] sm:$0xff] (!%p1162_p10), %v1462_v12  ;;  %320 = vst [vmem:[#allocation2 + $0x18] sm:$0xff] (!%p1162_p10), %v1462_v12 }
  0x28   : > { %321 = vst [vmem:[#allocation2 + $0x20] sm:$0xff] (!%p1162_p10), %v1462_v12  ;;  %322 = vst [vmem:[#allocation2 + $0x28] sm:$0xff] (!%p1162_p10), %v1462_v12 }
  0x29   : > { %323 = vst [vmem:[#allocation2 + $0x30] sm:$0xff] (!%p1162_p10), %v1462_v12  ;;  %324 = vst [vmem:[#allocation2 + $0x38] sm:$0xff] (!%p1162_p10), %v1462_v12 }
  0x2a   : > { %325 = vst [vmem:[#allocation2 + $0x40] sm:$0xff] (!%p1162_p10), %v1462_v12  ;;  %326 = vst [vmem:[#allocation2 + $0x48] sm:$0xff] (!%p1162_p10), %v1462_v12 }
  0x2b   : > { %327 = vst [vmem:[#allocation2 + $0x50] sm:$0xff] %v1462_v12  ;;  %328 = vst [vmem:[#allocation2 + $0x58] sm:$0xff] %v1462_v12 }
  0x2c   : > { %329 = vst [vmem:[#allocation2 + $0x60] sm:$0xff] %v1462_v12  ;;  %330 = vst [vmem:[#allocation2 + $0x68] sm:$0xff] %v1462_v12 }
  0x2d   : > { %331 = vst [vmem:[#allocation2 + $0x70] sm:$0xff] %v1462_v12  ;;  %332 = vst [vmem:[#allocation2 + $0x78] sm:$0xff] %v1462_v12 }
  0x2e PF: > { %v362_v13 = vld [vmem:[%s1534_s7 + $0x8] sm:$0xff]  ;;  %v364_v15 = vld [vmem:[%s1534_s7 + $0x18] sm:$0xff]  ;;  %v361_v18 = vld [vmem:[%s1534_s7] sm:$0xff]  ;;  %p1163_p11 = scmp.ne.s32.totalorder %s1452_s14, 5 }
  0x2f   : > { %v366_v14 = vld [vmem:[%s1534_s7 + $0x28] sm:$0xff]  ;;  %v368_v17 = vld [vmem:[%s1534_s7 + $0x38] sm:$0xff]  ;;  %v365_v19 = vld [vmem:[%s1534_s7 + $0x20] sm:$0xff] }
  0x30   : > { %v1170_v16 = vpack.c.bf16 %v366_v14, %v362_v13  ;;  %v1266_v20 = vpack.c.bf16 %v368_v17, %v364_v15  ;;  %v1172_v21 = vpack.c.bf16 %v365_v19, %v361_v18  ;;  %v363_v22 = vld [vmem:[%s1534_s7 + $0x10] sm:$0xff]  ;;  %v370_v24 = vld [vmem:[%s1534_s7 + $0x48] sm:$0xff]  ;;  %v372_v27 = vld [vmem:[%s1534_s7 + $0x58] sm:$0xff] }
  0x31   : > { %v367_v23 = vld [vmem:[%s1534_s7 + $0x30] sm:$0xff]  ;;  %v374_v26 = vld [vmem:[%s1534_s7 + $0x68] sm:$0xff]  ;;  %v376_v28 = vld [vmem:[%s1534_s7 + $0x78] sm:$0xff] }
  0x32   : > { %1171 = vmatprep.subr.bf16.mxu0 %v1170_v16  ;;  %v1268_v25 = vpack.c.bf16 %v367_v23, %v363_v22  ;;  %1267 = vmatprep.subr.bf16.mxu1 %v1266_v20  ;;  %v1174_v29 = vpack.c.bf16 %v374_v26, %v370_v24  ;;  %v1270_v30 = vpack.c.bf16 %v376_v28, %v372_v27  ;;  %v369_v31 = vld [vmem:[%s1534_s7 + $0x40] sm:$0xff]  ;;  %v371_v33 = vld [vmem:[%s1534_s7 + $0x50] sm:$0xff]  ;;  %v378_v36 = vld [vmem:[%s1534_s7 + $0x88] sm:$0xff] }
  0x33   : > { %1173 = vmatpush1.bf16.msra.mxu0 %v1172_v21  ;;  %v373_v32 = vld [vmem:[%s1534_s7 + $0x60] sm:$0xff]  ;;  %v375_v35 = vld [vmem:[%s1534_s7 + $0x70] sm:$0xff]  ;;  %v382_v37 = vld [vmem:[%s1534_s7 + $0xa8] sm:$0xff] }
  0x34   : > { %1269 = vmatpush1.bf16.msra.mxu1 %v1268_v25  ;;  %v1176_v34 = vpack.c.bf16 %v373_v32, %v369_v31  ;;  %1175 = vmatprep.subr.bf16.mxu0 %v1174_v29  ;;  %v1272_v38 = vpack.c.bf16 %v375_v35, %v371_v33  ;;  %v1178_v39 = vpack.c.bf16 %v382_v37, %v378_v36  ;;  %v380_v40 = vld [vmem:[%s1534_s7 + $0x98] sm:$0xff]  ;;  %v377_v42 = vld [vmem:[%s1534_s7 + $0x80] sm:$0xff]  ;;  %v379_v45 = vld [vmem:[%s1534_s7 + $0x90] sm:$0xff] }
  0x35   : > { %1271 = vmatprep.subr.bf16.mxu1 %v1270_v30  ;;  %v384_v41 = vld [vmem:[%s1534_s7 + $0xb8] sm:$0xff]  ;;  %v381_v44 = vld [vmem:[%s1534_s7 + $0xa0] sm:$0xff]  ;;  %v383_v46 = vld [vmem:[%s1534_s7 + $0xb0] sm:$0xff] }
  0x36   : > { %v1274_v43 = vpack.c.bf16 %v384_v41, %v380_v40  ;;  %v1180_v47 = vpack.c.bf16 %v381_v44, %v377_v42  ;;  %v386_v48 = vld [vmem:[%s1534_s7 + $0xc8] sm:$0xff]  ;;  %v388_v50 = vld [vmem:[%s1534_s7 + $0xd8] sm:$0xff]  ;;  %v1276_v51 = vpack.c.bf16 %v383_v46, %v379_v45  ;;  %v385_v54 = vld [vmem:[%s1534_s7 + $0xc0] sm:$0xff] }
  0x37   : > { %1177 = vmatpush1.bf16.msra.mxu0 %v1176_v34  ;;  %v390_v49 = vld [vmem:[%s1534_s7 + $0xe8] sm:$0xff]  ;;  %v392_v53 = vld [vmem:[%s1534_s7 + $0xf8] sm:$0xff]  ;;  %v389_v55 = vld [vmem:[%s1534_s7 + $0xe0] sm:$0xff] }
  0x38   : > { %1273 = vmatpush1.bf16.msra.mxu1 %v1272_v38  ;;  %1179 = vmatprep.subr.bf16.mxu0 %v1178_v39  ;;  %v1182_v52 = vpack.c.bf16 %v390_v49, %v386_v48  ;;  %v1278_v56 = vpack.c.bf16 %v392_v53, %v388_v50  ;;  %v387_v57 = vld [vmem:[%s1534_s7 + $0xd0] sm:$0xff]  ;;  %v394_v59 = vld [vmem:[%s1534_s7 + $0x108] sm:$0xff]  ;;  %v396_v61 = vld [vmem:[%s1534_s7 + $0x118] sm:$0xff]  ;;  %v1184_v63 = vpack.c.bf16 %v389_v55, %v385_v54 }
  0x39   : > { %1275 = vmatprep.subr.bf16.mxu1 %v1274_v43  ;;  %v391_v58 = vld [vmem:[%s1534_s7 + $0xf0] sm:$0xff]  ;;  %v398_v60 = vld [vmem:[%s1534_s7 + $0x128] sm:$0xff]  ;;  %v400_v62 = vld [vmem:[%s1534_s7 + $0x138] sm:$0xff] }
  0x3a   : > { %v1280_v0 = vpack.c.bf16 %v391_v58, %v387_v57  ;;  %v1186_v1 = vpack.c.bf16 %v398_v60, %v394_v59  ;;  %v393_v2 = vld [vmem:[%s1534_s7 + $0x100] sm:$0xff]  ;;  %v395_v4 = vld [vmem:[%s1534_s7 + $0x110] sm:$0xff]  ;;  %v1282_v5 = vpack.c.bf16 %v400_v62, %v396_v61  ;;  %v402_v7 = vld [vmem:[%s1534_s7 + $0x148] sm:$0xff] }
  0x3b   : > { %1181 = vmatpush1.bf16.msra.mxu0 %v1180_v47  ;;  %v397_v3 = vld [vmem:[%s1534_s7 + $0x120] sm:$0xff]  ;;  %v399_v6 = vld [vmem:[%s1534_s7 + $0x130] sm:$0xff]  ;;  %v406_v8 = vld [vmem:[%s1534_s7 + $0x168] sm:$0xff] }
  0x3c   : > { %1277 = vmatpush1.bf16.msra.mxu1 %v1276_v51  ;;  %1183 = vmatprep.subr.bf16.mxu0 %v1182_v52  ;;  %v404_v9 = vld [vmem:[%s1534_s7 + $0x158] sm:$0xff]  ;;  %v1188_v11 = vpack.c.bf16 %v397_v3, %v393_v2  ;;  %v1284_v12 = vpack.c.bf16 %v399_v6, %v395_v4  ;;  %v1190_v13 = vpack.c.bf16 %v406_v8, %v402_v7  ;;  %v401_v14 = vld [vmem:[%s1534_s7 + $0x140] sm:$0xff]  ;;  %v403_v16 = vld [vmem:[%s1534_s7 + $0x150] sm:$0xff] }
  0x3d   : > { %1279 = vmatprep.subr.bf16.mxu1 %v1278_v56  ;;  %v408_v10 = vld [vmem:[%s1534_s7 + $0x178] sm:$0xff]  ;;  %v405_v15 = vld [vmem:[%s1534_s7 + $0x160] sm:$0xff]  ;;  %v407_v18 = vld [vmem:[%s1534_s7 + $0x170] sm:$0xff] }
  0x3e   : > { %v1286_v17 = vpack.c.bf16 %v408_v10, %v404_v9  ;;  %v410_v19 = vld [vmem:[%s1534_s7 + $0x188] sm:$0xff]  ;;  %v412_v21 = vld [vmem:[%s1534_s7 + $0x198] sm:$0xff]  ;;  %v1192_v23 = vpack.c.bf16 %v405_v15, %v401_v14  ;;  %v1288_v24 = vpack.c.bf16 %v407_v18, %v403_v16  ;;  %v409_v26 = vld [vmem:[%s1534_s7 + $0x180] sm:$0xff] }
  0x3f   : > { %1185 = vmatpush1.bf16.msra.mxu0 %v1184_v63  ;;  %v414_v20 = vld [vmem:[%s1534_s7 + $0x1a8] sm:$0xff]  ;;  %v416_v22 = vld [vmem:[%s1534_s7 + $0x1b8] sm:$0xff]  ;;  %v413_v27 = vld [vmem:[%s1534_s7 + $0x1a0] sm:$0xff] }
  0x40   : > { %1281 = vmatpush1.bf16.msra.mxu1 %v1280_v0  ;;  %1187 = vmatprep.subr.bf16.mxu0 %v1186_v1  ;;  %v1194_v25 = vpack.c.bf16 %v414_v20, %v410_v19  ;;  %v411_v28 = vld [vmem:[%s1534_s7 + $0x190] sm:$0xff]  ;;  %v1290_v29 = vpack.c.bf16 %v416_v22, %v412_v21  ;;  %v418_v31 = vld [vmem:[%s1534_s7 + $0x1c8] sm:$0xff]  ;;  %v420_v33 = vld [vmem:[%s1534_s7 + $0x1d8] sm:$0xff]  ;;  %v1196_v35 = vpack.c.bf16 %v413_v27, %v409_v26 }
  0x41   : > { %1283 = vmatprep.subr.bf16.mxu1 %v1282_v5  ;;  %v415_v30 = vld [vmem:[%s1534_s7 + $0x1b0] sm:$0xff]  ;;  %v422_v32 = vld [vmem:[%s1534_s7 + $0x1e8] sm:$0xff]  ;;  %v424_v34 = vld [vmem:[%s1534_s7 + $0x1f8] sm:$0xff] }
  0x42   : > { %v1292_v36 = vpack.c.bf16 %v415_v30, %v411_v28  ;;  %v1198_v37 = vpack.c.bf16 %v422_v32, %v418_v31  ;;  %v417_v38 = vld [vmem:[%s1534_s7 + $0x1c0] sm:$0xff]  ;;  %v419_v40 = vld [vmem:[%s1534_s7 + $0x1d0] sm:$0xff]  ;;  %v1294_v41 = vpack.c.bf16 %v424_v34, %v420_v33  ;;  %v426_v43 = vld [vmem:[%s1534_s7 + $0x208] sm:$0xff] }
  0x43   : > { %1189 = vmatpush1.bf16.msra.mxu0 %v1188_v11  ;;  %v421_v39 = vld [vmem:[%s1534_s7 + $0x1e0] sm:$0xff]  ;;  %v423_v42 = vld [vmem:[%s1534_s7 + $0x1f0] sm:$0xff]  ;;  %v430_v44 = vld [vmem:[%s1534_s7 + $0x228] sm:$0xff] }
  0x44   : > { %1285 = vmatpush1.bf16.msra.mxu1 %v1284_v12  ;;  %1191 = vmatprep.subr.bf16.mxu0 %v1190_v13  ;;  %v428_v45 = vld [vmem:[%s1534_s7 + $0x218] sm:$0xff]  ;;  %v1200_v47 = vpack.c.bf16 %v421_v39, %v417_v38  ;;  %v1296_v48 = vpack.c.bf16 %v423_v42, %v419_v40  ;;  %v1202_v49 = vpack.c.bf16 %v430_v44, %v426_v43  ;;  %v425_v50 = vld [vmem:[%s1534_s7 + $0x200] sm:$0xff]  ;;  %v427_v52 = vld [vmem:[%s1534_s7 + $0x210] sm:$0xff] }
  0x45   : > { %1287 = vmatprep.subr.bf16.mxu1 %v1286_v17  ;;  %v432_v46 = vld [vmem:[%s1534_s7 + $0x238] sm:$0xff]  ;;  %v429_v51 = vld [vmem:[%s1534_s7 + $0x220] sm:$0xff]  ;;  %v431_v54 = vld [vmem:[%s1534_s7 + $0x230] sm:$0xff] }
  0x46   : > { %v1298_v53 = vpack.c.bf16 %v432_v46, %v428_v45  ;;  %v434_v55 = vld [vmem:[%s1534_s7 + $0x248] sm:$0xff]  ;;  %v436_v57 = vld [vmem:[%s1534_s7 + $0x258] sm:$0xff]  ;;  %v1204_v59 = vpack.c.bf16 %v429_v51, %v425_v50  ;;  %v1300_v60 = vpack.c.bf16 %v431_v54, %v427_v52  ;;  %v433_v62 = vld [vmem:[%s1534_s7 + $0x240] sm:$0xff] }
  0x47   : > { %1193 = vmatpush1.bf16.msra.mxu0 %v1192_v23  ;;  %v438_v56 = vld [vmem:[%s1534_s7 + $0x268] sm:$0xff]  ;;  %v440_v58 = vld [vmem:[%s1534_s7 + $0x278] sm:$0xff]  ;;  %v437_v63 = vld [vmem:[%s1534_s7 + $0x260] sm:$0xff] }
  0x48   : > { %1289 = vmatpush1.bf16.msra.mxu1 %v1288_v24  ;;  %1195 = vmatprep.subr.bf16.mxu0 %v1194_v25  ;;  %v1206_v61 = vpack.c.bf16 %v438_v56, %v434_v55  ;;  %v435_v0 = vld [vmem:[%s1534_s7 + $0x250] sm:$0xff]  ;;  %v1302_v1 = vpack.c.bf16 %v440_v58, %v436_v57  ;;  %v442_v3 = vld [vmem:[%s1534_s7 + $0x288] sm:$0xff]  ;;  %v444_v5 = vld [vmem:[%s1534_s7 + $0x298] sm:$0xff]  ;;  %v1208_v7 = vpack.c.bf16 %v437_v63, %v433_v62 }
  0x49   : > { %1291 = vmatprep.subr.bf16.mxu1 %v1290_v29  ;;  %v439_v2 = vld [vmem:[%s1534_s7 + $0x270] sm:$0xff]  ;;  %v446_v4 = vld [vmem:[%s1534_s7 + $0x2a8] sm:$0xff]  ;;  %v448_v6 = vld [vmem:[%s1534_s7 + $0x2b8] sm:$0xff] }
  0x4a   : > { %v1304_v8 = vpack.c.bf16 %v439_v2, %v435_v0  ;;  %v1210_v9 = vpack.c.bf16 %v446_v4, %v442_v3  ;;  %v441_v10 = vld [vmem:[%s1534_s7 + $0x280] sm:$0xff]  ;;  %v443_v12 = vld [vmem:[%s1534_s7 + $0x290] sm:$0xff]  ;;  %v1306_v13 = vpack.c.bf16 %v448_v6, %v444_v5  ;;  %v450_v15 = vld [vmem:[%s1534_s7 + $0x2c8] sm:$0xff] }
  0x4b   : > { %1197 = vmatpush1.bf16.msra.mxu0 %v1196_v35  ;;  %v445_v11 = vld [vmem:[%s1534_s7 + $0x2a0] sm:$0xff]  ;;  %v447_v14 = vld [vmem:[%s1534_s7 + $0x2b0] sm:$0xff]  ;;  %v454_v16 = vld [vmem:[%s1534_s7 + $0x2e8] sm:$0xff] }
  0x4c   : > { %1293 = vmatpush1.bf16.msra.mxu1 %v1292_v36  ;;  %1199 = vmatprep.subr.bf16.mxu0 %v1198_v37  ;;  %v452_v17 = vld [vmem:[%s1534_s7 + $0x2d8] sm:$0xff]  ;;  %v1212_v19 = vpack.c.bf16 %v445_v11, %v441_v10  ;;  %v449_v20 = vld [vmem:[%s1534_s7 + $0x2c0] sm:$0xff]  ;;  %v1308_v21 = vpack.c.bf16 %v447_v14, %v443_v12  ;;  %v1214_v22 = vpack.c.bf16 %v454_v16, %v450_v15  ;;  %v451_v24 = vld [vmem:[%s1534_s7 + $0x2d0] sm:$0xff] }
  0x4d   : > { %1295 = vmatprep.subr.bf16.mxu1 %v1294_v41  ;;  %v456_v18 = vld [vmem:[%s1534_s7 + $0x2f8] sm:$0xff]  ;;  %v453_v23 = vld [vmem:[%s1534_s7 + $0x2e0] sm:$0xff]  ;;  %v455_v25 = vld [vmem:[%s1534_s7 + $0x2f0] sm:$0xff] }
  0x4e   : > { %v1310_v26 = vpack.c.bf16 %v456_v18, %v452_v17  ;;  %v458_v27 = vld [vmem:[%s1534_s7 + $0x308] sm:$0xff]  ;;  %v460_v30 = vld [vmem:[%s1534_s7 + $0x318] sm:$0xff]  ;;  %v1216_v32 = vpack.c.bf16 %v453_v23, %v449_v20  ;;  %v1312_v33 = vpack.c.bf16 %v455_v25, %v451_v24  ;;  %v457_v35 = vld [vmem:[%s1534_s7 + $0x300] sm:$0xff] }
  0x4f   : > { %1201 = vmatpush1.bf16.msra.mxu0 %v1200_v47  ;;  %v462_v28 = vld [vmem:[%s1534_s7 + $0x328] sm:$0xff]  ;;  %v464_v31 = vld [vmem:[%s1534_s7 + $0x338] sm:$0xff]  ;;  %v461_v36 = vld [vmem:[%s1534_s7 + $0x320] sm:$0xff] }
  0x50   : > { %1297 = vmatpush1.bf16.msra.mxu1 %v1296_v48  ;;  %1203 = vmatprep.subr.bf16.mxu0 %v1202_v49  ;;  %v350_v29 = vld [vmem:[%s1536_s8 + $0x8] sm:$0xff]  ;;  %v1218_v34 = vpack.c.bf16 %v462_v28, %v458_v27  ;;  %v459_v37 = vld [vmem:[%s1534_s7 + $0x310] sm:$0xff]  ;;  %v1314_v38 = vpack.c.bf16 %v464_v31, %v460_v30  ;;  %v468_v42 = vld [vmem:[%s1534_s7 + $0x358] sm:$0xff]  ;;  %v1220_v44 = vpack.c.bf16 %v461_v36, %v457_v35 }
  0x51   : > { %1299 = vmatprep.subr.bf16.mxu1 %v1298_v53  ;;  %617 = vmatprep.mubr.f32.mxu0 %v350_v29  ;;  %v463_v39 = vld [vmem:[%s1534_s7 + $0x330] sm:$0xff]  ;;  %v466_v40 = vld [vmem:[%s1534_s7 + $0x348] sm:$0xff]  ;;  %v472_v43 = vld [vmem:[%s1534_s7 + $0x378] sm:$0xff] }
  0x52   : > { %795 = vmatprep.mubr.f32.mxu1 %v350_v29  ;;  %v470_v41 = vld [vmem:[%s1534_s7 + $0x368] sm:$0xff]  ;;  %v1316_v45 = vpack.c.bf16 %v463_v39, %v459_v37  ;;  %v465_v47 = vld [vmem:[%s1534_s7 + $0x340] sm:$0xff]  ;;  %v467_v49 = vld [vmem:[%s1534_s7 + $0x350] sm:$0xff]  ;;  %v1318_v50 = vpack.c.bf16 %v472_v43, %v468_v42 }
  0x53   : > { %1205 = vmatpush1.bf16.msra.mxu0 %v1204_v59  ;;  %v1222_v46 = vpack.c.bf16 %v470_v41, %v466_v40  ;;  %v469_v48 = vld [vmem:[%s1534_s7 + $0x360] sm:$0xff]  ;;  %v471_v51 = vld [vmem:[%s1534_s7 + $0x370] sm:$0xff]  ;;  %v474_v52 = vld [vmem:[%s1534_s7 + $0x388] sm:$0xff] }
  0x54   : > { %1301 = vmatpush1.bf16.msra.mxu1 %v1300_v60  ;;  %1207 = vmatprep.subr.bf16.mxu0 %v1206_v61  ;;  %v478_v53 = vld [vmem:[%s1534_s7 + $0x3a8] sm:$0xff]  ;;  %v476_v54 = vld [vmem:[%s1534_s7 + $0x398] sm:$0xff]  ;;  %v1224_v56 = vpack.c.bf16 %v469_v48, %v465_v47  ;;  %v1320_v57 = vpack.c.bf16 %v471_v51, %v467_v49  ;;  %v473_v59 = vld [vmem:[%s1534_s7 + $0x380] sm:$0xff] }
  0x55   : > { %1303 = vmatprep.subr.bf16.mxu1 %v1302_v1  ;;  %v480_v55 = vld [vmem:[%s1534_s7 + $0x3b8] sm:$0xff]  ;;  %v1226_v58 = vpack.c.bf16 %v478_v53, %v474_v52  ;;  %v477_v60 = vld [vmem:[%s1534_s7 + $0x3a0] sm:$0xff]  ;;  %v475_v61 = vld [vmem:[%s1534_s7 + $0x390] sm:$0xff] }
  0x56   : > { %v1322_v62 = vpack.c.bf16 %v480_v55, %v476_v54  ;;  %v479_v63 = vld [vmem:[%s1534_s7 + $0x3b0] sm:$0xff]  ;;  %v482_v0 = vld [vmem:[%s1534_s7 + $0x3c8] sm:$0xff]  ;;  %v484_v2 = vld [vmem:[%s1534_s7 + $0x3d8] sm:$0xff]  ;;  %v1228_v4 = vpack.c.bf16 %v477_v60, %v473_v59 }
  0x57   : > { %1209 = vmatpush1.bf16.msra.mxu0 %v1208_v7  ;;  %v486_v1 = vld [vmem:[%s1534_s7 + $0x3e8] sm:$0xff]  ;;  %v488_v3 = vld [vmem:[%s1534_s7 + $0x3f8] sm:$0xff]  ;;  %v1324_v5 = vpack.c.bf16 %v479_v63, %v475_v61  ;;  %v481_v7 = vld [vmem:[%s1534_s7 + $0x3c0] sm:$0xff] }
  0x58   : > { %1305 = vmatpush1.bf16.msra.mxu1 %v1304_v8  ;;  %1211 = vmatprep.subr.bf16.mxu0 %v1210_v9  ;;  %v1230_v6 = vpack.c.bf16 %v486_v1, %v482_v0  ;;  %v485_v8 = vld [vmem:[%s1534_s7 + $0x3e0] sm:$0xff]  ;;  %v483_v9 = vld [vmem:[%s1534_s7 + $0x3d0] sm:$0xff]  ;;  %v1326_v10 = vpack.c.bf16 %v488_v3, %v484_v2  ;;  %v490_v12 = vld [vmem:[%s1534_s7 + $0x408] sm:$0xff] }
  0x59   : > { %1307 = vmatprep.subr.bf16.mxu1 %v1306_v13  ;;  %v487_v11 = vld [vmem:[%s1534_s7 + $0x3f0] sm:$0xff]  ;;  %v494_v13 = vld [vmem:[%s1534_s7 + $0x428] sm:$0xff]  ;;  %v492_v14 = vld [vmem:[%s1534_s7 + $0x418] sm:$0xff]  ;;  %v1232_v16 = vpack.c.bf16 %v485_v8, %v481_v7 }
  0x5a   : > { %v496_v15 = vld [vmem:[%s1534_s7 + $0x438] sm:$0xff]  ;;  %v1328_v17 = vpack.c.bf16 %v487_v11, %v483_v9  ;;  %v1234_v18 = vpack.c.bf16 %v494_v13, %v490_v12  ;;  %v493_v20 = vld [vmem:[%s1534_s7 + $0x420] sm:$0xff]  ;;  %v495_v23 = vld [vmem:[%s1534_s7 + $0x430] sm:$0xff] }
  0x5b   : > { %1213 = vmatpush1.bf16.msra.mxu0 %v1212_v19  ;;  %v489_v19 = vld [vmem:[%s1534_s7 + $0x400] sm:$0xff]  ;;  %v498_v24 = vld [vmem:[%s1534_s7 + $0x448] sm:$0xff]  ;;  %v504_v27 = vld [vmem:[%s1534_s7 + $0x478] sm:$0xff] }
  0x5c   : > { %1309 = vmatpush1.bf16.msra.mxu1 %v1308_v21  ;;  %1215 = vmatprep.subr.bf16.mxu0 %v1214_v22  ;;  %v491_v21 = vld [vmem:[%s1534_s7 + $0x410] sm:$0xff]  ;;  %v1330_v22 = vpack.c.bf16 %v496_v15, %v492_v14  ;;  %v502_v25 = vld [vmem:[%s1534_s7 + $0x468] sm:$0xff]  ;;  %v349_v28 = vld [vmem:[%s1536_s8] sm:$0xff]  ;;  %v1236_v29 = vpack.c.bf16 %v493_v20, %v489_v19 }
  0x5d   : > { %1311 = vmatprep.subr.bf16.mxu1 %v1310_v26  ;;  %v500_v26 = vld [vmem:[%s1534_s7 + $0x458] sm:$0xff]  ;;  %v1332_v30 = vpack.c.bf16 %v495_v23, %v491_v21  ;;  %v1238_v31 = vpack.c.bf16 %v502_v25, %v498_v24  ;;  %v503_v36 = vld [vmem:[%s1534_s7 + $0x470] sm:$0xff]  ;;  %v506_v37 = vld [vmem:[%s1534_s7 + $0x488] sm:$0xff] }
  0x5e   : > { %v1334_v35 = vpack.c.bf16 %v504_v27, %v500_v26  ;;  %v508_v39 = vld [vmem:[%s1534_s7 + $0x498] sm:$0xff]  ;;  %v353_v41 = vld [vmem:[%s1536_s8 + $0x20] sm:$0xff]  ;;  %v507_v48 = vld [vmem:[%s1534_s7 + $0x490] sm:$0xff] }
  0x5f   : > { %1217 = vmatpush1.bf16.msra.mxu0 %v1216_v32  ;;  %v497_v32 = vld [vmem:[%s1534_s7 + $0x440] sm:$0xff]  ;;  %v512_v40 = vld [vmem:[%s1534_s7 + $0x4b8] sm:$0xff]  ;;  %v514_v51 = vld [vmem:[%s1534_s7 + $0x4c8] sm:$0xff] }
  0x60   : > { %1313 = vmatpush1.bf16.msra.mxu1 %v1312_v33  ;;  %1219 = vmatprep.subr.bf16.mxu0 %v1218_v34  ;;  %v501_v33 = vld [vmem:[%s1534_s7 + $0x460] sm:$0xff]  ;;  %v499_v34 = vld [vmem:[%s1534_s7 + $0x450] sm:$0xff]  ;;  %v352_v43 = vld [vmem:[%s1536_s8 + $0x18] sm:$0xff]  ;;  %v1338_v49 = vpack.c.bf16 %v512_v40, %v508_v39 }
  0x61   : > { %1315 = vmatprep.subr.bf16.mxu1 %v1314_v38  ;;  %v510_v38 = vld [vmem:[%s1534_s7 + $0x4a8] sm:$0xff]  ;;  %v1240_v42 = vpack.c.bf16 %v501_v33, %v497_v32  ;;  %v509_v47 = vld [vmem:[%s1534_s7 + $0x4a0] sm:$0xff]  ;;  %v516_v53 = vld [vmem:[%s1534_s7 + $0x4d8] sm:$0xff] }
  0x62   : > { %v518_v52 = vld [vmem:[%s1534_s7 + $0x4e8] sm:$0xff]  ;;  %v520_v54 = vld [vmem:[%s1534_s7 + $0x4f8] sm:$0xff]  ;;  %v513_v60 = vld [vmem:[%s1534_s7 + $0x4c0] sm:$0xff] }
  0x63   : > { %1221 = vmatpush1.bf16.msra.mxu0 %v1220_v44  ;;  %v1336_v44 = vpack.c.bf16 %v503_v36, %v499_v34  ;;  %v356_v55 = vld [vmem:[%s1536_s8 + $0x38] sm:$0xff]  ;;  %v1246_v59 = vpack.c.bf16 %v518_v52, %v514_v51  ;;  %v517_v61 = vld [vmem:[%s1534_s7 + $0x4e0] sm:$0xff]  ;;  %v1342_v63 = vpack.c.bf16 %v520_v54, %v516_v53  ;;  %v519_v0 = vld [vmem:[%s1534_s7 + $0x4f0] sm:$0xff] }
  0x64   : > { %1317 = vmatpush1.bf16.msra.mxu1 %v1316_v45  ;;  %1223 = vmatprep.subr.bf16.mxu0 %v1222_v46  ;;  %v1242_v45 = vpack.c.bf16 %v510_v38, %v506_v37  ;;  %v505_v46 = vld [vmem:[%s1534_s7 + $0x480] sm:$0xff]  ;;  %v522_v1 = vld [vmem:[%s1534_s7 + $0x508] sm:$0xff]  ;;  %v524_v3 = vld [vmem:[%s1534_s7 + $0x518] sm:$0xff] }
  0x65   : > { %1319 = vmatprep.subr.bf16.mxu1 %v1318_v50  ;;  %v511_v50 = vld [vmem:[%s1534_s7 + $0x4b0] sm:$0xff]  ;;  %v526_v2 = vld [vmem:[%s1534_s7 + $0x528] sm:$0xff]  ;;  %v525_v11 = vld [vmem:[%s1534_s7 + $0x520] sm:$0xff] }
  0x66   : > { %v358_v7 = vld [vmem:[%s1536_s8 + $0x48] sm:$0xff]  ;;  %v1250_v9 = vpack.c.bf16 %v526_v2, %v522_v1  ;;  %v523_v12 = vld [vmem:[%s1534_s7 + $0x510] sm:$0xff]  ;;  %v533_v23 = vld [vmem:[%s1534_s7 + $0x560] sm:$0xff] }
  0x67   : > { %1225 = vmatpush1.bf16.msra.mxu0 %v1224_v56  ;;  %v1244_v56 = vpack.c.bf16 %v509_v47, %v505_v46  ;;  %v527_v14 = vld [vmem:[%s1534_s7 + $0x530] sm:$0xff]  ;;  %v530_v15 = vld [vmem:[%s1534_s7 + $0x548] sm:$0xff]  ;;  %v541_v36 = vld [vmem:[%s1534_s7 + $0x5a0] sm:$0xff] }
  0x68   : > { %1321 = vmatpush1.bf16.msra.mxu1 %v1320_v57  ;;  %1227 = vmatprep.subr.bf16.mxu0 %v1226_v58  ;;  %v355_v57 = vld [vmem:[%s1536_s8 + $0x30] sm:$0xff]  ;;  %v1340_v58 = vpack.c.bf16 %v511_v50, %v507_v48  ;;  %v1348_v20 = vpack.c.bf16 %v527_v14, %v523_v12  ;;  %v538_v27 = vld [vmem:[%s1534_s7 + $0x588] sm:$0xff]  ;;  %v545_v47 = vld [vmem:[%s1534_s7 + $0x5c0] sm:$0xff] }
  0x69   : > { %1323 = vmatprep.subr.bf16.mxu1 %v1322_v62  ;;  %v515_v62 = vld [vmem:[%s1534_s7 + $0x4d0] sm:$0xff]  ;;  %v546_v40 = vld [vmem:[%s1534_s7 + $0x5c8] sm:$0xff]  ;;  %v549_v48 = vld [vmem:[%s1534_s7 + $0x5e0] sm:$0xff] }
  0x6a   : > { %v1344_v8 = vpack.c.bf16 %v519_v0, %v515_v62  ;;  %v531_v24 = vld [vmem:[%s1534_s7 + $0x550] sm:$0xff]  ;;  %v1264_v52 = vpack.c.bf16 %v549_v48, %v545_v47  ;;  %v336_v62 = vld [vmem:[#allocation2 + $0x18] sm:$0xff] }
  0x6b   : > { %1229 = vmatpush1.bf16.msra.mxu0 %v1228_v4  ;;  %v528_v4 = vld [vmem:[%s1534_s7 + $0x538] sm:$0xff]  ;;  %v535_v26 = vld [vmem:[%s1534_s7 + $0x570] sm:$0xff] }
  0x6c   : > { %1325 = vmatpush1.bf16.msra.mxu1 %v1324_v5  ;;  %1231 = vmatprep.subr.bf16.mxu0 %v1230_v6  ;;  %v359_v5 = vld [vmem:[%s1536_s8 + $0x50] sm:$0xff]  ;;  %v1248_v6 = vpack.c.bf16 %v517_v61, %v513_v60  ;;  %v1346_v13 = vpack.c.bf16 %v528_v4, %v524_v3  ;;  %v1352_v33 = vpack.c.bf16 %v535_v26, %v531_v24  ;;  %v334_v60 = vld [vmem:[#allocation2 + $0x8] sm:$0xff] }
  0x6d   : > { %1327 = vmatprep.subr.bf16.mxu1 %v1326_v10  ;;  %v521_v10 = vld [vmem:[%s1534_s7 + $0x500] sm:$0xff]  ;;  %v539_v37 = vld [vmem:[%s1534_s7 + $0x590] sm:$0xff] }
  0x6e   : > { %v1252_v19 = vpack.c.bf16 %v525_v11, %v521_v10  ;;  %v543_v39 = vld [vmem:[%s1534_s7 + $0x5b0] sm:$0xff]  ;;  %v340_v10 = vld [vmem:[#allocation2 + $0x38] sm:$0xff] }
  0x6f   : > { %1233 = vmatpush1.bf16.msra.mxu0 %v1232_v16  ;;  %v534_v16 = vld [vmem:[%s1534_s7 + $0x568] sm:$0xff]  ;;  %v547_v50 = vld [vmem:[%s1534_s7 + $0x5d0] sm:$0xff] }
  0x70   : > { %1329 = vmatpush1.bf16.msra.mxu1 %v1328_v17  ;;  %1235 = vmatprep.subr.bf16.mxu0 %v1234_v18  ;;  %v532_v17 = vld [vmem:[%s1534_s7 + $0x558] sm:$0xff]  ;;  %v1254_v21 = vpack.c.bf16 %v534_v16, %v530_v15  ;;  %v551_v51 = vld [vmem:[%s1534_s7 + $0x5f0] sm:$0xff] }
  0x71   : > { %1331 = vmatprep.subr.bf16.mxu1 %v1330_v22  ;;  %v536_v18 = vld [vmem:[%s1534_s7 + $0x578] sm:$0xff]  ;;  %v529_v22 = vld [vmem:[%s1534_s7 + $0x540] sm:$0xff]  ;;  %v1360_v53 = vpack.c.bf16 %v551_v51, %v547_v50  ;;  %v351_v54 = vld [vmem:[%s1536_s8 + $0x10] sm:$0xff] }
  0x72   : > { %618 = vmatmul.mubr.f32.vlgmr.msra.gmra.mrb[0].mxu0 %v349_v28  ;;  %v1350_v25 = vpack.c.bf16 %v536_v18, %v532_v17  ;;  %v1256_v32 = vpack.c.bf16 %v533_v23, %v529_v22  ;;  %v341_v17 = vld [vmem:[#allocation2 + $0x40] sm:$0xff]  ;;  %v344_v22 = vld [vmem:[#allocation2 + $0x58] sm:$0xff] }
  0x73   : > { %1237 = vmatpush1.bf16.msra.mxu0 %v1236_v29  ;;  %796 = vmatmul.mubr.f32.vlgmr.msra.gmra.mrb[0].mxu1 %v349_v28  ;;  %v542_v28 = vld [vmem:[%s1534_s7 + $0x5a8] sm:$0xff]  ;;  %v1463_v29 = vmov 0.0  }
  0x74   : > { %1333 = vmatpush1.bf16.msra.mxu1 %v1332_v30  ;;  %1239 = vmatprep.subr.bf16.mxu0 %v1238_v31  ;;  %v540_v30 = vld [vmem:[%s1534_s7 + $0x598] sm:$0xff]  ;;  %v1258_v34 = vpack.c.bf16 %v542_v28, %v538_v27 }
  0x75   : > { %1335 = vmatprep.subr.bf16.mxu1 %v1334_v35  ;;  %623 = vmatprep.mubr.f32.mxu0 %v353_v41  ;;  %v544_v31 = vld [vmem:[%s1534_s7 + $0x5b8] sm:$0xff]  ;;  %v537_v35 = vld [vmem:[%s1534_s7 + $0x580] sm:$0xff] }
  0x76   : > { %801 = vmatprep.mubr.f32.mxu1 %v353_v41  ;;  %624 = vmatmul.mubr.f32.gmra.mrb[2].mxu0 %v352_v43  ;;  %v1354_v38 = vpack.c.bf16 %v544_v31, %v540_v30  ;;  %v550_v41 = vld [vmem:[%s1534_s7 + $0x5e8] sm:$0xff]  ;;  %v347_v31 = vld [vmem:[#allocation2 + $0x70] sm:$0xff] }
  0x77   : > { %1241 = vmatpush1.bf16.msra.mxu0 %v1240_v42  ;;  %802 = vmatmul.mubr.f32.gmra.mrb[2].mxu1 %v352_v43  ;;  %v548_v42 = vld [vmem:[%s1534_s7 + $0x5d8] sm:$0xff]  ;;  %v1262_v46 = vpack.c.bf16 %v550_v41, %v546_v40 }
  0x78   : > { %1337 = vmatpush1.bf16.msra.mxu1 %v1336_v44  ;;  %1243 = vmatprep.subr.bf16.mxu0 %v1242_v45  ;;  %v552_v43 = vld [vmem:[%s1534_s7 + $0x5f8] sm:$0xff]  ;;  %v1260_v44 = vpack.c.bf16 %v541_v36, %v537_v35  ;;  %v1356_v45 = vpack.c.bf16 %v543_v39, %v539_v37 }
  0x79   : > { %1339 = vmatprep.subr.bf16.mxu1 %v1338_v49  ;;  %629 = vmatprep.mubr.f32.mxu0 %v356_v55  ;;  %v1358_v49 = vpack.c.bf16 %v552_v43, %v548_v42  ;;  %v963_v42 = vlaneseq (!%p1163_p11) }
  0x7a   : > { %807 = vmatprep.mubr.f32.mxu1 %v356_v55  ;;  %630 = vmatmul.mubr.f32.gmra.mrb[4].mxu0 %v355_v57  ;;  %v354_v55 = vld [vmem:[%s1536_s8 + $0x28] sm:$0xff] }
  0x7b   : > { %1245 = vmatpush1.bf16.msra.mxu0 %v1244_v56  ;;  %808 = vmatmul.mubr.f32.gmra.mrb[4].mxu1 %v355_v57  ;;  %v357_v56 = vld [vmem:[%s1536_s8 + $0x40] sm:$0xff]  ;;  %v360_v57 = vld [vmem:[%s1536_s8 + $0x58] sm:$0xff]  ;;  %v964_v43 = vshrl.u32 (!%p1163_p11), %v963_v42, 7 }
  0x7c   : > { %1341 = vmatpush1.bf16.msra.mxu1 %v1340_v58  ;;  %1247 = vmatprep.subr.bf16.mxu0 %v1246_v59  ;;  %v333_v58 = vld [vmem:[#allocation2] sm:$0xff]  ;;  %v335_v59 = vld [vmem:[#allocation2 + $0x10] sm:$0xff] }
  0x7d   : > { %1343 = vmatprep.subr.bf16.mxu1 %v1342_v63  ;;  %635 = vmatprep.mubr.f32.mxu0 %v359_v5  ;;  %v969_v48 = vsub.s32 (!%p1163_p11), 1, %v964_v43  ;;  %v977_v50 = vsub.s32 (!%p1163_p11), 3, %v964_v43 }
  0x7e   : > { %813 = vmatprep.mubr.f32.mxu1 %v359_v5  ;;  %636 = vmatmul.mubr.f32.gmra.mrb[6].mxu0 %v358_v7  ;;  %v337_v5 = vld [vmem:[#allocation2 + $0x20] sm:$0xff] }
  0x7f   : > { %1249 = vmatpush1.bf16.msra.mxu0 %v1248_v6  ;;  %814 = vmatmul.mubr.f32.gmra.mrb[6].mxu1 %v358_v7  ;;  %v339_v7 = vld [vmem:[#allocation2 + $0x30] sm:$0xff] }
  0x80   : > { %1345 = vmatpush1.bf16.msra.mxu1 %v1344_v8  ;;  %1251 = vmatprep.subr.bf16.mxu0 %v1250_v9  ;;  %v338_v8 = vld [vmem:[#allocation2 + $0x28] sm:$0xff] }
  0x81   : > { %1347 = vmatprep.subr.bf16.mxu1 %v1346_v13  ;;  %706 = vmatprep.mubr.f32.mxu0 %v1463_v29 }
  0x82   : > { %884 = vmatprep.mubr.f32.mxu1 %v1463_v29 }
  0x83   : > { %1253 = vmatpush1.bf16.msra.mxu0 %v1252_v19  ;;  %v343_v19 = vld [vmem:[#allocation2 + $0x50] sm:$0xff] }
  0x84   : > { %1349 = vmatpush1.bf16.msra.mxu1 %v1348_v20  ;;  %1255 = vmatprep.subr.bf16.mxu0 %v1254_v21  ;;  %v342_v20 = vld [vmem:[#allocation2 + $0x48] sm:$0xff] }
  0x85   : > { %1351 = vmatprep.subr.bf16.mxu1 %v1350_v25 }
  0x87   : > { %1257 = vmatpush1.bf16.msra.mxu0 %v1256_v32  ;;  %v346_v32 = vld [vmem:[#allocation2 + $0x68] sm:$0xff] }
  0x88   : > { %1353 = vmatpush1.bf16.msra.mxu1 %v1352_v33  ;;  %1259 = vmatprep.subr.bf16.mxu0 %v1258_v34  ;;  %v348_v34 = vld [vmem:[#allocation2 + $0x78] sm:$0xff] }
  0x89   : > { %1355 = vmatprep.subr.bf16.mxu1 %v1354_v38 }
  0x8b   : > { %1261 = vmatpush1.bf16.msra.mxu0 %v1260_v44  ;;  %v961_v44 = vld [vmem:[%s1812_s2] sm:$0xf] (!%p1163_p11) }
  0x8c   : > { %1357 = vmatpush1.bf16.msra.mxu1 %v1356_v45  ;;  %1263 = vmatprep.subr.bf16.mxu0 %v1262_v46  ;;  %v965_v46 = vsub.s32 (!%p1163_p11), 0, %v964_v43 }
  0x8d   : > { %1359 = vmatprep.subr.bf16.mxu1 %v1358_v49  ;;  %v973_v49 = vsub.s32 (!%p1163_p11), 2, %v964_v43 }
  0x8f   : > { %1265 = vmatpush1.bf16.msra.mxu0 %v1264_v52 }
  0x90   : > { %1361 = vmatpush1.bf16.msra.mxu1 %v1360_v53 }
  0x92   : > { %707 = vmatmul.mubr.f32.vlgmr.msra.gmra.mrb[0].mxu0 %v351_v54 }
  0x93   : > { %885 = vmatmul.mubr.f32.vlgmr.msra.gmra.mrb[0].mxu1 %v351_v54  ;;  %712 = vmatprep.mubr.f32.mxu0 %v1463_v29  ;;  %v966_v54 = vrot.slane (!%p1163_p11), %v961_v44, %v965_v46 }
  0x94   : > { %890 = vmatprep.mubr.f32.mxu1 %v1463_v29 }
  0x96   : > { %713 = vmatmul.mubr.f32.gmra.mrb[2].mxu0 %v354_v55 }
  0x97   : > { %891 = vmatmul.mubr.f32.gmra.mrb[2].mxu1 %v354_v55  ;;  %718 = vmatprep.mubr.f32.mxu0 %v1463_v29  ;;  %v970_v55 = vrot.slane (!%p1163_p11), %v961_v44, %v969_v48 }
  0x98   : > { %896 = vmatprep.mubr.f32.mxu1 %v1463_v29 }
  0x9a   : > { %719 = vmatmul.mubr.f32.gmra.mrb[4].mxu0 %v357_v56 }
  0x9b   : > { %897 = vmatmul.mubr.f32.gmra.mrb[4].mxu1 %v357_v56  ;;  %724 = vmatprep.mubr.f32.mxu0 %v1463_v29  ;;  %v974_v56 = vrot.slane (!%p1163_p11), %v961_v44, %v973_v49 }
  0x9c   : > { %902 = vmatprep.mubr.f32.mxu1 %v1463_v29  ;;  %v345_v29 = vld [vmem:[#allocation2 + $0x60] sm:$0xff] }
  0x9e   : > { %725 = vmatmul.mubr.f32.gmra.mrb[6].mxu0 %v360_v57 }
  0x9f   : > { %903 = vmatmul.mubr.f32.gmra.mrb[6].mxu1 %v360_v57  ;;  %v978_v57 = vrot.slane (!%p1163_p11), %v961_v44, %v977_v50 }
 0x165   : > { %v708_v61 = vpop.f32.mrb[0].mxu0 }
 0x166   : > { %v909_v63 = vadd.f32 %v708_v61, %v333_v58  ;;  %v886_v0 = vpop.f32.mrb[0].mxu1  ;;  %v710_v1 = vpop.f32.mrb[1].mxu0 }
 0x167   : > { %v911_v2 = vadd.f32 %v886_v0, %v335_v59  ;;  %v910_v3 = vadd.f32 %v710_v1, %v334_v60  ;;  %v888_v4 = vpop.f32.mrb[1].mxu1 }
 0x168   : > { %925 = vst [vmem:[#allocation2] sm:$0xff] %v909_v63  ;;  %v912_v6 = vadd.f32 %v888_v4, %v336_v62 }
 0x169   : > { %927 = vst [vmem:[#allocation2 + $0x10] sm:$0xff] %v911_v2  ;;  %926 = vst [vmem:[#allocation2 + $0x8] sm:$0xff] %v910_v3  ;;  %v714_v9 = vpop.f32.mrb[2].mxu0 }
 0x16a   : > { %928 = vst [vmem:[#allocation2 + $0x18] sm:$0xff] %v912_v6  ;;  %v913_v11 = vadd.f32 %v714_v9, %v337_v5  ;;  %v892_v12 = vpop.f32.mrb[2].mxu1  ;;  %v716_v13 = vpop.f32.mrb[3].mxu0 }
 0x16b   : > { %v915_v14 = vadd.f32 %v892_v12, %v339_v7  ;;  %v914_v15 = vadd.f32 %v716_v13, %v338_v8  ;;  %v894_v16 = vpop.f32.mrb[3].mxu1 }
 0x16c   : > { %929 = vst [vmem:[#allocation2 + $0x20] sm:$0xff] %v913_v11  ;;  %v916_v18 = vadd.f32 %v894_v16, %v340_v10 }
 0x16d   : > { %931 = vst [vmem:[#allocation2 + $0x30] sm:$0xff] %v915_v14  ;;  %930 = vst [vmem:[#allocation2 + $0x28] sm:$0xff] %v914_v15  ;;  %v720_v21 = vpop.f32.mrb[4].mxu0 }
 0x16e   : > { %932 = vst [vmem:[#allocation2 + $0x38] sm:$0xff] %v916_v18  ;;  %v917_v23 = vadd.f32 %v720_v21, %v341_v17  ;;  %v898_v24 = vpop.f32.mrb[4].mxu1  ;;  %v722_v25 = vpop.f32.mrb[5].mxu0 }
 0x16f   : > { %v919_v26 = vadd.f32 %v898_v24, %v343_v19  ;;  %v918_v27 = vadd.f32 %v722_v25, %v342_v20  ;;  %v900_v28 = vpop.f32.mrb[5].mxu1  ;;  %v945_v45 = vld [vmem:[#allocation2] sm:$0xff] (!%p1163_p11) }
 0x170   : > { %933 = vst [vmem:[#allocation2 + $0x40] sm:$0xff] %v917_v23  ;;  %v920_v30 = vadd.f32 %v900_v28, %v344_v22  ;;  %944 = sbr.rel (%p1163_p11) target bundleno = 387 (0x183), region = 63  ;;  %v946_v47 = vld [vmem:[#allocation2 + $0x8] sm:$0xff] (!%p1163_p11)  ;;  %v947_v51 = vld [vmem:[#allocation2 + $0x10] sm:$0xff] (!%p1163_p11)  ;;  %v983_v61 = vadd.f32 (!%p1163_p11), %v966_v54, %v945_v45 }
 0x171   : > { %935 = vst [vmem:[#allocation2 + $0x50] sm:$0xff] %v919_v26  ;;  %934 = vst [vmem:[#allocation2 + $0x48] sm:$0xff] %v918_v27  ;;  %v726_v33 = vpop.f32.mrb[6].mxu0  ;;  %v948_v52 = vld [vmem:[#allocation2 + $0x18] sm:$0xff] (!%p1163_p11)  ;;  %v984_v62 = vadd.f32 (!%p1163_p11), %v970_v55, %v946_v47  ;;  %v985_v63 = vadd.f32 (!%p1163_p11), %v974_v56, %v947_v51 }
 0x172   : > { %936 = vst [vmem:[#allocation2 + $0x58] sm:$0xff] %v920_v30  ;;  %v921_v35 = vadd.f32 %v726_v33, %v345_v29  ;;  %v904_v36 = vpop.f32.mrb[6].mxu1  ;;  %v728_v37 = vpop.f32.mrb[7].mxu0  ;;  %v986_v0 = vadd.f32 (!%p1163_p11), %v978_v57, %v948_v52  ;;  %v999_v11 = vmax.f32 (!%p1163_p11), %v983_v61, 0.0 }
 0x173   : > { %v923_v38 = vadd.f32 %v904_v36, %v347_v31  ;;  %v922_v39 = vadd.f32 %v728_v37, %v346_v32  ;;  %v906_v40 = vpop.f32.mrb[7].mxu1  ;;  %v949_v53 = vld [vmem:[#allocation2 + $0x20] sm:$0xff] (!%p1163_p11)  ;;  %v1000_v12 = vmax.f32 (!%p1163_p11), %v984_v62, 0.0  ;;  %v1001_v13 = vmax.f32 (!%p1163_p11), %v985_v63, 0.0 }
 0x174   : > { %937 = vst [vmem:[#allocation2 + $0x60] sm:$0xff] %v921_v35  ;;  %v924_v41 = vadd.f32 %v906_v40, %v348_v34  ;;  %v950_v58 = vld [vmem:[#allocation2 + $0x28] sm:$0xff] (!%p1163_p11)  ;;  %v951_v59 = vld [vmem:[#allocation2 + $0x30] sm:$0xff] (!%p1163_p11)  ;;  %v987_v4 = vadd.f32 (!%p1163_p11), %v966_v54, %v949_v53  ;;  %v1002_v14 = vmax.f32 (!%p1163_p11), %v986_v0, 0.0  ;;  %1015 = vst [vmem:[%s1813_s3] sm:$0xff] (!%p1163_p11), %v999_v11 }
 0x175   : > { %939 = vst [vmem:[#allocation2 + $0x70] sm:$0xff] %v923_v38  ;;  %938 = vst [vmem:[#allocation2 + $0x68] sm:$0xff] %v922_v39  ;;  %v952_v60 = vld [vmem:[#allocation2 + $0x38] sm:$0xff] (!%p1163_p11)  ;;  %v988_v5 = vadd.f32 (!%p1163_p11), %v970_v55, %v950_v58  ;;  %v989_v6 = vadd.f32 (!%p1163_p11), %v974_v56, %v951_v59 }
 0x176   : > { %940 = vst [vmem:[#allocation2 + $0x78] sm:$0xff] %v924_v41  ;;  %v990_v7 = vadd.f32 (!%p1163_p11), %v978_v57, %v952_v60  ;;  %v1003_v17 = vmax.f32 (!%p1163_p11), %v987_v4, 0.0  ;;  %1016 = vst [vmem:[%s1813_s3 + $0x8] sm:$0xff] (!%p1163_p11), %v1000_v12 }
 0x177   : > { %v953_v1 = vld [vmem:[#allocation2 + $0x40] sm:$0xff]  ;;  %v1004_v18 = vmax.f32 %v988_v5, 0.0  ;;  %v1005_v19 = vmax.f32 %v989_v6, 0.0  ;;  %1017 = vst [vmem:[%s1813_s3 + $0x10] sm:$0xff] %v1001_v13  ;;  %1018 = vst [vmem:[%s1813_s3 + $0x18] sm:$0xff] %v1002_v14 }
 0x178   : > { %v954_v2 = vld [vmem:[#allocation2 + $0x48] sm:$0xff]  ;;  %v955_v3 = vld [vmem:[#allocation2 + $0x50] sm:$0xff]  ;;  %v1006_v20 = vmax.f32 %v990_v7, 0.0  ;;  %v991_v21 = vadd.f32 %v966_v54, %v953_v1  ;;  %1019 = vst [vmem:[%s1813_s3 + $0x20] sm:$0xff] %v1003_v17 }
 0x179   : > { %v956_v8 = vld [vmem:[#allocation2 + $0x58] sm:$0xff]  ;;  %v992_v22 = vadd.f32 %v970_v55, %v954_v2  ;;  %v993_v23 = vadd.f32 %v974_v56, %v955_v3  ;;  %1020 = vst [vmem:[%s1813_s3 + $0x28] sm:$0xff] %v1004_v18  ;;  %1021 = vst [vmem:[%s1813_s3 + $0x30] sm:$0xff] %v1005_v19 }
 0x17a   : > { %v994_v24 = vadd.f32 %v978_v57, %v956_v8  ;;  %1022 = vst [vmem:[%s1813_s3 + $0x38] sm:$0xff] %v1006_v20  ;;  %v1007_v29 = vmax.f32 %v991_v21, 0.0 }
 0x17b   : > { %v957_v9 = vld [vmem:[#allocation2 + $0x60] sm:$0xff]  ;;  %v1008_v30 = vmax.f32 %v992_v22, 0.0  ;;  %v1009_v31 = vmax.f32 %v993_v23, 0.0 }
 0x17c   : > { %v958_v10 = vld [vmem:[#allocation2 + $0x68] sm:$0xff]  ;;  %v959_v15 = vld [vmem:[#allocation2 + $0x70] sm:$0xff]  ;;  %v995_v25 = vadd.f32 %v966_v54, %v957_v9  ;;  %v1010_v32 = vmax.f32 %v994_v24, 0.0  ;;  %1023 = vst [vmem:[%s1813_s3 + $0x40] sm:$0xff] %v1007_v29 }
 0x17d   : > { %v960_v16 = vld [vmem:[#allocation2 + $0x78] sm:$0xff]  ;;  %v996_v26 = vadd.f32 %v970_v55, %v958_v10  ;;  %v997_v27 = vadd.f32 %v974_v56, %v959_v15  ;;  %1024 = vst [vmem:[%s1813_s3 + $0x48] sm:$0xff] %v1008_v30  ;;  %1025 = vst [vmem:[%s1813_s3 + $0x50] sm:$0xff] %v1009_v31 }
 0x17e   : > { %v998_v28 = vadd.f32 %v978_v57, %v960_v16  ;;  %v1011_v33 = vmax.f32 %v995_v25, 0.0  ;;  %1026 = vst [vmem:[%s1813_s3 + $0x58] sm:$0xff] %v1010_v32 }
 0x17f   : > { %v1012_v34 = vmax.f32 %v996_v26, 0.0  ;;  %v1013_v35 = vmax.f32 %v997_v27, 0.0 }
 0x180   : > { %v1014_v36 = vmax.f32 %v998_v28, 0.0  ;;  %1027 = vst [vmem:[%s1813_s3 + $0x60] sm:$0xff] %v1011_v33 }
 0x181   : > { %1028 = vst [vmem:[%s1813_s3 + $0x68] sm:$0xff] %v1012_v34  ;;  %1029 = vst [vmem:[%s1813_s3 + $0x70] sm:$0xff] %v1013_v35 }
 0x182   : > { %1030 = vst [vmem:[%s1813_s3 + $0x78] sm:$0xff] %v1014_v36 }
 0x183 PF: > { %s13_s16 = sadd.s32 1, %s1460_s16   ;;  %s1814_s12 = smov %s1448_s13 }
 0x184   : > { %p10_p12 = scmp.ge.s32.totalorder %s13_s16, 8   ;;  %s1815_s13 = smov %s1519_s20 }
 0x185   : > { %s1816_s14 = smov %s1456_s15  ;;  %s1817_s15 = smov %s1819_s17 }
 0x186   :  { %12 = sbr.rel (!%p10_p12) target bundleno = 3 (0x3), region = 104 }

// kernel: encoder1_forward.10
= control target key start
LH: loop header
LB: loop body
LE: loop exit
PB: predicated region body
PF: predicated region fallthrough
CT: control target
= control target key end

     0   :  { %s1347_s12 = smov 0   ;;  %s1349_s13 = smov 0   ;;  %s1665_s0 = inlined_call_operand.vmem [shape: f32[8,4608], index: 0, kind: input, shape index: {}]   ;;  %s1666_s1 = inlined_call_operand.vmem [shape: f32[4608,512], index: 1, kind: input, shape index: {}]   ;;  %s1667_s2 = inlined_call_operand.vmem [shape: f32[1,512], index: 2, kind: input, shape index: {}]   ;;  %s1668_s3 = inlined_call_operand.vmem [shape: f32[8,512], index: 3, kind: output, shape index: {}]  }
   0x1   :  { %s1351_s14 = smov 0  }
   0x2 LB: > { %s25_s15 = sadd.s32 1, %s1320_s13  ;;  %p1004_p0 = scmp.ge.s32.totalorder %s1324_s14, 1  ;;  %s1324_s14 = sphi %s1351_s14, %s13_s14   ;;  %s1320_s13 = sphi %s1349_s13, %s1670_s13   ;;  %s1316_s12 = sphi %s1347_s12, %s1669_s12  }
   0x3   : > { %p26_p1 = scmp.ge.s32.totalorder %s25_s15, 9  ;;  %p194_p2 = scmp.lt.s32.totalorder %s1324_s14, 10 }
   0x5   : > { %s1672_s15 = smov (%p26_p1, %s25_s15), 0  ;;  %p195_p3 = pnand %p1004_p0, %p194_p2 }
   0x6   : > { %s1005_s16 = sshll.u32 (!%p195_p3), %s1316_s12, 2  ;;  %s1007_s17 = sshll.u32 (!%p195_p3), %s1316_s12, 6 }
   0x7   : > { %198 = sbr.rel (%p195_p3) target bundleno = 385 (0x181), region = 32  ;;  %p243_p4 = scmp.lt.s32.totalorder (!%p195_p3), %s1005_s16, 35 }
   0x8   : > { %p252_p5 = scmp.lt.s32.totalorder (!%p195_p3), %s1007_s17, 575  ;;  %p1010_p6 = scmp.ne.s32.totalorder (!%p195_p3), %s1316_s12, 0 }
   0xe   : > { %s1674_s16 = smov (!%p243_p4, %s1005_s16), 35  ;;  %s1676_s17 = smov (!%p252_p5, %s1007_s17), 575 }
   0xf   : > { %s1006_s18 = sshll.u32 %s1674_s16, 3  ;;  %s1016_s22 = sshll.u32 %s1676_s17, 5  ;;  %v1326_v0 = vmov (!%p1010_p6), 0.0  }
  0x10   : > { %s1372_s21 = scalar_lea.vmem %s1665_s0, %s1006_s18  ;;  %s1377_s25 = scalar_lea.vmem %s1666_s1, %s1016_s22  ;;  %281 = vst [vmem:[#allocation2] sm:$0xff] (!%p1010_p6), %v1326_v0  ;;  %282 = vst [vmem:[#allocation2 + $0x8] sm:$0xff] (!%p1010_p6), %v1326_v0 }
  0x11   : > { %280 = sbr.rel (%p1010_p6) target bundleno = 24 (0x18), region = 36  ;;  %283 = vst [vmem:[#allocation2 + $0x10] sm:$0xff] (!%p1010_p6), %v1326_v0  ;;  %284 = vst [vmem:[#allocation2 + $0x18] sm:$0xff] (!%p1010_p6), %v1326_v0 }
  0x18 PF: > { %v294_v1 = vld [vmem:[%s1377_s25 + $0x8] sm:$0xff]  ;;  %v296_v3 = vld [vmem:[%s1377_s25 + $0x18] sm:$0xff]  ;;  %v293_v6 = vld [vmem:[%s1377_s25] sm:$0xff]  ;;  %p1011_p7 = scmp.ne.s32.totalorder %s1316_s12, 8 }
  0x19   : > { %v298_v2 = vld [vmem:[%s1377_s25 + $0x28] sm:$0xff]  ;;  %v300_v5 = vld [vmem:[%s1377_s25 + $0x38] sm:$0xff]  ;;  %v297_v7 = vld [vmem:[%s1377_s25 + $0x20] sm:$0xff] }
  0x1a   : > { %v1017_v4 = vpack.c.bf16 %v298_v2, %v294_v1  ;;  %v1145_v8 = vpack.c.bf16 %v300_v5, %v296_v3  ;;  %v1019_v9 = vpack.c.bf16 %v297_v7, %v293_v6  ;;  %v295_v10 = vld [vmem:[%s1377_s25 + $0x10] sm:$0xff]  ;;  %v302_v12 = vld [vmem:[%s1377_s25 + $0x48] sm:$0xff]  ;;  %v304_v15 = vld [vmem:[%s1377_s25 + $0x58] sm:$0xff] }
  0x1b   : > { %v299_v11 = vld [vmem:[%s1377_s25 + $0x30] sm:$0xff]  ;;  %v306_v14 = vld [vmem:[%s1377_s25 + $0x68] sm:$0xff]  ;;  %v308_v16 = vld [vmem:[%s1377_s25 + $0x78] sm:$0xff] }
  0x1c   : > { %1018 = vmatprep.subr.bf16.mxu0 %v1017_v4  ;;  %v1147_v13 = vpack.c.bf16 %v299_v11, %v295_v10  ;;  %1146 = vmatprep.subr.bf16.mxu1 %v1145_v8  ;;  %v1021_v17 = vpack.c.bf16 %v306_v14, %v302_v12  ;;  %v1149_v18 = vpack.c.bf16 %v308_v16, %v304_v15  ;;  %v301_v19 = vld [vmem:[%s1377_s25 + $0x40] sm:$0xff]  ;;  %v303_v21 = vld [vmem:[%s1377_s25 + $0x50] sm:$0xff]  ;;  %v310_v24 = vld [vmem:[%s1377_s25 + $0x88] sm:$0xff] }
  0x1d   : > { %1020 = vmatpush1.bf16.msra.mxu0 %v1019_v9  ;;  %v305_v20 = vld [vmem:[%s1377_s25 + $0x60] sm:$0xff]  ;;  %v307_v23 = vld [vmem:[%s1377_s25 + $0x70] sm:$0xff]  ;;  %v314_v25 = vld [vmem:[%s1377_s25 + $0xa8] sm:$0xff] }
  0x1e   : > { %1148 = vmatpush1.bf16.msra.mxu1 %v1147_v13  ;;  %v1023_v22 = vpack.c.bf16 %v305_v20, %v301_v19  ;;  %1022 = vmatprep.subr.bf16.mxu0 %v1021_v17  ;;  %v1151_v26 = vpack.c.bf16 %v307_v23, %v303_v21  ;;  %v1025_v27 = vpack.c.bf16 %v314_v25, %v310_v24  ;;  %v312_v28 = vld [vmem:[%s1377_s25 + $0x98] sm:$0xff]  ;;  %v309_v30 = vld [vmem:[%s1377_s25 + $0x80] sm:$0xff]  ;;  %v311_v33 = vld [vmem:[%s1377_s25 + $0x90] sm:$0xff] }
  0x1f   : > { %1150 = vmatprep.subr.bf16.mxu1 %v1149_v18  ;;  %v316_v29 = vld [vmem:[%s1377_s25 + $0xb8] sm:$0xff]  ;;  %v313_v32 = vld [vmem:[%s1377_s25 + $0xa0] sm:$0xff]  ;;  %v315_v34 = vld [vmem:[%s1377_s25 + $0xb0] sm:$0xff] }
  0x20   : > { %v1153_v31 = vpack.c.bf16 %v316_v29, %v312_v28  ;;  %v1027_v35 = vpack.c.bf16 %v313_v32, %v309_v30  ;;  %v318_v36 = vld [vmem:[%s1377_s25 + $0xc8] sm:$0xff]  ;;  %v320_v38 = vld [vmem:[%s1377_s25 + $0xd8] sm:$0xff]  ;;  %v1155_v39 = vpack.c.bf16 %v315_v34, %v311_v33  ;;  %v317_v42 = vld [vmem:[%s1377_s25 + $0xc0] sm:$0xff] }
  0x21   : > { %1024 = vmatpush1.bf16.msra.mxu0 %v1023_v22  ;;  %v322_v37 = vld [vmem:[%s1377_s25 + $0xe8] sm:$0xff]  ;;  %v324_v41 = vld [vmem:[%s1377_s25 + $0xf8] sm:$0xff]  ;;  %v321_v43 = vld [vmem:[%s1377_s25 + $0xe0] sm:$0xff] }
  0x22   : > { %1152 = vmatpush1.bf16.msra.mxu1 %v1151_v26  ;;  %1026 = vmatprep.subr.bf16.mxu0 %v1025_v27  ;;  %v1029_v40 = vpack.c.bf16 %v322_v37, %v318_v36  ;;  %v1157_v44 = vpack.c.bf16 %v324_v41, %v320_v38  ;;  %v319_v45 = vld [vmem:[%s1377_s25 + $0xd0] sm:$0xff]  ;;  %v326_v47 = vld [vmem:[%s1377_s25 + $0x108] sm:$0xff]  ;;  %v328_v49 = vld [vmem:[%s1377_s25 + $0x118] sm:$0xff]  ;;  %v1031_v51 = vpack.c.bf16 %v321_v43, %v317_v42 }
  0x23   : > { %1154 = vmatprep.subr.bf16.mxu1 %v1153_v31  ;;  %v323_v46 = vld [vmem:[%s1377_s25 + $0xf0] sm:$0xff]  ;;  %v330_v48 = vld [vmem:[%s1377_s25 + $0x128] sm:$0xff]  ;;  %v332_v50 = vld [vmem:[%s1377_s25 + $0x138] sm:$0xff] }
  0x24   : > { %v1159_v52 = vpack.c.bf16 %v323_v46, %v319_v45  ;;  %v1033_v53 = vpack.c.bf16 %v330_v48, %v326_v47  ;;  %v325_v54 = vld [vmem:[%s1377_s25 + $0x100] sm:$0xff]  ;;  %v327_v56 = vld [vmem:[%s1377_s25 + $0x110] sm:$0xff]  ;;  %v1161_v57 = vpack.c.bf16 %v332_v50, %v328_v49  ;;  %v334_v59 = vld [vmem:[%s1377_s25 + $0x148] sm:$0xff] }
  0x25   : > { %1028 = vmatpush1.bf16.msra.mxu0 %v1027_v35  ;;  %v329_v55 = vld [vmem:[%s1377_s25 + $0x120] sm:$0xff]  ;;  %v331_v58 = vld [vmem:[%s1377_s25 + $0x130] sm:$0xff]  ;;  %v338_v60 = vld [vmem:[%s1377_s25 + $0x168] sm:$0xff] }
  0x26   : > { %1156 = vmatpush1.bf16.msra.mxu1 %v1155_v39  ;;  %1030 = vmatprep.subr.bf16.mxu0 %v1029_v40  ;;  %v336_v61 = vld [vmem:[%s1377_s25 + $0x158] sm:$0xff]  ;;  %v1035_v63 = vpack.c.bf16 %v329_v55, %v325_v54  ;;  %v1163_v0 = vpack.c.bf16 %v331_v58, %v327_v56  ;;  %v1037_v1 = vpack.c.bf16 %v338_v60, %v334_v59  ;;  %v333_v2 = vld [vmem:[%s1377_s25 + $0x140] sm:$0xff]  ;;  %v335_v4 = vld [vmem:[%s1377_s25 + $0x150] sm:$0xff] }
  0x27   : > { %1158 = vmatprep.subr.bf16.mxu1 %v1157_v44  ;;  %v340_v62 = vld [vmem:[%s1377_s25 + $0x178] sm:$0xff]  ;;  %v337_v3 = vld [vmem:[%s1377_s25 + $0x160] sm:$0xff]  ;;  %v339_v6 = vld [vmem:[%s1377_s25 + $0x170] sm:$0xff] }
  0x28   : > { %v1165_v5 = vpack.c.bf16 %v340_v62, %v336_v61  ;;  %v342_v7 = vld [vmem:[%s1377_s25 + $0x188] sm:$0xff]  ;;  %v344_v9 = vld [vmem:[%s1377_s25 + $0x198] sm:$0xff]  ;;  %v1039_v11 = vpack.c.bf16 %v337_v3, %v333_v2  ;;  %v1167_v12 = vpack.c.bf16 %v339_v6, %v335_v4  ;;  %v341_v14 = vld [vmem:[%s1377_s25 + $0x180] sm:$0xff] }
  0x29   : > { %1032 = vmatpush1.bf16.msra.mxu0 %v1031_v51  ;;  %v346_v8 = vld [vmem:[%s1377_s25 + $0x1a8] sm:$0xff]  ;;  %v348_v10 = vld [vmem:[%s1377_s25 + $0x1b8] sm:$0xff]  ;;  %v345_v15 = vld [vmem:[%s1377_s25 + $0x1a0] sm:$0xff] }
  0x2a   : > { %1160 = vmatpush1.bf16.msra.mxu1 %v1159_v52  ;;  %1034 = vmatprep.subr.bf16.mxu0 %v1033_v53  ;;  %v1041_v13 = vpack.c.bf16 %v346_v8, %v342_v7  ;;  %v343_v16 = vld [vmem:[%s1377_s25 + $0x190] sm:$0xff]  ;;  %v1169_v17 = vpack.c.bf16 %v348_v10, %v344_v9  ;;  %v350_v19 = vld [vmem:[%s1377_s25 + $0x1c8] sm:$0xff]  ;;  %v352_v21 = vld [vmem:[%s1377_s25 + $0x1d8] sm:$0xff]  ;;  %v1043_v23 = vpack.c.bf16 %v345_v15, %v341_v14 }
  0x2b   : > { %1162 = vmatprep.subr.bf16.mxu1 %v1161_v57  ;;  %v347_v18 = vld [vmem:[%s1377_s25 + $0x1b0] sm:$0xff]  ;;  %v354_v20 = vld [vmem:[%s1377_s25 + $0x1e8] sm:$0xff]  ;;  %v356_v22 = vld [vmem:[%s1377_s25 + $0x1f8] sm:$0xff] }
  0x2c   : > { %v1171_v24 = vpack.c.bf16 %v347_v18, %v343_v16  ;;  %v1045_v25 = vpack.c.bf16 %v354_v20, %v350_v19  ;;  %v349_v26 = vld [vmem:[%s1377_s25 + $0x1c0] sm:$0xff]  ;;  %v351_v28 = vld [vmem:[%s1377_s25 + $0x1d0] sm:$0xff]  ;;  %v1173_v29 = vpack.c.bf16 %v356_v22, %v352_v21  ;;  %v358_v31 = vld [vmem:[%s1377_s25 + $0x208] sm:$0xff] }
  0x2d   : > { %1036 = vmatpush1.bf16.msra.mxu0 %v1035_v63  ;;  %v353_v27 = vld [vmem:[%s1377_s25 + $0x1e0] sm:$0xff]  ;;  %v355_v30 = vld [vmem:[%s1377_s25 + $0x1f0] sm:$0xff]  ;;  %v362_v32 = vld [vmem:[%s1377_s25 + $0x228] sm:$0xff] }
  0x2e   : > { %1164 = vmatpush1.bf16.msra.mxu1 %v1163_v0  ;;  %1038 = vmatprep.subr.bf16.mxu0 %v1037_v1  ;;  %v360_v33 = vld [vmem:[%s1377_s25 + $0x218] sm:$0xff]  ;;  %v1047_v35 = vpack.c.bf16 %v353_v27, %v349_v26  ;;  %v1175_v36 = vpack.c.bf16 %v355_v30, %v351_v28  ;;  %v1049_v37 = vpack.c.bf16 %v362_v32, %v358_v31  ;;  %v357_v38 = vld [vmem:[%s1377_s25 + $0x200] sm:$0xff]  ;;  %v359_v40 = vld [vmem:[%s1377_s25 + $0x210] sm:$0xff] }
  0x2f   : > { %1166 = vmatprep.subr.bf16.mxu1 %v1165_v5  ;;  %v364_v34 = vld [vmem:[%s1377_s25 + $0x238] sm:$0xff]  ;;  %v361_v39 = vld [vmem:[%s1377_s25 + $0x220] sm:$0xff]  ;;  %v363_v42 = vld [vmem:[%s1377_s25 + $0x230] sm:$0xff] }
  0x30   : > { %v1177_v41 = vpack.c.bf16 %v364_v34, %v360_v33  ;;  %v366_v43 = vld [vmem:[%s1377_s25 + $0x248] sm:$0xff]  ;;  %v368_v45 = vld [vmem:[%s1377_s25 + $0x258] sm:$0xff]  ;;  %v1051_v47 = vpack.c.bf16 %v361_v39, %v357_v38  ;;  %v1179_v48 = vpack.c.bf16 %v363_v42, %v359_v40  ;;  %v365_v50 = vld [vmem:[%s1377_s25 + $0x240] sm:$0xff] }
  0x31   : > { %1040 = vmatpush1.bf16.msra.mxu0 %v1039_v11  ;;  %v370_v44 = vld [vmem:[%s1377_s25 + $0x268] sm:$0xff]  ;;  %v372_v46 = vld [vmem:[%s1377_s25 + $0x278] sm:$0xff]  ;;  %v369_v51 = vld [vmem:[%s1377_s25 + $0x260] sm:$0xff] }
  0x32   : > { %1168 = vmatpush1.bf16.msra.mxu1 %v1167_v12  ;;  %1042 = vmatprep.subr.bf16.mxu0 %v1041_v13  ;;  %v1053_v49 = vpack.c.bf16 %v370_v44, %v366_v43  ;;  %v367_v52 = vld [vmem:[%s1377_s25 + $0x250] sm:$0xff]  ;;  %v1181_v53 = vpack.c.bf16 %v372_v46, %v368_v45  ;;  %v374_v55 = vld [vmem:[%s1377_s25 + $0x288] sm:$0xff]  ;;  %v376_v57 = vld [vmem:[%s1377_s25 + $0x298] sm:$0xff]  ;;  %v1055_v59 = vpack.c.bf16 %v369_v51, %v365_v50 }
  0x33   : > { %1170 = vmatprep.subr.bf16.mxu1 %v1169_v17  ;;  %v371_v54 = vld [vmem:[%s1377_s25 + $0x270] sm:$0xff]  ;;  %v378_v56 = vld [vmem:[%s1377_s25 + $0x2a8] sm:$0xff]  ;;  %v380_v58 = vld [vmem:[%s1377_s25 + $0x2b8] sm:$0xff] }
  0x34   : > { %v1183_v60 = vpack.c.bf16 %v371_v54, %v367_v52  ;;  %v1057_v61 = vpack.c.bf16 %v378_v56, %v374_v55  ;;  %v373_v62 = vld [vmem:[%s1377_s25 + $0x280] sm:$0xff]  ;;  %v375_v0 = vld [vmem:[%s1377_s25 + $0x290] sm:$0xff]  ;;  %v1185_v1 = vpack.c.bf16 %v380_v58, %v376_v57  ;;  %v382_v3 = vld [vmem:[%s1377_s25 + $0x2c8] sm:$0xff] }
  0x35   : > { %1044 = vmatpush1.bf16.msra.mxu0 %v1043_v23  ;;  %v377_v63 = vld [vmem:[%s1377_s25 + $0x2a0] sm:$0xff]  ;;  %v379_v2 = vld [vmem:[%s1377_s25 + $0x2b0] sm:$0xff]  ;;  %v386_v4 = vld [vmem:[%s1377_s25 + $0x2e8] sm:$0xff] }
  0x36   : > { %1172 = vmatpush1.bf16.msra.mxu1 %v1171_v24  ;;  %1046 = vmatprep.subr.bf16.mxu0 %v1045_v25  ;;  %v384_v5 = vld [vmem:[%s1377_s25 + $0x2d8] sm:$0xff]  ;;  %v1059_v7 = vpack.c.bf16 %v377_v63, %v373_v62  ;;  %v381_v8 = vld [vmem:[%s1377_s25 + $0x2c0] sm:$0xff]  ;;  %v1187_v9 = vpack.c.bf16 %v379_v2, %v375_v0  ;;  %v1061_v10 = vpack.c.bf16 %v386_v4, %v382_v3  ;;  %v383_v12 = vld [vmem:[%s1377_s25 + $0x2d0] sm:$0xff] }
  0x37   : > { %1174 = vmatprep.subr.bf16.mxu1 %v1173_v29  ;;  %v388_v6 = vld [vmem:[%s1377_s25 + $0x2f8] sm:$0xff]  ;;  %v385_v11 = vld [vmem:[%s1377_s25 + $0x2e0] sm:$0xff]  ;;  %v387_v13 = vld [vmem:[%s1377_s25 + $0x2f0] sm:$0xff] }
  0x38   : > { %v1189_v14 = vpack.c.bf16 %v388_v6, %v384_v5  ;;  %v390_v15 = vld [vmem:[%s1377_s25 + $0x308] sm:$0xff]  ;;  %v392_v18 = vld [vmem:[%s1377_s25 + $0x318] sm:$0xff]  ;;  %v1063_v20 = vpack.c.bf16 %v385_v11, %v381_v8  ;;  %v1191_v21 = vpack.c.bf16 %v387_v13, %v383_v12  ;;  %v389_v23 = vld [vmem:[%s1377_s25 + $0x300] sm:$0xff] }
  0x39   : > { %1048 = vmatpush1.bf16.msra.mxu0 %v1047_v35  ;;  %v394_v16 = vld [vmem:[%s1377_s25 + $0x328] sm:$0xff]  ;;  %v396_v19 = vld [vmem:[%s1377_s25 + $0x338] sm:$0xff]  ;;  %v393_v24 = vld [vmem:[%s1377_s25 + $0x320] sm:$0xff] }
  0x3a   : > { %1176 = vmatpush1.bf16.msra.mxu1 %v1175_v36  ;;  %1050 = vmatprep.subr.bf16.mxu0 %v1049_v37  ;;  %v290_v17 = vld [vmem:[%s1372_s21 + $0x8] sm:$0xff]  ;;  %v1065_v22 = vpack.c.bf16 %v394_v16, %v390_v15  ;;  %v391_v25 = vld [vmem:[%s1377_s25 + $0x310] sm:$0xff]  ;;  %v1193_v26 = vpack.c.bf16 %v396_v19, %v392_v18  ;;  %v400_v30 = vld [vmem:[%s1377_s25 + $0x358] sm:$0xff]  ;;  %v1067_v32 = vpack.c.bf16 %v393_v24, %v389_v23 }
  0x3b   : > { %1178 = vmatprep.subr.bf16.mxu1 %v1177_v41  ;;  %613 = vmatprep.mubr.f32.mxu0 %v290_v17  ;;  %v395_v27 = vld [vmem:[%s1377_s25 + $0x330] sm:$0xff]  ;;  %v398_v28 = vld [vmem:[%s1377_s25 + $0x348] sm:$0xff]  ;;  %v404_v31 = vld [vmem:[%s1377_s25 + $0x378] sm:$0xff] }
  0x3c   : > { %755 = vmatprep.mubr.f32.mxu1 %v290_v17  ;;  %v402_v29 = vld [vmem:[%s1377_s25 + $0x368] sm:$0xff]  ;;  %v1195_v33 = vpack.c.bf16 %v395_v27, %v391_v25  ;;  %v397_v35 = vld [vmem:[%s1377_s25 + $0x340] sm:$0xff]  ;;  %v399_v37 = vld [vmem:[%s1377_s25 + $0x350] sm:$0xff]  ;;  %v1197_v38 = vpack.c.bf16 %v404_v31, %v400_v30 }
  0x3d   : > { %1052 = vmatpush1.bf16.msra.mxu0 %v1051_v47  ;;  %v1069_v34 = vpack.c.bf16 %v402_v29, %v398_v28  ;;  %v401_v36 = vld [vmem:[%s1377_s25 + $0x360] sm:$0xff]  ;;  %v403_v39 = vld [vmem:[%s1377_s25 + $0x370] sm:$0xff]  ;;  %v406_v40 = vld [vmem:[%s1377_s25 + $0x388] sm:$0xff] }
  0x3e   : > { %1180 = vmatpush1.bf16.msra.mxu1 %v1179_v48  ;;  %1054 = vmatprep.subr.bf16.mxu0 %v1053_v49  ;;  %v410_v41 = vld [vmem:[%s1377_s25 + $0x3a8] sm:$0xff]  ;;  %v408_v42 = vld [vmem:[%s1377_s25 + $0x398] sm:$0xff]  ;;  %v1071_v44 = vpack.c.bf16 %v401_v36, %v397_v35  ;;  %v1199_v45 = vpack.c.bf16 %v403_v39, %v399_v37  ;;  %v405_v47 = vld [vmem:[%s1377_s25 + $0x380] sm:$0xff] }
  0x3f   : > { %1182 = vmatprep.subr.bf16.mxu1 %v1181_v53  ;;  %v412_v43 = vld [vmem:[%s1377_s25 + $0x3b8] sm:$0xff]  ;;  %v1073_v46 = vpack.c.bf16 %v410_v41, %v406_v40  ;;  %v409_v48 = vld [vmem:[%s1377_s25 + $0x3a0] sm:$0xff]  ;;  %v407_v49 = vld [vmem:[%s1377_s25 + $0x390] sm:$0xff] }
  0x40   : > { %v1201_v50 = vpack.c.bf16 %v412_v43, %v408_v42  ;;  %v411_v51 = vld [vmem:[%s1377_s25 + $0x3b0] sm:$0xff]  ;;  %v414_v52 = vld [vmem:[%s1377_s25 + $0x3c8] sm:$0xff]  ;;  %v416_v54 = vld [vmem:[%s1377_s25 + $0x3d8] sm:$0xff]  ;;  %v1075_v56 = vpack.c.bf16 %v409_v48, %v405_v47 }
  0x41   : > { %1056 = vmatpush1.bf16.msra.mxu0 %v1055_v59  ;;  %v418_v53 = vld [vmem:[%s1377_s25 + $0x3e8] sm:$0xff]  ;;  %v420_v55 = vld [vmem:[%s1377_s25 + $0x3f8] sm:$0xff]  ;;  %v1203_v57 = vpack.c.bf16 %v411_v51, %v407_v49  ;;  %v413_v59 = vld [vmem:[%s1377_s25 + $0x3c0] sm:$0xff] }
  0x42   : > { %1184 = vmatpush1.bf16.msra.mxu1 %v1183_v60  ;;  %1058 = vmatprep.subr.bf16.mxu0 %v1057_v61  ;;  %v1077_v58 = vpack.c.bf16 %v418_v53, %v414_v52  ;;  %v417_v60 = vld [vmem:[%s1377_s25 + $0x3e0] sm:$0xff]  ;;  %v415_v61 = vld [vmem:[%s1377_s25 + $0x3d0] sm:$0xff]  ;;  %v1205_v62 = vpack.c.bf16 %v420_v55, %v416_v54  ;;  %v422_v0 = vld [vmem:[%s1377_s25 + $0x408] sm:$0xff] }
  0x43   : > { %1186 = vmatprep.subr.bf16.mxu1 %v1185_v1  ;;  %v419_v63 = vld [vmem:[%s1377_s25 + $0x3f0] sm:$0xff]  ;;  %v426_v1 = vld [vmem:[%s1377_s25 + $0x428] sm:$0xff]  ;;  %v424_v2 = vld [vmem:[%s1377_s25 + $0x418] sm:$0xff]  ;;  %v1079_v4 = vpack.c.bf16 %v417_v60, %v413_v59 }
  0x44   : > { %v428_v3 = vld [vmem:[%s1377_s25 + $0x438] sm:$0xff]  ;;  %v1207_v5 = vpack.c.bf16 %v419_v63, %v415_v61  ;;  %v1081_v6 = vpack.c.bf16 %v426_v1, %v422_v0  ;;  %v425_v8 = vld [vmem:[%s1377_s25 + $0x420] sm:$0xff]  ;;  %v427_v11 = vld [vmem:[%s1377_s25 + $0x430] sm:$0xff] }
  0x45   : > { %1060 = vmatpush1.bf16.msra.mxu0 %v1059_v7  ;;  %v421_v7 = vld [vmem:[%s1377_s25 + $0x400] sm:$0xff]  ;;  %v430_v12 = vld [vmem:[%s1377_s25 + $0x448] sm:$0xff]  ;;  %v436_v15 = vld [vmem:[%s1377_s25 + $0x478] sm:$0xff] }
  0x46   : > { %1188 = vmatpush1.bf16.msra.mxu1 %v1187_v9  ;;  %1062 = vmatprep.subr.bf16.mxu0 %v1061_v10  ;;  %v423_v9 = vld [vmem:[%s1377_s25 + $0x410] sm:$0xff]  ;;  %v1209_v10 = vpack.c.bf16 %v428_v3, %v424_v2  ;;  %v434_v13 = vld [vmem:[%s1377_s25 + $0x468] sm:$0xff]  ;;  %v289_v16 = vld [vmem:[%s1372_s21] sm:$0xff]  ;;  %v1083_v17 = vpack.c.bf16 %v425_v8, %v421_v7 }
  0x47   : > { %1190 = vmatprep.subr.bf16.mxu1 %v1189_v14  ;;  %v432_v14 = vld [vmem:[%s1377_s25 + $0x458] sm:$0xff]  ;;  %v1211_v18 = vpack.c.bf16 %v427_v11, %v423_v9  ;;  %v1085_v19 = vpack.c.bf16 %v434_v13, %v430_v12  ;;  %v435_v24 = vld [vmem:[%s1377_s25 + $0x470] sm:$0xff]  ;;  %v438_v25 = vld [vmem:[%s1377_s25 + $0x488] sm:$0xff] }
  0x48   : > { %v1213_v23 = vpack.c.bf16 %v436_v15, %v432_v14  ;;  %v440_v27 = vld [vmem:[%s1377_s25 + $0x498] sm:$0xff]  ;;  %v443_v36 = vld [vmem:[%s1377_s25 + $0x4b0] sm:$0xff]  ;;  %v446_v37 = vld [vmem:[%s1377_s25 + $0x4c8] sm:$0xff] }
  0x49   : > { %1064 = vmatpush1.bf16.msra.mxu0 %v1063_v20  ;;  %v429_v20 = vld [vmem:[%s1377_s25 + $0x440] sm:$0xff]  ;;  %v444_v28 = vld [vmem:[%s1377_s25 + $0x4b8] sm:$0xff]  ;;  %v451_v48 = vld [vmem:[%s1377_s25 + $0x4f0] sm:$0xff] }
  0x4a   : > { %1192 = vmatpush1.bf16.msra.mxu1 %v1191_v21  ;;  %1066 = vmatprep.subr.bf16.mxu0 %v1065_v22  ;;  %v433_v21 = vld [vmem:[%s1377_s25 + $0x460] sm:$0xff]  ;;  %v431_v22 = vld [vmem:[%s1377_s25 + $0x450] sm:$0xff]  ;;  %v1217_v35 = vpack.c.bf16 %v444_v28, %v440_v27  ;;  %v448_v39 = vld [vmem:[%s1377_s25 + $0x4d8] sm:$0xff] }
  0x4b   : > { %1194 = vmatprep.subr.bf16.mxu1 %v1193_v26  ;;  %v442_v26 = vld [vmem:[%s1377_s25 + $0x4a8] sm:$0xff]  ;;  %v1087_v29 = vpack.c.bf16 %v433_v21, %v429_v20  ;;  %v1215_v30 = vpack.c.bf16 %v435_v24, %v431_v22  ;;  %v452_v40 = vld [vmem:[%s1377_s25 + $0x4f8] sm:$0xff]  ;;  %v459_v60 = vld [vmem:[%s1377_s25 + $0x530] sm:$0xff] }
  0x4c   : > { %v1089_v31 = vpack.c.bf16 %v442_v26, %v438_v25  ;;  %v1221_v47 = vpack.c.bf16 %v452_v40, %v448_v39  ;;  %v454_v49 = vld [vmem:[%s1377_s25 + $0x508] sm:$0xff]  ;;  %v456_v51 = vld [vmem:[%s1377_s25 + $0x518] sm:$0xff]  ;;  %v467_v8 = vld [vmem:[%s1377_s25 + $0x570] sm:$0xff] }
  0x4d   : > { %1068 = vmatpush1.bf16.msra.mxu0 %v1067_v32  ;;  %v437_v32 = vld [vmem:[%s1377_s25 + $0x480] sm:$0xff]  ;;  %v460_v52 = vld [vmem:[%s1377_s25 + $0x538] sm:$0xff]  ;;  %v462_v61 = vld [vmem:[%s1377_s25 + $0x548] sm:$0xff] }
  0x4e   : > { %1196 = vmatpush1.bf16.msra.mxu1 %v1195_v33  ;;  %1070 = vmatprep.subr.bf16.mxu0 %v1069_v34  ;;  %v441_v33 = vld [vmem:[%s1377_s25 + $0x4a0] sm:$0xff]  ;;  %v439_v34 = vld [vmem:[%s1377_s25 + $0x490] sm:$0xff]  ;;  %v1225_v59 = vpack.c.bf16 %v460_v52, %v456_v51  ;;  %v464_v63 = vld [vmem:[%s1377_s25 + $0x558] sm:$0xff] }
  0x4f   : > { %1198 = vmatprep.subr.bf16.mxu1 %v1197_v38  ;;  %v450_v38 = vld [vmem:[%s1377_s25 + $0x4e8] sm:$0xff]  ;;  %v1091_v41 = vpack.c.bf16 %v441_v33, %v437_v32  ;;  %v1219_v42 = vpack.c.bf16 %v443_v36, %v439_v34  ;;  %v468_v0 = vld [vmem:[%s1377_s25 + $0x578] sm:$0xff]  ;;  %v469_v14 = vld [vmem:[%s1377_s25 + $0x580] sm:$0xff] }
  0x50   : > { %v1093_v43 = vpack.c.bf16 %v450_v38, %v446_v37  ;;  %v1229_v7 = vpack.c.bf16 %v468_v0, %v464_v63  ;;  %v470_v9 = vld [vmem:[%s1377_s25 + $0x588] sm:$0xff]  ;;  %v472_v11 = vld [vmem:[%s1377_s25 + $0x598] sm:$0xff]  ;;  %v483_v33 = vld [vmem:[%s1377_s25 + $0x5f0] sm:$0xff] }
  0x51   : > { %1072 = vmatpush1.bf16.msra.mxu0 %v1071_v44  ;;  %v445_v44 = vld [vmem:[%s1377_s25 + $0x4c0] sm:$0xff]  ;;  %v476_v12 = vld [vmem:[%s1377_s25 + $0x5b8] sm:$0xff]  ;;  %v478_v21 = vld [vmem:[%s1377_s25 + $0x5c8] sm:$0xff] }
  0x52   : > { %1200 = vmatpush1.bf16.msra.mxu1 %v1199_v45  ;;  %1074 = vmatprep.subr.bf16.mxu0 %v1073_v46  ;;  %v449_v45 = vld [vmem:[%s1377_s25 + $0x4e0] sm:$0xff]  ;;  %v447_v46 = vld [vmem:[%s1377_s25 + $0x4d0] sm:$0xff]  ;;  %v1233_v20 = vpack.c.bf16 %v476_v12, %v472_v11  ;;  %v482_v22 = vld [vmem:[%s1377_s25 + $0x5e8] sm:$0xff] }
  0x53   : > { %1202 = vmatprep.subr.bf16.mxu1 %v1201_v50  ;;  %v458_v50 = vld [vmem:[%s1377_s25 + $0x528] sm:$0xff]  ;;  %v1095_v53 = vpack.c.bf16 %v449_v45, %v445_v44  ;;  %v1223_v54 = vpack.c.bf16 %v451_v48, %v447_v46  ;;  %v480_v24 = vld [vmem:[%s1377_s25 + $0x5d8] sm:$0xff]  ;;  %v1109_v28 = vpack.c.bf16 %v482_v22, %v478_v21  ;;  %v491_v45 = vld [vmem:[%s1377_s25 + $0x630] sm:$0xff] }
  0x54   : > { %v1097_v55 = vpack.c.bf16 %v458_v50, %v454_v49  ;;  %v484_v25 = vld [vmem:[%s1377_s25 + $0x5f8] sm:$0xff]  ;;  %v486_v34 = vld [vmem:[%s1377_s25 + $0x608] sm:$0xff] }
  0x55   : > { %1076 = vmatpush1.bf16.msra.mxu0 %v1075_v56  ;;  %v453_v56 = vld [vmem:[%s1377_s25 + $0x500] sm:$0xff]  ;;  %v1237_v32 = vpack.c.bf16 %v484_v25, %v480_v24  ;;  %v488_v36 = vld [vmem:[%s1377_s25 + $0x618] sm:$0xff]  ;;  %v494_v46 = vld [vmem:[%s1377_s25 + $0x648] sm:$0xff] }
  0x56   : > { %1204 = vmatpush1.bf16.msra.mxu1 %v1203_v57  ;;  %1078 = vmatprep.subr.bf16.mxu0 %v1077_v58  ;;  %v457_v57 = vld [vmem:[%s1377_s25 + $0x520] sm:$0xff]  ;;  %v455_v58 = vld [vmem:[%s1377_s25 + $0x510] sm:$0xff]  ;;  %v492_v37 = vld [vmem:[%s1377_s25 + $0x638] sm:$0xff] }
  0x57   : > { %1206 = vmatprep.subr.bf16.mxu1 %v1205_v62  ;;  %v466_v62 = vld [vmem:[%s1377_s25 + $0x568] sm:$0xff]  ;;  %v1099_v1 = vpack.c.bf16 %v457_v57, %v453_v56  ;;  %v1227_v2 = vpack.c.bf16 %v459_v60, %v455_v58  ;;  %v1241_v44 = vpack.c.bf16 %v492_v37, %v488_v36  ;;  %v496_v48 = vld [vmem:[%s1377_s25 + $0x658] sm:$0xff]  ;;  %v499_v57 = vld [vmem:[%s1377_s25 + $0x670] sm:$0xff] }
  0x58   : > { %v1101_v3 = vpack.c.bf16 %v466_v62, %v462_v61  ;;  %v500_v49 = vld [vmem:[%s1377_s25 + $0x678] sm:$0xff]  ;;  %v502_v58 = vld [vmem:[%s1377_s25 + $0x688] sm:$0xff]  ;;  %v517_v25 = vld [vmem:[%s1377_s25 + $0x700] sm:$0xff] }
  0x59   : > { %1080 = vmatpush1.bf16.msra.mxu0 %v1079_v4  ;;  %v461_v4 = vld [vmem:[%s1377_s25 + $0x540] sm:$0xff]  ;;  %v1245_v56 = vpack.c.bf16 %v500_v49, %v496_v48  ;;  %v504_v60 = vld [vmem:[%s1377_s25 + $0x698] sm:$0xff] }
  0x5a   : > { %1208 = vmatpush1.bf16.msra.mxu1 %v1207_v5  ;;  %1082 = vmatprep.subr.bf16.mxu0 %v1081_v6  ;;  %v465_v5 = vld [vmem:[%s1377_s25 + $0x560] sm:$0xff]  ;;  %v463_v6 = vld [vmem:[%s1377_s25 + $0x550] sm:$0xff]  ;;  %v508_v61 = vld [vmem:[%s1377_s25 + $0x6b8] sm:$0xff] }
  0x5b   : > { %1210 = vmatprep.subr.bf16.mxu1 %v1209_v10  ;;  %v474_v10 = vld [vmem:[%s1377_s25 + $0x5a8] sm:$0xff]  ;;  %v1103_v13 = vpack.c.bf16 %v465_v5, %v461_v4  ;;  %v1231_v15 = vpack.c.bf16 %v467_v8, %v463_v6  ;;  %v1249_v4 = vpack.c.bf16 %v508_v61, %v504_v60  ;;  %v507_v5 = vld [vmem:[%s1377_s25 + $0x6b0] sm:$0xff]  ;;  %v512_v8 = vld [vmem:[%s1377_s25 + $0x6d8] sm:$0xff] }
  0x5c   : > { %614 = vmatmul.mubr.f32.vlgmr.msra.gmra.mrb[0].mxu0 %v289_v16  ;;  %v510_v6 = vld [vmem:[%s1377_s25 + $0x6c8] sm:$0xff]  ;;  %v524_v21 = vld [vmem:[%s1377_s25 + $0x738] sm:$0xff]  ;;  %v525_v37 = vld [vmem:[%s1377_s25 + $0x740] sm:$0xff] }
  0x5d   : > { %1084 = vmatpush1.bf16.msra.mxu0 %v1083_v17  ;;  %756 = vmatmul.mubr.f32.vlgmr.msra.gmra.mrb[0].mxu1 %v289_v16  ;;  %v1105_v16 = vpack.c.bf16 %v474_v10, %v470_v9  ;;  %v473_v17 = vld [vmem:[%s1377_s25 + $0x5a0] sm:$0xff]  ;;  %v516_v9 = vld [vmem:[%s1377_s25 + $0x6f8] sm:$0xff] }
  0x5e   : > { %1212 = vmatpush1.bf16.msra.mxu1 %v1211_v18  ;;  %1086 = vmatprep.subr.bf16.mxu0 %v1085_v19  ;;  %v471_v18 = vld [vmem:[%s1377_s25 + $0x590] sm:$0xff]  ;;  %v1107_v26 = vpack.c.bf16 %v473_v17, %v469_v14  ;;  %v513_v14 = vld [vmem:[%s1377_s25 + $0x6e0] sm:$0xff] }
  0x5f   : > { %1214 = vmatprep.subr.bf16.mxu1 %v1213_v23  ;;  %v475_v19 = vld [vmem:[%s1377_s25 + $0x5b0] sm:$0xff]  ;;  %v292_v23 = vld [vmem:[%s1372_s21 + $0x18] sm:$0xff]  ;;  %v533_v49 = vld [vmem:[%s1377_s25 + $0x780] sm:$0xff] }
  0x60   : > { %684 = vmatprep.mubr.f32.mxu0 %v292_v23  ;;  %826 = vmatprep.mubr.f32.mxu1 %v292_v23  ;;  %v1235_v27 = vpack.c.bf16 %v475_v19, %v471_v18  ;;  %v515_v17 = vld [vmem:[%s1377_s25 + $0x6f0] sm:$0xff]  ;;  %v518_v18 = vld [vmem:[%s1377_s25 + $0x708] sm:$0xff]  ;;  %v541_v61 = vld [vmem:[%s1377_s25 + $0x7c0] sm:$0xff] }
  0x61   : > { %1088 = vmatpush1.bf16.msra.mxu0 %v1087_v29  ;;  %v477_v29 = vld [vmem:[%s1377_s25 + $0x5c0] sm:$0xff]  ;;  %v522_v19 = vld [vmem:[%s1377_s25 + $0x728] sm:$0xff] }
  0x62   : > { %1216 = vmatpush1.bf16.msra.mxu1 %v1215_v30  ;;  %1090 = vmatprep.subr.bf16.mxu0 %v1089_v31  ;;  %v481_v30 = vld [vmem:[%s1377_s25 + $0x5e0] sm:$0xff]  ;;  %v479_v31 = vld [vmem:[%s1377_s25 + $0x5d0] sm:$0xff]  ;;  %v1129_v24 = vpack.c.bf16 %v522_v19, %v518_v18 }
  0x63   : > { %1218 = vmatprep.subr.bf16.mxu1 %v1217_v35  ;;  %v490_v35 = vld [vmem:[%s1377_s25 + $0x628] sm:$0xff]  ;;  %v1111_v38 = vpack.c.bf16 %v481_v30, %v477_v29  ;;  %v1239_v39 = vpack.c.bf16 %v483_v33, %v479_v31  ;;  %v523_v29 = vld [vmem:[%s1377_s25 + $0x730] sm:$0xff]  ;;  %v532_v33 = vld [vmem:[%s1377_s25 + $0x778] sm:$0xff] }
  0x64   : > { %v1113_v40 = vpack.c.bf16 %v490_v35, %v486_v34  ;;  %v526_v30 = vld [vmem:[%s1377_s25 + $0x748] sm:$0xff]  ;;  %v849_v19 = vld [vmem:[%s1667_s2] sm:$0xf] (!%p1011_p7) }
  0x65   : > { %1092 = vmatpush1.bf16.msra.mxu0 %v1091_v41  ;;  %v485_v41 = vld [vmem:[%s1377_s25 + $0x600] sm:$0xff]  ;;  %v530_v31 = vld [vmem:[%s1377_s25 + $0x768] sm:$0xff] }
  0x66   : > { %1220 = vmatpush1.bf16.msra.mxu1 %v1219_v42  ;;  %1094 = vmatprep.subr.bf16.mxu0 %v1093_v43  ;;  %v489_v42 = vld [vmem:[%s1377_s25 + $0x620] sm:$0xff]  ;;  %v487_v43 = vld [vmem:[%s1377_s25 + $0x610] sm:$0xff]  ;;  %v1133_v36 = vpack.c.bf16 %v530_v31, %v526_v30 }
  0x67   : > { %1222 = vmatprep.subr.bf16.mxu1 %v1221_v47  ;;  %v498_v47 = vld [vmem:[%s1377_s25 + $0x668] sm:$0xff]  ;;  %v1115_v50 = vpack.c.bf16 %v489_v42, %v485_v41  ;;  %v1243_v51 = vpack.c.bf16 %v491_v45, %v487_v43  ;;  %v531_v41 = vld [vmem:[%s1377_s25 + $0x770] sm:$0xff]  ;;  %v540_v45 = vld [vmem:[%s1377_s25 + $0x7b8] sm:$0xff] }
  0x68   : > { %v1117_v52 = vpack.c.bf16 %v498_v47, %v494_v46  ;;  %v534_v42 = vld [vmem:[%s1377_s25 + $0x788] sm:$0xff] }
  0x69   : > { %1096 = vmatpush1.bf16.msra.mxu0 %v1095_v53  ;;  %v493_v53 = vld [vmem:[%s1377_s25 + $0x640] sm:$0xff]  ;;  %v538_v43 = vld [vmem:[%s1377_s25 + $0x7a8] sm:$0xff] }
  0x6a   : > { %1224 = vmatpush1.bf16.msra.mxu1 %v1223_v54  ;;  %1098 = vmatprep.subr.bf16.mxu0 %v1097_v55  ;;  %v497_v54 = vld [vmem:[%s1377_s25 + $0x660] sm:$0xff]  ;;  %v495_v55 = vld [vmem:[%s1377_s25 + $0x650] sm:$0xff]  ;;  %v1137_v48 = vpack.c.bf16 %v538_v43, %v534_v42 }
  0x6b   : > { %1226 = vmatprep.subr.bf16.mxu1 %v1225_v59  ;;  %v506_v59 = vld [vmem:[%s1377_s25 + $0x6a8] sm:$0xff]  ;;  %v1119_v62 = vpack.c.bf16 %v497_v54, %v493_v53  ;;  %v1247_v63 = vpack.c.bf16 %v499_v57, %v495_v55  ;;  %v539_v53 = vld [vmem:[%s1377_s25 + $0x7b0] sm:$0xff]  ;;  %v548_v57 = vld [vmem:[%s1377_s25 + $0x7f8] sm:$0xff] }
  0x6c   : > { %v1121_v0 = vpack.c.bf16 %v506_v59, %v502_v58  ;;  %v542_v54 = vld [vmem:[%s1377_s25 + $0x7c8] sm:$0xff] }
  0x6d   : > { %1100 = vmatpush1.bf16.msra.mxu0 %v1099_v1  ;;  %v501_v1 = vld [vmem:[%s1377_s25 + $0x680] sm:$0xff]  ;;  %v546_v55 = vld [vmem:[%s1377_s25 + $0x7e8] sm:$0xff] }
  0x6e   : > { %1228 = vmatpush1.bf16.msra.mxu1 %v1227_v2  ;;  %1102 = vmatprep.subr.bf16.mxu0 %v1101_v3  ;;  %v505_v2 = vld [vmem:[%s1377_s25 + $0x6a0] sm:$0xff]  ;;  %v503_v3 = vld [vmem:[%s1377_s25 + $0x690] sm:$0xff]  ;;  %v1141_v60 = vpack.c.bf16 %v546_v55, %v542_v54 }
  0x6f   : > { %1230 = vmatprep.subr.bf16.mxu1 %v1229_v7  ;;  %v514_v7 = vld [vmem:[%s1377_s25 + $0x6e8] sm:$0xff]  ;;  %v1123_v10 = vpack.c.bf16 %v505_v2, %v501_v1  ;;  %v1251_v11 = vpack.c.bf16 %v507_v5, %v503_v3  ;;  %v547_v1 = vld [vmem:[%s1377_s25 + $0x7f0] sm:$0xff]  ;;  %v285_v5 = vld [vmem:[#allocation2] sm:$0xff] }
  0x70   : > { %v1125_v12 = vpack.c.bf16 %v514_v7, %v510_v6  ;;  %v287_v6 = vld [vmem:[#allocation2 + $0x10] sm:$0xff]  ;;  %v286_v7 = vld [vmem:[#allocation2 + $0x8] sm:$0xff] }
  0x71   : > { %1104 = vmatpush1.bf16.msra.mxu0 %v1103_v13  ;;  %v509_v13 = vld [vmem:[%s1377_s25 + $0x6c0] sm:$0xff] }
  0x72   : > { %1232 = vmatpush1.bf16.msra.mxu1 %v1231_v15  ;;  %1106 = vmatprep.subr.bf16.mxu0 %v1105_v16  ;;  %v511_v15 = vld [vmem:[%s1377_s25 + $0x6d0] sm:$0xff]  ;;  %v1253_v16 = vpack.c.bf16 %v516_v9, %v512_v8  ;;  %v1127_v22 = vpack.c.bf16 %v513_v14, %v509_v13  ;;  %v288_v9 = vld [vmem:[#allocation2 + $0x18] sm:$0xff] }
  0x73   : > { %1234 = vmatprep.subr.bf16.mxu1 %v1233_v20  ;;  %v520_v20 = vld [vmem:[%s1377_s25 + $0x718] sm:$0xff]  ;;  %v1255_v23 = vpack.c.bf16 %v515_v17, %v511_v15  ;;  %v851_v17 = vlaneseq (!%p1011_p7) }
  0x75   : > { %1108 = vmatpush1.bf16.msra.mxu0 %v1107_v26  ;;  %v521_v26 = vld [vmem:[%s1377_s25 + $0x720] sm:$0xff]  ;;  %v852_v18 = vshrl.u32 (!%p1011_p7), %v851_v17, 7 }
  0x76   : > { %1236 = vmatpush1.bf16.msra.mxu1 %v1235_v27  ;;  %1110 = vmatprep.subr.bf16.mxu0 %v1109_v28  ;;  %v519_v27 = vld [vmem:[%s1377_s25 + $0x710] sm:$0xff]  ;;  %v1257_v28 = vpack.c.bf16 %v524_v21, %v520_v20  ;;  %v1131_v34 = vpack.c.bf16 %v521_v26, %v517_v25 }
  0x77   : > { %1238 = vmatprep.subr.bf16.mxu1 %v1237_v32  ;;  %v528_v32 = vld [vmem:[%s1377_s25 + $0x758] sm:$0xff]  ;;  %v1259_v35 = vpack.c.bf16 %v523_v29, %v519_v27  ;;  %v853_v21 = vsub.s32 (!%p1011_p7), 0, %v852_v18 }
  0x79   : > { %1112 = vmatpush1.bf16.msra.mxu0 %v1111_v38  ;;  %v529_v38 = vld [vmem:[%s1377_s25 + $0x760] sm:$0xff] }
  0x7a   : > { %1240 = vmatpush1.bf16.msra.mxu1 %v1239_v39  ;;  %1114 = vmatprep.subr.bf16.mxu0 %v1113_v40  ;;  %v527_v39 = vld [vmem:[%s1377_s25 + $0x750] sm:$0xff]  ;;  %v1261_v40 = vpack.c.bf16 %v532_v33, %v528_v32  ;;  %v1135_v46 = vpack.c.bf16 %v529_v38, %v525_v37 }
  0x7b   : > { %1242 = vmatprep.subr.bf16.mxu1 %v1241_v44  ;;  %v536_v44 = vld [vmem:[%s1377_s25 + $0x798] sm:$0xff]  ;;  %v1263_v47 = vpack.c.bf16 %v531_v41, %v527_v39 }
  0x7d   : > { %1116 = vmatpush1.bf16.msra.mxu0 %v1115_v50  ;;  %v537_v50 = vld [vmem:[%s1377_s25 + $0x7a0] sm:$0xff] }
  0x7e   : > { %1244 = vmatpush1.bf16.msra.mxu1 %v1243_v51  ;;  %1118 = vmatprep.subr.bf16.mxu0 %v1117_v52  ;;  %v535_v51 = vld [vmem:[%s1377_s25 + $0x790] sm:$0xff]  ;;  %v1265_v52 = vpack.c.bf16 %v540_v45, %v536_v44  ;;  %v1139_v58 = vpack.c.bf16 %v537_v50, %v533_v49 }
  0x7f   : > { %1246 = vmatprep.subr.bf16.mxu1 %v1245_v56  ;;  %v544_v56 = vld [vmem:[%s1377_s25 + $0x7d8] sm:$0xff]  ;;  %v1267_v59 = vpack.c.bf16 %v539_v53, %v535_v51 }
  0x81   : > { %1120 = vmatpush1.bf16.msra.mxu0 %v1119_v62  ;;  %v545_v62 = vld [vmem:[%s1377_s25 + $0x7e0] sm:$0xff] }
  0x82   : > { %1248 = vmatpush1.bf16.msra.mxu1 %v1247_v63  ;;  %1122 = vmatprep.subr.bf16.mxu0 %v1121_v0  ;;  %v1269_v63 = vpack.c.bf16 %v548_v57, %v544_v56  ;;  %v543_v0 = vld [vmem:[%s1377_s25 + $0x7d0] sm:$0xff]  ;;  %v1143_v2 = vpack.c.bf16 %v545_v62, %v541_v61 }
  0x83   : > { %1250 = vmatprep.subr.bf16.mxu1 %v1249_v4  ;;  %v1271_v3 = vpack.c.bf16 %v547_v1, %v543_v0  ;;  %v291_v4 = vld [vmem:[%s1372_s21 + $0x10] sm:$0xff] }
  0x85   : > { %1124 = vmatpush1.bf16.msra.mxu0 %v1123_v10 }
  0x86   : > { %1252 = vmatpush1.bf16.msra.mxu1 %v1251_v11  ;;  %1126 = vmatprep.subr.bf16.mxu0 %v1125_v12 }
  0x87   : > { %1254 = vmatprep.subr.bf16.mxu1 %v1253_v16 }
  0x89   : > { %1128 = vmatpush1.bf16.msra.mxu0 %v1127_v22  ;;  %v857_v22 = vsub.s32 (!%p1011_p7), 1, %v852_v18 }
  0x8a   : > { %1256 = vmatpush1.bf16.msra.mxu1 %v1255_v23  ;;  %1130 = vmatprep.subr.bf16.mxu0 %v1129_v24  ;;  %v861_v23 = vsub.s32 (!%p1011_p7), 2, %v852_v18  ;;  %v865_v24 = vsub.s32 (!%p1011_p7), 3, %v852_v18 }
  0x8b   : > { %1258 = vmatprep.subr.bf16.mxu1 %v1257_v28  ;;  %v854_v28 = vrot.slane (!%p1011_p7), %v849_v19, %v853_v21  ;;  %v858_v29 = vrot.slane (!%p1011_p7), %v849_v19, %v857_v22 }
  0x8c   : > { %v862_v30 = vrot.slane (!%p1011_p7), %v849_v19, %v861_v23  ;;  %v866_v31 = vrot.slane (!%p1011_p7), %v849_v19, %v865_v24 }
  0x8d   : > { %1132 = vmatpush1.bf16.msra.mxu0 %v1131_v34 }
  0x8e   : > { %1260 = vmatpush1.bf16.msra.mxu1 %v1259_v35  ;;  %1134 = vmatprep.subr.bf16.mxu0 %v1133_v36 }
  0x8f   : > { %1262 = vmatprep.subr.bf16.mxu1 %v1261_v40 }
  0x91   : > { %1136 = vmatpush1.bf16.msra.mxu0 %v1135_v46 }
  0x92   : > { %1264 = vmatpush1.bf16.msra.mxu1 %v1263_v47  ;;  %1138 = vmatprep.subr.bf16.mxu0 %v1137_v48 }
  0x93   : > { %1266 = vmatprep.subr.bf16.mxu1 %v1265_v52 }
  0x95   : > { %1140 = vmatpush1.bf16.msra.mxu0 %v1139_v58 }
  0x96   : > { %1268 = vmatpush1.bf16.msra.mxu1 %v1267_v59  ;;  %1142 = vmatprep.subr.bf16.mxu0 %v1141_v60 }
  0x97   : > { %1270 = vmatprep.subr.bf16.mxu1 %v1269_v63 }
  0x99   : > { %1144 = vmatpush1.bf16.msra.mxu0 %v1143_v2 }
  0x9a   : > { %1272 = vmatpush1.bf16.msra.mxu1 %v1271_v3 }
  0x9c   : > { %685 = vmatmul.mubr.f32.vlgmr.msra.gmra.mrb[0].mxu0 %v291_v4 }
  0x9d   : > { %827 = vmatmul.mubr.f32.vlgmr.msra.gmra.mrb[0].mxu1 %v291_v4 }
 0x16e   : > { %844 = sbr.rel (%p1011_p7) target bundleno = 385 (0x181), region = 40 }
 0x16f   : > { %v686_v8 = vpop.f32.mrb[0].mxu0 }
 0x170   : > { %v833_v10 = vadd.f32 %v686_v8, %v285_v5  ;;  %v828_v11 = vpop.f32.mrb[0].mxu1  ;;  %v688_v12 = vpop.f32.mrb[1].mxu0 }
 0x171   : > { %v835_v13 = vadd.f32 %v828_v11, %v287_v6  ;;  %v834_v14 = vadd.f32 %v688_v12, %v286_v7  ;;  %v830_v15 = vpop.f32.mrb[1].mxu1 }
 0x172   : > { %837 = vst [vmem:[#allocation2] sm:$0xff] %v833_v10  ;;  %v836_v16 = vadd.f32 %v830_v15, %v288_v9 }
 0x173   : > { %839 = vst [vmem:[#allocation2 + $0x10] sm:$0xff] %v835_v13  ;;  %838 = vst [vmem:[#allocation2 + $0x8] sm:$0xff] %v834_v14 }
 0x174   : > { %840 = vst [vmem:[#allocation2 + $0x18] sm:$0xff] %v836_v16 }
 0x179   : > { %v845_v20 = vld [vmem:[#allocation2] sm:$0xff] }
 0x17a   : > { %v846_v25 = vld [vmem:[#allocation2 + $0x8] sm:$0xff]  ;;  %v847_v26 = vld [vmem:[#allocation2 + $0x10] sm:$0xff]  ;;  %v871_v32 = vadd.f32 %v854_v28, %v845_v20 }
 0x17b   : > { %v848_v27 = vld [vmem:[#allocation2 + $0x18] sm:$0xff]  ;;  %v872_v33 = vadd.f32 %v858_v29, %v846_v25  ;;  %v873_v34 = vadd.f32 %v862_v30, %v847_v26 }
 0x17c   : > { %v874_v35 = vadd.f32 %v866_v31, %v848_v27  ;;  %v875_v36 = vmax.f32 %v871_v32, 0.0 }
 0x17d   : > { %v876_v37 = vmax.f32 %v872_v33, 0.0  ;;  %v877_v38 = vmax.f32 %v873_v34, 0.0 }
 0x17e   : > { %v878_v39 = vmax.f32 %v874_v35, 0.0  ;;  %879 = vst [vmem:[%s1668_s3] sm:$0xff] %v875_v36 }
 0x17f   : > { %880 = vst [vmem:[%s1668_s3 + $0x8] sm:$0xff] %v876_v37  ;;  %881 = vst [vmem:[%s1668_s3 + $0x10] sm:$0xff] %v877_v38 }
 0x180   : > { %882 = vst [vmem:[%s1668_s3 + $0x18] sm:$0xff] %v878_v39 }
 0x181 PF: > { %s13_s14 = sadd.s32 1, %s1324_s14   ;;  %s1669_s12 = smov %s1320_s13 }
 0x182   : > { %p10_p8 = scmp.ge.s32.totalorder %s13_s14, 11   ;;  %s1670_s13 = smov %s1672_s15 }
 0x184   :  { %12 = sbr.rel (!%p10_p8) target bundleno = 2 (0x2), region = 76 }

// kernel: encoder1_forward.11
= control target key start
LH: loop header
LB: loop body
LE: loop exit
PB: predicated region body
PF: predicated region fallthrough
CT: control target
= control target key end

     0   :  { %s850_s18 = smov 0   ;;  %s1053_s0 = inlined_call_operand.vmem [shape: f32[8,2048], index: 0, kind: input, shape index: {}]   ;;  %s1054_s1 = inlined_call_operand.vmem [shape: f32[2048,128], index: 1, kind: input, shape index: {}]   ;;  %s1055_s2 = inlined_call_operand.vmem [shape: f32[1,128], index: 2, kind: input, shape index: {}]   ;;  %s1056_s3 = inlined_call_operand.vmem [shape: f32[128,256], index: 3, kind: input, shape index: {}]   ;;  %s1057_s4 = inlined_call_operand.vmem [shape: f32[1,256], index: 4, kind: input, shape index: {}]   ;;  %s1058_s5 = inlined_call_operand.vmem [shape: f32[8,256], index: 5, kind: output, shape index: {}]  }
   0x1 LB: > { %s856_s19 = sadd.s32 4294967295, %s816_s18   ;;  %p624_p0 = scmp.ge.s32.totalorder %s816_s18, 1  ;;  %s816_s18 = sphi %s850_s18, %s15_s18  }
   0x2   : > { %p194_p1 = scmp.lt.s32.totalorder %s816_s18, 5 }
   0x4   : > { %p195_p2 = pnand %p624_p0, %p194_p1 }
   0x5   : > { %s625_s20 = sshll.u32 (!%p195_p2), %s856_s19, 2  ;;  %s627_s21 = sshll.u32 (!%p195_p2), %s856_s19, 6 }
   0x6   : > { %198 = sbr.rel (%p195_p2) target bundleno = 507 (0x1fb), region = 40  ;;  %p223_p3 = scmp.lt.s32.totalorder (!%p195_p2), %s625_s20, 15 }
   0x7   : > { %p229_p4 = scmp.lt.s32.totalorder (!%p195_p2), %s627_s21, 255  ;;  %p629_p5 = scmp.ne.s32.totalorder (!%p195_p2), %s856_s19, 0 }
   0xd   : > { %s1060_s20 = smov (!%p223_p3, %s625_s20), 15  ;;  %s1062_s21 = smov (!%p229_p4, %s627_s21), 255 }
   0xe   : > { %s626_s22 = sshll.u32 %s1060_s20, 3  ;;  %s628_s26 = sshll.u32 %s1062_s21, 3  ;;  %v818_v0 = vmov (!%p629_p5), 0.0  }
   0xf   : > { %s865_s25 = scalar_lea.vmem %s1053_s0, %s626_s22  ;;  %s870_s29 = scalar_lea.vmem %s1054_s1, %s628_s26  ;;  %238 = vst [vmem:[#allocation2] sm:$0xff] (!%p629_p5), %v818_v0 }
  0x10   : > { %237 = sbr.rel (%p629_p5) target bundleno = 23 (0x17), region = 44 }
  0x17 PF: > { %v260_v1 = vld [vmem:[%s870_s29 + $0x80] sm:$0xff]  ;;  %v261_v2 = vld [vmem:[%s870_s29 + $0x88] sm:$0xff]  ;;  %v262_v12 = vld [vmem:[%s870_s29 + $0x90] sm:$0xff]  ;;  %p630_p6 = scmp.ne.s32.totalorder %s856_s19, 3 }
  0x18   : > { %v292_v3 = vld [vmem:[%s870_s29 + $0x180] sm:$0xff]  ;;  %v704_v4 = vpack.c.bf16 %v261_v2, %v260_v1  ;;  %v293_v5 = vld [vmem:[%s870_s29 + $0x188] sm:$0xff]  ;;  %v263_v14 = vld [vmem:[%s870_s29 + $0x98] sm:$0xff] }
  0x19   : > { %v244_v6 = vld [vmem:[%s870_s29] sm:$0xff]  ;;  %v245_v7 = vld [vmem:[%s870_s29 + $0x8] sm:$0xff]  ;;  %v736_v8 = vpack.c.bf16 %v293_v5, %v292_v3  ;;  %v294_v15 = vld [vmem:[%s870_s29 + $0x190] sm:$0xff]  ;;  %v708_v17 = vpack.c.bf16 %v263_v14, %v262_v12 }
  0x1a   : > { %v706_v9 = vpack.c.bf16 %v245_v7, %v244_v6  ;;  %v276_v10 = vld [vmem:[%s870_s29 + $0x100] sm:$0xff]  ;;  %v277_v11 = vld [vmem:[%s870_s29 + $0x108] sm:$0xff]  ;;  %705 = vmatprep.subr.bf16.mxu0 %v704_v4  ;;  %v295_v16 = vld [vmem:[%s870_s29 + $0x198] sm:$0xff] }
  0x1b   : > { %v738_v13 = vpack.c.bf16 %v277_v11, %v276_v10  ;;  %737 = vmatprep.subr.bf16.mxu1 %v736_v8  ;;  %v740_v18 = vpack.c.bf16 %v295_v16, %v294_v15  ;;  %v246_v19 = vld [vmem:[%s870_s29 + $0x10] sm:$0xff]  ;;  %v247_v20 = vld [vmem:[%s870_s29 + $0x18] sm:$0xff]  ;;  %v264_v24 = vld [vmem:[%s870_s29 + $0xa0] sm:$0xff] }
  0x1c   : > { %707 = vmatpush3.bf16.msra.mxu0 %v706_v9  ;;  %v278_v21 = vld [vmem:[%s870_s29 + $0x110] sm:$0xff]  ;;  %v710_v22 = vpack.c.bf16 %v247_v20, %v246_v19  ;;  %v279_v23 = vld [vmem:[%s870_s29 + $0x118] sm:$0xff]  ;;  %v265_v25 = vld [vmem:[%s870_s29 + $0xa8] sm:$0xff] }
  0x1d   : > { %739 = vmatpush3.bf16.msra.mxu1 %v738_v13  ;;  %709 = vmatprep.subr.bf16.mxu0 %v708_v17  ;;  %v742_v26 = vpack.c.bf16 %v279_v23, %v278_v21  ;;  %v712_v27 = vpack.c.bf16 %v265_v25, %v264_v24  ;;  %v296_v28 = vld [vmem:[%s870_s29 + $0x1a0] sm:$0xff]  ;;  %v297_v29 = vld [vmem:[%s870_s29 + $0x1a8] sm:$0xff]  ;;  %v266_v36 = vld [vmem:[%s870_s29 + $0xb0] sm:$0xff] }
  0x1e   : > { %741 = vmatprep.subr.bf16.mxu1 %v740_v18  ;;  %v248_v30 = vld [vmem:[%s870_s29 + $0x20] sm:$0xff]  ;;  %v744_v31 = vpack.c.bf16 %v297_v29, %v296_v28  ;;  %v249_v32 = vld [vmem:[%s870_s29 + $0x28] sm:$0xff]  ;;  %v267_v37 = vld [vmem:[%s870_s29 + $0xb8] sm:$0xff] }
  0x1f   : > { %v280_v33 = vld [vmem:[%s870_s29 + $0x120] sm:$0xff]  ;;  %v281_v34 = vld [vmem:[%s870_s29 + $0x128] sm:$0xff]  ;;  %v714_v35 = vpack.c.bf16 %v249_v32, %v248_v30  ;;  %v298_v38 = vld [vmem:[%s870_s29 + $0x1b0] sm:$0xff]  ;;  %v716_v40 = vpack.c.bf16 %v267_v37, %v266_v36 }
  0x20   : > { %711 = vmatpush3.bf16.msra.mxu0 %v710_v22  ;;  %v746_v39 = vpack.c.bf16 %v281_v34, %v280_v33  ;;  %v299_v41 = vld [vmem:[%s870_s29 + $0x1b8] sm:$0xff]  ;;  %v250_v42 = vld [vmem:[%s870_s29 + $0x30] sm:$0xff]  ;;  %v268_v47 = vld [vmem:[%s870_s29 + $0xc0] sm:$0xff] }
  0x21   : > { %743 = vmatpush3.bf16.msra.mxu1 %v742_v26  ;;  %713 = vmatprep.subr.bf16.mxu0 %v712_v27  ;;  %v251_v43 = vld [vmem:[%s870_s29 + $0x38] sm:$0xff]  ;;  %v748_v44 = vpack.c.bf16 %v299_v41, %v298_v38  ;;  %v282_v45 = vld [vmem:[%s870_s29 + $0x130] sm:$0xff]  ;;  %v269_v48 = vld [vmem:[%s870_s29 + $0xc8] sm:$0xff] }
  0x22   : > { %745 = vmatprep.subr.bf16.mxu1 %v744_v31  ;;  %v283_v46 = vld [vmem:[%s870_s29 + $0x138] sm:$0xff]  ;;  %v300_v49 = vld [vmem:[%s870_s29 + $0x1c0] sm:$0xff]  ;;  %v301_v50 = vld [vmem:[%s870_s29 + $0x1c8] sm:$0xff]  ;;  %v718_v51 = vpack.c.bf16 %v251_v43, %v250_v42  ;;  %v720_v53 = vpack.c.bf16 %v269_v48, %v268_v47 }
  0x23   : > { %v750_v52 = vpack.c.bf16 %v283_v46, %v282_v45  ;;  %v252_v54 = vld [vmem:[%s870_s29 + $0x40] sm:$0xff]  ;;  %v253_v55 = vld [vmem:[%s870_s29 + $0x48] sm:$0xff]  ;;  %v752_v57 = vpack.c.bf16 %v301_v50, %v300_v49  ;;  %v270_v59 = vld [vmem:[%s870_s29 + $0xd0] sm:$0xff] }
  0x24   : > { %715 = vmatpush3.bf16.msra.mxu0 %v714_v35  ;;  %v284_v56 = vld [vmem:[%s870_s29 + $0x140] sm:$0xff]  ;;  %v285_v58 = vld [vmem:[%s870_s29 + $0x148] sm:$0xff]  ;;  %v271_v60 = vld [vmem:[%s870_s29 + $0xd8] sm:$0xff]  ;;  %v722_v63 = vpack.c.bf16 %v253_v55, %v252_v54 }
  0x25   : > { %747 = vmatpush3.bf16.msra.mxu1 %v746_v39  ;;  %717 = vmatprep.subr.bf16.mxu0 %v716_v40  ;;  %v302_v61 = vld [vmem:[%s870_s29 + $0x1d0] sm:$0xff]  ;;  %v303_v62 = vld [vmem:[%s870_s29 + $0x1d8] sm:$0xff]  ;;  %v754_v0 = vpack.c.bf16 %v285_v58, %v284_v56  ;;  %v724_v1 = vpack.c.bf16 %v271_v60, %v270_v59  ;;  %v272_v7 = vld [vmem:[%s870_s29 + $0xe0] sm:$0xff] }
  0x26   : > { %749 = vmatprep.subr.bf16.mxu1 %v748_v44  ;;  %v254_v2 = vld [vmem:[%s870_s29 + $0x50] sm:$0xff]  ;;  %v255_v3 = vld [vmem:[%s870_s29 + $0x58] sm:$0xff]  ;;  %v756_v5 = vpack.c.bf16 %v303_v62, %v302_v61  ;;  %v273_v8 = vld [vmem:[%s870_s29 + $0xe8] sm:$0xff] }
  0x27   : > { %v286_v4 = vld [vmem:[%s870_s29 + $0x150] sm:$0xff]  ;;  %v287_v6 = vld [vmem:[%s870_s29 + $0x158] sm:$0xff]  ;;  %v304_v9 = vld [vmem:[%s870_s29 + $0x1e0] sm:$0xff]  ;;  %v726_v11 = vpack.c.bf16 %v255_v3, %v254_v2  ;;  %v728_v15 = vpack.c.bf16 %v273_v8, %v272_v7 }
  0x28   : > { %719 = vmatpush3.bf16.msra.mxu0 %v718_v51  ;;  %v305_v10 = vld [vmem:[%s870_s29 + $0x1e8] sm:$0xff]  ;;  %v256_v12 = vld [vmem:[%s870_s29 + $0x60] sm:$0xff]  ;;  %v758_v14 = vpack.c.bf16 %v287_v6, %v286_v4  ;;  %v243_v18 = vld [vmem:[%s865_s25 + $0x18] sm:$0xff] }
  0x29   : > { %751 = vmatpush3.bf16.msra.mxu1 %v750_v52  ;;  %721 = vmatprep.subr.bf16.mxu0 %v720_v53  ;;  %v257_v13 = vld [vmem:[%s870_s29 + $0x68] sm:$0xff]  ;;  %v288_v16 = vld [vmem:[%s870_s29 + $0x160] sm:$0xff]  ;;  %v760_v19 = vpack.c.bf16 %v305_v10, %v304_v9  ;;  %v274_v21 = vld [vmem:[%s870_s29 + $0xf0] sm:$0xff]  ;;  %v819_v53 = vmov (!%p630_p6), 0.0  }
  0x2a   : > { %753 = vmatprep.subr.bf16.mxu1 %v752_v57  ;;  %v241_v17 = vld [vmem:[%s865_s25 + $0x8] sm:$0xff]  ;;  %v275_v22 = vld [vmem:[%s870_s29 + $0xf8] sm:$0xff]  ;;  %v306_v23 = vld [vmem:[%s870_s29 + $0x1f0] sm:$0xff]  ;;  %442 = vmatprep.mubr.f32.mxu1 %v243_v18  ;;  %v730_v25 = vpack.c.bf16 %v257_v13, %v256_v12 }
  0x2b   : > { %v289_v20 = vld [vmem:[%s870_s29 + $0x168] sm:$0xff]  ;;  %372 = vmatprep.mubr.f32.mxu0 %v241_v17  ;;  %v307_v24 = vld [vmem:[%s870_s29 + $0x1f8] sm:$0xff]  ;;  %v732_v27 = vpack.c.bf16 %v275_v22, %v274_v21  ;;  %v258_v28 = vld [vmem:[%s870_s29 + $0x70] sm:$0xff] }
  0x2c   : > { %723 = vmatpush3.bf16.msra.mxu0 %v722_v63  ;;  %v762_v26 = vpack.c.bf16 %v289_v20, %v288_v16  ;;  %v259_v29 = vld [vmem:[%s870_s29 + $0x78] sm:$0xff]  ;;  %v764_v30 = vpack.c.bf16 %v307_v24, %v306_v23  ;;  %v290_v31 = vld [vmem:[%s870_s29 + $0x170] sm:$0xff]  ;;  %v240_v35 = vld [vmem:[%s865_s25] sm:$0xff] }
  0x2d   : > { %755 = vmatpush3.bf16.msra.mxu1 %v754_v0  ;;  %725 = vmatprep.subr.bf16.mxu0 %v724_v1  ;;  %v291_v32 = vld [vmem:[%s870_s29 + $0x178] sm:$0xff]  ;;  %v734_v33 = vpack.c.bf16 %v259_v29, %v258_v28  ;;  %v242_v36 = vld [vmem:[%s865_s25 + $0x10] sm:$0xff]  ;;  %v239_v43 = vld [vmem:[#allocation2] sm:$0xff] }
  0x2e   : > { %757 = vmatprep.subr.bf16.mxu1 %v756_v5  ;;  %v766_v34 = vpack.c.bf16 %v291_v32, %v290_v31  ;;  %v465_v46 = vld [vmem:[%s1056_s3 + $0x8] sm:$0xff] (!%p630_p6)  ;;  %v467_v47 = vld [vmem:[%s1056_s3 + $0x18] sm:$0xff] (!%p630_p6)  ;;  %v464_v48 = vld [vmem:[%s1056_s3] sm:$0xff] (!%p630_p6) }
  0x2f   : > { %v768_v49 = vpack.c.bf16 (!%p630_p6), %v467_v47, %v465_v46  ;;  %v466_v50 = vld [vmem:[%s1056_s3 + $0x10] sm:$0xff] (!%p630_p6)  ;;  %v469_v51 = vld [vmem:[%s1056_s3 + $0x28] sm:$0xff] (!%p630_p6)  ;;  %v471_v52 = vld [vmem:[%s1056_s3 + $0x38] sm:$0xff] (!%p630_p6) }
  0x30   : > { %727 = vmatpush3.bf16.msra.mxu0 %v726_v11  ;;  %v770_v54 = vpack.c.bf16 (!%p630_p6), %v466_v50, %v464_v48  ;;  %v772_v55 = vpack.c.bf16 (!%p630_p6), %v471_v52, %v469_v51  ;;  %v468_v56 = vld [vmem:[%s1056_s3 + $0x20] sm:$0xff] (!%p630_p6)  ;;  %v470_v57 = vld [vmem:[%s1056_s3 + $0x30] sm:$0xff] (!%p630_p6)  ;;  %v473_v58 = vld [vmem:[%s1056_s3 + $0x48] sm:$0xff] (!%p630_p6) }
  0x31   : > { %759 = vmatpush3.bf16.msra.mxu1 %v758_v14  ;;  %729 = vmatprep.subr.bf16.mxu0 %v728_v15  ;;  %v475_v59 = vld [vmem:[%s1056_s3 + $0x58] sm:$0xff] (!%p630_p6)  ;;  %v774_v60 = vpack.c.bf16 (!%p630_p6), %v470_v57, %v468_v56  ;;  %v472_v62 = vld [vmem:[%s1056_s3 + $0x40] sm:$0xff] (!%p630_p6)  ;;  %v474_v63 = vld [vmem:[%s1056_s3 + $0x50] sm:$0xff] (!%p630_p6) }
  0x32   : > { %761 = vmatprep.subr.bf16.mxu1 %v760_v19  ;;  %v776_v61 = vpack.c.bf16 (!%p630_p6), %v475_v59, %v473_v58  ;;  %v477_v0 = vld [vmem:[%s1056_s3 + $0x68] sm:$0xff] (!%p630_p6)  ;;  %v479_v1 = vld [vmem:[%s1056_s3 + $0x78] sm:$0xff] (!%p630_p6)  ;;  %v778_v2 = vpack.c.bf16 (!%p630_p6), %v474_v63, %v472_v62  ;;  %v476_v4 = vld [vmem:[%s1056_s3 + $0x60] sm:$0xff] (!%p630_p6) }
  0x33   : > { %v780_v3 = vpack.c.bf16 (!%p630_p6), %v479_v1, %v477_v0  ;;  %v478_v5 = vld [vmem:[%s1056_s3 + $0x70] sm:$0xff] (!%p630_p6)  ;;  %v481_v6 = vld [vmem:[%s1056_s3 + $0x88] sm:$0xff] (!%p630_p6)  ;;  %v483_v7 = vld [vmem:[%s1056_s3 + $0x98] sm:$0xff] (!%p630_p6) }
  0x34   : > { %731 = vmatpush3.bf16.msra.mxu0 %v730_v25  ;;  %v782_v8 = vpack.c.bf16 (!%p630_p6), %v478_v5, %v476_v4  ;;  %v784_v9 = vpack.c.bf16 (!%p630_p6), %v483_v7, %v481_v6  ;;  %v480_v10 = vld [vmem:[%s1056_s3 + $0x80] sm:$0xff] (!%p630_p6)  ;;  %v482_v11 = vld [vmem:[%s1056_s3 + $0x90] sm:$0xff] (!%p630_p6)  ;;  %v485_v12 = vld [vmem:[%s1056_s3 + $0xa8] sm:$0xff] (!%p630_p6) }
  0x35   : > { %763 = vmatpush3.bf16.msra.mxu1 %v762_v26  ;;  %733 = vmatprep.subr.bf16.mxu0 %v732_v27  ;;  %v487_v13 = vld [vmem:[%s1056_s3 + $0xb8] sm:$0xff] (!%p630_p6)  ;;  %v786_v14 = vpack.c.bf16 (!%p630_p6), %v482_v11, %v480_v10  ;;  %v484_v16 = vld [vmem:[%s1056_s3 + $0xa0] sm:$0xff] (!%p630_p6)  ;;  %v486_v17 = vld [vmem:[%s1056_s3 + $0xb0] sm:$0xff] (!%p630_p6) }
  0x36   : > { %765 = vmatprep.subr.bf16.mxu1 %v764_v30  ;;  %v788_v15 = vpack.c.bf16 (!%p630_p6), %v487_v13, %v485_v12  ;;  %v489_v18 = vld [vmem:[%s1056_s3 + $0xc8] sm:$0xff] (!%p630_p6)  ;;  %v491_v19 = vld [vmem:[%s1056_s3 + $0xd8] sm:$0xff] (!%p630_p6)  ;;  %v790_v20 = vpack.c.bf16 (!%p630_p6), %v486_v17, %v484_v16  ;;  %v488_v22 = vld [vmem:[%s1056_s3 + $0xc0] sm:$0xff] (!%p630_p6) }
  0x37   : > { %v792_v21 = vpack.c.bf16 (!%p630_p6), %v491_v19, %v489_v18  ;;  %v490_v23 = vld [vmem:[%s1056_s3 + $0xd0] sm:$0xff] (!%p630_p6)  ;;  %v493_v24 = vld [vmem:[%s1056_s3 + $0xe8] sm:$0xff] (!%p630_p6)  ;;  %v495_v25 = vld [vmem:[%s1056_s3 + $0xf8] sm:$0xff] (!%p630_p6) }
  0x38   : > { %735 = vmatpush3.bf16.msra.mxu0 %v734_v33  ;;  %v794_v26 = vpack.c.bf16 (!%p630_p6), %v490_v23, %v488_v22  ;;  %v631_v28 = vld [vmem:[%s1055_s2] ss:$0 sm:$0xff] (!%p630_p6)  ;;  %v796_v29 = vpack.c.bf16 (!%p630_p6), %v495_v25, %v493_v24  ;;  %v494_v31 = vld [vmem:[%s1056_s3 + $0xf0] sm:$0xff] (!%p630_p6) }
  0x39   : > { %767 = vmatpush3.bf16.msra.mxu1 %v766_v34  ;;  %769 = vmatprep.subr.bf16.mxu0 (!%p630_p6), %v768_v49  ;;  %v492_v30 = vld [vmem:[%s1056_s3 + $0xe0] sm:$0xff] (!%p630_p6) }
  0x3a   : > { %v798_v33 = vpack.c.bf16 (!%p630_p6), %v494_v31, %v492_v30 }
  0x3b   : > { %373 = vmatmul.mubr.f32.vlgmr.msra.gmra.mrb[0].mxu0 %v240_v35  ;;  %v498_v35 = vlaneseq (!%p630_p6) }
  0x3c   : > { %443 = vmatmul.mubr.f32.vlgmr.msra.gmra.mrb[0].mxu1 %v242_v36  ;;  %572 = vmatprep.mubr.f32.mxu0 (!%p630_p6), %v819_v53 }
  0x3d   : > { %771 = vmatpush1.bf16.msra.mxu0 (!%p630_p6), %v770_v54  ;;  %v499_v36 = vshrl.u32 (!%p630_p6), %v498_v35, 7 }
  0x3e   : > { %773 = vmatprep.subr.bf16.mxu0 (!%p630_p6), %v772_v55 }
  0x41   : > { %775 = vmatpush1.bf16.msra.mxu0 (!%p630_p6), %v774_v60 }
  0x42   : > { %777 = vmatprep.subr.bf16.mxu0 (!%p630_p6), %v776_v61 }
  0x45   : > { %779 = vmatpush1.bf16.msra.mxu0 (!%p630_p6), %v778_v2 }
  0x46   : > { %781 = vmatprep.subr.bf16.mxu0 (!%p630_p6), %v780_v3 }
  0x49   : > { %783 = vmatpush1.bf16.msra.mxu0 (!%p630_p6), %v782_v8 }
  0x4a   : > { %785 = vmatprep.subr.bf16.mxu0 (!%p630_p6), %v784_v9 }
  0x4d   : > { %787 = vmatpush1.bf16.msra.mxu0 (!%p630_p6), %v786_v14 }
  0x4e   : > { %789 = vmatprep.subr.bf16.mxu0 (!%p630_p6), %v788_v15 }
  0x51   : > { %791 = vmatpush1.bf16.msra.mxu0 (!%p630_p6), %v790_v20 }
  0x52   : > { %793 = vmatprep.subr.bf16.mxu0 (!%p630_p6), %v792_v21 }
  0x55   : > { %795 = vmatpush1.bf16.msra.mxu0 (!%p630_p6), %v794_v26 }
  0x56   : > { %797 = vmatprep.subr.bf16.mxu0 (!%p630_p6), %v796_v29 }
  0x59   : > { %799 = vmatpush1.bf16.msra.mxu0 (!%p630_p6), %v798_v33 }
 0x10e   : > { %v666_v37 = vpop.f32.mrb[0].mxu0 }
 0x10f   : > { %v701_v38 = vpop.f32.mrb[0].mxu1  ;;  %v667_v39 = vpop.f32.mrb[1].mxu0 }
 0x110   : > { %v668_v40 = vadd.f32 %v667_v39, %v666_v37  ;;  %v702_v41 = vpop.f32.mrb[1].mxu1  ;;  %v500_v37 = vsub.s32 (!%p630_p6), 0, %v499_v36  ;;  %v504_v39 = vsub.s32 (!%p630_p6), 1, %v499_v36 }
 0x111   : > { %v703_v42 = vadd.f32 %v702_v41, %v701_v38  ;;  %453 = sbr.rel (%p630_p6) target bundleno = 507 (0x1fb), region = 48  ;;  %v496_v38 = vld [vmem:[%s1057_s4] sm:$0x3] (!%p630_p6) }
 0x112   : > { %v505_v41 = vrot.slane (!%p630_p6), %v496_v38, %v504_v39 }
 0x113   : > { %v445_v44 = vadd.f32 %v703_v42, %v668_v40  ;;  %v501_v40 = vrot.slane (!%p630_p6), %v496_v38, %v500_v37 }
 0x115   : > { %v448_v45 = vadd.f32 %v445_v44, %v239_v43 }
 0x117   : > { %449 = vst [vmem:[#allocation2] sm:$0xff] %v448_v45 }
 0x11e   : > { %v454_v27 = vld [vmem:[#allocation2] sm:$0xff] }
 0x11f   : > { %v462_v32 = vadd.f32 %v631_v28, %v454_v27 }
 0x121   : > { %v463_v34 = vmax.f32 %v462_v32, 0.0 }
 0x123   : > { %573 = vmatmul.mubr.f32.vlgmr.msra.gmra.mrb[0].mxu0 %v463_v34 }
 0x1f6   : > { %v574_v42 = vpop.f32.mrb[0].mxu0 }
 0x1f7   : > { %v575_v43 = vadd.f32 %v574_v42, %v501_v40  ;;  %v576_v44 = vpop.f32.mrb[1].mxu0 }
 0x1f8   : > { %v577_v45 = vadd.f32 %v576_v44, %v505_v41 }
 0x1f9   : > { %579 = vst [vmem:[%s1058_s5] sm:$0xff] %v575_v43 }
 0x1fa   : > { %580 = vst [vmem:[%s1058_s5 + $0x8] sm:$0xff] %v577_v45 }
 0x1fb PF: > { %s15_s18 = sadd.s32 1, %s816_s18  }
 0x1fc   : > { %p12_p7 = scmp.ge.s32.totalorder %s15_s18, 6  }
 0x1fe   :  { %14 = sbr.rel (!%p12_p7) target bundleno = 1 (0x1), region = 77 }

</bundles_post_ra>
